<compile_context>
chip_gen: v6e
topology: v6e:2x2x1
jax: 0.10.0
libtpu: 0.0.40
codegen_flags: <defaults>
</compile_context>

<pallas_src>
import functools

import jax
import jax.numpy as jnp
from jax.experimental import pallas as pl
from jax.experimental.pallas import tpu as pltpu


# --------------------------------------------------------------------------
# Pallas kernels
# --------------------------------------------------------------------------
def _fused_1x1_stem_kernel(x_ref, w_ref, b_ref, o_ref, *, n_relu, compute_dtype):
    """(tm, Cin) x (Cin, Cout_total) matmul; bias+ReLU only on the first n_relu lanes."""
    x = x_ref[...].astype(compute_dtype)      # cast in VMEM, no wrapper-side HBM copy
    z = jnp.dot(x, w_ref[...], preferred_element_type=jnp.float32) + b_ref[...]
    if n_relu >= z.shape[-1]:
        y = jnp.maximum(z, 0.0)
    else:
        lane = jax.lax.broadcasted_iota(jnp.int32, z.shape, 1)
        y = jnp.where(lane < n_relu, jnp.maximum(z, 0.0), z)
    o_ref[...] = y.astype(o_ref.dtype)


def _conv_kxk_kernel(x_ref, w_ref, b_ref, o_ref, *, K, W, Wp, th):
    """KxK 'same' conv (+bias+ReLU) for one row tile of one image.

    x_ref: (1, (Hp+1)*Wp, Cin) zero-padded image flattened over (rows, cols)
    w_ref: (K*K, Cin, Cout) BN-scale-folded weights
    b_ref: (1, Cout) f32 folded BN bias
    o_ref: (1, th, W, Cout) output row tile

    Each tap is a contiguous offset slice of the flat slab (over-computing the
    Wp-W horizontal pad columns, dropped at the store).  Partial matmuls
    accumulate in a jnp value; the output is written exactly once.
    """
    r = pl.program_id(1)
    rows = th * Wp
    base = r * rows
    if rows % 8 == 0:
        base = pl.multiple_of(base, 8)
    acc = None
    for dy in range(K):
        for dx in range(K):
            patch = x_ref[0, pl.ds(base + dy * Wp + dx, rows), :]
            part = jnp.dot(patch, w_ref[dy * K + dx],
                           preferred_element_type=jnp.float32)
            acc = part if acc is None else acc + part           # first tap inits
    y = jnp.maximum(acc + b_ref[...], 0.0).astype(o_ref.dtype)  # (th*Wp, Cout)
    for h in range(th):                  # drop the over-computed pad columns
        o_ref[0, h] = y[h * Wp:h * Wp + W, :]


# --------------------------------------------------------------------------
# Wrappers around pallas_call
# --------------------------------------------------------------------------
def _round_up(x, m):
    return (x + m - 1) // m * m


def _row_tiling(M, max_tile=1024):
    """Row tile (multiple of 8) and padded row count for the 1x1 stem."""
    if M <= max_tile:
        t = _round_up(M, 8)
        return t, t
    for t in range(max_tile - max_tile % 8, 7, -8):   # largest mult-of-8 divisor
        if M % t == 0:
            return t, M
    return max_tile, _round_up(M, max_tile)


def _pick_row_tile(H, Wp, max_rows=512):
    """Largest divisor of H whose flat tile (th*Wp rows) stays small enough
    for in-vreg accumulation."""
    best = 1
    for th in range(1, H + 1):
        if H % th == 0 and th * Wp <= max_rows:
            best = th
    return best


def fused_conv1x1_stem(x, branches, n_relu_splits, compute_dtype):
    """All 1x1 BasicConv2d's reading x -> ONE lane-dense matmul kernel.

    branches: sequence of (w_hwio (1,1,Cin,Ci), bn_scale, bn_bias).  The first
    n_relu_splits branches get bias+ReLU in-kernel; the rest are emitted linear
    (BN scale folded, bias/ReLU deferred to the caller).
    Returns (out (N,H,W,sum(Ci)), [(offset, Ci), ...]).
    """
    N, H, W, Cin = x.shape
    widths = [int(w.shape[-1]) for w, _, _ in branches]
    wm = jnp.concatenate(
        [(w.reshape(Cin, -1) * s) for w, s, _ in branches], axis=-1
    ).astype(compute_dtype)                                    # fold BN scale
    bias = jnp.concatenate(
        [b if i < n_relu_splits else jnp.zeros_like(b)
         for i, (_, _, b) in enumerate(branches)]).astype(jnp.float32)
    Cout = int(wm.shape[-1])
    n_relu = int(sum(widths[:n_relu_splits]))

    M = N * H * W
    xm = x.reshape(M, Cin)                      # native dtype; cast in-kernel
    tm, Mp = _row_tiling(M)
    if Mp != M:
        xm = jnp.pad(xm, ((0, Mp - M), (0, 0)))

    out = pl.pallas_call(
        functools.partial(_fused_1x1_stem_kernel, n_relu=n_relu,
                          compute_dtype=compute_dtype),
        out_shape=jax.ShapeDtypeStruct((Mp, Cout), compute_dtype),
        grid=(Mp // tm,),
        in_specs=[
            pl.BlockSpec((tm, Cin), lambda i: (i, 0)),
            pl.BlockSpec((Cin, Cout), lambda i: (0, 0)),
            pl.BlockSpec((1, Cout), lambda i: (0, 0)),
        ],
        out_specs=pl.BlockSpec((tm, Cout), lambda i: (i, 0)),
        compiler_params=pltpu.CompilerParams(
            dimension_semantics=("parallel",)),
    )(xm, wm, bias.reshape(1, Cout))
    out = out[:M].reshape(N, H, W, Cout)

    offsets, off = [], 0
    for c in widths:
        offsets.append((off, c))
        off += c
    return out, offsets


def conv_kxk_bn_relu(x, w_hwio, scale, bias, compute_dtype):
    """KxK 'same' BasicConv2d: conv(no bias) + BN(eval) + ReLU, one kernel."""
    N, H, W, Cin = x.shape
    K = int(w_hwio.shape[0])
    Cout = int(w_hwio.shape[-1])
    pad = (K - 1) // 2
    Hp, Wp = H + 2 * pad, W + 2 * pad

    w = (w_hwio * scale).reshape(K * K, Cin, Cout).astype(compute_dtype)
    b = bias.astype(jnp.float32).reshape(1, Cout)

    # TODO(synk): the explicit zero-pad is one extra HBM round trip per conv
    # input; a fully fused pipeline would have the producing kernel emit a
    # pre-padded buffer.  One extra bottom row keeps the last row tile's flat
    # shifted taps in bounds (it only feeds dropped pad columns).
    xp = jnp.pad(x.astype(compute_dtype),
                 ((0, 0), (pad, pad + 1), (pad, pad), (0, 0)))
    L = (Hp + 1) * Wp
    xflat = xp.reshape(N, L, Cin)

    th = _pick_row_tile(H, Wp)
    R = H // th

    ym = pl.pallas_call(
        functools.partial(_conv_kxk_kernel, K=K, W=W, Wp=Wp, th=th),
        out_shape=jax.ShapeDtypeStruct((N, H, W, Cout), compute_dtype),
        grid=(N, R),
        in_specs=[
            pl.BlockSpec((1, L, Cin), lambda n, r: (n, 0, 0)),   # resident across r
            pl.BlockSpec((K * K, Cin, Cout), lambda n, r: (0, 0, 0)),
            pl.BlockSpec((1, Cout), lambda n, r: (0, 0)),
        ],
        out_specs=pl.BlockSpec((1, th, W, Cout), lambda n, r: (n, r, 0, 0)),
        compiler_params=pltpu.CompilerParams(
            dimension_semantics=("parallel", "parallel")),
    )(xflat, w, b)
    return ym


# --------------------------------------------------------------------------
# InceptionA forward (NCHW in / NCHW out, like the PyTorch module)
# --------------------------------------------------------------------------
def inception_a(x_nchw, params, compute_dtype=jnp.bfloat16):
    # TODO(synk): a multi-block pipeline should stay NHWC between blocks; the
    # two transposes + final concat are kept only to match the NCHW interface.
    x = jnp.transpose(x_nchw, (0, 2, 3, 1))  # -> NHWC

    # Fused 1x1 stem: branch1x1(64) | branch5x5_1(48) | branch3x3dbl_1(64) get
    # bias+ReLU; branch_pool's 1x1 is folded in *linear* (avg-pool commutes with
    # a linear 1x1 conv; its bias/ReLU are applied after the pool below).
    stem, offs = fused_conv1x1_stem(
        x,
        (params["branch1x1"], params["branch5x5_1"], params["branch3x3dbl_1"],
         params["branch_pool"]),
        n_relu_splits=3, compute_dtype=compute_dtype)
    (o1, c1), (o5, c5), (o3, c3), (opf, cpf) = offs

    b1x1 = stem[..., o1:o1 + c1]

    b5 = conv_kxk_bn_relu(stem[..., o5:o5 + c5], *params["branch5x5_2"],
                          compute_dtype=compute_dtype)

    b3 = conv_kxk_bn_relu(stem[..., o3:o3 + c3], *params["branch3x3dbl_2"],
                          compute_dtype=compute_dtype)
    b3 = conv_kxk_bn_relu(b3, *params["branch3x3dbl_3"],
                          compute_dtype=compute_dtype)

    # branch_pool: 3x3/9 average (count_include_pad=True) + deferred BN bias +
    # ReLU on the P-wide linear stem split, as the same KxK kernel with eye(P)/9.
    _, _, bp_bias = params["branch_pool"]
    P = cpf
    eye_w = jnp.broadcast_to((jnp.eye(P, dtype=jnp.float32) / 9.0)[None, None],
                             (3, 3, P, P))
    bp = conv_kxk_bn_relu(stem[..., opf:opf + cpf], eye_w,
                          jnp.ones((P,), jnp.float32), bp_bias,
                          compute_dtype=compute_dtype)

    # TODO(synk): writing each branch straight into the concatenated buffer
    # needs 128-aligned channel offsets (64/112/... are not), so the final
    # channel concat stays in XLA.
    out = jnp.concatenate([b1x1, b5, b3, bp], axis=-1)
    return jnp.transpose(out, (0, 3, 1, 2)).astype(x_nchw.dtype)  # -> NCHW


# --------------------------------------------------------------------------
# Deterministic synthetic parameters (BN folded: inference semantics)
# --------------------------------------------------------------------------
def _conv_bn_params(key, cin, cout, k):
    kw, kg, kb, km, kv = jax.random.split(key, 5)
    w = 0.1 * jax.random.normal(kw, (k, k, cin, cout), jnp.float32)  # HWIO
    gamma = 1.0 + 0.1 * jax.random.normal(kg, (cout,), jnp.float32)
    beta = 0.1 * jax.random.normal(kb, (cout,), jnp.float32)
    mean = 0.1 * jax.random.normal(km, (cout,), jnp.float32)
    var = jax.random.uniform(kv, (cout,), jnp.float32, minval=0.5, maxval=1.5)
    scale = gamma * jax.lax.rsqrt(var + 1e-3)  # BatchNorm eps = 0.001
    bias = beta - mean * scale
    return (w, scale, bias)


def init_params(key, in_channels, pool_features):
    ks = jax.random.split(key, 7)
    return {
        "branch1x1":      _conv_bn_params(ks[0], in_channels, 64, 1),
        "branch5x5_1":    _conv_bn_params(ks[1], in_channels, 48, 1),
        "branch5x5_2":    _conv_bn_params(ks[2], 48, 64, 5),
        "branch3x3dbl_1": _conv_bn_params(ks[3], in_channels, 64, 1),
        "branch3x3dbl_2": _conv_bn_params(ks[4], 64, 96, 3),
        "branch3x3dbl_3": _conv_bn_params(ks[5], 96, 96, 3),
        "branch_pool":    _conv_bn_params(ks[6], in_channels, pool_features, 1),
    }


# --------------------------------------------------------------------------
# Pure-JAX reference for correctness checking
# --------------------------------------------------------------------------
def _conv_bn_relu_ref(x, w, scale, bias, padding):
    y = jax.lax.conv_general_dilated(
        x, w, window_strides=(1, 1),
        padding=[(padding, padding), (padding, padding)],
        dimension_numbers=("NHWC", "HWIO", "NHWC"))
    return jnp.maximum(y * scale + bias, 0.0)


def _avgpool_ref(x):
    s = jax.lax.reduce_window(x, 0.0, jax.lax.add, (1, 3, 3, 1), (1, 1, 1, 1),
                              [(0, 0), (1, 1), (1, 1), (0, 0)])
    return s / 9.0


def inception_a_ref(x_nchw, params):
    x = jnp.transpose(x_nchw, (0, 2, 3, 1))
    b1 = _conv_bn_relu_ref(x, *params["branch1x1"], padding=0)
    b5 = _conv_bn_relu_ref(x, *params["branch5x5_1"], padding=0)
    b5 = _conv_bn_relu_ref(b5, *params["branch5x5_2"], padding=2)
    b3 = _conv_bn_relu_ref(x, *params["branch3x3dbl_1"], padding=0)
    b3 = _conv_bn_relu_ref(b3, *params["branch3x3dbl_2"], padding=1)
    b3 = _conv_bn_relu_ref(b3, *params["branch3x3dbl_3"], padding=1)
    bp = _avgpool_ref(x)
    bp = _conv_bn_relu_ref(bp, *params["branch_pool"], padding=0)
    out = jnp.concatenate([b1, b5, b3, bp], axis=-1)
    return jnp.transpose(out, (0, 3, 1, 2))


# --------------------------------------------------------------------------
if __name__ == "__main__":
    key = jax.random.PRNGKey(0)
    kx, kp = jax.random.split(key)

    N, Cin, H, W = 2, 8, 8, 8
    pool_features = 8
    x = jax.random.normal(kx, (N, Cin, H, W), jnp.float32)  # NCHW like PyTorch
    params = init_params(kp, Cin, pool_features)

    ref = jax.block_until_ready(inception_a_ref(x, params))
    out_channels = 64 + 64 + 96 + pool_features

    # f32 compute path (tight check).
    fwd_f32 = jax.jit(functools.partial(inception_a, compute_dtype=jnp.float32))
    out_f32 = jax.block_until_ready(fwd_f32(x, params))
    assert out_f32.shape == (N, out_channels, H, W), out_f32.shape
    assert bool(jnp.all(jnp.isfinite(out_f32)))
    assert bool(jnp.allclose(out_f32, ref, atol=5e-2, rtol=5e-2)), (
        float(jnp.max(jnp.abs(out_f32 - ref))))

    # Default bf16 MXU-input path (f32 accumulate / epilogue; looser check).
    fwd = jax.jit(inception_a)
    out = jax.block_until_ready(fwd(x, params))
    assert out.shape == (N, out_channels, H, W), out.shape
    assert bool(jnp.all(jnp.isfinite(out)))
    assert bool(jnp.allclose(out, ref, atol=1e-1, rtol=1e-1)), (
        float(jnp.max(jnp.abs(out - ref))))

    print("KERNEL_OK")
</pallas_src>

<mosaic_0001>
module attributes {stable_mosaic.version = 11 : i64} {
  func.func @_fused_1x1_stem_kernel(%arg0: i32, %arg1: memref<128x8xf32, #tpu.memory_space<vmem>>, %arg2: memref<8x184xf32, #tpu.memory_space<vmem>>, %arg3: memref<1x184xf32, #tpu.memory_space<vmem>>, %arg4: memref<128x184xf32, #tpu.memory_space<vmem>>) attributes {dimension_semantics = [#tpu.dimension_semantics<parallel>], iteration_bounds = array<i64: 1>, scalar_prefetch = 0 : i64, scratch_operands = 0 : i64, tpu.core_type = #tpu.core_type<tc>, window_params = [{transform_indices = @transform_0, window_bounds = array<i64: 128, 8>}, {pipeline_mode = #tpu.pipeline_mode<synchronous>, transform_indices = @transform_1, window_bounds = array<i64: 8, 184>}, {pipeline_mode = #tpu.pipeline_mode<synchronous>, transform_indices = @transform_2, window_bounds = array<i64: 1, 184>}, {transform_indices = @transform_3, window_bounds = array<i64: 128, 184>}]} {
    %c0 = arith.constant 0 : index
    %c0_0 = arith.constant 0 : index
    %0 = vector.load %arg1[%c0, %c0_0] : memref<128x8xf32, #tpu.memory_space<vmem>>, vector<128x8xf32>
    %c0_1 = arith.constant 0 : index
    %c0_2 = arith.constant 0 : index
    %1 = vector.load %arg2[%c0_1, %c0_2] : memref<8x184xf32, #tpu.memory_space<vmem>>, vector<8x184xf32>
    %cst = arith.constant dense<0.000000e+00> : vector<128x184xf32>
    %2 = tpu.matmul %0, %1, %cst {dimension_numbers = #tpu.dot_dimension_numbers<[1], [0], [0], [1], [0, 0, 1, 1], [], []>} : vector<128x8xf32>, vector<8x184xf32>, vector<128x184xf32> -> vector<128x184xf32>
    %c0_3 = arith.constant 0 : index
    %c0_4 = arith.constant 0 : index
    %3 = vector.load %arg3[%c0_3, %c0_4] : memref<1x184xf32, #tpu.memory_space<vmem>>, vector<1x184xf32>
    %4 = vector.broadcast %3 : vector<1x184xf32> to vector<128x184xf32>
    %5 = arith.addf %2, %4 : vector<128x184xf32>
    %6 = tpu.iota {dimensions = array<i32: 1>} : vector<128x184xi32>
    %c176_i32 = arith.constant 176 : i32
    %7 = vector.broadcast %c176_i32 : i32 to vector<128x184xi32>
    %8 = arith.cmpi slt, %6, %7 : vector<128x184xi32>
    %cst_5 = arith.constant 0.000000e+00 : f32
    %9 = vector.broadcast %cst_5 : f32 to vector<128x184xf32>
    %10 = arith.maximumf %5, %9 : vector<128x184xf32>
    %11 = arith.select %8, %10, %5 : vector<128x184xi1>, vector<128x184xf32>
    %c0_6 = arith.constant 0 : index
    %c0_7 = arith.constant 0 : index
    %12 = vector.load %arg4[%c0_6, %c0_7] : memref<128x184xf32, #tpu.memory_space<vmem>>, vector<128x184xf32>
    tpu.vector_store %arg4[%c0_6, %c0_7], %11 {strides = array<i32>} : memref<128x184xf32, #tpu.memory_space<vmem>>, vector<128x184xf32>,
    return
  }
  func.func @transform_0(%arg0: i32) -> (i32, i32) {
    %c0_i32 = arith.constant 0 : i32
    %c0_i32_0 = arith.constant 0 : i32
    return %arg0, %c0_i32 : i32, i32
  }
  func.func @transform_1(%arg0: i32) -> (i32, i32) {
    %c0_i32 = arith.constant 0 : i32
    %c0_i32_0 = arith.constant 0 : i32
    %c0_i32_1 = arith.constant 0 : i32
    return %c0_i32, %c0_i32_0 : i32, i32
  }
  func.func @transform_2(%arg0: i32) -> (i32, i32) {
    %c0_i32 = arith.constant 0 : i32
    %c0_i32_0 = arith.constant 0 : i32
    %c0_i32_1 = arith.constant 0 : i32
    return %c0_i32, %c0_i32_0 : i32, i32
  }
  func.func @transform_3(%arg0: i32) -> (i32, i32) {
    %c0_i32 = arith.constant 0 : i32
    %c0_i32_0 = arith.constant 0 : i32
    return %arg0, %c0_i32 : i32, i32
  }
}

module attributes {stable_mosaic.version = 11 : i64} {
  func.func @_conv_kxk_kernel(%arg0: i32, %arg1: i32, %arg2: memref<1x110x8xf32, #tpu.memory_space<vmem>>, %arg3: memref<9x8x8xf32, #tpu.memory_space<vmem>>, %arg4: memref<1x8xf32, #tpu.memory_space<vmem>>, %arg5: memref<1x8x8x8xf32, #tpu.memory_space<vmem>>) attributes {dimension_semantics = [#tpu.dimension_semantics<parallel>, #tpu.dimension_semantics<parallel>], iteration_bounds = array<i64: 2, 1>, scalar_prefetch = 0 : i64, scratch_operands = 0 : i64, tpu.core_type = #tpu.core_type<tc>, window_params = [{transform_indices = @transform_0, window_bounds = array<i64: 1, 110, 8>}, {pipeline_mode = #tpu.pipeline_mode<synchronous>, transform_indices = @transform_1, window_bounds = array<i64: 9, 8, 8>}, {pipeline_mode = #tpu.pipeline_mode<synchronous>, transform_indices = @transform_2, window_bounds = array<i64: 1, 8>}, {transform_indices = @transform_3, window_bounds = array<i64: 1, 8, 8, 8>}]} {
    %c80_i32 = arith.constant 80 : i32
    %0 = arith.muli %arg1, %c80_i32 : i32
    %1 = tpu.assume_multiple %0, 8 : i32
    %c0_i32 = arith.constant 0 : i32
    %2 = arith.addi %1, %c0_i32 : i32
    %c0_i32_0 = arith.constant 0 : i32
    %3 = arith.addi %2, %c0_i32_0 : i32
    %c0 = arith.constant 0 : index
    %4 = arith.index_cast %3 : i32 to index
    %c0_1 = arith.constant 0 : index
    %5 = vector.load %arg2[%c0, %4, %c0_1] : memref<1x110x8xf32, #tpu.memory_space<vmem>>, vector<1x80x8xf32>
    %6 = vector.shape_cast %5 : vector<1x80x8xf32> to vector<80x8xf32>
    %c0_2 = arith.constant 0 : index
    %c0_3 = arith.constant 0 : index
    %c0_4 = arith.constant 0 : index
    %7 = vector.load %arg3[%c0_2, %c0_3, %c0_4] : memref<9x8x8xf32, #tpu.memory_space<vmem>>, vector<1x8x8xf32>
    %8 = vector.shape_cast %7 : vector<1x8x8xf32> to vector<8x8xf32>
    %cst = arith.constant dense<0.000000e+00> : vector<80x8xf32>
    %9 = tpu.matmul %6, %8, %cst {dimension_numbers = #tpu.dot_dimension_numbers<[1], [0], [0], [1], [0, 0, 1, 1], [], []>} : vector<80x8xf32>, vector<8x8xf32>, vector<80x8xf32> -> vector<80x8xf32>
    %c0_i32_5 = arith.constant 0 : i32
    %10 = arith.addi %1, %c0_i32_5 : i32
    %c1_i32 = arith.constant 1 : i32
    %11 = arith.addi %10, %c1_i32 : i32
    %c0_6 = arith.constant 0 : index
    %12 = arith.index_cast %11 : i32 to index
    %c0_7 = arith.constant 0 : index
    %13 = vector.load %arg2[%c0_6, %12, %c0_7] : memref<1x110x8xf32, #tpu.memory_space<vmem>>, vector<1x80x8xf32>
    %14 = vector.shape_cast %13 : vector<1x80x8xf32> to vector<80x8xf32>
    %c1 = arith.constant 1 : index
    %c0_8 = arith.constant 0 : index
    %c0_9 = arith.constant 0 : index
    %15 = vector.load %arg3[%c1, %c0_8, %c0_9] : memref<9x8x8xf32, #tpu.memory_space<vmem>>, vector<1x8x8xf32>
    %16 = vector.shape_cast %15 : vector<1x8x8xf32> to vector<8x8xf32>
    %cst_10 = arith.constant dense<0.000000e+00> : vector<80x8xf32>
    %17 = tpu.matmul %14, %16, %cst_10 {dimension_numbers = #tpu.dot_dimension_numbers<[1], [0], [0], [1], [0, 0, 1, 1], [], []>} : vector<80x8xf32>, vector<8x8xf32>, vector<80x8xf32> -> vector<80x8xf32>
    %18 = arith.addf %9, %17 : vector<80x8xf32>
    %c0_i32_11 = arith.constant 0 : i32
    %19 = arith.addi %1, %c0_i32_11 : i32
    %c2_i32 = arith.constant 2 : i32
    %20 = arith.addi %19, %c2_i32 : i32
    %c0_12 = arith.constant 0 : index
    %21 = arith.index_cast %20 : i32 to index
    %c0_13 = arith.constant 0 : index
    %22 = vector.load %arg2[%c0_12, %21, %c0_13] : memref<1x110x8xf32, #tpu.memory_space<vmem>>, vector<1x80x8xf32>
    %23 = vector.shape_cast %22 : vector<1x80x8xf32> to vector<80x8xf32>
    %c2 = arith.constant 2 : index
    %c0_14 = arith.constant 0 : index
    %c0_15 = arith.constant 0 : index
    %24 = vector.load %arg3[%c2, %c0_14, %c0_15] : memref<9x8x8xf32, #tpu.memory_space<vmem>>, vector<1x8x8xf32>
    %25 = vector.shape_cast %24 : vector<1x8x8xf32> to vector<8x8xf32>
    %cst_16 = arith.constant dense<0.000000e+00> : vector<80x8xf32>
    %26 = tpu.matmul %23, %25, %cst_16 {dimension_numbers = #tpu.dot_dimension_numbers<[1], [0], [0], [1], [0, 0, 1, 1], [], []>} : vector<80x8xf32>, vector<8x8xf32>, vector<80x8xf32> -> vector<80x8xf32>
    %27 = arith.addf %18, %26 : vector<80x8xf32>
    %c10_i32 = arith.constant 10 : i32
    %28 = arith.addi %1, %c10_i32 : i32
    %c0_i32_17 = arith.constant 0 : i32
    %29 = arith.addi %28, %c0_i32_17 : i32
    %c0_18 = arith.constant 0 : index
    %30 = arith.index_cast %29 : i32 to index
    %c0_19 = arith.constant 0 : index
    %31 = vector.load %arg2[%c0_18, %30, %c0_19] : memref<1x110x8xf32, #tpu.memory_space<vmem>>, vector<1x80x8xf32>
    %32 = vector.shape_cast %31 : vector<1x80x8xf32> to vector<80x8xf32>
    %c3 = arith.constant 3 : index
    %c0_20 = arith.constant 0 : index
    %c0_21 = arith.constant 0 : index
    %33 = vector.load %arg3[%c3, %c0_20, %c0_21] : memref<9x8x8xf32, #tpu.memory_space<vmem>>, vector<1x8x8xf32>
    %34 = vector.shape_cast %33 : vector<1x8x8xf32> to vector<8x8xf32>
    %cst_22 = arith.constant dense<0.000000e+00> : vector<80x8xf32>
    %35 = tpu.matmul %32, %34, %cst_22 {dimension_numbers = #tpu.dot_dimension_numbers<[1], [0], [0], [1], [0, 0, 1, 1], [], []>} : vector<80x8xf32>, vector<8x8xf32>, vector<80x8xf32> -> vector<80x8xf32>
    %36 = arith.addf %27, %35 : vector<80x8xf32>
    %c10_i32_23 = arith.constant 10 : i32
    %37 = arith.addi %1, %c10_i32_23 : i32
    %c1_i32_24 = arith.constant 1 : i32
    %38 = arith.addi %37, %c1_i32_24 : i32
    %c0_25 = arith.constant 0 : index
    %39 = arith.index_cast %38 : i32 to index
    %c0_26 = arith.constant 0 : index
    %40 = vector.load %arg2[%c0_25, %39, %c0_26] : memref<1x110x8xf32, #tpu.memory_space<vmem>>, vector<1x80x8xf32>
    %41 = vector.shape_cast %40 : vector<1x80x8xf32> to vector<80x8xf32>
    %c4 = arith.constant 4 : index
    %c0_27 = arith.constant 0 : index
    %c0_28 = arith.constant 0 : index
    %42 = vector.load %arg3[%c4, %c0_27, %c0_28] : memref<9x8x8xf32, #tpu.memory_space<vmem>>, vector<1x8x8xf32>
    %43 = vector.shape_cast %42 : vector<1x8x8xf32> to vector<8x8xf32>
    %cst_29 = arith.constant dense<0.000000e+00> : vector<80x8xf32>
    %44 = tpu.matmul %41, %43, %cst_29 {dimension_numbers = #tpu.dot_dimension_numbers<[1], [0], [0], [1], [0, 0, 1, 1], [], []>} : vector<80x8xf32>, vector<8x8xf32>, vector<80x8xf32> -> vector<80x8xf32>
    %45 = arith.addf %36, %44 : vector<80x8xf32>
    %c10_i32_30 = arith.constant 10 : i32
    %46 = arith.addi %1, %c10_i32_30 : i32
    %c2_i32_31 = arith.constant 2 : i32
    %47 = arith.addi %46, %c2_i32_31 : i32
    %c0_32 = arith.constant 0 : index
    %48 = arith.index_cast %47 : i32 to index
    %c0_33 = arith.constant 0 : index
    %49 = vector.load %arg2[%c0_32, %48, %c0_33] : memref<1x110x8xf32, #tpu.memory_space<vmem>>, vector<1x80x8xf32>
    %50 = vector.shape_cast %49 : vector<1x80x8xf32> to vector<80x8xf32>
    %c5 = arith.constant 5 : index
    %c0_34 = arith.constant 0 : index
    %c0_35 = arith.constant 0 : index
    %51 = vector.load %arg3[%c5, %c0_34, %c0_35] : memref<9x8x8xf32, #tpu.memory_space<vmem>>, vector<1x8x8xf32>
    %52 = vector.shape_cast %51 : vector<1x8x8xf32> to vector<8x8xf32>
    %cst_36 = arith.constant dense<0.000000e+00> : vector<80x8xf32>
    %53 = tpu.matmul %50, %52, %cst_36 {dimension_numbers = #tpu.dot_dimension_numbers<[1], [0], [0], [1], [0, 0, 1, 1], [], []>} : vector<80x8xf32>, vector<8x8xf32>, vector<80x8xf32> -> vector<80x8xf32>
    %54 = arith.addf %45, %53 : vector<80x8xf32>
    %c20_i32 = arith.constant 20 : i32
    %55 = arith.addi %1, %c20_i32 : i32
    %c0_i32_37 = arith.constant 0 : i32
    %56 = arith.addi %55, %c0_i32_37 : i32
    %c0_38 = arith.constant 0 : index
    %57 = arith.index_cast %56 : i32 to index
    %c0_39 = arith.constant 0 : index
    %58 = vector.load %arg2[%c0_38, %57, %c0_39] : memref<1x110x8xf32, #tpu.memory_space<vmem>>, vector<1x80x8xf32>
    %59 = vector.shape_cast %58 : vector<1x80x8xf32> to vector<80x8xf32>
    %c6 = arith.constant 6 : index
    %c0_40 = arith.constant 0 : index
    %c0_41 = arith.constant 0 : index
    %60 = vector.load %arg3[%c6, %c0_40, %c0_41] : memref<9x8x8xf32, #tpu.memory_space<vmem>>, vector<1x8x8xf32>
    %61 = vector.shape_cast %60 : vector<1x8x8xf32> to vector<8x8xf32>
    %cst_42 = arith.constant dense<0.000000e+00> : vector<80x8xf32>
    %62 = tpu.matmul %59, %61, %cst_42 {dimension_numbers = #tpu.dot_dimension_numbers<[1], [0], [0], [1], [0, 0, 1, 1], [], []>} : vector<80x8xf32>, vector<8x8xf32>, vector<80x8xf32> -> vector<80x8xf32>
    %63 = arith.addf %54, %62 : vector<80x8xf32>
    %c20_i32_43 = arith.constant 20 : i32
    %64 = arith.addi %1, %c20_i32_43 : i32
    %c1_i32_44 = arith.constant 1 : i32
    %65 = arith.addi %64, %c1_i32_44 : i32
    %c0_45 = arith.constant 0 : index
    %66 = arith.index_cast %65 : i32 to index
    %c0_46 = arith.constant 0 : index
    %67 = vector.load %arg2[%c0_45, %66, %c0_46] : memref<1x110x8xf32, #tpu.memory_space<vmem>>, vector<1x80x8xf32>
    %68 = vector.shape_cast %67 : vector<1x80x8xf32> to vector<80x8xf32>
    %c7 = arith.constant 7 : index
    %c0_47 = arith.constant 0 : index
    %c0_48 = arith.constant 0 : index
    %69 = vector.load %arg3[%c7, %c0_47, %c0_48] : memref<9x8x8xf32, #tpu.memory_space<vmem>>, vector<1x8x8xf32>
    %70 = vector.shape_cast %69 : vector<1x8x8xf32> to vector<8x8xf32>
    %cst_49 = arith.constant dense<0.000000e+00> : vector<80x8xf32>
    %71 = tpu.matmul %68, %70, %cst_49 {dimension_numbers = #tpu.dot_dimension_numbers<[1], [0], [0], [1], [0, 0, 1, 1], [], []>} : vector<80x8xf32>, vector<8x8xf32>, vector<80x8xf32> -> vector<80x8xf32>
    %72 = arith.addf %63, %71 : vector<80x8xf32>
    %c20_i32_50 = arith.constant 20 : i32
    %73 = arith.addi %1, %c20_i32_50 : i32
    %c2_i32_51 = arith.constant 2 : i32
    %74 = arith.addi %73, %c2_i32_51 : i32
    %c0_52 = arith.constant 0 : index
    %75 = arith.index_cast %74 : i32 to index
    %c0_53 = arith.constant 0 : index
    %76 = vector.load %arg2[%c0_52, %75, %c0_53] : memref<1x110x8xf32, #tpu.memory_space<vmem>>, vector<1x80x8xf32>
    %77 = vector.shape_cast %76 : vector<1x80x8xf32> to vector<80x8xf32>
    %c8 = arith.constant 8 : index
    %c0_54 = arith.constant 0 : index
    %c0_55 = arith.constant 0 : index
    %78 = vector.load %arg3[%c8, %c0_54, %c0_55] : memref<9x8x8xf32, #tpu.memory_space<vmem>>, vector<1x8x8xf32>
    %79 = vector.shape_cast %78 : vector<1x8x8xf32> to vector<8x8xf32>
    %cst_56 = arith.constant dense<0.000000e+00> : vector<80x8xf32>
    %80 = tpu.matmul %77, %79, %cst_56 {dimension_numbers = #tpu.dot_dimension_numbers<[1], [0], [0], [1], [0, 0, 1, 1], [], []>} : vector<80x8xf32>, vector<8x8xf32>, vector<80x8xf32> -> vector<80x8xf32>
    %81 = arith.addf %72, %80 : vector<80x8xf32>
    %c0_57 = arith.constant 0 : index
    %c0_58 = arith.constant 0 : index
    %82 = vector.load %arg4[%c0_57, %c0_58] : memref<1x8xf32, #tpu.memory_space<vmem>>, vector<1x8xf32>
    %83 = vector.broadcast %82 : vector<1x8xf32> to vector<80x8xf32>
    %84 = arith.addf %81, %83 : vector<80x8xf32>
    %cst_59 = arith.constant 0.000000e+00 : f32
    %85 = vector.broadcast %cst_59 : f32 to vector<80x8xf32>
    %86 = arith.maximumf %84, %85 : vector<80x8xf32>
    %87 = vector.extract_strided_slice %86 {offsets = [0, 0], sizes = [8, 8], strides = [1, 1]} : vector<80x8xf32> to vector<8x8xf32>
    %c0_60 = arith.constant 0 : index
    %c0_61 = arith.constant 0 : index
    %c0_62 = arith.constant 0 : index
    %c0_63 = arith.constant 0 : index
    %88 = vector.load %arg5[%c0_60, %c0_61, %c0_62, %c0_63] : memref<1x8x8x8xf32, #tpu.memory_space<vmem>>, vector<1x1x8x8xf32>
    %89 = vector.shape_cast %88 : vector<1x1x8x8xf32> to vector<8x8xf32>
    %90 = vector.shape_cast %87 : vector<8x8xf32> to vector<1x1x8x8xf32>
    tpu.vector_store %arg5[%c0_60, %c0_61, %c0_62, %c0_63], %90 {strides = array<i32>} : memref<1x8x8x8xf32, #tpu.memory_space<vmem>>, vector<1x1x8x8xf32>,
    %91 = vector.extract_strided_slice %86 {offsets = [10, 0], sizes = [8, 8], strides = [1, 1]} : vector<80x8xf32> to vector<8x8xf32>
    %c0_64 = arith.constant 0 : index
    %c1_65 = arith.constant 1 : index
    %c0_66 = arith.constant 0 : index
    %c0_67 = arith.constant 0 : index
    %92 = vector.load %arg5[%c0_64, %c1_65, %c0_66, %c0_67] : memref<1x8x8x8xf32, #tpu.memory_space<vmem>>, vector<1x1x8x8xf32>
    %93 = vector.shape_cast %92 : vector<1x1x8x8xf32> to vector<8x8xf32>
    %94 = vector.shape_cast %91 : vector<8x8xf32> to vector<1x1x8x8xf32>
    tpu.vector_store %arg5[%c0_64, %c1_65, %c0_66, %c0_67], %94 {strides = array<i32>} : memref<1x8x8x8xf32, #tpu.memory_space<vmem>>, vector<1x1x8x8xf32>,
    %95 = vector.extract_strided_slice %86 {offsets = [20, 0], sizes = [8, 8], strides = [1, 1]} : vector<80x8xf32> to vector<8x8xf32>
    %c0_68 = arith.constant 0 : index
    %c2_69 = arith.constant 2 : index
    %c0_70 = arith.constant 0 : index
    %c0_71 = arith.constant 0 : index
    %96 = vector.load %arg5[%c0_68, %c2_69, %c0_70, %c0_71] : memref<1x8x8x8xf32, #tpu.memory_space<vmem>>, vector<1x1x8x8xf32>
    %97 = vector.shape_cast %96 : vector<1x1x8x8xf32> to vector<8x8xf32>
    %98 = vector.shape_cast %95 : vector<8x8xf32> to vector<1x1x8x8xf32>
    tpu.vector_store %arg5[%c0_68, %c2_69, %c0_70, %c0_71], %98 {strides = array<i32>} : memref<1x8x8x8xf32, #tpu.memory_space<vmem>>, vector<1x1x8x8xf32>,
    %99 = vector.extract_strided_slice %86 {offsets = [30, 0], sizes = [8, 8], strides = [1, 1]} : vector<80x8xf32> to vector<8x8xf32>
    %c0_72 = arith.constant 0 : index
    %c3_73 = arith.constant 3 : index
    %c0_74 = arith.constant 0 : index
    %c0_75 = arith.constant 0 : index
    %100 = vector.load %arg5[%c0_72, %c3_73, %c0_74, %c0_75] : memref<1x8x8x8xf32, #tpu.memory_space<vmem>>, vector<1x1x8x8xf32>
    %101 = vector.shape_cast %100 : vector<1x1x8x8xf32> to vector<8x8xf32>
    %102 = vector.shape_cast %99 : vector<8x8xf32> to vector<1x1x8x8xf32>
    tpu.vector_store %arg5[%c0_72, %c3_73, %c0_74, %c0_75], %102 {strides = array<i32>} : memref<1x8x8x8xf32, #tpu.memory_space<vmem>>, vector<1x1x8x8xf32>,
    %103 = vector.extract_strided_slice %86 {offsets = [40, 0], sizes = [8, 8], strides = [1, 1]} : vector<80x8xf32> to vector<8x8xf32>
    %c0_76 = arith.constant 0 : index
    %c4_77 = arith.constant 4 : index
    %c0_78 = arith.constant 0 : index
    %c0_79 = arith.constant 0 : index
    %104 = vector.load %arg5[%c0_76, %c4_77, %c0_78, %c0_79] : memref<1x8x8x8xf32, #tpu.memory_space<vmem>>, vector<1x1x8x8xf32>
    %105 = vector.shape_cast %104 : vector<1x1x8x8xf32> to vector<8x8xf32>
    %106 = vector.shape_cast %103 : vector<8x8xf32> to vector<1x1x8x8xf32>
    tpu.vector_store %arg5[%c0_76, %c4_77, %c0_78, %c0_79], %106 {strides = array<i32>} : memref<1x8x8x8xf32, #tpu.memory_space<vmem>>, vector<1x1x8x8xf32>,
    %107 = vector.extract_strided_slice %86 {offsets = [50, 0], sizes = [8, 8], strides = [1, 1]} : vector<80x8xf32> to vector<8x8xf32>
    %c0_80 = arith.constant 0 : index
    %c5_81 = arith.constant 5 : index
    %c0_82 = arith.constant 0 : index
    %c0_83 = arith.constant 0 : index
    %108 = vector.load %arg5[%c0_80, %c5_81, %c0_82, %c0_83] : memref<1x8x8x8xf32, #tpu.memory_space<vmem>>, vector<1x1x8x8xf32>
    %109 = vector.shape_cast %108 : vector<1x1x8x8xf32> to vector<8x8xf32>
    %110 = vector.shape_cast %107 : vector<8x8xf32> to vector<1x1x8x8xf32>
    tpu.vector_store %arg5[%c0_80, %c5_81, %c0_82, %c0_83], %110 {strides = array<i32>} : memref<1x8x8x8xf32, #tpu.memory_space<vmem>>, vector<1x1x8x8xf32>,
    %111 = vector.extract_strided_slice %86 {offsets = [60, 0], sizes = [8, 8], strides = [1, 1]} : vector<80x8xf32> to vector<8x8xf32>
    %c0_84 = arith.constant 0 : index
    %c6_85 = arith.constant 6 : index
    %c0_86 = arith.constant 0 : index
    %c0_87 = arith.constant 0 : index
    %112 = vector.load %arg5[%c0_84, %c6_85, %c0_86, %c0_87] : memref<1x8x8x8xf32, #tpu.memory_space<vmem>>, vector<1x1x8x8xf32>
    %113 = vector.shape_cast %112 : vector<1x1x8x8xf32> to vector<8x8xf32>
    %114 = vector.shape_cast %111 : vector<8x8xf32> to vector<1x1x8x8xf32>
    tpu.vector_store %arg5[%c0_84, %c6_85, %c0_86, %c0_87], %114 {strides = array<i32>} : memref<1x8x8x8xf32, #tpu.memory_space<vmem>>, vector<1x1x8x8xf32>,
    %115 = vector.extract_strided_slice %86 {offsets = [70, 0], sizes = [8, 8], strides = [1, 1]} : vector<80x8xf32> to vector<8x8xf32>
    %c0_88 = arith.constant 0 : index
    %c7_89 = arith.constant 7 : index
    %c0_90 = arith.constant 0 : index
    %c0_91 = arith.constant 0 : index
    %116 = vector.load %arg5[%c0_88, %c7_89, %c0_90, %c0_91] : memref<1x8x8x8xf32, #tpu.memory_space<vmem>>, vector<1x1x8x8xf32>
    %117 = vector.shape_cast %116 : vector<1x1x8x8xf32> to vector<8x8xf32>
    %118 = vector.shape_cast %115 : vector<8x8xf32> to vector<1x1x8x8xf32>
    tpu.vector_store %arg5[%c0_88, %c7_89, %c0_90, %c0_91], %118 {strides = array<i32>} : memref<1x8x8x8xf32, #tpu.memory_space<vmem>>, vector<1x1x8x8xf32>,
    return
  }
  func.func @transform_0(%arg0: i32, %arg1: i32) -> (i32, i32, i32) {
    %c0_i32 = arith.constant 0 : i32
    %c0_i32_0 = arith.constant 0 : i32
    %c0_i32_1 = arith.constant 0 : i32
    return %arg0, %c0_i32, %c0_i32_0 : i32, i32, i32
  }
  func.func @transform_1(%arg0: i32, %arg1: i32) -> (i32, i32, i32) {
    %c0_i32 = arith.constant 0 : i32
    %c0_i32_0 = arith.constant 0 : i32
    %c0_i32_1 = arith.constant 0 : i32
    %c0_i32_2 = arith.constant 0 : i32
    return %c0_i32, %c0_i32_0, %c0_i32_1 : i32, i32, i32
  }
  func.func @transform_2(%arg0: i32, %arg1: i32) -> (i32, i32) {
    %c0_i32 = arith.constant 0 : i32
    %c0_i32_0 = arith.constant 0 : i32
    %c0_i32_1 = arith.constant 0 : i32
    return %c0_i32, %c0_i32_0 : i32, i32
  }
  func.func @transform_3(%arg0: i32, %arg1: i32) -> (i32, i32, i32, i32) {
    %c0_i32 = arith.constant 0 : i32
    %c0_i32_0 = arith.constant 0 : i32
    %c0_i32_1 = arith.constant 0 : i32
    return %arg0, %arg1, %c0_i32, %c0_i32_0 : i32, i32, i32, i32
  }
}

module attributes {stable_mosaic.version = 11 : i64} {
  func.func @_conv_kxk_kernel(%arg0: i32, %arg1: i32, %arg2: memref<1x110x64xf32, #tpu.memory_space<vmem>>, %arg3: memref<9x64x96xf32, #tpu.memory_space<vmem>>, %arg4: memref<1x96xf32, #tpu.memory_space<vmem>>, %arg5: memref<1x8x8x96xf32, #tpu.memory_space<vmem>>) attributes {dimension_semantics = [#tpu.dimension_semantics<parallel>, #tpu.dimension_semantics<parallel>], iteration_bounds = array<i64: 2, 1>, scalar_prefetch = 0 : i64, scratch_operands = 0 : i64, tpu.core_type = #tpu.core_type<tc>, window_params = [{transform_indices = @transform_0, window_bounds = array<i64: 1, 110, 64>}, {pipeline_mode = #tpu.pipeline_mode<synchronous>, transform_indices = @transform_1, window_bounds = array<i64: 9, 64, 96>}, {pipeline_mode = #tpu.pipeline_mode<synchronous>, transform_indices = @transform_2, window_bounds = array<i64: 1, 96>}, {transform_indices = @transform_3, window_bounds = array<i64: 1, 8, 8, 96>}]} {
    %c80_i32 = arith.constant 80 : i32
    %0 = arith.muli %arg1, %c80_i32 : i32
    %1 = tpu.assume_multiple %0, 8 : i32
    %c0_i32 = arith.constant 0 : i32
    %2 = arith.addi %1, %c0_i32 : i32
    %c0_i32_0 = arith.constant 0 : i32
    %3 = arith.addi %2, %c0_i32_0 : i32
    %c0 = arith.constant 0 : index
    %4 = arith.index_cast %3 : i32 to index
    %c0_1 = arith.constant 0 : index
    %5 = vector.load %arg2[%c0, %4, %c0_1] : memref<1x110x64xf32, #tpu.memory_space<vmem>>, vector<1x80x64xf32>
    %6 = vector.shape_cast %5 : vector<1x80x64xf32> to vector<80x64xf32>
    %c0_2 = arith.constant 0 : index
    %c0_3 = arith.constant 0 : index
    %c0_4 = arith.constant 0 : index
    %7 = vector.load %arg3[%c0_2, %c0_3, %c0_4] : memref<9x64x96xf32, #tpu.memory_space<vmem>>, vector<1x64x96xf32>
    %8 = vector.shape_cast %7 : vector<1x64x96xf32> to vector<64x96xf32>
    %cst = arith.constant dense<0.000000e+00> : vector<80x96xf32>
    %9 = tpu.matmul %6, %8, %cst {dimension_numbers = #tpu.dot_dimension_numbers<[1], [0], [0], [1], [0, 0, 1, 1], [], []>} : vector<80x64xf32>, vector<64x96xf32>, vector<80x96xf32> -> vector<80x96xf32>
    %c0_i32_5 = arith.constant 0 : i32
    %10 = arith.addi %1, %c0_i32_5 : i32
    %c1_i32 = arith.constant 1 : i32
    %11 = arith.addi %10, %c1_i32 : i32
    %c0_6 = arith.constant 0 : index
    %12 = arith.index_cast %11 : i32 to index
    %c0_7 = arith.constant 0 : index
    %13 = vector.load %arg2[%c0_6, %12, %c0_7] : memref<1x110x64xf32, #tpu.memory_space<vmem>>, vector<1x80x64xf32>
    %14 = vector.shape_cast %13 : vector<1x80x64xf32> to vector<80x64xf32>
    %c1 = arith.constant 1 : index
    %c0_8 = arith.constant 0 : index
    %c0_9 = arith.constant 0 : index
    %15 = vector.load %arg3[%c1, %c0_8, %c0_9] : memref<9x64x96xf32, #tpu.memory_space<vmem>>, vector<1x64x96xf32>
    %16 = vector.shape_cast %15 : vector<1x64x96xf32> to vector<64x96xf32>
    %cst_10 = arith.constant dense<0.000000e+00> : vector<80x96xf32>
    %17 = tpu.matmul %14, %16, %cst_10 {dimension_numbers = #tpu.dot_dimension_numbers<[1], [0], [0], [1], [0, 0, 1, 1], [], []>} : vector<80x64xf32>, vector<64x96xf32>, vector<80x96xf32> -> vector<80x96xf32>
    %18 = arith.addf %9, %17 : vector<80x96xf32>
    %c0_i32_11 = arith.constant 0 : i32
    %19 = arith.addi %1, %c0_i32_11 : i32
    %c2_i32 = arith.constant 2 : i32
    %20 = arith.addi %19, %c2_i32 : i32
    %c0_12 = arith.constant 0 : index
    %21 = arith.index_cast %20 : i32 to index
    %c0_13 = arith.constant 0 : index
    %22 = vector.load %arg2[%c0_12, %21, %c0_13] : memref<1x110x64xf32, #tpu.memory_space<vmem>>, vector<1x80x64xf32>
    %23 = vector.shape_cast %22 : vector<1x80x64xf32> to vector<80x64xf32>
    %c2 = arith.constant 2 : index
    %c0_14 = arith.constant 0 : index
    %c0_15 = arith.constant 0 : index
    %24 = vector.load %arg3[%c2, %c0_14, %c0_15] : memref<9x64x96xf32, #tpu.memory_space<vmem>>, vector<1x64x96xf32>
    %25 = vector.shape_cast %24 : vector<1x64x96xf32> to vector<64x96xf32>
    %cst_16 = arith.constant dense<0.000000e+00> : vector<80x96xf32>
    %26 = tpu.matmul %23, %25, %cst_16 {dimension_numbers = #tpu.dot_dimension_numbers<[1], [0], [0], [1], [0, 0, 1, 1], [], []>} : vector<80x64xf32>, vector<64x96xf32>, vector<80x96xf32> -> vector<80x96xf32>
    %27 = arith.addf %18, %26 : vector<80x96xf32>
    %c10_i32 = arith.constant 10 : i32
    %28 = arith.addi %1, %c10_i32 : i32
    %c0_i32_17 = arith.constant 0 : i32
    %29 = arith.addi %28, %c0_i32_17 : i32
    %c0_18 = arith.constant 0 : index
    %30 = arith.index_cast %29 : i32 to index
    %c0_19 = arith.constant 0 : index
    %31 = vector.load %arg2[%c0_18, %30, %c0_19] : memref<1x110x64xf32, #tpu.memory_space<vmem>>, vector<1x80x64xf32>
    %32 = vector.shape_cast %31 : vector<1x80x64xf32> to vector<80x64xf32>
    %c3 = arith.constant 3 : index
    %c0_20 = arith.constant 0 : index
    %c0_21 = arith.constant 0 : index
    %33 = vector.load %arg3[%c3, %c0_20, %c0_21] : memref<9x64x96xf32, #tpu.memory_space<vmem>>, vector<1x64x96xf32>
    %34 = vector.shape_cast %33 : vector<1x64x96xf32> to vector<64x96xf32>
    %cst_22 = arith.constant dense<0.000000e+00> : vector<80x96xf32>
    %35 = tpu.matmul %32, %34, %cst_22 {dimension_numbers = #tpu.dot_dimension_numbers<[1], [0], [0], [1], [0, 0, 1, 1], [], []>} : vector<80x64xf32>, vector<64x96xf32>, vector<80x96xf32> -> vector<80x96xf32>
    %36 = arith.addf %27, %35 : vector<80x96xf32>
    %c10_i32_23 = arith.constant 10 : i32
    %37 = arith.addi %1, %c10_i32_23 : i32
    %c1_i32_24 = arith.constant 1 : i32
    %38 = arith.addi %37, %c1_i32_24 : i32
    %c0_25 = arith.constant 0 : index
    %39 = arith.index_cast %38 : i32 to index
    %c0_26 = arith.constant 0 : index
    %40 = vector.load %arg2[%c0_25, %39, %c0_26] : memref<1x110x64xf32, #tpu.memory_space<vmem>>, vector<1x80x64xf32>
    %41 = vector.shape_cast %40 : vector<1x80x64xf32> to vector<80x64xf32>
    %c4 = arith.constant 4 : index
    %c0_27 = arith.constant 0 : index
    %c0_28 = arith.constant 0 : index
    %42 = vector.load %arg3[%c4, %c0_27, %c0_28] : memref<9x64x96xf32, #tpu.memory_space<vmem>>, vector<1x64x96xf32>
    %43 = vector.shape_cast %42 : vector<1x64x96xf32> to vector<64x96xf32>
    %cst_29 = arith.constant dense<0.000000e+00> : vector<80x96xf32>
    %44 = tpu.matmul %41, %43, %cst_29 {dimension_numbers = #tpu.dot_dimension_numbers<[1], [0], [0], [1], [0, 0, 1, 1], [], []>} : vector<80x64xf32>, vector<64x96xf32>, vector<80x96xf32> -> vector<80x96xf32>
    %45 = arith.addf %36, %44 : vector<80x96xf32>
    %c10_i32_30 = arith.constant 10 : i32
    %46 = arith.addi %1, %c10_i32_30 : i32
    %c2_i32_31 = arith.constant 2 : i32
    %47 = arith.addi %46, %c2_i32_31 : i32
    %c0_32 = arith.constant 0 : index
    %48 = arith.index_cast %47 : i32 to index
    %c0_33 = arith.constant 0 : index
    %49 = vector.load %arg2[%c0_32, %48, %c0_33] : memref<1x110x64xf32, #tpu.memory_space<vmem>>, vector<1x80x64xf32>
    %50 = vector.shape_cast %49 : vector<1x80x64xf32> to vector<80x64xf32>
    %c5 = arith.constant 5 : index
    %c0_34 = arith.constant 0 : index
    %c0_35 = arith.constant 0 : index
    %51 = vector.load %arg3[%c5, %c0_34, %c0_35] : memref<9x64x96xf32, #tpu.memory_space<vmem>>, vector<1x64x96xf32>
    %52 = vector.shape_cast %51 : vector<1x64x96xf32> to vector<64x96xf32>
    %cst_36 = arith.constant dense<0.000000e+00> : vector<80x96xf32>
    %53 = tpu.matmul %50, %52, %cst_36 {dimension_numbers = #tpu.dot_dimension_numbers<[1], [0], [0], [1], [0, 0, 1, 1], [], []>} : vector<80x64xf32>, vector<64x96xf32>, vector<80x96xf32> -> vector<80x96xf32>
    %54 = arith.addf %45, %53 : vector<80x96xf32>
    %c20_i32 = arith.constant 20 : i32
    %55 = arith.addi %1, %c20_i32 : i32
    %c0_i32_37 = arith.constant 0 : i32
    %56 = arith.addi %55, %c0_i32_37 : i32
    %c0_38 = arith.constant 0 : index
    %57 = arith.index_cast %56 : i32 to index
    %c0_39 = arith.constant 0 : index
    %58 = vector.load %arg2[%c0_38, %57, %c0_39] : memref<1x110x64xf32, #tpu.memory_space<vmem>>, vector<1x80x64xf32>
    %59 = vector.shape_cast %58 : vector<1x80x64xf32> to vector<80x64xf32>
    %c6 = arith.constant 6 : index
    %c0_40 = arith.constant 0 : index
    %c0_41 = arith.constant 0 : index
    %60 = vector.load %arg3[%c6, %c0_40, %c0_41] : memref<9x64x96xf32, #tpu.memory_space<vmem>>, vector<1x64x96xf32>
    %61 = vector.shape_cast %60 : vector<1x64x96xf32> to vector<64x96xf32>
    %cst_42 = arith.constant dense<0.000000e+00> : vector<80x96xf32>
    %62 = tpu.matmul %59, %61, %cst_42 {dimension_numbers = #tpu.dot_dimension_numbers<[1], [0], [0], [1], [0, 0, 1, 1], [], []>} : vector<80x64xf32>, vector<64x96xf32>, vector<80x96xf32> -> vector<80x96xf32>
    %63 = arith.addf %54, %62 : vector<80x96xf32>
    %c20_i32_43 = arith.constant 20 : i32
    %64 = arith.addi %1, %c20_i32_43 : i32
    %c1_i32_44 = arith.constant 1 : i32
    %65 = arith.addi %64, %c1_i32_44 : i32
    %c0_45 = arith.constant 0 : index
    %66 = arith.index_cast %65 : i32 to index
    %c0_46 = arith.constant 0 : index
    %67 = vector.load %arg2[%c0_45, %66, %c0_46] : memref<1x110x64xf32, #tpu.memory_space<vmem>>, vector<1x80x64xf32>
    %68 = vector.shape_cast %67 : vector<1x80x64xf32> to vector<80x64xf32>
    %c7 = arith.constant 7 : index
    %c0_47 = arith.constant 0 : index
    %c0_48 = arith.constant 0 : index
    %69 = vector.load %arg3[%c7, %c0_47, %c0_48] : memref<9x64x96xf32, #tpu.memory_space<vmem>>, vector<1x64x96xf32>
    %70 = vector.shape_cast %69 : vector<1x64x96xf32> to vector<64x96xf32>
    %cst_49 = arith.constant dense<0.000000e+00> : vector<80x96xf32>
    %71 = tpu.matmul %68, %70, %cst_49 {dimension_numbers = #tpu.dot_dimension_numbers<[1], [0], [0], [1], [0, 0, 1, 1], [], []>} : vector<80x64xf32>, vector<64x96xf32>, vector<80x96xf32> -> vector<80x96xf32>
    %72 = arith.addf %63, %71 : vector<80x96xf32>
    %c20_i32_50 = arith.constant 20 : i32
    %73 = arith.addi %1, %c20_i32_50 : i32
    %c2_i32_51 = arith.constant 2 : i32
    %74 = arith.addi %73, %c2_i32_51 : i32
    %c0_52 = arith.constant 0 : index
    %75 = arith.index_cast %74 : i32 to index
    %c0_53 = arith.constant 0 : index
    %76 = vector.load %arg2[%c0_52, %75, %c0_53] : memref<1x110x64xf32, #tpu.memory_space<vmem>>, vector<1x80x64xf32>
    %77 = vector.shape_cast %76 : vector<1x80x64xf32> to vector<80x64xf32>
    %c8 = arith.constant 8 : index
    %c0_54 = arith.constant 0 : index
    %c0_55 = arith.constant 0 : index
    %78 = vector.load %arg3[%c8, %c0_54, %c0_55] : memref<9x64x96xf32, #tpu.memory_space<vmem>>, vector<1x64x96xf32>
    %79 = vector.shape_cast %78 : vector<1x64x96xf32> to vector<64x96xf32>
    %cst_56 = arith.constant dense<0.000000e+00> : vector<80x96xf32>
    %80 = tpu.matmul %77, %79, %cst_56 {dimension_numbers = #tpu.dot_dimension_numbers<[1], [0], [0], [1], [0, 0, 1, 1], [], []>} : vector<80x64xf32>, vector<64x96xf32>, vector<80x96xf32> -> vector<80x96xf32>
    %81 = arith.addf %72, %80 : vector<80x96xf32>
    %c0_57 = arith.constant 0 : index
    %c0_58 = arith.constant 0 : index
    %82 = vector.load %arg4[%c0_57, %c0_58] : memref<1x96xf32, #tpu.memory_space<vmem>>, vector<1x96xf32>
    %83 = vector.broadcast %82 : vector<1x96xf32> to vector<80x96xf32>
    %84 = arith.addf %81, %83 : vector<80x96xf32>
    %cst_59 = arith.constant 0.000000e+00 : f32
    %85 = vector.broadcast %cst_59 : f32 to vector<80x96xf32>
    %86 = arith.maximumf %84, %85 : vector<80x96xf32>
    %87 = vector.extract_strided_slice %86 {offsets = [0, 0], sizes = [8, 96], strides = [1, 1]} : vector<80x96xf32> to vector<8x96xf32>
    %c0_60 = arith.constant 0 : index
    %c0_61 = arith.constant 0 : index
    %c0_62 = arith.constant 0 : index
    %c0_63 = arith.constant 0 : index
    %88 = vector.load %arg5[%c0_60, %c0_61, %c0_62, %c0_63] : memref<1x8x8x96xf32, #tpu.memory_space<vmem>>, vector<1x1x8x96xf32>
    %89 = vector.shape_cast %88 : vector<1x1x8x96xf32> to vector<8x96xf32>
    %90 = vector.shape_cast %87 : vector<8x96xf32> to vector<1x1x8x96xf32>
    tpu.vector_store %arg5[%c0_60, %c0_61, %c0_62, %c0_63], %90 {strides = array<i32>} : memref<1x8x8x96xf32, #tpu.memory_space<vmem>>, vector<1x1x8x96xf32>,
    %91 = vector.extract_strided_slice %86 {offsets = [10, 0], sizes = [8, 96], strides = [1, 1]} : vector<80x96xf32> to vector<8x96xf32>
    %c0_64 = arith.constant 0 : index
    %c1_65 = arith.constant 1 : index
    %c0_66 = arith.constant 0 : index
    %c0_67 = arith.constant 0 : index
    %92 = vector.load %arg5[%c0_64, %c1_65, %c0_66, %c0_67] : memref<1x8x8x96xf32, #tpu.memory_space<vmem>>, vector<1x1x8x96xf32>
    %93 = vector.shape_cast %92 : vector<1x1x8x96xf32> to vector<8x96xf32>
    %94 = vector.shape_cast %91 : vector<8x96xf32> to vector<1x1x8x96xf32>
    tpu.vector_store %arg5[%c0_64, %c1_65, %c0_66, %c0_67], %94 {strides = array<i32>} : memref<1x8x8x96xf32, #tpu.memory_space<vmem>>, vector<1x1x8x96xf32>,
    %95 = vector.extract_strided_slice %86 {offsets = [20, 0], sizes = [8, 96], strides = [1, 1]} : vector<80x96xf32> to vector<8x96xf32>
    %c0_68 = arith.constant 0 : index
    %c2_69 = arith.constant 2 : index
    %c0_70 = arith.constant 0 : index
    %c0_71 = arith.constant 0 : index
    %96 = vector.load %arg5[%c0_68, %c2_69, %c0_70, %c0_71] : memref<1x8x8x96xf32, #tpu.memory_space<vmem>>, vector<1x1x8x96xf32>
    %97 = vector.shape_cast %96 : vector<1x1x8x96xf32> to vector<8x96xf32>
    %98 = vector.shape_cast %95 : vector<8x96xf32> to vector<1x1x8x96xf32>
    tpu.vector_store %arg5[%c0_68, %c2_69, %c0_70, %c0_71], %98 {strides = array<i32>} : memref<1x8x8x96xf32, #tpu.memory_space<vmem>>, vector<1x1x8x96xf32>,
    %99 = vector.extract_strided_slice %86 {offsets = [30, 0], sizes = [8, 96], strides = [1, 1]} : vector<80x96xf32> to vector<8x96xf32>
    %c0_72 = arith.constant 0 : index
    %c3_73 = arith.constant 3 : index
    %c0_74 = arith.constant 0 : index
    %c0_75 = arith.constant 0 : index
    %100 = vector.load %arg5[%c0_72, %c3_73, %c0_74, %c0_75] : memref<1x8x8x96xf32, #tpu.memory_space<vmem>>, vector<1x1x8x96xf32>
    %101 = vector.shape_cast %100 : vector<1x1x8x96xf32> to vector<8x96xf32>
    %102 = vector.shape_cast %99 : vector<8x96xf32> to vector<1x1x8x96xf32>
    tpu.vector_store %arg5[%c0_72, %c3_73, %c0_74, %c0_75], %102 {strides = array<i32>} : memref<1x8x8x96xf32, #tpu.memory_space<vmem>>, vector<1x1x8x96xf32>,
    %103 = vector.extract_strided_slice %86 {offsets = [40, 0], sizes = [8, 96], strides = [1, 1]} : vector<80x96xf32> to vector<8x96xf32>
    %c0_76 = arith.constant 0 : index
    %c4_77 = arith.constant 4 : index
    %c0_78 = arith.constant 0 : index
    %c0_79 = arith.constant 0 : index
    %104 = vector.load %arg5[%c0_76, %c4_77, %c0_78, %c0_79] : memref<1x8x8x96xf32, #tpu.memory_space<vmem>>, vector<1x1x8x96xf32>
    %105 = vector.shape_cast %104 : vector<1x1x8x96xf32> to vector<8x96xf32>
    %106 = vector.shape_cast %103 : vector<8x96xf32> to vector<1x1x8x96xf32>
    tpu.vector_store %arg5[%c0_76, %c4_77, %c0_78, %c0_79], %106 {strides = array<i32>} : memref<1x8x8x96xf32, #tpu.memory_space<vmem>>, vector<1x1x8x96xf32>,
    %107 = vector.extract_strided_slice %86 {offsets = [50, 0], sizes = [8, 96], strides = [1, 1]} : vector<80x96xf32> to vector<8x96xf32>
    %c0_80 = arith.constant 0 : index
    %c5_81 = arith.constant 5 : index
    %c0_82 = arith.constant 0 : index
    %c0_83 = arith.constant 0 : index
    %108 = vector.load %arg5[%c0_80, %c5_81, %c0_82, %c0_83] : memref<1x8x8x96xf32, #tpu.memory_space<vmem>>, vector<1x1x8x96xf32>
    %109 = vector.shape_cast %108 : vector<1x1x8x96xf32> to vector<8x96xf32>
    %110 = vector.shape_cast %107 : vector<8x96xf32> to vector<1x1x8x96xf32>
    tpu.vector_store %arg5[%c0_80, %c5_81, %c0_82, %c0_83], %110 {strides = array<i32>} : memref<1x8x8x96xf32, #tpu.memory_space<vmem>>, vector<1x1x8x96xf32>,
    %111 = vector.extract_strided_slice %86 {offsets = [60, 0], sizes = [8, 96], strides = [1, 1]} : vector<80x96xf32> to vector<8x96xf32>
    %c0_84 = arith.constant 0 : index
    %c6_85 = arith.constant 6 : index
    %c0_86 = arith.constant 0 : index
    %c0_87 = arith.constant 0 : index
    %112 = vector.load %arg5[%c0_84, %c6_85, %c0_86, %c0_87] : memref<1x8x8x96xf32, #tpu.memory_space<vmem>>, vector<1x1x8x96xf32>
    %113 = vector.shape_cast %112 : vector<1x1x8x96xf32> to vector<8x96xf32>
    %114 = vector.shape_cast %111 : vector<8x96xf32> to vector<1x1x8x96xf32>
    tpu.vector_store %arg5[%c0_84, %c6_85, %c0_86, %c0_87], %114 {strides = array<i32>} : memref<1x8x8x96xf32, #tpu.memory_space<vmem>>, vector<1x1x8x96xf32>,
    %115 = vector.extract_strided_slice %86 {offsets = [70, 0], sizes = [8, 96], strides = [1, 1]} : vector<80x96xf32> to vector<8x96xf32>
    %c0_88 = arith.constant 0 : index
    %c7_89 = arith.constant 7 : index
    %c0_90 = arith.constant 0 : index
    %c0_91 = arith.constant 0 : index
    %116 = vector.load %arg5[%c0_88, %c7_89, %c0_90, %c0_91] : memref<1x8x8x96xf32, #tpu.memory_space<vmem>>, vector<1x1x8x96xf32>
    %117 = vector.shape_cast %116 : vector<1x1x8x96xf32> to vector<8x96xf32>
    %118 = vector.shape_cast %115 : vector<8x96xf32> to vector<1x1x8x96xf32>
    tpu.vector_store %arg5[%c0_88, %c7_89, %c0_90, %c0_91], %118 {strides = array<i32>} : memref<1x8x8x96xf32, #tpu.memory_space<vmem>>, vector<1x1x8x96xf32>,
    return
  }
  func.func @transform_0(%arg0: i32, %arg1: i32) -> (i32, i32, i32) {
    %c0_i32 = arith.constant 0 : i32
    %c0_i32_0 = arith.constant 0 : i32
    %c0_i32_1 = arith.constant 0 : i32
    return %arg0, %c0_i32, %c0_i32_0 : i32, i32, i32
  }
  func.func @transform_1(%arg0: i32, %arg1: i32) -> (i32, i32, i32) {
    %c0_i32 = arith.constant 0 : i32
    %c0_i32_0 = arith.constant 0 : i32
    %c0_i32_1 = arith.constant 0 : i32
    %c0_i32_2 = arith.constant 0 : i32
    return %c0_i32, %c0_i32_0, %c0_i32_1 : i32, i32, i32
  }
  func.func @transform_2(%arg0: i32, %arg1: i32) -> (i32, i32) {
    %c0_i32 = arith.constant 0 : i32
    %c0_i32_0 = arith.constant 0 : i32
    %c0_i32_1 = arith.constant 0 : i32
    return %c0_i32, %c0_i32_0 : i32, i32
  }
  func.func @transform_3(%arg0: i32, %arg1: i32) -> (i32, i32, i32, i32) {
    %c0_i32 = arith.constant 0 : i32
    %c0_i32_0 = arith.constant 0 : i32
    %c0_i32_1 = arith.constant 0 : i32
    return %arg0, %arg1, %c0_i32, %c0_i32_0 : i32, i32, i32, i32
  }
}

module attributes {stable_mosaic.version = 11 : i64} {
  func.func @_conv_kxk_kernel(%arg0: i32, %arg1: i32, %arg2: memref<1x110x96xf32, #tpu.memory_space<vmem>>, %arg3: memref<9x96x96xf32, #tpu.memory_space<vmem>>, %arg4: memref<1x96xf32, #tpu.memory_space<vmem>>, %arg5: memref<1x8x8x96xf32, #tpu.memory_space<vmem>>) attributes {dimension_semantics = [#tpu.dimension_semantics<parallel>, #tpu.dimension_semantics<parallel>], iteration_bounds = array<i64: 2, 1>, scalar_prefetch = 0 : i64, scratch_operands = 0 : i64, tpu.core_type = #tpu.core_type<tc>, window_params = [{transform_indices = @transform_0, window_bounds = array<i64: 1, 110, 96>}, {pipeline_mode = #tpu.pipeline_mode<synchronous>, transform_indices = @transform_1, window_bounds = array<i64: 9, 96, 96>}, {pipeline_mode = #tpu.pipeline_mode<synchronous>, transform_indices = @transform_2, window_bounds = array<i64: 1, 96>}, {transform_indices = @transform_3, window_bounds = array<i64: 1, 8, 8, 96>}]} {
    %c80_i32 = arith.constant 80 : i32
    %0 = arith.muli %arg1, %c80_i32 : i32
    %1 = tpu.assume_multiple %0, 8 : i32
    %c0_i32 = arith.constant 0 : i32
    %2 = arith.addi %1, %c0_i32 : i32
    %c0_i32_0 = arith.constant 0 : i32
    %3 = arith.addi %2, %c0_i32_0 : i32
    %c0 = arith.constant 0 : index
    %4 = arith.index_cast %3 : i32 to index
    %c0_1 = arith.constant 0 : index
    %5 = vector.load %arg2[%c0, %4, %c0_1] : memref<1x110x96xf32, #tpu.memory_space<vmem>>, vector<1x80x96xf32>
    %6 = vector.shape_cast %5 : vector<1x80x96xf32> to vector<80x96xf32>
    %c0_2 = arith.constant 0 : index
    %c0_3 = arith.constant 0 : index
    %c0_4 = arith.constant 0 : index
    %7 = vector.load %arg3[%c0_2, %c0_3, %c0_4] : memref<9x96x96xf32, #tpu.memory_space<vmem>>, vector<1x96x96xf32>
    %8 = vector.shape_cast %7 : vector<1x96x96xf32> to vector<96x96xf32>
    %cst = arith.constant dense<0.000000e+00> : vector<80x96xf32>
    %9 = tpu.matmul %6, %8, %cst {dimension_numbers = #tpu.dot_dimension_numbers<[1], [0], [0], [1], [0, 0, 1, 1], [], []>} : vector<80x96xf32>, vector<96x96xf32>, vector<80x96xf32> -> vector<80x96xf32>
    %c0_i32_5 = arith.constant 0 : i32
    %10 = arith.addi %1, %c0_i32_5 : i32
    %c1_i32 = arith.constant 1 : i32
    %11 = arith.addi %10, %c1_i32 : i32
    %c0_6 = arith.constant 0 : index
    %12 = arith.index_cast %11 : i32 to index
    %c0_7 = arith.constant 0 : index
    %13 = vector.load %arg2[%c0_6, %12, %c0_7] : memref<1x110x96xf32, #tpu.memory_space<vmem>>, vector<1x80x96xf32>
    %14 = vector.shape_cast %13 : vector<1x80x96xf32> to vector<80x96xf32>
    %c1 = arith.constant 1 : index
    %c0_8 = arith.constant 0 : index
    %c0_9 = arith.constant 0 : index
    %15 = vector.load %arg3[%c1, %c0_8, %c0_9] : memref<9x96x96xf32, #tpu.memory_space<vmem>>, vector<1x96x96xf32>
    %16 = vector.shape_cast %15 : vector<1x96x96xf32> to vector<96x96xf32>
    %cst_10 = arith.constant dense<0.000000e+00> : vector<80x96xf32>
    %17 = tpu.matmul %14, %16, %cst_10 {dimension_numbers = #tpu.dot_dimension_numbers<[1], [0], [0], [1], [0, 0, 1, 1], [], []>} : vector<80x96xf32>, vector<96x96xf32>, vector<80x96xf32> -> vector<80x96xf32>
    %18 = arith.addf %9, %17 : vector<80x96xf32>
    %c0_i32_11 = arith.constant 0 : i32
    %19 = arith.addi %1, %c0_i32_11 : i32
    %c2_i32 = arith.constant 2 : i32
    %20 = arith.addi %19, %c2_i32 : i32
    %c0_12 = arith.constant 0 : index
    %21 = arith.index_cast %20 : i32 to index
    %c0_13 = arith.constant 0 : index
    %22 = vector.load %arg2[%c0_12, %21, %c0_13] : memref<1x110x96xf32, #tpu.memory_space<vmem>>, vector<1x80x96xf32>
    %23 = vector.shape_cast %22 : vector<1x80x96xf32> to vector<80x96xf32>
    %c2 = arith.constant 2 : index
    %c0_14 = arith.constant 0 : index
    %c0_15 = arith.constant 0 : index
    %24 = vector.load %arg3[%c2, %c0_14, %c0_15] : memref<9x96x96xf32, #tpu.memory_space<vmem>>, vector<1x96x96xf32>
    %25 = vector.shape_cast %24 : vector<1x96x96xf32> to vector<96x96xf32>
    %cst_16 = arith.constant dense<0.000000e+00> : vector<80x96xf32>
    %26 = tpu.matmul %23, %25, %cst_16 {dimension_numbers = #tpu.dot_dimension_numbers<[1], [0], [0], [1], [0, 0, 1, 1], [], []>} : vector<80x96xf32>, vector<96x96xf32>, vector<80x96xf32> -> vector<80x96xf32>
    %27 = arith.addf %18, %26 : vector<80x96xf32>
    %c10_i32 = arith.constant 10 : i32
    %28 = arith.addi %1, %c10_i32 : i32
    %c0_i32_17 = arith.constant 0 : i32
    %29 = arith.addi %28, %c0_i32_17 : i32
    %c0_18 = arith.constant 0 : index
    %30 = arith.index_cast %29 : i32 to index
    %c0_19 = arith.constant 0 : index
    %31 = vector.load %arg2[%c0_18, %30, %c0_19] : memref<1x110x96xf32, #tpu.memory_space<vmem>>, vector<1x80x96xf32>
    %32 = vector.shape_cast %31 : vector<1x80x96xf32> to vector<80x96xf32>
    %c3 = arith.constant 3 : index
    %c0_20 = arith.constant 0 : index
    %c0_21 = arith.constant 0 : index
    %33 = vector.load %arg3[%c3, %c0_20, %c0_21] : memref<9x96x96xf32, #tpu.memory_space<vmem>>, vector<1x96x96xf32>
    %34 = vector.shape_cast %33 : vector<1x96x96xf32> to vector<96x96xf32>
    %cst_22 = arith.constant dense<0.000000e+00> : vector<80x96xf32>
    %35 = tpu.matmul %32, %34, %cst_22 {dimension_numbers = #tpu.dot_dimension_numbers<[1], [0], [0], [1], [0, 0, 1, 1], [], []>} : vector<80x96xf32>, vector<96x96xf32>, vector<80x96xf32> -> vector<80x96xf32>
    %36 = arith.addf %27, %35 : vector<80x96xf32>
    %c10_i32_23 = arith.constant 10 : i32
    %37 = arith.addi %1, %c10_i32_23 : i32
    %c1_i32_24 = arith.constant 1 : i32
    %38 = arith.addi %37, %c1_i32_24 : i32
    %c0_25 = arith.constant 0 : index
    %39 = arith.index_cast %38 : i32 to index
    %c0_26 = arith.constant 0 : index
    %40 = vector.load %arg2[%c0_25, %39, %c0_26] : memref<1x110x96xf32, #tpu.memory_space<vmem>>, vector<1x80x96xf32>
    %41 = vector.shape_cast %40 : vector<1x80x96xf32> to vector<80x96xf32>
    %c4 = arith.constant 4 : index
    %c0_27 = arith.constant 0 : index
    %c0_28 = arith.constant 0 : index
    %42 = vector.load %arg3[%c4, %c0_27, %c0_28] : memref<9x96x96xf32, #tpu.memory_space<vmem>>, vector<1x96x96xf32>
    %43 = vector.shape_cast %42 : vector<1x96x96xf32> to vector<96x96xf32>
    %cst_29 = arith.constant dense<0.000000e+00> : vector<80x96xf32>
    %44 = tpu.matmul %41, %43, %cst_29 {dimension_numbers = #tpu.dot_dimension_numbers<[1], [0], [0], [1], [0, 0, 1, 1], [], []>} : vector<80x96xf32>, vector<96x96xf32>, vector<80x96xf32> -> vector<80x96xf32>
    %45 = arith.addf %36, %44 : vector<80x96xf32>
    %c10_i32_30 = arith.constant 10 : i32
    %46 = arith.addi %1, %c10_i32_30 : i32
    %c2_i32_31 = arith.constant 2 : i32
    %47 = arith.addi %46, %c2_i32_31 : i32
    %c0_32 = arith.constant 0 : index
    %48 = arith.index_cast %47 : i32 to index
    %c0_33 = arith.constant 0 : index
    %49 = vector.load %arg2[%c0_32, %48, %c0_33] : memref<1x110x96xf32, #tpu.memory_space<vmem>>, vector<1x80x96xf32>
    %50 = vector.shape_cast %49 : vector<1x80x96xf32> to vector<80x96xf32>
    %c5 = arith.constant 5 : index
    %c0_34 = arith.constant 0 : index
    %c0_35 = arith.constant 0 : index
    %51 = vector.load %arg3[%c5, %c0_34, %c0_35] : memref<9x96x96xf32, #tpu.memory_space<vmem>>, vector<1x96x96xf32>
    %52 = vector.shape_cast %51 : vector<1x96x96xf32> to vector<96x96xf32>
    %cst_36 = arith.constant dense<0.000000e+00> : vector<80x96xf32>
    %53 = tpu.matmul %50, %52, %cst_36 {dimension_numbers = #tpu.dot_dimension_numbers<[1], [0], [0], [1], [0, 0, 1, 1], [], []>} : vector<80x96xf32>, vector<96x96xf32>, vector<80x96xf32> -> vector<80x96xf32>
    %54 = arith.addf %45, %53 : vector<80x96xf32>
    %c20_i32 = arith.constant 20 : i32
    %55 = arith.addi %1, %c20_i32 : i32
    %c0_i32_37 = arith.constant 0 : i32
    %56 = arith.addi %55, %c0_i32_37 : i32
    %c0_38 = arith.constant 0 : index
    %57 = arith.index_cast %56 : i32 to index
    %c0_39 = arith.constant 0 : index
    %58 = vector.load %arg2[%c0_38, %57, %c0_39] : memref<1x110x96xf32, #tpu.memory_space<vmem>>, vector<1x80x96xf32>
    %59 = vector.shape_cast %58 : vector<1x80x96xf32> to vector<80x96xf32>
    %c6 = arith.constant 6 : index
    %c0_40 = arith.constant 0 : index
    %c0_41 = arith.constant 0 : index
    %60 = vector.load %arg3[%c6, %c0_40, %c0_41] : memref<9x96x96xf32, #tpu.memory_space<vmem>>, vector<1x96x96xf32>
    %61 = vector.shape_cast %60 : vector<1x96x96xf32> to vector<96x96xf32>
    %cst_42 = arith.constant dense<0.000000e+00> : vector<80x96xf32>
    %62 = tpu.matmul %59, %61, %cst_42 {dimension_numbers = #tpu.dot_dimension_numbers<[1], [0], [0], [1], [0, 0, 1, 1], [], []>} : vector<80x96xf32>, vector<96x96xf32>, vector<80x96xf32> -> vector<80x96xf32>
    %63 = arith.addf %54, %62 : vector<80x96xf32>
    %c20_i32_43 = arith.constant 20 : i32
    %64 = arith.addi %1, %c20_i32_43 : i32
    %c1_i32_44 = arith.constant 1 : i32
    %65 = arith.addi %64, %c1_i32_44 : i32
    %c0_45 = arith.constant 0 : index
    %66 = arith.index_cast %65 : i32 to index
    %c0_46 = arith.constant 0 : index
    %67 = vector.load %arg2[%c0_45, %66, %c0_46] : memref<1x110x96xf32, #tpu.memory_space<vmem>>, vector<1x80x96xf32>
    %68 = vector.shape_cast %67 : vector<1x80x96xf32> to vector<80x96xf32>
    %c7 = arith.constant 7 : index
    %c0_47 = arith.constant 0 : index
    %c0_48 = arith.constant 0 : index
    %69 = vector.load %arg3[%c7, %c0_47, %c0_48] : memref<9x96x96xf32, #tpu.memory_space<vmem>>, vector<1x96x96xf32>
    %70 = vector.shape_cast %69 : vector<1x96x96xf32> to vector<96x96xf32>
    %cst_49 = arith.constant dense<0.000000e+00> : vector<80x96xf32>
    %71 = tpu.matmul %68, %70, %cst_49 {dimension_numbers = #tpu.dot_dimension_numbers<[1], [0], [0], [1], [0, 0, 1, 1], [], []>} : vector<80x96xf32>, vector<96x96xf32>, vector<80x96xf32> -> vector<80x96xf32>
    %72 = arith.addf %63, %71 : vector<80x96xf32>
    %c20_i32_50 = arith.constant 20 : i32
    %73 = arith.addi %1, %c20_i32_50 : i32
    %c2_i32_51 = arith.constant 2 : i32
    %74 = arith.addi %73, %c2_i32_51 : i32
    %c0_52 = arith.constant 0 : index
    %75 = arith.index_cast %74 : i32 to index
    %c0_53 = arith.constant 0 : index
    %76 = vector.load %arg2[%c0_52, %75, %c0_53] : memref<1x110x96xf32, #tpu.memory_space<vmem>>, vector<1x80x96xf32>
    %77 = vector.shape_cast %76 : vector<1x80x96xf32> to vector<80x96xf32>
    %c8 = arith.constant 8 : index
    %c0_54 = arith.constant 0 : index
    %c0_55 = arith.constant 0 : index
    %78 = vector.load %arg3[%c8, %c0_54, %c0_55] : memref<9x96x96xf32, #tpu.memory_space<vmem>>, vector<1x96x96xf32>
    %79 = vector.shape_cast %78 : vector<1x96x96xf32> to vector<96x96xf32>
    %cst_56 = arith.constant dense<0.000000e+00> : vector<80x96xf32>
    %80 = tpu.matmul %77, %79, %cst_56 {dimension_numbers = #tpu.dot_dimension_numbers<[1], [0], [0], [1], [0, 0, 1, 1], [], []>} : vector<80x96xf32>, vector<96x96xf32>, vector<80x96xf32> -> vector<80x96xf32>
    %81 = arith.addf %72, %80 : vector<80x96xf32>
    %c0_57 = arith.constant 0 : index
    %c0_58 = arith.constant 0 : index
    %82 = vector.load %arg4[%c0_57, %c0_58] : memref<1x96xf32, #tpu.memory_space<vmem>>, vector<1x96xf32>
    %83 = vector.broadcast %82 : vector<1x96xf32> to vector<80x96xf32>
    %84 = arith.addf %81, %83 : vector<80x96xf32>
    %cst_59 = arith.constant 0.000000e+00 : f32
    %85 = vector.broadcast %cst_59 : f32 to vector<80x96xf32>
    %86 = arith.maximumf %84, %85 : vector<80x96xf32>
    %87 = vector.extract_strided_slice %86 {offsets = [0, 0], sizes = [8, 96], strides = [1, 1]} : vector<80x96xf32> to vector<8x96xf32>
    %c0_60 = arith.constant 0 : index
    %c0_61 = arith.constant 0 : index
    %c0_62 = arith.constant 0 : index
    %c0_63 = arith.constant 0 : index
    %88 = vector.load %arg5[%c0_60, %c0_61, %c0_62, %c0_63] : memref<1x8x8x96xf32, #tpu.memory_space<vmem>>, vector<1x1x8x96xf32>
    %89 = vector.shape_cast %88 : vector<1x1x8x96xf32> to vector<8x96xf32>
    %90 = vector.shape_cast %87 : vector<8x96xf32> to vector<1x1x8x96xf32>
    tpu.vector_store %arg5[%c0_60, %c0_61, %c0_62, %c0_63], %90 {strides = array<i32>} : memref<1x8x8x96xf32, #tpu.memory_space<vmem>>, vector<1x1x8x96xf32>,
    %91 = vector.extract_strided_slice %86 {offsets = [10, 0], sizes = [8, 96], strides = [1, 1]} : vector<80x96xf32> to vector<8x96xf32>
    %c0_64 = arith.constant 0 : index
    %c1_65 = arith.constant 1 : index
    %c0_66 = arith.constant 0 : index
    %c0_67 = arith.constant 0 : index
    %92 = vector.load %arg5[%c0_64, %c1_65, %c0_66, %c0_67] : memref<1x8x8x96xf32, #tpu.memory_space<vmem>>, vector<1x1x8x96xf32>
    %93 = vector.shape_cast %92 : vector<1x1x8x96xf32> to vector<8x96xf32>
    %94 = vector.shape_cast %91 : vector<8x96xf32> to vector<1x1x8x96xf32>
    tpu.vector_store %arg5[%c0_64, %c1_65, %c0_66, %c0_67], %94 {strides = array<i32>} : memref<1x8x8x96xf32, #tpu.memory_space<vmem>>, vector<1x1x8x96xf32>,
    %95 = vector.extract_strided_slice %86 {offsets = [20, 0], sizes = [8, 96], strides = [1, 1]} : vector<80x96xf32> to vector<8x96xf32>
    %c0_68 = arith.constant 0 : index
    %c2_69 = arith.constant 2 : index
    %c0_70 = arith.constant 0 : index
    %c0_71 = arith.constant 0 : index
    %96 = vector.load %arg5[%c0_68, %c2_69, %c0_70, %c0_71] : memref<1x8x8x96xf32, #tpu.memory_space<vmem>>, vector<1x1x8x96xf32>
    %97 = vector.shape_cast %96 : vector<1x1x8x96xf32> to vector<8x96xf32>
    %98 = vector.shape_cast %95 : vector<8x96xf32> to vector<1x1x8x96xf32>
    tpu.vector_store %arg5[%c0_68, %c2_69, %c0_70, %c0_71], %98 {strides = array<i32>} : memref<1x8x8x96xf32, #tpu.memory_space<vmem>>, vector<1x1x8x96xf32>,
    %99 = vector.extract_strided_slice %86 {offsets = [30, 0], sizes = [8, 96], strides = [1, 1]} : vector<80x96xf32> to vector<8x96xf32>
    %c0_72 = arith.constant 0 : index
    %c3_73 = arith.constant 3 : index
    %c0_74 = arith.constant 0 : index
    %c0_75 = arith.constant 0 : index
    %100 = vector.load %arg5[%c0_72, %c3_73, %c0_74, %c0_75] : memref<1x8x8x96xf32, #tpu.memory_space<vmem>>, vector<1x1x8x96xf32>
    %101 = vector.shape_cast %100 : vector<1x1x8x96xf32> to vector<8x96xf32>
    %102 = vector.shape_cast %99 : vector<8x96xf32> to vector<1x1x8x96xf32>
    tpu.vector_store %arg5[%c0_72, %c3_73, %c0_74, %c0_75], %102 {strides = array<i32>} : memref<1x8x8x96xf32, #tpu.memory_space<vmem>>, vector<1x1x8x96xf32>,
    %103 = vector.extract_strided_slice %86 {offsets = [40, 0], sizes = [8, 96], strides = [1, 1]} : vector<80x96xf32> to vector<8x96xf32>
    %c0_76 = arith.constant 0 : index
    %c4_77 = arith.constant 4 : index
    %c0_78 = arith.constant 0 : index
    %c0_79 = arith.constant 0 : index
    %104 = vector.load %arg5[%c0_76, %c4_77, %c0_78, %c0_79] : memref<1x8x8x96xf32, #tpu.memory_space<vmem>>, vector<1x1x8x96xf32>
    %105 = vector.shape_cast %104 : vector<1x1x8x96xf32> to vector<8x96xf32>
    %106 = vector.shape_cast %103 : vector<8x96xf32> to vector<1x1x8x96xf32>
    tpu.vector_store %arg5[%c0_76, %c4_77, %c0_78, %c0_79], %106 {strides = array<i32>} : memref<1x8x8x96xf32, #tpu.memory_space<vmem>>, vector<1x1x8x96xf32>,
    %107 = vector.extract_strided_slice %86 {offsets = [50, 0], sizes = [8, 96], strides = [1, 1]} : vector<80x96xf32> to vector<8x96xf32>
    %c0_80 = arith.constant 0 : index
    %c5_81 = arith.constant 5 : index
    %c0_82 = arith.constant 0 : index
    %c0_83 = arith.constant 0 : index
    %108 = vector.load %arg5[%c0_80, %c5_81, %c0_82, %c0_83] : memref<1x8x8x96xf32, #tpu.memory_space<vmem>>, vector<1x1x8x96xf32>
    %109 = vector.shape_cast %108 : vector<1x1x8x96xf32> to vector<8x96xf32>
    %110 = vector.shape_cast %107 : vector<8x96xf32> to vector<1x1x8x96xf32>
    tpu.vector_store %arg5[%c0_80, %c5_81, %c0_82, %c0_83], %110 {strides = array<i32>} : memref<1x8x8x96xf32, #tpu.memory_space<vmem>>, vector<1x1x8x96xf32>,
    %111 = vector.extract_strided_slice %86 {offsets = [60, 0], sizes = [8, 96], strides = [1, 1]} : vector<80x96xf32> to vector<8x96xf32>
    %c0_84 = arith.constant 0 : index
    %c6_85 = arith.constant 6 : index
    %c0_86 = arith.constant 0 : index
    %c0_87 = arith.constant 0 : index
    %112 = vector.load %arg5[%c0_84, %c6_85, %c0_86, %c0_87] : memref<1x8x8x96xf32, #tpu.memory_space<vmem>>, vector<1x1x8x96xf32>
    %113 = vector.shape_cast %112 : vector<1x1x8x96xf32> to vector<8x96xf32>
    %114 = vector.shape_cast %111 : vector<8x96xf32> to vector<1x1x8x96xf32>
    tpu.vector_store %arg5[%c0_84, %c6_85, %c0_86, %c0_87], %114 {strides = array<i32>} : memref<1x8x8x96xf32, #tpu.memory_space<vmem>>, vector<1x1x8x96xf32>,
    %115 = vector.extract_strided_slice %86 {offsets = [70, 0], sizes = [8, 96], strides = [1, 1]} : vector<80x96xf32> to vector<8x96xf32>
    %c0_88 = arith.constant 0 : index
    %c7_89 = arith.constant 7 : index
    %c0_90 = arith.constant 0 : index
    %c0_91 = arith.constant 0 : index
    %116 = vector.load %arg5[%c0_88, %c7_89, %c0_90, %c0_91] : memref<1x8x8x96xf32, #tpu.memory_space<vmem>>, vector<1x1x8x96xf32>
    %117 = vector.shape_cast %116 : vector<1x1x8x96xf32> to vector<8x96xf32>
    %118 = vector.shape_cast %115 : vector<8x96xf32> to vector<1x1x8x96xf32>
    tpu.vector_store %arg5[%c0_88, %c7_89, %c0_90, %c0_91], %118 {strides = array<i32>} : memref<1x8x8x96xf32, #tpu.memory_space<vmem>>, vector<1x1x8x96xf32>,
    return
  }
  func.func @transform_0(%arg0: i32, %arg1: i32) -> (i32, i32, i32) {
    %c0_i32 = arith.constant 0 : i32
    %c0_i32_0 = arith.constant 0 : i32
    %c0_i32_1 = arith.constant 0 : i32
    return %arg0, %c0_i32, %c0_i32_0 : i32, i32, i32
  }
  func.func @transform_1(%arg0: i32, %arg1: i32) -> (i32, i32, i32) {
    %c0_i32 = arith.constant 0 : i32
    %c0_i32_0 = arith.constant 0 : i32
    %c0_i32_1 = arith.constant 0 : i32
    %c0_i32_2 = arith.constant 0 : i32
    return %c0_i32, %c0_i32_0, %c0_i32_1 : i32, i32, i32
  }
  func.func @transform_2(%arg0: i32, %arg1: i32) -> (i32, i32) {
    %c0_i32 = arith.constant 0 : i32
    %c0_i32_0 = arith.constant 0 : i32
    %c0_i32_1 = arith.constant 0 : i32
    return %c0_i32, %c0_i32_0 : i32, i32
  }
  func.func @transform_3(%arg0: i32, %arg1: i32) -> (i32, i32, i32, i32) {
    %c0_i32 = arith.constant 0 : i32
    %c0_i32_0 = arith.constant 0 : i32
    %c0_i32_1 = arith.constant 0 : i32
    return %arg0, %arg1, %c0_i32, %c0_i32_0 : i32, i32, i32, i32
  }
}

module attributes {stable_mosaic.version = 11 : i64} {
  func.func @_conv_kxk_kernel(%arg0: i32, %arg1: i32, %arg2: memref<1x156x48xf32, #tpu.memory_space<vmem>>, %arg3: memref<25x48x64xf32, #tpu.memory_space<vmem>>, %arg4: memref<1x64xf32, #tpu.memory_space<vmem>>, %arg5: memref<1x8x8x64xf32, #tpu.memory_space<vmem>>) attributes {dimension_semantics = [#tpu.dimension_semantics<parallel>, #tpu.dimension_semantics<parallel>], iteration_bounds = array<i64: 2, 1>, scalar_prefetch = 0 : i64, scratch_operands = 0 : i64, tpu.core_type = #tpu.core_type<tc>, window_params = [{transform_indices = @transform_0, window_bounds = array<i64: 1, 156, 48>}, {pipeline_mode = #tpu.pipeline_mode<synchronous>, transform_indices = @transform_1, window_bounds = array<i64: 25, 48, 64>}, {pipeline_mode = #tpu.pipeline_mode<synchronous>, transform_indices = @transform_2, window_bounds = array<i64: 1, 64>}, {transform_indices = @transform_3, window_bounds = array<i64: 1, 8, 8, 64>}]} {
    %c96_i32 = arith.constant 96 : i32
    %0 = arith.muli %arg1, %c96_i32 : i32
    %1 = tpu.assume_multiple %0, 8 : i32
    %c0_i32 = arith.constant 0 : i32
    %2 = arith.addi %1, %c0_i32 : i32
    %c0_i32_0 = arith.constant 0 : i32
    %3 = arith.addi %2, %c0_i32_0 : i32
    %c0 = arith.constant 0 : index
    %4 = arith.index_cast %3 : i32 to index
    %c0_1 = arith.constant 0 : index
    %5 = vector.load %arg2[%c0, %4, %c0_1] : memref<1x156x48xf32, #tpu.memory_space<vmem>>, vector<1x96x48xf32>
    %6 = vector.shape_cast %5 : vector<1x96x48xf32> to vector<96x48xf32>
    %c0_2 = arith.constant 0 : index
    %c0_3 = arith.constant 0 : index
    %c0_4 = arith.constant 0 : index
    %7 = vector.load %arg3[%c0_2, %c0_3, %c0_4] : memref<25x48x64xf32, #tpu.memory_space<vmem>>, vector<1x48x64xf32>
    %8 = vector.shape_cast %7 : vector<1x48x64xf32> to vector<48x64xf32>
    %cst = arith.constant dense<0.000000e+00> : vector<96x64xf32>
    %9 = tpu.matmul %6, %8, %cst {dimension_numbers = #tpu.dot_dimension_numbers<[1], [0], [0], [1], [0, 0, 1, 1], [], []>} : vector<96x48xf32>, vector<48x64xf32>, vector<96x64xf32> -> vector<96x64xf32>
    %c0_i32_5 = arith.constant 0 : i32
    %10 = arith.addi %1, %c0_i32_5 : i32
    %c1_i32 = arith.constant 1 : i32
    %11 = arith.addi %10, %c1_i32 : i32
    %c0_6 = arith.constant 0 : index
    %12 = arith.index_cast %11 : i32 to index
    %c0_7 = arith.constant 0 : index
    %13 = vector.load %arg2[%c0_6, %12, %c0_7] : memref<1x156x48xf32, #tpu.memory_space<vmem>>, vector<1x96x48xf32>
    %14 = vector.shape_cast %13 : vector<1x96x48xf32> to vector<96x48xf32>
    %c1 = arith.constant 1 : index
    %c0_8 = arith.constant 0 : index
    %c0_9 = arith.constant 0 : index
    %15 = vector.load %arg3[%c1, %c0_8, %c0_9] : memref<25x48x64xf32, #tpu.memory_space<vmem>>, vector<1x48x64xf32>
    %16 = vector.shape_cast %15 : vector<1x48x64xf32> to vector<48x64xf32>
    %cst_10 = arith.constant dense<0.000000e+00> : vector<96x64xf32>
    %17 = tpu.matmul %14, %16, %cst_10 {dimension_numbers = #tpu.dot_dimension_numbers<[1], [0], [0], [1], [0, 0, 1, 1], [], []>} : vector<96x48xf32>, vector<48x64xf32>, vector<96x64xf32> -> vector<96x64xf32>
    %18 = arith.addf %9, %17 : vector<96x64xf32>
    %c0_i32_11 = arith.constant 0 : i32
    %19 = arith.addi %1, %c0_i32_11 : i32
    %c2_i32 = arith.constant 2 : i32
    %20 = arith.addi %19, %c2_i32 : i32
    %c0_12 = arith.constant 0 : index
    %21 = arith.index_cast %20 : i32 to index
    %c0_13 = arith.constant 0 : index
    %22 = vector.load %arg2[%c0_12, %21, %c0_13] : memref<1x156x48xf32, #tpu.memory_space<vmem>>, vector<1x96x48xf32>
    %23 = vector.shape_cast %22 : vector<1x96x48xf32> to vector<96x48xf32>
    %c2 = arith.constant 2 : index
    %c0_14 = arith.constant 0 : index
    %c0_15 = arith.constant 0 : index
    %24 = vector.load %arg3[%c2, %c0_14, %c0_15] : memref<25x48x64xf32, #tpu.memory_space<vmem>>, vector<1x48x64xf32>
    %25 = vector.shape_cast %24 : vector<1x48x64xf32> to vector<48x64xf32>
    %cst_16 = arith.constant dense<0.000000e+00> : vector<96x64xf32>
    %26 = tpu.matmul %23, %25, %cst_16 {dimension_numbers = #tpu.dot_dimension_numbers<[1], [0], [0], [1], [0, 0, 1, 1], [], []>} : vector<96x48xf32>, vector<48x64xf32>, vector<96x64xf32> -> vector<96x64xf32>
    %27 = arith.addf %18, %26 : vector<96x64xf32>
    %c0_i32_17 = arith.constant 0 : i32
    %28 = arith.addi %1, %c0_i32_17 : i32
    %c3_i32 = arith.constant 3 : i32
    %29 = arith.addi %28, %c3_i32 : i32
    %c0_18 = arith.constant 0 : index
    %30 = arith.index_cast %29 : i32 to index
    %c0_19 = arith.constant 0 : index
    %31 = vector.load %arg2[%c0_18, %30, %c0_19] : memref<1x156x48xf32, #tpu.memory_space<vmem>>, vector<1x96x48xf32>
    %32 = vector.shape_cast %31 : vector<1x96x48xf32> to vector<96x48xf32>
    %c3 = arith.constant 3 : index
    %c0_20 = arith.constant 0 : index
    %c0_21 = arith.constant 0 : index
    %33 = vector.load %arg3[%c3, %c0_20, %c0_21] : memref<25x48x64xf32, #tpu.memory_space<vmem>>, vector<1x48x64xf32>
    %34 = vector.shape_cast %33 : vector<1x48x64xf32> to vector<48x64xf32>
    %cst_22 = arith.constant dense<0.000000e+00> : vector<96x64xf32>
    %35 = tpu.matmul %32, %34, %cst_22 {dimension_numbers = #tpu.dot_dimension_numbers<[1], [0], [0], [1], [0, 0, 1, 1], [], []>} : vector<96x48xf32>, vector<48x64xf32>, vector<96x64xf32> -> vector<96x64xf32>
    %36 = arith.addf %27, %35 : vector<96x64xf32>
    %c0_i32_23 = arith.constant 0 : i32
    %37 = arith.addi %1, %c0_i32_23 : i32
    %c4_i32 = arith.constant 4 : i32
    %38 = arith.addi %37, %c4_i32 : i32
    %c0_24 = arith.constant 0 : index
    %39 = arith.index_cast %38 : i32 to index
    %c0_25 = arith.constant 0 : index
    %40 = vector.load %arg2[%c0_24, %39, %c0_25] : memref<1x156x48xf32, #tpu.memory_space<vmem>>, vector<1x96x48xf32>
    %41 = vector.shape_cast %40 : vector<1x96x48xf32> to vector<96x48xf32>
    %c4 = arith.constant 4 : index
    %c0_26 = arith.constant 0 : index
    %c0_27 = arith.constant 0 : index
    %42 = vector.load %arg3[%c4, %c0_26, %c0_27] : memref<25x48x64xf32, #tpu.memory_space<vmem>>, vector<1x48x64xf32>
    %43 = vector.shape_cast %42 : vector<1x48x64xf32> to vector<48x64xf32>
    %cst_28 = arith.constant dense<0.000000e+00> : vector<96x64xf32>
    %44 = tpu.matmul %41, %43, %cst_28 {dimension_numbers = #tpu.dot_dimension_numbers<[1], [0], [0], [1], [0, 0, 1, 1], [], []>} : vector<96x48xf32>, vector<48x64xf32>, vector<96x64xf32> -> vector<96x64xf32>
    %45 = arith.addf %36, %44 : vector<96x64xf32>
    %c12_i32 = arith.constant 12 : i32
    %46 = arith.addi %1, %c12_i32 : i32
    %c0_i32_29 = arith.constant 0 : i32
    %47 = arith.addi %46, %c0_i32_29 : i32
    %c0_30 = arith.constant 0 : index
    %48 = arith.index_cast %47 : i32 to index
    %c0_31 = arith.constant 0 : index
    %49 = vector.load %arg2[%c0_30, %48, %c0_31] : memref<1x156x48xf32, #tpu.memory_space<vmem>>, vector<1x96x48xf32>
    %50 = vector.shape_cast %49 : vector<1x96x48xf32> to vector<96x48xf32>
    %c5 = arith.constant 5 : index
    %c0_32 = arith.constant 0 : index
    %c0_33 = arith.constant 0 : index
    %51 = vector.load %arg3[%c5, %c0_32, %c0_33] : memref<25x48x64xf32, #tpu.memory_space<vmem>>, vector<1x48x64xf32>
    %52 = vector.shape_cast %51 : vector<1x48x64xf32> to vector<48x64xf32>
    %cst_34 = arith.constant dense<0.000000e+00> : vector<96x64xf32>
    %53 = tpu.matmul %50, %52, %cst_34 {dimension_numbers = #tpu.dot_dimension_numbers<[1], [0], [0], [1], [0, 0, 1, 1], [], []>} : vector<96x48xf32>, vector<48x64xf32>, vector<96x64xf32> -> vector<96x64xf32>
    %54 = arith.addf %45, %53 : vector<96x64xf32>
    %c12_i32_35 = arith.constant 12 : i32
    %55 = arith.addi %1, %c12_i32_35 : i32
    %c1_i32_36 = arith.constant 1 : i32
    %56 = arith.addi %55, %c1_i32_36 : i32
    %c0_37 = arith.constant 0 : index
    %57 = arith.index_cast %56 : i32 to index
    %c0_38 = arith.constant 0 : index
    %58 = vector.load %arg2[%c0_37, %57, %c0_38] : memref<1x156x48xf32, #tpu.memory_space<vmem>>, vector<1x96x48xf32>
    %59 = vector.shape_cast %58 : vector<1x96x48xf32> to vector<96x48xf32>
    %c6 = arith.constant 6 : index
    %c0_39 = arith.constant 0 : index
    %c0_40 = arith.constant 0 : index
    %60 = vector.load %arg3[%c6, %c0_39, %c0_40] : memref<25x48x64xf32, #tpu.memory_space<vmem>>, vector<1x48x64xf32>
    %61 = vector.shape_cast %60 : vector<1x48x64xf32> to vector<48x64xf32>
    %cst_41 = arith.constant dense<0.000000e+00> : vector<96x64xf32>
    %62 = tpu.matmul %59, %61, %cst_41 {dimension_numbers = #tpu.dot_dimension_numbers<[1], [0], [0], [1], [0, 0, 1, 1], [], []>} : vector<96x48xf32>, vector<48x64xf32>, vector<96x64xf32> -> vector<96x64xf32>
    %63 = arith.addf %54, %62 : vector<96x64xf32>
    %c12_i32_42 = arith.constant 12 : i32
    %64 = arith.addi %1, %c12_i32_42 : i32
    %c2_i32_43 = arith.constant 2 : i32
    %65 = arith.addi %64, %c2_i32_43 : i32
    %c0_44 = arith.constant 0 : index
    %66 = arith.index_cast %65 : i32 to index
    %c0_45 = arith.constant 0 : index
    %67 = vector.load %arg2[%c0_44, %66, %c0_45] : memref<1x156x48xf32, #tpu.memory_space<vmem>>, vector<1x96x48xf32>
    %68 = vector.shape_cast %67 : vector<1x96x48xf32> to vector<96x48xf32>
    %c7 = arith.constant 7 : index
    %c0_46 = arith.constant 0 : index
    %c0_47 = arith.constant 0 : index
    %69 = vector.load %arg3[%c7, %c0_46, %c0_47] : memref<25x48x64xf32, #tpu.memory_space<vmem>>, vector<1x48x64xf32>
    %70 = vector.shape_cast %69 : vector<1x48x64xf32> to vector<48x64xf32>
    %cst_48 = arith.constant dense<0.000000e+00> : vector<96x64xf32>
    %71 = tpu.matmul %68, %70, %cst_48 {dimension_numbers = #tpu.dot_dimension_numbers<[1], [0], [0], [1], [0, 0, 1, 1], [], []>} : vector<96x48xf32>, vector<48x64xf32>, vector<96x64xf32> -> vector<96x64xf32>
    %72 = arith.addf %63, %71 : vector<96x64xf32>
    %c12_i32_49 = arith.constant 12 : i32
    %73 = arith.addi %1, %c12_i32_49 : i32
    %c3_i32_50 = arith.constant 3 : i32
    %74 = arith.addi %73, %c3_i32_50 : i32
    %c0_51 = arith.constant 0 : index
    %75 = arith.index_cast %74 : i32 to index
    %c0_52 = arith.constant 0 : index
    %76 = vector.load %arg2[%c0_51, %75, %c0_52] : memref<1x156x48xf32, #tpu.memory_space<vmem>>, vector<1x96x48xf32>
    %77 = vector.shape_cast %76 : vector<1x96x48xf32> to vector<96x48xf32>
    %c8 = arith.constant 8 : index
    %c0_53 = arith.constant 0 : index
    %c0_54 = arith.constant 0 : index
    %78 = vector.load %arg3[%c8, %c0_53, %c0_54] : memref<25x48x64xf32, #tpu.memory_space<vmem>>, vector<1x48x64xf32>
    %79 = vector.shape_cast %78 : vector<1x48x64xf32> to vector<48x64xf32>
    %cst_55 = arith.constant dense<0.000000e+00> : vector<96x64xf32>
    %80 = tpu.matmul %77, %79, %cst_55 {dimension_numbers = #tpu.dot_dimension_numbers<[1], [0], [0], [1], [0, 0, 1, 1], [], []>} : vector<96x48xf32>, vector<48x64xf32>, vector<96x64xf32> -> vector<96x64xf32>
    %81 = arith.addf %72, %80 : vector<96x64xf32>
    %c12_i32_56 = arith.constant 12 : i32
    %82 = arith.addi %1, %c12_i32_56 : i32
    %c4_i32_57 = arith.constant 4 : i32
    %83 = arith.addi %82, %c4_i32_57 : i32
    %c0_58 = arith.constant 0 : index
    %84 = arith.index_cast %83 : i32 to index
    %c0_59 = arith.constant 0 : index
    %85 = vector.load %arg2[%c0_58, %84, %c0_59] : memref<1x156x48xf32, #tpu.memory_space<vmem>>, vector<1x96x48xf32>
    %86 = vector.shape_cast %85 : vector<1x96x48xf32> to vector<96x48xf32>
    %c9 = arith.constant 9 : index
    %c0_60 = arith.constant 0 : index
    %c0_61 = arith.constant 0 : index
    %87 = vector.load %arg3[%c9, %c0_60, %c0_61] : memref<25x48x64xf32, #tpu.memory_space<vmem>>, vector<1x48x64xf32>
    %88 = vector.shape_cast %87 : vector<1x48x64xf32> to vector<48x64xf32>
    %cst_62 = arith.constant dense<0.000000e+00> : vector<96x64xf32>
    %89 = tpu.matmul %86, %88, %cst_62 {dimension_numbers = #tpu.dot_dimension_numbers<[1], [0], [0], [1], [0, 0, 1, 1], [], []>} : vector<96x48xf32>, vector<48x64xf32>, vector<96x64xf32> -> vector<96x64xf32>
    %90 = arith.addf %81, %89 : vector<96x64xf32>
    %c24_i32 = arith.constant 24 : i32
    %91 = arith.addi %1, %c24_i32 : i32
    %c0_i32_63 = arith.constant 0 : i32
    %92 = arith.addi %91, %c0_i32_63 : i32
    %c0_64 = arith.constant 0 : index
    %93 = arith.index_cast %92 : i32 to index
    %c0_65 = arith.constant 0 : index
    %94 = vector.load %arg2[%c0_64, %93, %c0_65] : memref<1x156x48xf32, #tpu.memory_space<vmem>>, vector<1x96x48xf32>
    %95 = vector.shape_cast %94 : vector<1x96x48xf32> to vector<96x48xf32>
    %c10 = arith.constant 10 : index
    %c0_66 = arith.constant 0 : index
    %c0_67 = arith.constant 0 : index
    %96 = vector.load %arg3[%c10, %c0_66, %c0_67] : memref<25x48x64xf32, #tpu.memory_space<vmem>>, vector<1x48x64xf32>
    %97 = vector.shape_cast %96 : vector<1x48x64xf32> to vector<48x64xf32>
    %cst_68 = arith.constant dense<0.000000e+00> : vector<96x64xf32>
    %98 = tpu.matmul %95, %97, %cst_68 {dimension_numbers = #tpu.dot_dimension_numbers<[1], [0], [0], [1], [0, 0, 1, 1], [], []>} : vector<96x48xf32>, vector<48x64xf32>, vector<96x64xf32> -> vector<96x64xf32>
    %99 = arith.addf %90, %98 : vector<96x64xf32>
    %c24_i32_69 = arith.constant 24 : i32
    %100 = arith.addi %1, %c24_i32_69 : i32
    %c1_i32_70 = arith.constant 1 : i32
    %101 = arith.addi %100, %c1_i32_70 : i32
    %c0_71 = arith.constant 0 : index
    %102 = arith.index_cast %101 : i32 to index
    %c0_72 = arith.constant 0 : index
    %103 = vector.load %arg2[%c0_71, %102, %c0_72] : memref<1x156x48xf32, #tpu.memory_space<vmem>>, vector<1x96x48xf32>
    %104 = vector.shape_cast %103 : vector<1x96x48xf32> to vector<96x48xf32>
    %c11 = arith.constant 11 : index
    %c0_73 = arith.constant 0 : index
    %c0_74 = arith.constant 0 : index
    %105 = vector.load %arg3[%c11, %c0_73, %c0_74] : memref<25x48x64xf32, #tpu.memory_space<vmem>>, vector<1x48x64xf32>
    %106 = vector.shape_cast %105 : vector<1x48x64xf32> to vector<48x64xf32>
    %cst_75 = arith.constant dense<0.000000e+00> : vector<96x64xf32>
    %107 = tpu.matmul %104, %106, %cst_75 {dimension_numbers = #tpu.dot_dimension_numbers<[1], [0], [0], [1], [0, 0, 1, 1], [], []>} : vector<96x48xf32>, vector<48x64xf32>, vector<96x64xf32> -> vector<96x64xf32>
    %108 = arith.addf %99, %107 : vector<96x64xf32>
    %c24_i32_76 = arith.constant 24 : i32
    %109 = arith.addi %1, %c24_i32_76 : i32
    %c2_i32_77 = arith.constant 2 : i32
    %110 = arith.addi %109, %c2_i32_77 : i32
    %c0_78 = arith.constant 0 : index
    %111 = arith.index_cast %110 : i32 to index
    %c0_79 = arith.constant 0 : index
    %112 = vector.load %arg2[%c0_78, %111, %c0_79] : memref<1x156x48xf32, #tpu.memory_space<vmem>>, vector<1x96x48xf32>
    %113 = vector.shape_cast %112 : vector<1x96x48xf32> to vector<96x48xf32>
    %c12 = arith.constant 12 : index
    %c0_80 = arith.constant 0 : index
    %c0_81 = arith.constant 0 : index
    %114 = vector.load %arg3[%c12, %c0_80, %c0_81] : memref<25x48x64xf32, #tpu.memory_space<vmem>>, vector<1x48x64xf32>
    %115 = vector.shape_cast %114 : vector<1x48x64xf32> to vector<48x64xf32>
    %cst_82 = arith.constant dense<0.000000e+00> : vector<96x64xf32>
    %116 = tpu.matmul %113, %115, %cst_82 {dimension_numbers = #tpu.dot_dimension_numbers<[1], [0], [0], [1], [0, 0, 1, 1], [], []>} : vector<96x48xf32>, vector<48x64xf32>, vector<96x64xf32> -> vector<96x64xf32>
    %117 = arith.addf %108, %116 : vector<96x64xf32>
    %c24_i32_83 = arith.constant 24 : i32
    %118 = arith.addi %1, %c24_i32_83 : i32
    %c3_i32_84 = arith.constant 3 : i32
    %119 = arith.addi %118, %c3_i32_84 : i32
    %c0_85 = arith.constant 0 : index
    %120 = arith.index_cast %119 : i32 to index
    %c0_86 = arith.constant 0 : index
    %121 = vector.load %arg2[%c0_85, %120, %c0_86] : memref<1x156x48xf32, #tpu.memory_space<vmem>>, vector<1x96x48xf32>
    %122 = vector.shape_cast %121 : vector<1x96x48xf32> to vector<96x48xf32>
    %c13 = arith.constant 13 : index
    %c0_87 = arith.constant 0 : index
    %c0_88 = arith.constant 0 : index
    %123 = vector.load %arg3[%c13, %c0_87, %c0_88] : memref<25x48x64xf32, #tpu.memory_space<vmem>>, vector<1x48x64xf32>
    %124 = vector.shape_cast %123 : vector<1x48x64xf32> to vector<48x64xf32>
    %cst_89 = arith.constant dense<0.000000e+00> : vector<96x64xf32>
    %125 = tpu.matmul %122, %124, %cst_89 {dimension_numbers = #tpu.dot_dimension_numbers<[1], [0], [0], [1], [0, 0, 1, 1], [], []>} : vector<96x48xf32>, vector<48x64xf32>, vector<96x64xf32> -> vector<96x64xf32>
    %126 = arith.addf %117, %125 : vector<96x64xf32>
    %c24_i32_90 = arith.constant 24 : i32
    %127 = arith.addi %1, %c24_i32_90 : i32
    %c4_i32_91 = arith.constant 4 : i32
    %128 = arith.addi %127, %c4_i32_91 : i32
    %c0_92 = arith.constant 0 : index
    %129 = arith.index_cast %128 : i32 to index
    %c0_93 = arith.constant 0 : index
    %130 = vector.load %arg2[%c0_92, %129, %c0_93] : memref<1x156x48xf32, #tpu.memory_space<vmem>>, vector<1x96x48xf32>
    %131 = vector.shape_cast %130 : vector<1x96x48xf32> to vector<96x48xf32>
    %c14 = arith.constant 14 : index
    %c0_94 = arith.constant 0 : index
    %c0_95 = arith.constant 0 : index
    %132 = vector.load %arg3[%c14, %c0_94, %c0_95] : memref<25x48x64xf32, #tpu.memory_space<vmem>>, vector<1x48x64xf32>
    %133 = vector.shape_cast %132 : vector<1x48x64xf32> to vector<48x64xf32>
    %cst_96 = arith.constant dense<0.000000e+00> : vector<96x64xf32>
    %134 = tpu.matmul %131, %133, %cst_96 {dimension_numbers = #tpu.dot_dimension_numbers<[1], [0], [0], [1], [0, 0, 1, 1], [], []>} : vector<96x48xf32>, vector<48x64xf32>, vector<96x64xf32> -> vector<96x64xf32>
    %135 = arith.addf %126, %134 : vector<96x64xf32>
    %c36_i32 = arith.constant 36 : i32
    %136 = arith.addi %1, %c36_i32 : i32
    %c0_i32_97 = arith.constant 0 : i32
    %137 = arith.addi %136, %c0_i32_97 : i32
    %c0_98 = arith.constant 0 : index
    %138 = arith.index_cast %137 : i32 to index
    %c0_99 = arith.constant 0 : index
    %139 = vector.load %arg2[%c0_98, %138, %c0_99] : memref<1x156x48xf32, #tpu.memory_space<vmem>>, vector<1x96x48xf32>
    %140 = vector.shape_cast %139 : vector<1x96x48xf32> to vector<96x48xf32>
    %c15 = arith.constant 15 : index
    %c0_100 = arith.constant 0 : index
    %c0_101 = arith.constant 0 : index
    %141 = vector.load %arg3[%c15, %c0_100, %c0_101] : memref<25x48x64xf32, #tpu.memory_space<vmem>>, vector<1x48x64xf32>
    %142 = vector.shape_cast %141 : vector<1x48x64xf32> to vector<48x64xf32>
    %cst_102 = arith.constant dense<0.000000e+00> : vector<96x64xf32>
    %143 = tpu.matmul %140, %142, %cst_102 {dimension_numbers = #tpu.dot_dimension_numbers<[1], [0], [0], [1], [0, 0, 1, 1], [], []>} : vector<96x48xf32>, vector<48x64xf32>, vector<96x64xf32> -> vector<96x64xf32>
    %144 = arith.addf %135, %143 : vector<96x64xf32>
    %c36_i32_103 = arith.constant 36 : i32
    %145 = arith.addi %1, %c36_i32_103 : i32
    %c1_i32_104 = arith.constant 1 : i32
    %146 = arith.addi %145, %c1_i32_104 : i32
    %c0_105 = arith.constant 0 : index
    %147 = arith.index_cast %146 : i32 to index
    %c0_106 = arith.constant 0 : index
    %148 = vector.load %arg2[%c0_105, %147, %c0_106] : memref<1x156x48xf32, #tpu.memory_space<vmem>>, vector<1x96x48xf32>
    %149 = vector.shape_cast %148 : vector<1x96x48xf32> to vector<96x48xf32>
    %c16 = arith.constant 16 : index
    %c0_107 = arith.constant 0 : index
    %c0_108 = arith.constant 0 : index
    %150 = vector.load %arg3[%c16, %c0_107, %c0_108] : memref<25x48x64xf32, #tpu.memory_space<vmem>>, vector<1x48x64xf32>
    %151 = vector.shape_cast %150 : vector<1x48x64xf32> to vector<48x64xf32>
    %cst_109 = arith.constant dense<0.000000e+00> : vector<96x64xf32>
    %152 = tpu.matmul %149, %151, %cst_109 {dimension_numbers = #tpu.dot_dimension_numbers<[1], [0], [0], [1], [0, 0, 1, 1], [], []>} : vector<96x48xf32>, vector<48x64xf32>, vector<96x64xf32> -> vector<96x64xf32>
    %153 = arith.addf %144, %152 : vector<96x64xf32>
    %c36_i32_110 = arith.constant 36 : i32
    %154 = arith.addi %1, %c36_i32_110 : i32
    %c2_i32_111 = arith.constant 2 : i32
    %155 = arith.addi %154, %c2_i32_111 : i32
    %c0_112 = arith.constant 0 : index
    %156 = arith.index_cast %155 : i32 to index
    %c0_113 = arith.constant 0 : index
    %157 = vector.load %arg2[%c0_112, %156, %c0_113] : memref<1x156x48xf32, #tpu.memory_space<vmem>>, vector<1x96x48xf32>
    %158 = vector.shape_cast %157 : vector<1x96x48xf32> to vector<96x48xf32>
    %c17 = arith.constant 17 : index
    %c0_114 = arith.constant 0 : index
    %c0_115 = arith.constant 0 : index
    %159 = vector.load %arg3[%c17, %c0_114, %c0_115] : memref<25x48x64xf32, #tpu.memory_space<vmem>>, vector<1x48x64xf32>
    %160 = vector.shape_cast %159 : vector<1x48x64xf32> to vector<48x64xf32>
    %cst_116 = arith.constant dense<0.000000e+00> : vector<96x64xf32>
    %161 = tpu.matmul %158, %160, %cst_116 {dimension_numbers = #tpu.dot_dimension_numbers<[1], [0], [0], [1], [0, 0, 1, 1], [], []>} : vector<96x48xf32>, vector<48x64xf32>, vector<96x64xf32> -> vector<96x64xf32>
    %162 = arith.addf %153, %161 : vector<96x64xf32>
    %c36_i32_117 = arith.constant 36 : i32
    %163 = arith.addi %1, %c36_i32_117 : i32
    %c3_i32_118 = arith.constant 3 : i32
    %164 = arith.addi %163, %c3_i32_118 : i32
    %c0_119 = arith.constant 0 : index
    %165 = arith.index_cast %164 : i32 to index
    %c0_120 = arith.constant 0 : index
    %166 = vector.load %arg2[%c0_119, %165, %c0_120] : memref<1x156x48xf32, #tpu.memory_space<vmem>>, vector<1x96x48xf32>
    %167 = vector.shape_cast %166 : vector<1x96x48xf32> to vector<96x48xf32>
    %c18 = arith.constant 18 : index
    %c0_121 = arith.constant 0 : index
    %c0_122 = arith.constant 0 : index
    %168 = vector.load %arg3[%c18, %c0_121, %c0_122] : memref<25x48x64xf32, #tpu.memory_space<vmem>>, vector<1x48x64xf32>
    %169 = vector.shape_cast %168 : vector<1x48x64xf32> to vector<48x64xf32>
    %cst_123 = arith.constant dense<0.000000e+00> : vector<96x64xf32>
    %170 = tpu.matmul %167, %169, %cst_123 {dimension_numbers = #tpu.dot_dimension_numbers<[1], [0], [0], [1], [0, 0, 1, 1], [], []>} : vector<96x48xf32>, vector<48x64xf32>, vector<96x64xf32> -> vector<96x64xf32>
    %171 = arith.addf %162, %170 : vector<96x64xf32>
    %c36_i32_124 = arith.constant 36 : i32
    %172 = arith.addi %1, %c36_i32_124 : i32
    %c4_i32_125 = arith.constant 4 : i32
    %173 = arith.addi %172, %c4_i32_125 : i32
    %c0_126 = arith.constant 0 : index
    %174 = arith.index_cast %173 : i32 to index
    %c0_127 = arith.constant 0 : index
    %175 = vector.load %arg2[%c0_126, %174, %c0_127] : memref<1x156x48xf32, #tpu.memory_space<vmem>>, vector<1x96x48xf32>
    %176 = vector.shape_cast %175 : vector<1x96x48xf32> to vector<96x48xf32>
    %c19 = arith.constant 19 : index
    %c0_128 = arith.constant 0 : index
    %c0_129 = arith.constant 0 : index
    %177 = vector.load %arg3[%c19, %c0_128, %c0_129] : memref<25x48x64xf32, #tpu.memory_space<vmem>>, vector<1x48x64xf32>
    %178 = vector.shape_cast %177 : vector<1x48x64xf32> to vector<48x64xf32>
    %cst_130 = arith.constant dense<0.000000e+00> : vector<96x64xf32>
    %179 = tpu.matmul %176, %178, %cst_130 {dimension_numbers = #tpu.dot_dimension_numbers<[1], [0], [0], [1], [0, 0, 1, 1], [], []>} : vector<96x48xf32>, vector<48x64xf32>, vector<96x64xf32> -> vector<96x64xf32>
    %180 = arith.addf %171, %179 : vector<96x64xf32>
    %c48_i32 = arith.constant 48 : i32
    %181 = arith.addi %1, %c48_i32 : i32
    %c0_i32_131 = arith.constant 0 : i32
    %182 = arith.addi %181, %c0_i32_131 : i32
    %c0_132 = arith.constant 0 : index
    %183 = arith.index_cast %182 : i32 to index
    %c0_133 = arith.constant 0 : index
    %184 = vector.load %arg2[%c0_132, %183, %c0_133] : memref<1x156x48xf32, #tpu.memory_space<vmem>>, vector<1x96x48xf32>
    %185 = vector.shape_cast %184 : vector<1x96x48xf32> to vector<96x48xf32>
    %c20 = arith.constant 20 : index
    %c0_134 = arith.constant 0 : index
    %c0_135 = arith.constant 0 : index
    %186 = vector.load %arg3[%c20, %c0_134, %c0_135] : memref<25x48x64xf32, #tpu.memory_space<vmem>>, vector<1x48x64xf32>
    %187 = vector.shape_cast %186 : vector<1x48x64xf32> to vector<48x64xf32>
    %cst_136 = arith.constant dense<0.000000e+00> : vector<96x64xf32>
    %188 = tpu.matmul %185, %187, %cst_136 {dimension_numbers = #tpu.dot_dimension_numbers<[1], [0], [0], [1], [0, 0, 1, 1], [], []>} : vector<96x48xf32>, vector<48x64xf32>, vector<96x64xf32> -> vector<96x64xf32>
    %189 = arith.addf %180, %188 : vector<96x64xf32>
    %c48_i32_137 = arith.constant 48 : i32
    %190 = arith.addi %1, %c48_i32_137 : i32
    %c1_i32_138 = arith.constant 1 : i32
    %191 = arith.addi %190, %c1_i32_138 : i32
    %c0_139 = arith.constant 0 : index
    %192 = arith.index_cast %191 : i32 to index
    %c0_140 = arith.constant 0 : index
    %193 = vector.load %arg2[%c0_139, %192, %c0_140] : memref<1x156x48xf32, #tpu.memory_space<vmem>>, vector<1x96x48xf32>
    %194 = vector.shape_cast %193 : vector<1x96x48xf32> to vector<96x48xf32>
    %c21 = arith.constant 21 : index
    %c0_141 = arith.constant 0 : index
    %c0_142 = arith.constant 0 : index
    %195 = vector.load %arg3[%c21, %c0_141, %c0_142] : memref<25x48x64xf32, #tpu.memory_space<vmem>>, vector<1x48x64xf32>
    %196 = vector.shape_cast %195 : vector<1x48x64xf32> to vector<48x64xf32>
    %cst_143 = arith.constant dense<0.000000e+00> : vector<96x64xf32>
    %197 = tpu.matmul %194, %196, %cst_143 {dimension_numbers = #tpu.dot_dimension_numbers<[1], [0], [0], [1], [0, 0, 1, 1], [], []>} : vector<96x48xf32>, vector<48x64xf32>, vector<96x64xf32> -> vector<96x64xf32>
    %198 = arith.addf %189, %197 : vector<96x64xf32>
    %c48_i32_144 = arith.constant 48 : i32
    %199 = arith.addi %1, %c48_i32_144 : i32
    %c2_i32_145 = arith.constant 2 : i32
    %200 = arith.addi %199, %c2_i32_145 : i32
    %c0_146 = arith.constant 0 : index
    %201 = arith.index_cast %200 : i32 to index
    %c0_147 = arith.constant 0 : index
    %202 = vector.load %arg2[%c0_146, %201, %c0_147] : memref<1x156x48xf32, #tpu.memory_space<vmem>>, vector<1x96x48xf32>
    %203 = vector.shape_cast %202 : vector<1x96x48xf32> to vector<96x48xf32>
    %c22 = arith.constant 22 : index
    %c0_148 = arith.constant 0 : index
    %c0_149 = arith.constant 0 : index
    %204 = vector.load %arg3[%c22, %c0_148, %c0_149] : memref<25x48x64xf32, #tpu.memory_space<vmem>>, vector<1x48x64xf32>
    %205 = vector.shape_cast %204 : vector<1x48x64xf32> to vector<48x64xf32>
    %cst_150 = arith.constant dense<0.000000e+00> : vector<96x64xf32>
    %206 = tpu.matmul %203, %205, %cst_150 {dimension_numbers = #tpu.dot_dimension_numbers<[1], [0], [0], [1], [0, 0, 1, 1], [], []>} : vector<96x48xf32>, vector<48x64xf32>, vector<96x64xf32> -> vector<96x64xf32>
    %207 = arith.addf %198, %206 : vector<96x64xf32>
    %c48_i32_151 = arith.constant 48 : i32
    %208 = arith.addi %1, %c48_i32_151 : i32
    %c3_i32_152 = arith.constant 3 : i32
    %209 = arith.addi %208, %c3_i32_152 : i32
    %c0_153 = arith.constant 0 : index
    %210 = arith.index_cast %209 : i32 to index
    %c0_154 = arith.constant 0 : index
    %211 = vector.load %arg2[%c0_153, %210, %c0_154] : memref<1x156x48xf32, #tpu.memory_space<vmem>>, vector<1x96x48xf32>
    %212 = vector.shape_cast %211 : vector<1x96x48xf32> to vector<96x48xf32>
    %c23 = arith.constant 23 : index
    %c0_155 = arith.constant 0 : index
    %c0_156 = arith.constant 0 : index
    %213 = vector.load %arg3[%c23, %c0_155, %c0_156] : memref<25x48x64xf32, #tpu.memory_space<vmem>>, vector<1x48x64xf32>
    %214 = vector.shape_cast %213 : vector<1x48x64xf32> to vector<48x64xf32>
    %cst_157 = arith.constant dense<0.000000e+00> : vector<96x64xf32>
    %215 = tpu.matmul %212, %214, %cst_157 {dimension_numbers = #tpu.dot_dimension_numbers<[1], [0], [0], [1], [0, 0, 1, 1], [], []>} : vector<96x48xf32>, vector<48x64xf32>, vector<96x64xf32> -> vector<96x64xf32>
    %216 = arith.addf %207, %215 : vector<96x64xf32>
    %c48_i32_158 = arith.constant 48 : i32
    %217 = arith.addi %1, %c48_i32_158 : i32
    %c4_i32_159 = arith.constant 4 : i32
    %218 = arith.addi %217, %c4_i32_159 : i32
    %c0_160 = arith.constant 0 : index
    %219 = arith.index_cast %218 : i32 to index
    %c0_161 = arith.constant 0 : index
    %220 = vector.load %arg2[%c0_160, %219, %c0_161] : memref<1x156x48xf32, #tpu.memory_space<vmem>>, vector<1x96x48xf32>
    %221 = vector.shape_cast %220 : vector<1x96x48xf32> to vector<96x48xf32>
    %c24 = arith.constant 24 : index
    %c0_162 = arith.constant 0 : index
    %c0_163 = arith.constant 0 : index
    %222 = vector.load %arg3[%c24, %c0_162, %c0_163] : memref<25x48x64xf32, #tpu.memory_space<vmem>>, vector<1x48x64xf32>
    %223 = vector.shape_cast %222 : vector<1x48x64xf32> to vector<48x64xf32>
    %cst_164 = arith.constant dense<0.000000e+00> : vector<96x64xf32>
    %224 = tpu.matmul %221, %223, %cst_164 {dimension_numbers = #tpu.dot_dimension_numbers<[1], [0], [0], [1], [0, 0, 1, 1], [], []>} : vector<96x48xf32>, vector<48x64xf32>, vector<96x64xf32> -> vector<96x64xf32>
    %225 = arith.addf %216, %224 : vector<96x64xf32>
    %c0_165 = arith.constant 0 : index
    %c0_166 = arith.constant 0 : index
    %226 = vector.load %arg4[%c0_165, %c0_166] : memref<1x64xf32, #tpu.memory_space<vmem>>, vector<1x64xf32>
    %227 = vector.broadcast %226 : vector<1x64xf32> to vector<96x64xf32>
    %228 = arith.addf %225, %227 : vector<96x64xf32>
    %cst_167 = arith.constant 0.000000e+00 : f32
    %229 = vector.broadcast %cst_167 : f32 to vector<96x64xf32>
    %230 = arith.maximumf %228, %229 : vector<96x64xf32>
    %231 = vector.extract_strided_slice %230 {offsets = [0, 0], sizes = [8, 64], strides = [1, 1]} : vector<96x64xf32> to vector<8x64xf32>
    %c0_168 = arith.constant 0 : index
    %c0_169 = arith.constant 0 : index
    %c0_170 = arith.constant 0 : index
    %c0_171 = arith.constant 0 : index
    %232 = vector.load %arg5[%c0_168, %c0_169, %c0_170, %c0_171] : memref<1x8x8x64xf32, #tpu.memory_space<vmem>>, vector<1x1x8x64xf32>
    %233 = vector.shape_cast %232 : vector<1x1x8x64xf32> to vector<8x64xf32>
    %234 = vector.shape_cast %231 : vector<8x64xf32> to vector<1x1x8x64xf32>
    tpu.vector_store %arg5[%c0_168, %c0_169, %c0_170, %c0_171], %234 {strides = array<i32>} : memref<1x8x8x64xf32, #tpu.memory_space<vmem>>, vector<1x1x8x64xf32>,
    %235 = vector.extract_strided_slice %230 {offsets = [12, 0], sizes = [8, 64], strides = [1, 1]} : vector<96x64xf32> to vector<8x64xf32>
    %c0_172 = arith.constant 0 : index
    %c1_173 = arith.constant 1 : index
    %c0_174 = arith.constant 0 : index
    %c0_175 = arith.constant 0 : index
    %236 = vector.load %arg5[%c0_172, %c1_173, %c0_174, %c0_175] : memref<1x8x8x64xf32, #tpu.memory_space<vmem>>, vector<1x1x8x64xf32>
    %237 = vector.shape_cast %236 : vector<1x1x8x64xf32> to vector<8x64xf32>
    %238 = vector.shape_cast %235 : vector<8x64xf32> to vector<1x1x8x64xf32>
    tpu.vector_store %arg5[%c0_172, %c1_173, %c0_174, %c0_175], %238 {strides = array<i32>} : memref<1x8x8x64xf32, #tpu.memory_space<vmem>>, vector<1x1x8x64xf32>,
    %239 = vector.extract_strided_slice %230 {offsets = [24, 0], sizes = [8, 64], strides = [1, 1]} : vector<96x64xf32> to vector<8x64xf32>
    %c0_176 = arith.constant 0 : index
    %c2_177 = arith.constant 2 : index
    %c0_178 = arith.constant 0 : index
    %c0_179 = arith.constant 0 : index
    %240 = vector.load %arg5[%c0_176, %c2_177, %c0_178, %c0_179] : memref<1x8x8x64xf32, #tpu.memory_space<vmem>>, vector<1x1x8x64xf32>
    %241 = vector.shape_cast %240 : vector<1x1x8x64xf32> to vector<8x64xf32>
    %242 = vector.shape_cast %239 : vector<8x64xf32> to vector<1x1x8x64xf32>
    tpu.vector_store %arg5[%c0_176, %c2_177, %c0_178, %c0_179], %242 {strides = array<i32>} : memref<1x8x8x64xf32, #tpu.memory_space<vmem>>, vector<1x1x8x64xf32>,
    %243 = vector.extract_strided_slice %230 {offsets = [36, 0], sizes = [8, 64], strides = [1, 1]} : vector<96x64xf32> to vector<8x64xf32>
    %c0_180 = arith.constant 0 : index
    %c3_181 = arith.constant 3 : index
    %c0_182 = arith.constant 0 : index
    %c0_183 = arith.constant 0 : index
    %244 = vector.load %arg5[%c0_180, %c3_181, %c0_182, %c0_183] : memref<1x8x8x64xf32, #tpu.memory_space<vmem>>, vector<1x1x8x64xf32>
    %245 = vector.shape_cast %244 : vector<1x1x8x64xf32> to vector<8x64xf32>
    %246 = vector.shape_cast %243 : vector<8x64xf32> to vector<1x1x8x64xf32>
    tpu.vector_store %arg5[%c0_180, %c3_181, %c0_182, %c0_183], %246 {strides = array<i32>} : memref<1x8x8x64xf32, #tpu.memory_space<vmem>>, vector<1x1x8x64xf32>,
    %247 = vector.extract_strided_slice %230 {offsets = [48, 0], sizes = [8, 64], strides = [1, 1]} : vector<96x64xf32> to vector<8x64xf32>
    %c0_184 = arith.constant 0 : index
    %c4_185 = arith.constant 4 : index
    %c0_186 = arith.constant 0 : index
    %c0_187 = arith.constant 0 : index
    %248 = vector.load %arg5[%c0_184, %c4_185, %c0_186, %c0_187] : memref<1x8x8x64xf32, #tpu.memory_space<vmem>>, vector<1x1x8x64xf32>
    %249 = vector.shape_cast %248 : vector<1x1x8x64xf32> to vector<8x64xf32>
    %250 = vector.shape_cast %247 : vector<8x64xf32> to vector<1x1x8x64xf32>
    tpu.vector_store %arg5[%c0_184, %c4_185, %c0_186, %c0_187], %250 {strides = array<i32>} : memref<1x8x8x64xf32, #tpu.memory_space<vmem>>, vector<1x1x8x64xf32>,
    %251 = vector.extract_strided_slice %230 {offsets = [60, 0], sizes = [8, 64], strides = [1, 1]} : vector<96x64xf32> to vector<8x64xf32>
    %c0_188 = arith.constant 0 : index
    %c5_189 = arith.constant 5 : index
    %c0_190 = arith.constant 0 : index
    %c0_191 = arith.constant 0 : index
    %252 = vector.load %arg5[%c0_188, %c5_189, %c0_190, %c0_191] : memref<1x8x8x64xf32, #tpu.memory_space<vmem>>, vector<1x1x8x64xf32>
    %253 = vector.shape_cast %252 : vector<1x1x8x64xf32> to vector<8x64xf32>
    %254 = vector.shape_cast %251 : vector<8x64xf32> to vector<1x1x8x64xf32>
    tpu.vector_store %arg5[%c0_188, %c5_189, %c0_190, %c0_191], %254 {strides = array<i32>} : memref<1x8x8x64xf32, #tpu.memory_space<vmem>>, vector<1x1x8x64xf32>,
    %255 = vector.extract_strided_slice %230 {offsets = [72, 0], sizes = [8, 64], strides = [1, 1]} : vector<96x64xf32> to vector<8x64xf32>
    %c0_192 = arith.constant 0 : index
    %c6_193 = arith.constant 6 : index
    %c0_194 = arith.constant 0 : index
    %c0_195 = arith.constant 0 : index
    %256 = vector.load %arg5[%c0_192, %c6_193, %c0_194, %c0_195] : memref<1x8x8x64xf32, #tpu.memory_space<vmem>>, vector<1x1x8x64xf32>
    %257 = vector.shape_cast %256 : vector<1x1x8x64xf32> to vector<8x64xf32>
    %258 = vector.shape_cast %255 : vector<8x64xf32> to vector<1x1x8x64xf32>
    tpu.vector_store %arg5[%c0_192, %c6_193, %c0_194, %c0_195], %258 {strides = array<i32>} : memref<1x8x8x64xf32, #tpu.memory_space<vmem>>, vector<1x1x8x64xf32>,
    %259 = vector.extract_strided_slice %230 {offsets = [84, 0], sizes = [8, 64], strides = [1, 1]} : vector<96x64xf32> to vector<8x64xf32>
    %c0_196 = arith.constant 0 : index
    %c7_197 = arith.constant 7 : index
    %c0_198 = arith.constant 0 : index
    %c0_199 = arith.constant 0 : index
    %260 = vector.load %arg5[%c0_196, %c7_197, %c0_198, %c0_199] : memref<1x8x8x64xf32, #tpu.memory_space<vmem>>, vector<1x1x8x64xf32>
    %261 = vector.shape_cast %260 : vector<1x1x8x64xf32> to vector<8x64xf32>
    %262 = vector.shape_cast %259 : vector<8x64xf32> to vector<1x1x8x64xf32>
    tpu.vector_store %arg5[%c0_196, %c7_197, %c0_198, %c0_199], %262 {strides = array<i32>} : memref<1x8x8x64xf32, #tpu.memory_space<vmem>>, vector<1x1x8x64xf32>,
    return
  }
  func.func @transform_0(%arg0: i32, %arg1: i32) -> (i32, i32, i32) {
    %c0_i32 = arith.constant 0 : i32
    %c0_i32_0 = arith.constant 0 : i32
    %c0_i32_1 = arith.constant 0 : i32
    return %arg0, %c0_i32, %c0_i32_0 : i32, i32, i32
  }
  func.func @transform_1(%arg0: i32, %arg1: i32) -> (i32, i32, i32) {
    %c0_i32 = arith.constant 0 : i32
    %c0_i32_0 = arith.constant 0 : i32
    %c0_i32_1 = arith.constant 0 : i32
    %c0_i32_2 = arith.constant 0 : i32
    return %c0_i32, %c0_i32_0, %c0_i32_1 : i32, i32, i32
  }
  func.func @transform_2(%arg0: i32, %arg1: i32) -> (i32, i32) {
    %c0_i32 = arith.constant 0 : i32
    %c0_i32_0 = arith.constant 0 : i32
    %c0_i32_1 = arith.constant 0 : i32
    return %c0_i32, %c0_i32_0 : i32, i32
  }
  func.func @transform_3(%arg0: i32, %arg1: i32) -> (i32, i32, i32, i32) {
    %c0_i32 = arith.constant 0 : i32
    %c0_i32_0 = arith.constant 0 : i32
    %c0_i32_1 = arith.constant 0 : i32
    return %arg0, %arg1, %c0_i32, %c0_i32_0 : i32, i32, i32, i32
  }
}

</mosaic_0001>

<bundles_post_ra>
// kernel: inception_a.5
= control target key start
LH: loop header
LB: loop body
LE: loop exit
PB: predicated region body
PF: predicated region fallthrough
CT: control target
= control target key end

     0   :  { %v379_v2 = vmov 0.0   ;;  %vm44_vm0 = vcmask 64512   ;;  %v34_v19 = vlaneseq  ;;  %vm324_vm2 = vcmask 457728   ;;  %s656_s1 = inlined_call_operand.vmem [shape: f32[8,184], index: 1, kind: input, shape index: {}]   ;;  %s657_s0 = inlined_call_operand.vmem [shape: f32[128,8], index: 0, kind: input, shape index: {}]   ;;  %s658_s2 = inlined_call_operand.vmem [shape: f32[1,184], index: 2, kind: input, shape index: {}]   ;;  %s659_s3 = inlined_call_operand.vmem [shape: f32[128,184], index: 3, kind: output, shape index: {}]  }
   0x1   :  { %v31_v0 = vld [vmem:[%s656_s1 + $0x8] sm:$0xff]  ;;  %v30_v1 = vld [vmem:[%s656_s1] sm:$0xff]  ;;  %157 = vmatprep.mubr.f32.mxu0 %v379_v2  ;;  %205 = vmatprep.mubr.f32.mxu1 %v379_v2  ;;  %v16_v7 = vld [vmem:[%s657_s0 + $0x10] sm:$0xff] }
   0x2   :  { %v14_v3 = vld [vmem:[%s657_s0] sm:$0xff]  ;;  %123 = vmatprep.subr.mxu0 %v31_v0  ;;  %376 = vmatprep.subr.mxu1 %v31_v0  ;;  %v15_v5 = vld [vmem:[%s657_s0 + $0x8] sm:$0xff]  ;;  %v24_v8 = vld [vmem:[%s657_s0 + $0x50] sm:$0xff]  ;;  %v35_v20 = vshrl.u32 %v34_v19, 7  ;;  %v255_v24 = vand.u32 127, %v34_v19 }
   0x3   :  { %v22_v4 = vld [vmem:[%s657_s0 + $0x40] sm:$0xff]  ;;  %124 = vmatpush1.msra.mxu0 %v30_v1  ;;  %377 = vmatpush1.msra.mxu1 %v30_v1  ;;  %v23_v6 = vld [vmem:[%s657_s0 + $0x48] sm:$0xff]  ;;  %v17_v9 = vld [vmem:[%s657_s0 + $0x18] sm:$0xff] }
   0x4   :  { %360 = vmatmul.mubr.msk.f32.vlgmr.msra.gmra.mxu0 %vm44_vm0, %v14_v3  ;;  %368 = vmatmul.mubr.msk.f32.vlgmr.msra.gmra.mxu1 %vm44_vm0, %v22_v4  ;;  %v25_v10 = vld [vmem:[%s657_s0 + $0x58] sm:$0xff]  ;;  %v18_v11 = vld [vmem:[%s657_s0 + $0x20] sm:$0xff]  ;;  %v19_v13 = vld [vmem:[%s657_s0 + $0x28] sm:$0xff]  ;;  %v36_v21 = vsub.s32 0, %v35_v20  ;;  %v40_v23 = vsub.s32 1, %v35_v20  ;;  %v477_v29 = vadd.s32 128, %v255_v24 }
   0x5   :  { %163 = vmatprep.mubr.f32.mxu0 %v379_v2  ;;  %211 = vmatprep.mubr.f32.mxu1 %v379_v2  ;;  %v26_v12 = vld [vmem:[%s657_s0 + $0x60] sm:$0xff]  ;;  %v27_v14 = vld [vmem:[%s657_s0 + $0x68] sm:$0xff]  ;;  %v20_v15 = vld [vmem:[%s657_s0 + $0x30] sm:$0xff] }
   0x6   :  { %v28_v16 = vld [vmem:[%s657_s0 + $0x70] sm:$0xff]  ;;  %v21_v17 = vld [vmem:[%s657_s0 + $0x38] sm:$0xff]  ;;  %v32_v22 = vld [vmem:[%s658_s2] sm:$0x3]  ;;  %vm258_vm1 = vcmp.lt.s32.totalorder %v477_v29, 176 }
   0x7   :  { %v29_v18 = vld [vmem:[%s657_s0 + $0x78] sm:$0xff]  ;;  %v473_v25 = vrot.slane %v32_v22, %v36_v21  ;;  %v475_v26 = vrot.slane %v32_v22, %v40_v23 }
   0x8   :  { %361 = vmatmul.mubr.msk.f32.gmra.mxu0 %vm44_vm0, %v15_v5  ;;  %369 = vmatmul.mubr.msk.f32.gmra.mxu1 %vm44_vm0, %v23_v6 }
   0x9   :  { %169 = vmatprep.mubr.f32.mxu0 %v379_v2  ;;  %217 = vmatprep.mubr.f32.mxu1 %v379_v2 }
   0xc   :  { %362 = vmatmul.mubr.msk.f32.gmra.mxu0 %vm44_vm0, %v16_v7  ;;  %370 = vmatmul.mubr.msk.f32.gmra.mxu1 %vm44_vm0, %v24_v8 }
   0xd   :  { %175 = vmatprep.mubr.f32.mxu0 %v379_v2  ;;  %223 = vmatprep.mubr.f32.mxu1 %v379_v2 }
  0x10   :  { %363 = vmatmul.mubr.msk.f32.gmra.mxu0 %vm44_vm0, %v17_v9  ;;  %371 = vmatmul.mubr.msk.f32.gmra.mxu1 %vm44_vm0, %v25_v10 }
  0x11   :  { %181 = vmatprep.mubr.f32.mxu0 %v379_v2  ;;  %229 = vmatprep.mubr.f32.mxu1 %v379_v2 }
  0x14   :  { %364 = vmatmul.mubr.msk.f32.gmra.mxu0 %vm44_vm0, %v18_v11  ;;  %372 = vmatmul.mubr.msk.f32.gmra.mxu1 %vm44_vm0, %v26_v12 }
  0x15   :  { %187 = vmatprep.mubr.f32.mxu0 %v379_v2  ;;  %235 = vmatprep.mubr.f32.mxu1 %v379_v2 }
  0x18   :  { %365 = vmatmul.mubr.msk.f32.gmra.mxu0 %vm44_vm0, %v19_v13  ;;  %373 = vmatmul.mubr.msk.f32.gmra.mxu1 %vm44_vm0, %v27_v14 }
  0x19   :  { %193 = vmatprep.mubr.f32.mxu0 %v379_v2  ;;  %241 = vmatprep.mubr.f32.mxu1 %v379_v2 }
  0x1c   :  { %366 = vmatmul.mubr.msk.f32.gmra.mxu0 %vm44_vm0, %v20_v15  ;;  %374 = vmatmul.mubr.msk.f32.gmra.mxu1 %vm44_vm0, %v28_v16 }
  0x1d   :  { %199 = vmatprep.mubr.f32.mxu0 %v379_v2  ;;  %247 = vmatprep.mubr.f32.mxu1 %v379_v2 }
  0x20   :  { %367 = vmatmul.mubr.msk.f32.gmra.mxu0 %vm44_vm0, %v21_v17  ;;  %375 = vmatmul.mubr.msk.f32.gmra.mxu1 %vm44_vm0, %v29_v18 }
  0xc4   :  { %v159_v27 = vpop.f32.mrf.mxu0  ;;  %v207_v28 = vpop.f32.mrf.mxu1 }
  0xc5   :  { %v160_v30 = vadd.f32 %v159_v27, %v473_v25  ;;  %v208_v31 = vadd.f32 %v207_v28, %v473_v25 }
  0xc6   :  { %v161_v32 = vpop.f32.mrf.mxu0  ;;  %v209_v33 = vpop.f32.mrf.mxu1 }
  0xc7   :  { %v259_v34 = vmax.f32 %v160_v30, 0.0  ;;  %v275_v35 = vmax.f32 %v208_v31, 0.0  ;;  %v162_v36 = vadd.f32 %v161_v32, %v475_v26  ;;  %v210_v37 = vadd.f32 %v209_v33, %v475_v26 }
  0xc8   :  { %v165_v38 = vpop.f32.mrf.mxu0  ;;  %v213_v39 = vpop.f32.mrf.mxu1 }
  0xc9   :  { %323 = vst [vmem:[%s659_s3] sm:$0xff] %v259_v34  ;;  %340 = vst [vmem:[%s659_s3 + $0x80] sm:$0xff] %v275_v35  ;;  %v260_v40 = vmax.f32 %v162_v36, 0.0  ;;  %v276_v41 = vmax.f32 %v210_v37, 0.0  ;;  %v166_v42 = vadd.f32 %v165_v38, %v473_v25  ;;  %v214_v43 = vadd.f32 %v213_v39, %v473_v25 }
  0xca   :  { %v167_v44 = vpop.f32.mrf.mxu0  ;;  %v215_v45 = vpop.f32.mrf.mxu1 }
  0xcb   :  { %v292_v46 = vsel %vm258_vm1, %v260_v40, %v162_v36  ;;  %v308_v47 = vsel %vm258_vm1, %v276_v41, %v210_v37  ;;  %v261_v48 = vmax.f32 %v166_v42, 0.0  ;;  %v277_v49 = vmax.f32 %v214_v43, 0.0 }
  0xcc   :  { %325 = vst.msk [vmem:[%s659_s3 + $0x8] sm:$0xff] %vm324_vm2, %v292_v46  ;;  %341 = vst.msk [vmem:[%s659_s3 + $0x88] sm:$0xff] %vm324_vm2, %v308_v47  ;;  %v168_v50 = vadd.f32 %v167_v44, %v475_v26  ;;  %v216_v51 = vadd.f32 %v215_v45, %v475_v26  ;;  %v171_v52 = vpop.f32.mrf.mxu0  ;;  %v219_v53 = vpop.f32.mrf.mxu1 }
  0xcd   :  { %326 = vst [vmem:[%s659_s3 + $0x10] sm:$0xff] %v261_v48  ;;  %342 = vst [vmem:[%s659_s3 + $0x90] sm:$0xff] %v277_v49  ;;  %v172_v54 = vadd.f32 %v171_v52, %v473_v25  ;;  %v220_v55 = vadd.f32 %v219_v53, %v473_v25 }
  0xce   :  { %v262_v56 = vmax.f32 %v168_v50, 0.0  ;;  %v278_v57 = vmax.f32 %v216_v51, 0.0  ;;  %v173_v58 = vpop.f32.mrf.mxu0  ;;  %v221_v59 = vpop.f32.mrf.mxu1 }
  0xcf   :  { %v263_v60 = vmax.f32 %v172_v54, 0.0  ;;  %v279_v61 = vmax.f32 %v220_v55, 0.0  ;;  %v174_v62 = vadd.f32 %v173_v58, %v475_v26  ;;  %v222_v63 = vadd.f32 %v221_v59, %v475_v26 }
  0xd0   :  { %v294_v0 = vsel %vm258_vm1, %v262_v56, %v168_v50  ;;  %v310_v1 = vsel %vm258_vm1, %v278_v57, %v216_v51  ;;  %v177_v2 = vpop.f32.mrf.mxu0  ;;  %v225_v3 = vpop.f32.mrf.mxu1 }
  0xd1   :  { %327 = vst.msk [vmem:[%s659_s3 + $0x18] sm:$0xff] %vm324_vm2, %v294_v0  ;;  %343 = vst.msk [vmem:[%s659_s3 + $0x98] sm:$0xff] %vm324_vm2, %v310_v1  ;;  %v264_v4 = vmax.f32 %v174_v62, 0.0  ;;  %v280_v5 = vmax.f32 %v222_v63, 0.0  ;;  %v178_v6 = vadd.f32 %v177_v2, %v473_v25  ;;  %v226_v7 = vadd.f32 %v225_v3, %v473_v25 }
  0xd2   :  { %328 = vst [vmem:[%s659_s3 + $0x20] sm:$0xff] %v263_v60  ;;  %344 = vst [vmem:[%s659_s3 + $0xa0] sm:$0xff] %v279_v61  ;;  %v179_v8 = vpop.f32.mrf.mxu0  ;;  %v227_v9 = vpop.f32.mrf.mxu1 }
  0xd3   :  { %v296_v10 = vsel %vm258_vm1, %v264_v4, %v174_v62  ;;  %v312_v11 = vsel %vm258_vm1, %v280_v5, %v222_v63  ;;  %v265_v12 = vmax.f32 %v178_v6, 0.0  ;;  %v281_v13 = vmax.f32 %v226_v7, 0.0 }
  0xd4   :  { %329 = vst.msk [vmem:[%s659_s3 + $0x28] sm:$0xff] %vm324_vm2, %v296_v10  ;;  %345 = vst.msk [vmem:[%s659_s3 + $0xa8] sm:$0xff] %vm324_vm2, %v312_v11  ;;  %v180_v14 = vadd.f32 %v179_v8, %v475_v26  ;;  %v228_v15 = vadd.f32 %v227_v9, %v475_v26  ;;  %v183_v16 = vpop.f32.mrf.mxu0  ;;  %v231_v17 = vpop.f32.mrf.mxu1 }
  0xd5   :  { %330 = vst [vmem:[%s659_s3 + $0x30] sm:$0xff] %v265_v12  ;;  %346 = vst [vmem:[%s659_s3 + $0xb0] sm:$0xff] %v281_v13  ;;  %v184_v18 = vadd.f32 %v183_v16, %v473_v25  ;;  %v232_v19 = vadd.f32 %v231_v17, %v473_v25 }
  0xd6   :  { %v266_v20 = vmax.f32 %v180_v14, 0.0  ;;  %v282_v21 = vmax.f32 %v228_v15, 0.0  ;;  %v185_v22 = vpop.f32.mrf.mxu0  ;;  %v233_v23 = vpop.f32.mrf.mxu1 }
  0xd7   :  { %v267_v24 = vmax.f32 %v184_v18, 0.0  ;;  %v283_v27 = vmax.f32 %v232_v19, 0.0  ;;  %v186_v28 = vadd.f32 %v185_v22, %v475_v26  ;;  %v234_v30 = vadd.f32 %v233_v23, %v475_v26 }
  0xd8   :  { %v298_v31 = vsel %vm258_vm1, %v266_v20, %v180_v14  ;;  %v314_v32 = vsel %vm258_vm1, %v282_v21, %v228_v15  ;;  %v189_v33 = vpop.f32.mrf.mxu0  ;;  %v237_v34 = vpop.f32.mrf.mxu1 }
  0xd9   :  { %331 = vst.msk [vmem:[%s659_s3 + $0x38] sm:$0xff] %vm324_vm2, %v298_v31  ;;  %347 = vst.msk [vmem:[%s659_s3 + $0xb8] sm:$0xff] %vm324_vm2, %v314_v32  ;;  %v268_v35 = vmax.f32 %v186_v28, 0.0  ;;  %v284_v36 = vmax.f32 %v234_v30, 0.0  ;;  %v190_v37 = vadd.f32 %v189_v33, %v473_v25  ;;  %v238_v38 = vadd.f32 %v237_v34, %v473_v25 }
  0xda   :  { %332 = vst [vmem:[%s659_s3 + $0x40] sm:$0xff] %v267_v24  ;;  %348 = vst [vmem:[%s659_s3 + $0xc0] sm:$0xff] %v283_v27  ;;  %v191_v39 = vpop.f32.mrf.mxu0  ;;  %v239_v40 = vpop.f32.mrf.mxu1 }
  0xdb   :  { %v300_v41 = vsel %vm258_vm1, %v268_v35, %v186_v28  ;;  %v316_v42 = vsel %vm258_vm1, %v284_v36, %v234_v30  ;;  %v269_v43 = vmax.f32 %v190_v37, 0.0  ;;  %v285_v44 = vmax.f32 %v238_v38, 0.0 }
  0xdc   :  { %333 = vst.msk [vmem:[%s659_s3 + $0x48] sm:$0xff] %vm324_vm2, %v300_v41  ;;  %349 = vst.msk [vmem:[%s659_s3 + $0xc8] sm:$0xff] %vm324_vm2, %v316_v42  ;;  %v192_v45 = vadd.f32 %v191_v39, %v475_v26  ;;  %v240_v46 = vadd.f32 %v239_v40, %v475_v26  ;;  %v195_v47 = vpop.f32.mrf.mxu0  ;;  %v243_v48 = vpop.f32.mrf.mxu1 }
  0xdd   :  { %334 = vst [vmem:[%s659_s3 + $0x50] sm:$0xff] %v269_v43  ;;  %350 = vst [vmem:[%s659_s3 + $0xd0] sm:$0xff] %v285_v44  ;;  %v196_v49 = vadd.f32 %v195_v47, %v473_v25  ;;  %v244_v50 = vadd.f32 %v243_v48, %v473_v25 }
  0xde   :  { %v270_v51 = vmax.f32 %v192_v45, 0.0  ;;  %v286_v52 = vmax.f32 %v240_v46, 0.0  ;;  %v197_v53 = vpop.f32.mrf.mxu0  ;;  %v245_v54 = vpop.f32.mrf.mxu1 }
  0xdf   :  { %v271_v55 = vmax.f32 %v196_v49, 0.0  ;;  %v287_v56 = vmax.f32 %v244_v50, 0.0  ;;  %v198_v57 = vadd.f32 %v197_v53, %v475_v26  ;;  %v246_v58 = vadd.f32 %v245_v54, %v475_v26 }
  0xe0   :  { %v302_v59 = vsel %vm258_vm1, %v270_v51, %v192_v45  ;;  %v318_v60 = vsel %vm258_vm1, %v286_v52, %v240_v46  ;;  %v201_v61 = vpop.f32.mrf.mxu0  ;;  %v249_v62 = vpop.f32.mrf.mxu1 }
  0xe1   :  { %335 = vst.msk [vmem:[%s659_s3 + $0x58] sm:$0xff] %vm324_vm2, %v302_v59  ;;  %351 = vst.msk [vmem:[%s659_s3 + $0xd8] sm:$0xff] %vm324_vm2, %v318_v60  ;;  %v272_v63 = vmax.f32 %v198_v57, 0.0  ;;  %v288_v0 = vmax.f32 %v246_v58, 0.0  ;;  %v202_v1 = vadd.f32 %v201_v61, %v473_v25  ;;  %v250_v2 = vadd.f32 %v249_v62, %v473_v25 }
  0xe2   :  { %336 = vst [vmem:[%s659_s3 + $0x60] sm:$0xff] %v271_v55  ;;  %352 = vst [vmem:[%s659_s3 + $0xe0] sm:$0xff] %v287_v56  ;;  %v203_v3 = vpop.f32.mrf.mxu0  ;;  %v251_v4 = vpop.f32.mrf.mxu1 }
  0xe3   :  { %v304_v5 = vsel %vm258_vm1, %v272_v63, %v198_v57  ;;  %v320_v6 = vsel %vm258_vm1, %v288_v0, %v246_v58  ;;  %v273_v7 = vmax.f32 %v202_v1, 0.0  ;;  %v289_v8 = vmax.f32 %v250_v2, 0.0 }
  0xe4   :  { %337 = vst.msk [vmem:[%s659_s3 + $0x68] sm:$0xff] %vm324_vm2, %v304_v5  ;;  %353 = vst.msk [vmem:[%s659_s3 + $0xe8] sm:$0xff] %vm324_vm2, %v320_v6  ;;  %v204_v25 = vadd.f32 %v203_v3, %v475_v26  ;;  %v252_v9 = vadd.f32 %v251_v4, %v475_v26 }
  0xe5   :  { %338 = vst [vmem:[%s659_s3 + $0x70] sm:$0xff] %v273_v7  ;;  %354 = vst [vmem:[%s659_s3 + $0xf0] sm:$0xff] %v289_v8 }
  0xe6   :  { %v274_v10 = vmax.f32 %v204_v25, 0.0  ;;  %v290_v11 = vmax.f32 %v252_v9, 0.0 }
  0xe8   :  { %v306_v12 = vsel %vm258_vm1, %v274_v10, %v204_v25  ;;  %v322_v13 = vsel %vm258_vm1, %v290_v11, %v252_v9 }
  0xe9   :  { %339 = vst.msk [vmem:[%s659_s3 + $0x78] sm:$0xff] %vm324_vm2, %v306_v12  ;;  %355 = vst.msk [vmem:[%s659_s3 + $0xf8] sm:$0xff] %vm324_vm2, %v322_v13 }

// kernel: inception_a.9
= control target key start
LH: loop header
LB: loop body
LE: loop exit
PB: predicated region body
PF: predicated region fallthrough
CT: control target
= control target key end

     0   :  { %s2382_s12 = smov 0   ;;  %s2384_s13 = smov 0   ;;  %s2781_s0 = inlined_call_operand.vmem [shape: f32[2,110,8], index: 0, kind: input, shape index: {}]   ;;  %s2782_s1 = inlined_call_operand.vmem [shape: f32[9,8,8], index: 1, kind: input, shape index: {}]   ;;  %s2783_s2 = inlined_call_operand.vmem [shape: f32[1,8], index: 2, kind: input, shape index: {}]   ;;  %s2784_s3 = inlined_call_operand.vmem [shape: f32[2,8,8,8], index: 3, kind: output, shape index: {}]  }
   0x1   :  { %s2386_s14 = smov 0  }
   0x2 LB: > { %s25_s15 = sadd.s32 1, %s2356_s13  ;;  %p1860_p0 = scmp.ge.s32.totalorder %s2360_s14, 1  ;;  %s2360_s14 = sphi %s2386_s14, %s13_s14   ;;  %s2356_s13 = sphi %s2384_s13, %s2806_s13   ;;  %s2352_s12 = sphi %s2382_s12, %s2805_s12  }
   0x3   : > { %p27_p1 = scmp.ge.s32.totalorder %s25_s15, 2  ;;  %p151_p2 = scmp.lt.s32.totalorder %s2360_s14, 3 }
   0x5   : > { %s2808_s15 = smov (%p27_p1, %s25_s15), 0  ;;  %p152_p3 = pnand %p1860_p0, %p151_p2 }
   0x7   : > { %155 = sbr.rel (%p152_p3) target bundleno = 311 (0x137), region = 32 }
   0xc   : > { %v1874_v0 = vld [vmem:[%s2782_s1 + $0x8] sm:$0xff]  ;;  %p179_p4 = scmp.lt.s32.totalorder %s2352_s12, 1  ;;  %v1905_v1 = vld [vmem:[%s2782_s1 + $0x10] sm:$0xff]  ;;  %v206_v2 = vld [vmem:[%s2782_s1] sm:$0xff]  ;;  %vm221_vm0 = vcmask 64512   ;;  %vm1724_vm1 = vcmask 64514  }
   0xd   : > { %2158 = vmatprep.subr.mxu0 %v1874_v0  ;;  %2311 = vmatprep.subr.mxu1 %v1874_v0  ;;  %v1926_v9 = vld [vmem:[%s2782_s1 + $0x18] sm:$0xff]  ;;  %v1947_v10 = vld [vmem:[%s2782_s1 + $0x20] sm:$0xff]  ;;  %v1968_v19 = vld [vmem:[%s2782_s1 + $0x28] sm:$0xff]  ;;  %vm1731_vm2 = vcmask 60416   ;;  %vm1734_vm3 = vcmask 64518   ;;  %vm1726_vm4 = vcmask 58368  }
   0xe   : > { %2159 = vmatpush3.msra.mxu0 %v1874_v0  ;;  %2312 = vmatpush3.msra.mxu1 %v1874_v0  ;;  %s2810_s12 = smov (!%p179_p4, %s2352_s12), 1  ;;  %v1989_v24 = vld [vmem:[%s2782_s1 + $0x30] sm:$0xff]  ;;  %v2010_v38 = vld [vmem:[%s2782_s1 + $0x38] sm:$0xff]  ;;  %v2031_v41 = vld [vmem:[%s2782_s1 + $0x40] sm:$0xff]  ;;  %vm1729_vm5 = vcmask 64516   ;;  %vm1736_vm6 = vcmask 62464  }
   0xf   : > { %2192 = vmatprep.subr.mxu0 %v1905_v1  ;;  %2175 = vmatprep.subr.mxu1 %v206_v2  ;;  %s2313_s22 = smul.u32 112, %s2810_s12  ;;  %s2058_s17 = sshll.u32 %s2810_s12, 6 }
  0x10   : > { %s2719_s19 = scalar_lea.vmem %s2784_s3, %s2058_s17 }
  0x11   : > { %s2415_s25 = scalar_lea.vmem %s2781_s0, %s2313_s22 }
  0x12   : > { %v1864_v3 = vld [vmem:[%s2415_s25 + $0x1] sm:$0xff]  ;;  %v1870_v4 = vld [vmem:[%s2415_s25 + $0x31] sm:$0xff]  ;;  %v1865_v5 = vld [vmem:[%s2415_s25 + $0x9] sm:$0xff] }
  0x13   : > { %2160 = vmatprep.mubr.msk.f32.mxu0 %vm221_vm0, %v1864_v3  ;;  %2169 = vmatprep.mubr.msk.f32.mxu1 %vm221_vm0, %v1870_v4  ;;  %v1871_v6 = vld [vmem:[%s2415_s25 + $0x39] sm:$0xff]  ;;  %v1866_v7 = vld [vmem:[%s2415_s25 + $0x11] sm:$0xff]  ;;  %v1872_v8 = vld [vmem:[%s2415_s25 + $0x41] sm:$0xff] }
  0x14   : > { %2161 = vmatmul.mubr.msk.f32.vlgmr.msra.gmra.mxu0 %vm221_vm0, %v1865_v5  ;;  %2170 = vmatmul.mubr.msk.f32.vlgmr.msra.gmra.mxu1 %vm221_vm0, %v1871_v6  ;;  %v1867_v11 = vld [vmem:[%s2415_s25 + $0x19] sm:$0xff]  ;;  %v1873_v12 = vld [vmem:[%s2415_s25 + $0x49] sm:$0xff]  ;;  %v1868_v13 = vld [vmem:[%s2415_s25 + $0x21] sm:$0xff] }
  0x15   : > { %2193 = vmatpush3.msra.mxu0 %v1905_v1  ;;  %2176 = vmatpush3.msra.mxu1 %v206_v2  ;;  %v196_v14 = vld [vmem:[%s2415_s25] sm:$0xff]  ;;  %v1869_v15 = vld [vmem:[%s2415_s25 + $0x29] sm:$0xff]  ;;  %v199_v20 = vld [vmem:[%s2415_s25 + $0x18] sm:$0xff] }
  0x16   : > { %2163 = vmatprep.mubr.msk.f32.mxu0 %vm221_vm0, %v1866_v7  ;;  %2172 = vmatprep.mubr.msk.f32.mxu1 %vm221_vm0, %v1872_v8  ;;  %v197_v16 = vld [vmem:[%s2415_s25 + $0x8] sm:$0xff]  ;;  %v198_v17 = vld [vmem:[%s2415_s25 + $0x10] sm:$0xff]  ;;  %v200_v22 = vld [vmem:[%s2415_s25 + $0x20] sm:$0xff] }
  0x17   : > { %2209 = vmatprep.subr.mxu1 %v1926_v9  ;;  %2226 = vmatprep.subr.mxu0 %v1947_v10  ;;  %v1895_v18 = vld [vmem:[%s2415_s25 + $0x2] sm:$0xff]  ;;  %v1896_v21 = vld [vmem:[%s2415_s25 + $0xa] sm:$0xff]  ;;  %v1897_v23 = vld [vmem:[%s2415_s25 + $0x12] sm:$0xff] }
  0x18   : > { %2164 = vmatmul.mubr.msk.f32.gmra.mxu0 %vm221_vm0, %v1867_v11  ;;  %2173 = vmatmul.mubr.msk.f32.gmra.mxu1 %vm221_vm0, %v1873_v12  ;;  %v201_v25 = vld [vmem:[%s2415_s25 + $0x28] sm:$0xff]  ;;  %v1898_v26 = vld [vmem:[%s2415_s25 + $0x1a] sm:$0xff]  ;;  %v202_v27 = vld [vmem:[%s2415_s25 + $0x30] sm:$0xff] }
  0x19   : > { %2166 = vmatprep.mubr.msk.f32.mxu0 %vm221_vm0, %v1868_v13  ;;  %2177 = vmatprep.mubr.msk.f32.mxu1 %vm221_vm0, %v196_v14  ;;  %v1899_v28 = vld [vmem:[%s2415_s25 + $0x22] sm:$0xff]  ;;  %v203_v29 = vld [vmem:[%s2415_s25 + $0x38] sm:$0xff]  ;;  %v1900_v30 = vld [vmem:[%s2415_s25 + $0x2a] sm:$0xff] }
  0x1a   : > { %v204_v31 = vld [vmem:[%s2415_s25 + $0x40] sm:$0xff]  ;;  %v1901_v32 = vld [vmem:[%s2415_s25 + $0x32] sm:$0xff]  ;;  %v205_v33 = vld [vmem:[%s2415_s25 + $0x48] sm:$0xff] }
  0x1b   : > { %v1902_v34 = vld [vmem:[%s2415_s25 + $0x3a] sm:$0xff]  ;;  %v1903_v35 = vld [vmem:[%s2415_s25 + $0x42] sm:$0xff]  ;;  %v1904_v36 = vld [vmem:[%s2415_s25 + $0x4a] sm:$0xff] }
  0x1c   : > { %2167 = vmatmul.mubr.msk.f32.gmra.mxu0 %vm221_vm0, %v1869_v15  ;;  %2178 = vmatmul.mubr.msk.f32.vlgmr.msra.gmra.mxu1 %vm221_vm0, %v197_v16  ;;  %v1937_v37 = vld [vmem:[%s2415_s25 + $0xb] sm:$0xff]  ;;  %v1938_v39 = vld [vmem:[%s2415_s25 + $0x13] sm:$0xff]  ;;  %v1939_v40 = vld [vmem:[%s2415_s25 + $0x1b] sm:$0xff] }
  0x1d   : > { %2210 = vmatpush3.msra.mxu1 %v1926_v9  ;;  %2180 = vmatprep.mubr.msk.f32.mxu1 %vm221_vm0, %v198_v17  ;;  %v1940_v42 = vld [vmem:[%s2415_s25 + $0x23] sm:$0xff]  ;;  %v1941_v43 = vld [vmem:[%s2415_s25 + $0x2b] sm:$0xff]  ;;  %v1942_v44 = vld [vmem:[%s2415_s25 + $0x33] sm:$0xff] }
  0x1e   : > { %2194 = vmatprep.mubr.msk.f32.mxu0 %vm221_vm0, %v1895_v18  ;;  %2243 = vmatprep.subr.mxu1 %v1968_v19  ;;  %v1943_v45 = vld [vmem:[%s2415_s25 + $0x3b] sm:$0xff]  ;;  %v1925_v46 = vld [vmem:[%s2415_s25 + $0x52] sm:$0xff]  ;;  %v1944_v47 = vld [vmem:[%s2415_s25 + $0x43] sm:$0xff] }
  0x1f   : > { %v1945_v48 = vld [vmem:[%s2415_s25 + $0x4b] sm:$0xff]  ;;  %v1946_v50 = vld [vmem:[%s2415_s25 + $0x53] sm:$0xff]  ;;  %v1960_v52 = vld [vmem:[%s2415_s25 + $0x1c] sm:$0xff] }
  0x20   : > { %2181 = vmatmul.mubr.msk.f32.gmra.mxu1 %vm221_vm0, %v199_v20  ;;  %2195 = vmatmul.mubr.msk.f32.vlgmr.msra.gmra.mxu0 %vm221_vm0, %v1896_v21  ;;  %v1958_v49 = vld [vmem:[%s2415_s25 + $0xc] sm:$0xff]  ;;  %v1959_v51 = vld [vmem:[%s2415_s25 + $0x14] sm:$0xff]  ;;  %v1961_v53 = vld [vmem:[%s2415_s25 + $0x24] sm:$0xff] }
  0x21   : > { %2227 = vmatpush3.msra.mxu0 %v1947_v10  ;;  %2183 = vmatprep.mubr.msk.f32.mxu1 %vm221_vm0, %v200_v22  ;;  %v1962_v54 = vld [vmem:[%s2415_s25 + $0x2c] sm:$0xff]  ;;  %v1963_v55 = vld [vmem:[%s2415_s25 + $0x34] sm:$0xff]  ;;  %v1964_v56 = vld [vmem:[%s2415_s25 + $0x3c] sm:$0xff] }
  0x22   : > { %2197 = vmatprep.mubr.msk.f32.mxu0 %vm221_vm0, %v1897_v23  ;;  %2260 = vmatprep.subr.mxu0 %v1989_v24  ;;  %v1965_v57 = vld [vmem:[%s2415_s25 + $0x44] sm:$0xff]  ;;  %v1966_v58 = vld [vmem:[%s2415_s25 + $0x4c] sm:$0xff]  ;;  %v1967_v59 = vld [vmem:[%s2415_s25 + $0x54] sm:$0xff] }
  0x23   : > { %v2000_v60 = vld [vmem:[%s2415_s25 + $0x15] sm:$0xff]  ;;  %v2001_v62 = vld [vmem:[%s2415_s25 + $0x1d] sm:$0xff]  ;;  %v2002_v63 = vld [vmem:[%s2415_s25 + $0x25] sm:$0xff] }
  0x24   : > { %2184 = vmatmul.mubr.msk.f32.gmra.mxu1 %vm221_vm0, %v201_v25  ;;  %2198 = vmatmul.mubr.msk.f32.gmra.mxu0 %vm221_vm0, %v1898_v26  ;;  %v1988_v61 = vld [vmem:[%s2415_s25 + $0x5c] sm:$0xff]  ;;  %v2003_v1 = vld [vmem:[%s2415_s25 + $0x2d] sm:$0xff]  ;;  %v2006_v7 = vld [vmem:[%s2415_s25 + $0x45] sm:$0xff] }
  0x25   : > { %2186 = vmatprep.mubr.msk.f32.mxu1 %vm221_vm0, %v202_v27  ;;  %2200 = vmatprep.mubr.msk.f32.mxu0 %vm221_vm0, %v1899_v28  ;;  %v2021_v0 = vld [vmem:[%s2415_s25 + $0x16] sm:$0xff]  ;;  %v2022_v2 = vld [vmem:[%s2415_s25 + $0x1e] sm:$0xff]  ;;  %v2023_v4 = vld [vmem:[%s2415_s25 + $0x26] sm:$0xff] }
  0x26   : > { %v2004_v3 = vld [vmem:[%s2415_s25 + $0x35] sm:$0xff]  ;;  %v2005_v5 = vld [vmem:[%s2415_s25 + $0x3d] sm:$0xff]  ;;  %v2007_v9 = vld [vmem:[%s2415_s25 + $0x4d] sm:$0xff] }
  0x27   : > { %v2024_v6 = vld [vmem:[%s2415_s25 + $0x2e] sm:$0xff]  ;;  %v2025_v8 = vld [vmem:[%s2415_s25 + $0x36] sm:$0xff]  ;;  %v2026_v10 = vld [vmem:[%s2415_s25 + $0x3e] sm:$0xff] }
  0x28   : > { %2187 = vmatmul.mubr.msk.f32.gmra.mxu1 %vm221_vm0, %v203_v29  ;;  %2201 = vmatmul.mubr.msk.f32.gmra.mxu0 %vm221_vm0, %v1900_v30  ;;  %v2008_v11 = vld [vmem:[%s2415_s25 + $0x55] sm:$0xff]  ;;  %v2027_v12 = vld [vmem:[%s2415_s25 + $0x46] sm:$0xff]  ;;  %v2009_v13 = vld [vmem:[%s2415_s25 + $0x5d] sm:$0xff] }
  0x29   : > { %2189 = vmatprep.mubr.msk.f32.mxu1 %vm221_vm0, %v204_v31  ;;  %2203 = vmatprep.mubr.msk.f32.mxu0 %vm221_vm0, %v1901_v32  ;;  %v2028_v14 = vld [vmem:[%s2415_s25 + $0x4e] sm:$0xff]  ;;  %v2029_v15 = vld [vmem:[%s2415_s25 + $0x56] sm:$0xff]  ;;  %v2030_v16 = vld [vmem:[%s2415_s25 + $0x5e] sm:$0xff] }
  0x2c   : > { %2190 = vmatmul.mubr.msk.f32.gmra.mxu1 %vm221_vm0, %v205_v33  ;;  %2204 = vmatmul.mubr.msk.f32.gmra.mxu0 %vm221_vm0, %v1902_v34 }
  0x2d   : > { %2206 = vmatprep.mubr.msk.f32.mxu0 %vm221_vm0, %v1903_v35  ;;  %2211 = vmatprep.mubr.msk.f32.mxu1 %vm221_vm0, %v1896_v21 }
  0x30   : > { %2207 = vmatmul.mubr.msk.f32.gmra.mxu0 %vm221_vm0, %v1904_v36  ;;  %2212 = vmatmul.mubr.msk.f32.vlgmr.msra.gmra.mxu1 %vm221_vm0, %v1897_v23 }
  0x31   : > { %2244 = vmatpush3.msra.mxu1 %v1968_v19  ;;  %2214 = vmatprep.mubr.msk.f32.mxu1 %vm221_vm0, %v1898_v26 }
  0x32   : > { %2228 = vmatprep.mubr.msk.f32.mxu0 %vm221_vm0, %v1937_v37  ;;  %2277 = vmatprep.subr.mxu1 %v2010_v38 }
  0x34   : > { %2215 = vmatmul.mubr.msk.f32.gmra.mxu1 %vm221_vm0, %v1899_v28  ;;  %2229 = vmatmul.mubr.msk.f32.vlgmr.msra.gmra.mxu0 %vm221_vm0, %v1938_v39 }
  0x35   : > { %2261 = vmatpush3.msra.mxu0 %v1989_v24  ;;  %2217 = vmatprep.mubr.msk.f32.mxu1 %vm221_vm0, %v1900_v30 }
  0x36   : > { %2231 = vmatprep.mubr.msk.f32.mxu0 %vm221_vm0, %v1939_v40  ;;  %2294 = vmatprep.subr.mxu0 %v2031_v41 }
  0x38   : > { %2218 = vmatmul.mubr.msk.f32.gmra.mxu1 %vm221_vm0, %v1901_v32  ;;  %2232 = vmatmul.mubr.msk.f32.gmra.mxu0 %vm221_vm0, %v1940_v42 }
  0x39   : > { %2220 = vmatprep.mubr.msk.f32.mxu1 %vm221_vm0, %v1902_v34  ;;  %2234 = vmatprep.mubr.msk.f32.mxu0 %vm221_vm0, %v1941_v43 }
  0x3c   : > { %2221 = vmatmul.mubr.msk.f32.gmra.mxu1 %vm221_vm0, %v1903_v35  ;;  %2235 = vmatmul.mubr.msk.f32.gmra.mxu0 %vm221_vm0, %v1942_v44 }
  0x3d   : > { %2223 = vmatprep.mubr.msk.f32.mxu1 %vm221_vm0, %v1904_v36  ;;  %2237 = vmatprep.mubr.msk.f32.mxu0 %vm221_vm0, %v1943_v45 }
  0x40   : > { %2224 = vmatmul.mubr.msk.f32.gmra.mxu1 %vm221_vm0, %v1925_v46  ;;  %2238 = vmatmul.mubr.msk.f32.gmra.mxu0 %vm221_vm0, %v1944_v47 }
  0x41   : > { %2240 = vmatprep.mubr.msk.f32.mxu0 %vm221_vm0, %v1945_v48  ;;  %2245 = vmatprep.mubr.msk.f32.mxu1 %vm221_vm0, %v1958_v49 }
  0x44   : > { %2241 = vmatmul.mubr.msk.f32.gmra.mxu0 %vm221_vm0, %v1946_v50  ;;  %2246 = vmatmul.mubr.msk.f32.vlgmr.msra.gmra.mxu1 %vm221_vm0, %v1959_v51 }
  0x45   : > { %2278 = vmatpush3.msra.mxu1 %v2010_v38  ;;  %2248 = vmatprep.mubr.msk.f32.mxu1 %vm221_vm0, %v1960_v52 }
  0x46   : > { %2262 = vmatprep.mubr.msk.f32.mxu0 %vm221_vm0, %v1959_v51 }
  0x48   : > { %2249 = vmatmul.mubr.msk.f32.gmra.mxu1 %vm221_vm0, %v1961_v53  ;;  %2263 = vmatmul.mubr.msk.f32.vlgmr.msra.gmra.mxu0 %vm221_vm0, %v1960_v52 }
  0x49   : > { %2295 = vmatpush3.msra.mxu0 %v2031_v41  ;;  %2251 = vmatprep.mubr.msk.f32.mxu1 %vm221_vm0, %v1962_v54 }
  0x4a   : > { %2265 = vmatprep.mubr.msk.f32.mxu0 %vm221_vm0, %v1961_v53 }
  0x4c   : > { %2252 = vmatmul.mubr.msk.f32.gmra.mxu1 %vm221_vm0, %v1963_v55  ;;  %2266 = vmatmul.mubr.msk.f32.gmra.mxu0 %vm221_vm0, %v1962_v54 }
  0x4d   : > { %2254 = vmatprep.mubr.msk.f32.mxu1 %vm221_vm0, %v1964_v56  ;;  %2268 = vmatprep.mubr.msk.f32.mxu0 %vm221_vm0, %v1963_v55 }
  0x50   : > { %2255 = vmatmul.mubr.msk.f32.gmra.mxu1 %vm221_vm0, %v1965_v57  ;;  %2269 = vmatmul.mubr.msk.f32.gmra.mxu0 %vm221_vm0, %v1964_v56 }
  0x51   : > { %2257 = vmatprep.mubr.msk.f32.mxu1 %vm221_vm0, %v1966_v58  ;;  %2271 = vmatprep.mubr.msk.f32.mxu0 %vm221_vm0, %v1965_v57 }
  0x54   : > { %2258 = vmatmul.mubr.msk.f32.gmra.mxu1 %vm221_vm0, %v1967_v59  ;;  %2272 = vmatmul.mubr.msk.f32.gmra.mxu0 %vm221_vm0, %v1966_v58 }
  0x55   : > { %2274 = vmatprep.mubr.msk.f32.mxu0 %vm221_vm0, %v1967_v59  ;;  %2279 = vmatprep.mubr.msk.f32.mxu1 %vm221_vm0, %v2000_v60 }
  0x58   : > { %2275 = vmatmul.mubr.msk.f32.gmra.mxu0 %vm221_vm0, %v1988_v61  ;;  %2280 = vmatmul.mubr.msk.f32.vlgmr.msra.gmra.mxu1 %vm221_vm0, %v2001_v62 }
  0x59   : > { %2282 = vmatprep.mubr.msk.f32.mxu1 %vm221_vm0, %v2002_v63  ;;  %2296 = vmatprep.mubr.msk.f32.mxu0 %vm221_vm0, %v2021_v0 }
  0x5c   : > { %2283 = vmatmul.mubr.msk.f32.gmra.mxu1 %vm221_vm0, %v2003_v1  ;;  %2297 = vmatmul.mubr.msk.f32.vlgmr.msra.gmra.mxu0 %vm221_vm0, %v2022_v2 }
  0x5d   : > { %2285 = vmatprep.mubr.msk.f32.mxu1 %vm221_vm0, %v2004_v3  ;;  %2299 = vmatprep.mubr.msk.f32.mxu0 %vm221_vm0, %v2023_v4 }
  0x60   : > { %2286 = vmatmul.mubr.msk.f32.gmra.mxu1 %vm221_vm0, %v2005_v5  ;;  %2300 = vmatmul.mubr.msk.f32.gmra.mxu0 %vm221_vm0, %v2024_v6 }
  0x61   : > { %2288 = vmatprep.mubr.msk.f32.mxu1 %vm221_vm0, %v2006_v7  ;;  %2302 = vmatprep.mubr.msk.f32.mxu0 %vm221_vm0, %v2025_v8 }
  0x64   : > { %2289 = vmatmul.mubr.msk.f32.gmra.mxu1 %vm221_vm0, %v2007_v9  ;;  %2303 = vmatmul.mubr.msk.f32.gmra.mxu0 %vm221_vm0, %v2026_v10 }
  0x65   : > { %2291 = vmatprep.mubr.msk.f32.mxu1 %vm221_vm0, %v2008_v11  ;;  %2305 = vmatprep.mubr.msk.f32.mxu0 %vm221_vm0, %v2027_v12 }
  0x68   : > { %2292 = vmatmul.mubr.msk.f32.gmra.mxu1 %vm221_vm0, %v2009_v13  ;;  %2306 = vmatmul.mubr.msk.f32.gmra.mxu0 %vm221_vm0, %v2028_v14 }
  0x69   : > { %2308 = vmatprep.mubr.msk.f32.mxu0 %vm221_vm0, %v2029_v15 }
  0x6c   : > { %2309 = vmatmul.mubr.msk.f32.gmra.mxu0 %vm221_vm0, %v2030_v16 }
  0xd4   : > { %v2162_v17 = vpop.f32.mrf.mxu0  ;;  %v2597_v18 = vpop.f32.mrf.mxu1 }
  0xd6   : > { %v318_v19 = vpop.f32.mrf.mxu0  ;;  %v2599_v20 = vpop.f32.mrf.mxu1 }
  0xd8   : > { %v2601_v21 = vpop.f32.mrf.mxu0  ;;  %v2603_v22 = vpop.f32.mrf.mxu1 }
  0xda   : > { %v2605_v23 = vpop.f32.mrf.mxu0  ;;  %v2607_v24 = vpop.f32.mrf.mxu1 }
  0xdc   : > { %v2609_v25 = vpop.f32.mrf.mxu0  ;;  %v2179_v26 = vpop.f32.mrf.mxu1 }
  0xdd   : > { %v469_v13 = vadd.f32 %v2179_v26, %v2162_v17 }
  0xde   : > { %v2611_v27 = vpop.f32.mrf.mxu0  ;;  %v463_v28 = vpop.f32.mrf.mxu1 }
  0xdf   : > { %v464_v16 = vadd.f32 %v463_v28, %v318_v19 }
  0xe0   : > { %v2182_v29 = vpop.f32.mrf.mxu1  ;;  %v2196_v30 = vpop.f32.mrf.mxu0 }
  0xe2   : > { %v473_v31 = vpop.f32.mrf.mxu1  ;;  %v622_v32 = vpop.f32.mrf.mxu0 }
  0xe3   : > { %v474_v17 = vadd.f32 %v473_v31, %v2605_v23 }
  0xe4   : > { %v2185_v33 = vpop.f32.mrf.mxu1  ;;  %v2199_v34 = vpop.f32.mrf.mxu0 }
  0xe5   : > { %v489_v19 = vadd.f32 %v2185_v33, %v2609_v25 }
  0xe6   : > { %v483_v35 = vpop.f32.mrf.mxu1  ;;  %v632_v36 = vpop.f32.mrf.mxu0 }
  0xe7   : > { %v484_v28 = vadd.f32 %v483_v35, %v2611_v27 }
  0xe8   : > { %v2613_v37 = vpop.f32.mrf.mxu1  ;;  %v2615_v38 = vpop.f32.mrf.mxu0 }
  0xe9   : > { %v676_v23 = vadd.f32 %v2615_v38, %v489_v19 }
  0xea   : > { %v2617_v39 = vpop.f32.mrf.mxu1  ;;  %v2619_v40 = vpop.f32.mrf.mxu0 }
  0xeb   : > { %v494_v31 = vadd.f32 %v2617_v39, %v2599_v20  ;;  %v675_v25 = vadd.f32 %v2619_v40, %v484_v28 }
  0xec   : > { %v2621_v41 = vpop.f32.mrf.mxu1  ;;  %v2623_v42 = vpop.f32.mrf.mxu0 }
  0xee   : > { %v2625_v43 = vpop.f32.mrf.mxu1  ;;  %v2627_v44 = vpop.f32.mrf.mxu0 }
  0xf0   : > { %v2629_v45 = vpop.f32.mrf.mxu0  ;;  %v2213_v46 = vpop.f32.mrf.mxu1 }
  0xf2   : > { %v2631_v47 = vpop.f32.mrf.mxu0  ;;  %v791_v48 = vpop.f32.mrf.mxu1 }
  0xf4   : > { %v2216_v49 = vpop.f32.mrf.mxu1  ;;  %v2230_v50 = vpop.f32.mrf.mxu0 }
  0xf6   : > { %v801_v51 = vpop.f32.mrf.mxu1  ;;  %v960_v52 = vpop.f32.mrf.mxu0 }
  0xf8   : > { %v2219_v53 = vpop.f32.mrf.mxu1  ;;  %v2233_v54 = vpop.f32.mrf.mxu0 }
  0xf9   : > { %v845_v38 = vadd.f32 %v2219_v53, %v676_v23 }
  0xfa   : > { %v2633_v55 = vpop.f32.mrf.mxu1  ;;  %v970_v56 = vpop.f32.mrf.mxu0 }
  0xfc   : > { %v2635_v57 = vpop.f32.mrf.mxu1  ;;  %v2637_v58 = vpop.f32.mrf.mxu0 }
  0xfe   : > { %v2639_v59 = vpop.f32.mrf.mxu1  ;;  %v2641_v60 = vpop.f32.mrf.mxu0 }
  0xff   : > { %2785 = vst [vmem:[#allocation2_spill] sm:$0xff] %v2639_v59 }
 0x100   : > { %v2643_v61 = vpop.f32.mrf.mxu1  ;;  %v2645_v62 = vpop.f32.mrf.mxu0 }
 0x101   : > { %2786 = vst [vmem:[#allocation3_spill] sm:$0xff] %v2643_v61  ;;  %2787 = vst [vmem:[#allocation4_spill] sm:$0xff] %v2645_v62  ;;  %v671_v61 = vadd.f32 %v622_v32, %v464_v16 }
 0x102   : > { %v2647_v63 = vpop.f32.mrf.mxu1  ;;  %v2649_v0 = vpop.f32.mrf.mxu0 }
 0x103   : > { %2788 = vst [vmem:[#allocation5_spill] sm:$0xff] %v2647_v63  ;;  %2789 = vst [vmem:[#allocation6_spill] sm:$0xff] %v2649_v0  ;;  %v479_v0 = vadd.f32 %v2182_v29, %v2601_v21  ;;  %v673_v21 = vadd.f32 %v632_v36, %v474_v17 }
 0x104   : > { %v2651_v1 = vpop.f32.mrf.mxu0  ;;  %v2247_v2 = vpop.f32.mrf.mxu1 }
 0x105   : > { %2790 = vst [vmem:[#allocation7_spill] sm:$0xff] %v2651_v1  ;;  %v672_v1 = vadd.f32 %v2196_v30, %v469_v13  ;;  %v674_v26 = vadd.f32 %v2199_v34, %v479_v0  ;;  %v842_v34 = vadd.f32 %v801_v51, %v673_v21 }
 0x106   : > { %v2653_v3 = vpop.f32.mrf.mxu0  ;;  %v1129_v4 = vpop.f32.mrf.mxu1 }
 0x107   : > { %2791 = vst [vmem:[#allocation8_spill] sm:$0xff] %v2653_v3  ;;  %v841_v62 = vadd.f32 %v2213_v46, %v672_v1  ;;  %v843_v29 = vadd.f32 %v2216_v49, %v674_v26  ;;  %v499_v1 = vadd.f32 %v2613_v37, %v2597_v18  ;;  %v509_v49 = vadd.f32 %v2621_v41, %v2603_v22 }
 0x108   : > { %v2250_v5 = vpop.f32.mrf.mxu1  ;;  %v2264_v6 = vpop.f32.mrf.mxu0  ;;  %v504_v37 = vadd.f32 %v2625_v43, %v2607_v24  ;;  %v1011_v40 = vadd.f32 %v970_v56, %v842_v34  ;;  %v844_v22 = vadd.f32 %v2633_v55, %v675_v25  ;;  %v1014_v41 = vadd.f32 %v2637_v58, %v845_v38  ;;  %v2703_v24 = vld [vmem:[%s2783_s2] ss:$0 sm:$0xff]  ;;  %v2797_v16 = vld [vmem:[#allocation4_spill] sm:$0xff] }
 0x109   : > { %v1012_v35 = vadd.f32 %v2233_v54, %v843_v29  ;;  %v678_v18 = vadd.f32 %v2623_v42, %v499_v1  ;;  %v677_v54 = vadd.f32 %v2627_v44, %v494_v31 }
 0x10a   : > { %v1139_v7 = vpop.f32.mrf.mxu1  ;;  %v1298_v8 = vpop.f32.mrf.mxu0  ;;  %v1013_v58 = vadd.f32 %v2641_v60, %v844_v22  ;;  %v2800_v1 = vld [vmem:[#allocation6_spill] sm:$0xff] }
 0x10b   : > { %v1180_v43 = vadd.f32 %v1139_v7, %v1011_v40  ;;  %v847_v55 = vadd.f32 %v2635_v57, %v678_v18  ;;  %v2802_v18 = vld [vmem:[#allocation5_spill] sm:$0xff] }
 0x10c   : > { %v2655_v9 = vpop.f32.mrf.mxu1  ;;  %v2267_v10 = vpop.f32.mrf.mxu0  ;;  %v2803_v38 = vld [vmem:[#allocation7_spill] sm:$0xff] }
 0x10d   : > { %v1183_v0 = vadd.f32 %v2655_v9, %v1014_v41  ;;  %v1016_v17 = vadd.f32 %v2797_v16, %v847_v55 }
 0x10e   : > { %v2657_v11 = vpop.f32.mrf.mxu1  ;;  %v2659_v12 = vpop.f32.mrf.mxu0  ;;  %v2804_v41 = vld [vmem:[#allocation8_spill] sm:$0xff] }
 0x10f   : > { %2792 = vst [vmem:[#allocation9_spill] sm:$0xff] %v2657_v11  ;;  %2793 = vst [vmem:[#allocation10_spill] sm:$0xff] %v2659_v12  ;;  %v1010_v12 = vadd.f32 %v2230_v50, %v841_v62  ;;  %v1181_v50 = vadd.f32 %v2250_v5, %v1012_v35 }
 0x110   : > { %v2661_v14 = vpop.f32.mrf.mxu1  ;;  %v2663_v15 = vpop.f32.mrf.mxu0 }
 0x111   : > { %2794 = vst [vmem:[#allocation11_spill] sm:$0xff] %v2661_v14  ;;  %v840_v14 = vadd.f32 %v791_v48, %v671_v61  ;;  %v1179_v46 = vadd.f32 %v2247_v2, %v1010_v12  ;;  %v680_v61 = vadd.f32 %v2629_v45, %v509_v49  ;;  %v1350_v53 = vadd.f32 %v2267_v10, %v1181_v50  ;;  %v2796_v12 = vld [vmem:[#allocation2_spill] sm:$0xff] }
 0x112   : > { %v2665_v3 = vpop.f32.mrf.mxu1  ;;  %v2667_v63 = vpop.f32.mrf.mxu0  ;;  %v679_v45 = vadd.f32 %v2631_v47, %v504_v37  ;;  %v1352_v57 = vadd.f32 %v2663_v15, %v1183_v0 }
 0x113   : > { %v1009_v32 = vadd.f32 %v960_v52, %v840_v14  ;;  %v1348_v48 = vadd.f32 %v2264_v6, %v1179_v46  ;;  %v846_v14 = vadd.f32 %v2796_v12, %v677_v54 }
 0x114   : > { %v2670_v59 = vpop.f32.mrf.mxu1  ;;  %v2672_v11 = vpop.f32.mrf.mxu0  ;;  %v848_v37 = vadd.f32 %v2802_v18, %v679_v45 }
 0x115   : > { %v1178_v36 = vadd.f32 %v1129_v4, %v1009_v32  ;;  %v2799_v32 = vld [vmem:[#allocation3_spill] sm:$0xff]  ;;  %v1015_v23 = vadd.f32 %v2800_v1, %v846_v14 }
 0x116   : > { %v2677_v30 = vpop.f32.mrf.mxu1  ;;  %v2679_v13 = vpop.f32.mrf.mxu0  ;;  %v2795_v5 = vld [vmem:[#allocation10_spill] sm:$0xff]  ;;  %v2798_v47 = vld [vmem:[#allocation9_spill] sm:$0xff]  ;;  %v849_v46 = vadd.f32 %v2799_v32, %v680_v61 }
 0x117   : > { %v1347_v52 = vadd.f32 %v1298_v8, %v1178_v36  ;;  %v1349_v6 = vadd.f32 %v2795_v5, %v1180_v43  ;;  %v1182_v26 = vadd.f32 %v2798_v47, %v1013_v58  ;;  %v1184_v40 = vadd.f32 %v2665_v3, %v1015_v23 }
 0x118   : > { %v2687_v33 = vpop.f32.mrf.mxu0  ;;  %v2281_v27 = vpop.f32.mrf.mxu1  ;;  %v2801_v31 = vld [vmem:[#allocation11_spill] sm:$0xff] }
 0x119   : > { %v1517_v51 = vadd.f32 %v2281_v27, %v1348_v48  ;;  %v1185_v15 = vadd.f32 %v2801_v31, %v1016_v17  ;;  %v1351_v25 = vadd.f32 %v2667_v63, %v1182_v26  ;;  %v1353_v3 = vadd.f32 %v2679_v13, %v1184_v40 }
 0x11a   : > { %v2694_v20 = vpop.f32.mrf.mxu0  ;;  %v1467_v39 = vpop.f32.mrf.mxu1 }
 0x11b   : > { %v1516_v56 = vadd.f32 %v1467_v39, %v1347_v52  ;;  %v1018_v39 = vadd.f32 %v2803_v38, %v849_v46  ;;  %v1354_v50 = vadd.f32 %v2672_v11, %v1185_v15 }
 0x11c   : > { %v2284_v42 = vpop.f32.mrf.mxu1  ;;  %v2298_v62 = vpop.f32.mrf.mxu0 }
 0x11d   : > { %v1686_v44 = vadd.f32 %v2298_v62, %v1517_v51  ;;  %v1519_v8 = vadd.f32 %v2284_v42, %v1350_v53  ;;  %v1017_v42 = vadd.f32 %v2804_v41, %v848_v37  ;;  %v1187_v62 = vadd.f32 %v2670_v59, %v1018_v39 }
 0x11e   : > { %v1477_v2 = vpop.f32.mrf.mxu1  ;;  %v1636_v4 = vpop.f32.mrf.mxu0 }
 0x11f   : > { %v1703_v7 = vadd.f32 %v2703_v24, %v1686_v44  ;;  %v1685_v10 = vadd.f32 %v1636_v4, %v1516_v56  ;;  %v1518_v28 = vadd.f32 %v1477_v2, %v1349_v6  ;;  %v1186_v55 = vadd.f32 %v2677_v30, %v1017_v42 }
 0x120   : > { %v2287_v60 = vpop.f32.mrf.mxu1  ;;  %v2301_v9 = vpop.f32.mrf.mxu0  ;;  %v1356_v59 = vadd.f32 %v2687_v33, %v1187_v62 }
 0x121   : > { %v1713_v19 = vmax.f32 %v1703_v7, 0.0  ;;  %v1702_v21 = vadd.f32 %v2703_v24, %v1685_v10  ;;  %v1688_v29 = vadd.f32 %v2301_v9, %v1519_v8  ;;  %v1521_v36 = vadd.f32 %v2287_v60, %v1352_v57 }
 0x122   : > { %v1487_v27 = vpop.f32.mrf.mxu1  ;;  %v1646_v34 = vpop.f32.mrf.mxu0  ;;  %v1355_v6 = vadd.f32 %v2694_v20, %v1186_v55 }
 0x123   : > { %2043 = vst.msk [vmem:[%s2719_s19 + $0x6] sm:$0xfc] %vm1724_vm1, %v1713_v19  ;;  %v1712_v35 = vmax.f32 %v1702_v21, 0.0  ;;  %v1705_v48 = vadd.f32 %v2703_v24, %v1688_v29  ;;  %v1687_v49 = vadd.f32 %v1646_v34, %v1518_v28  ;;  %v1520_v54 = vadd.f32 %v1487_v27, %v1351_v25 }
 0x124   : > { %v2290_v63 = vpop.f32.mrf.mxu1  ;;  %v2304_v52 = vpop.f32.mrf.mxu0 }
 0x125   : > { %1722 = vst.msk [vmem:[%s2719_s19] sm:$0xff] %vm221_vm0, %v1712_v35  ;;  %v1715_v51 = vmax.f32 %v1705_v48, 0.0  ;;  %v1704_v61 = vadd.f32 %v2703_v24, %v1687_v49  ;;  %v1690_v22 = vadd.f32 %v2304_v52, %v1521_v36  ;;  %v1523_v56 = vadd.f32 %v2290_v63, %v1354_v50 }
 0x126   : > { %v1497_v43 = vpop.f32.mrf.mxu1  ;;  %v1656_v11 = vpop.f32.mrf.mxu0 }
 0x127   : > { %2046 = vst.msk [vmem:[%s2719_s19 + $0x14] sm:$0xf] %vm1731_vm2, %v1715_v51  ;;  %v1714_v53 = vmax.f32 %v1704_v61, 0.0  ;;  %v1707_v44 = vadd.f32 %v2703_v24, %v1690_v22  ;;  %v1689_v45 = vadd.f32 %v1656_v11, %v1520_v54  ;;  %v1522_v2 = vadd.f32 %v1497_v43, %v1353_v3 }
 0x128   : > { %2047 = vst.msk [vmem:[%s2719_s19 + $0x12] sm:$0xc0] %vm1734_vm3, %v1715_v51  ;;  %v2293_v58 = vpop.f32.mrf.mxu1  ;;  %v2307_v0 = vpop.f32.mrf.mxu0 }
 0x129   : > { %2044 = vst.msk [vmem:[%s2719_s19 + $0xe] sm:$0x3] %vm1726_vm4, %v1714_v53  ;;  %v1717_v13 = vmax.f32 %v1707_v44, 0.0  ;;  %v1706_v4 = vadd.f32 %v2703_v24, %v1689_v45  ;;  %v1692_v5 = vadd.f32 %v2307_v0, %v1523_v56  ;;  %v1525_v7 = vadd.f32 %v2293_v58, %v1356_v59 }
 0x12a   : > { %2045 = vst.msk [vmem:[%s2719_s19 + $0xc] sm:$0xf0] %vm1729_vm5, %v1714_v53  ;;  %v1507_v30 = vpop.f32.mrf.mxu1  ;;  %v1666_v8 = vpop.f32.mrf.mxu0 }
 0x12b   : > { %2049 = vst.msk [vmem:[%s2719_s19 + $0x20] sm:$0xff] %vm221_vm0, %v1717_v13  ;;  %v1716_v33 = vmax.f32 %v1706_v4, 0.0  ;;  %v1709_v10 = vadd.f32 %v2703_v24, %v1692_v5  ;;  %v1691_v12 = vadd.f32 %v1666_v8, %v1522_v2  ;;  %v1524_v20 = vadd.f32 %v1507_v30, %v1355_v6 }
 0x12c   : > { %v2310_v14 = vpop.f32.mrf.mxu0 }
 0x12d   : > { %2048 = vst.msk [vmem:[%s2719_s19 + $0x1a] sm:$0x3f] %vm1736_vm6, %v1716_v33  ;;  %v1719_v16 = vmax.f32 %v1709_v10, 0.0  ;;  %v1708_v17 = vadd.f32 %v2703_v24, %v1691_v12  ;;  %v1694_v47 = vadd.f32 %v2310_v14, %v1525_v7 }
 0x12e   : > { %v1676_v26 = vpop.f32.mrf.mxu0 }
 0x12f   : > { %2051 = vst.msk [vmem:[%s2719_s19 + $0x2e] sm:$0x3] %vm1726_vm4, %v1719_v16  ;;  %v1718_v57 = vmax.f32 %v1708_v17, 0.0  ;;  %v1711_v60 = vadd.f32 %v2703_v24, %v1694_v47  ;;  %v1693_v9 = vadd.f32 %v1676_v26, %v1524_v20 }
 0x130   : > { %2052 = vst.msk [vmem:[%s2719_s19 + $0x2c] sm:$0xf0] %vm1729_vm5, %v1719_v16 }
 0x131   : > { %2050 = vst.msk [vmem:[%s2719_s19 + $0x26] sm:$0xfc] %vm1724_vm1, %v1718_v57  ;;  %v1721_v19 = vmax.f32 %v1711_v60, 0.0  ;;  %v1710_v28 = vadd.f32 %v2703_v24, %v1693_v9 }
 0x133   : > { %2055 = vst.msk [vmem:[%s2719_s19 + $0x3a] sm:$0x3f] %vm1736_vm6, %v1721_v19  ;;  %v1720_v21 = vmax.f32 %v1710_v28, 0.0 }
 0x135   : > { %2053 = vst.msk [vmem:[%s2719_s19 + $0x34] sm:$0xf] %vm1731_vm2, %v1720_v21 }
 0x136   : > { %2054 = vst.msk [vmem:[%s2719_s19 + $0x32] sm:$0xc0] %vm1734_vm3, %v1720_v21 }
 0x137 PF: > { %s13_s14 = sadd.s32 1, %s2360_s14   ;;  %s2805_s12 = smov %s2356_s13 }
 0x138   : > { %p10_p5 = scmp.ge.s32.totalorder %s13_s14, 4   ;;  %s2806_s13 = smov %s2808_s15 }
 0x13a   :  { %12 = sbr.rel (!%p10_p5) target bundleno = 2 (0x2), region = 86 }

// kernel: inception_a.7
= control target key start
LH: loop header
LB: loop body
LE: loop exit
PB: predicated region body
PF: predicated region fallthrough
CT: control target
= control target key end

     0   :  { %s2705_s12 = smov 0   ;;  %s2707_s13 = smov 0   ;;  %s3302_s0 = inlined_call_operand.vmem [shape: f32[2,110,64], index: 0, kind: input, shape index: {}]   ;;  %s3303_s1 = inlined_call_operand.vmem [shape: f32[9,64,96], index: 1, kind: input, shape index: {}]   ;;  %s3304_s2 = inlined_call_operand.vmem [shape: f32[1,96], index: 2, kind: input, shape index: {}]   ;;  %s3305_s3 = inlined_call_operand.vmem [shape: f32[2,8,8,96], index: 3, kind: output, shape index: {}]  }
   0x1   :  { %s2709_s14 = smov 0  }
   0x2 LB: > { %s25_s15 = sadd.s32 1, %s2679_s13  ;;  %p1924_p0 = scmp.ge.s32.totalorder %s2683_s14, 1  ;;  %s2683_s14 = sphi %s2709_s14, %s13_s14   ;;  %s2679_s13 = sphi %s2707_s13, %s3329_s13   ;;  %s2675_s12 = sphi %s2705_s12, %s3328_s12  }
   0x3   : > { %p27_p1 = scmp.ge.s32.totalorder %s25_s15, 2  ;;  %p151_p2 = scmp.lt.s32.totalorder %s2683_s14, 3 }
   0x5   : > { %s3331_s15 = smov (%p27_p1, %s25_s15), 0  ;;  %p152_p3 = pnand %p1924_p0, %p151_p2 }
   0x7   : > { %155 = sbr.rel (%p152_p3) target bundleno = 347 (0x15b), region = 32 }
   0xc   : > { %v1945_v0 = vld [vmem:[%s3303_s1 + $0x78] sm:$0xff]  ;;  %v1944_v2 = vld [vmem:[%s3303_s1 + $0x70] sm:$0xff]  ;;  %p179_p4 = scmp.lt.s32.totalorder %s2675_s12, 1  ;;  %v1943_v4 = vld [vmem:[%s3303_s1 + $0x68] sm:$0xff]  ;;  %vm235_vm0 = vcmask 523264   ;;  %vm1788_vm1 = vcmask 785410  }
   0xd   : > { %v213_v1 = vld [vmem:[%s3303_s1 + $0x38] sm:$0xff]  ;;  %2341 = vmatprep.subr.mxu0 %v1945_v0  ;;  %v212_v3 = vld [vmem:[%s3303_s1 + $0x30] sm:$0xff]  ;;  %v211_v5 = vld [vmem:[%s3303_s1 + $0x28] sm:$0xff]  ;;  %vm1790_vm2 = vcmask 779264   ;;  %vm1793_vm3 = vcmask 785412   ;;  %vm1785_vm4 = vcmask 785408  }
   0xe   : > { %2372 = vmatprep.subr.mxu1 %v213_v1  ;;  %2342 = vmatpush3.msra.mxu0 %v1945_v0  ;;  %s3333_s12 = smov (!%p179_p4, %s2675_s12), 1  ;;  %v1942_v6 = vld [vmem:[%s3303_s1 + $0x60] sm:$0xff]  ;;  %v1941_v8 = vld [vmem:[%s3303_s1 + $0x58] sm:$0xff]  ;;  %v1940_v10 = vld [vmem:[%s3303_s1 + $0x50] sm:$0xff]  ;;  %vm1795_vm5 = vcmask 781312   ;;  %vm1798_vm6 = vcmask 785414  }
   0xf   : > { %2373 = vmatpush3.msra.mxu1 %v213_v1  ;;  %2343 = vmatprep.subr.mxu0 %v1944_v2  ;;  %v210_v7 = vld [vmem:[%s3303_s1 + $0x20] sm:$0xff]  ;;  %v209_v9 = vld [vmem:[%s3303_s1 + $0x18] sm:$0xff]  ;;  %s2636_s9 = smul.u32 112, %s3333_s12  ;;  %v208_v11 = vld [vmem:[%s3303_s1 + $0x10] sm:$0xff]  ;;  %s2178_s5 = sshll.u32 %s3333_s12, 6  ;;  %vm1800_vm7 = vcmask 783360  }
  0x10   : > { %2374 = vmatprep.subr.mxu1 %v212_v3  ;;  %2344 = vmatpush3.msra.mxu0 %v1944_v2  ;;  %v1939_v12 = vld [vmem:[%s3303_s1 + $0x48] sm:$0xff]  ;;  %v1938_v14 = vld [vmem:[%s3303_s1 + $0x40] sm:$0xff]  ;;  %v1983_v20 = vld [vmem:[%s3303_s1 + $0xb8] sm:$0xff]  ;;  %s3253_s7 = scalar_lea.vmem %s3305_s3, %s2178_s5 }
  0x11   : > { %2375 = vmatpush3.msra.mxu1 %v212_v3  ;;  %2345 = vmatprep.subr.mxu0 %v1943_v4  ;;  %v207_v13 = vld [vmem:[%s3303_s1 + $0x8] sm:$0xff]  ;;  %s2771_s24 = scalar_lea.vmem %s3302_s0, %s2636_s9  ;;  %v206_v15 = vld [vmem:[%s3303_s1] sm:$0xff]  ;;  %v1982_v23 = vld [vmem:[%s3303_s1 + $0xb0] sm:$0xff] }
  0x12   : > { %2376 = vmatprep.subr.mxu1 %v211_v5  ;;  %2346 = vmatpush3.msra.mxu0 %v1943_v4  ;;  %v1928_v16 = vld [vmem:[%s2771_s24 + $0x1] sm:$0xff]  ;;  %v1929_v18 = vld [vmem:[%s2771_s24 + $0x9] sm:$0xff]  ;;  %v1930_v21 = vld [vmem:[%s2771_s24 + $0x11] sm:$0xff] }
  0x13   : > { %2377 = vmatpush3.msra.mxu1 %v211_v5  ;;  %2347 = vmatprep.subr.mxu0 %v1942_v6  ;;  %v196_v17 = vld [vmem:[%s2771_s24] sm:$0xff]  ;;  %v197_v19 = vld [vmem:[%s2771_s24 + $0x8] sm:$0xff]  ;;  %v198_v22 = vld [vmem:[%s2771_s24 + $0x10] sm:$0xff] }
  0x14   : > { %2378 = vmatprep.subr.mxu1 %v210_v7  ;;  %2348 = vmatpush3.msra.mxu0 %v1942_v6  ;;  %v2011_v24 = vld [vmem:[%s3303_s1 + $0xf8] sm:$0xff]  ;;  %v1981_v27 = vld [vmem:[%s3303_s1 + $0xa8] sm:$0xff]  ;;  %v2010_v28 = vld [vmem:[%s3303_s1 + $0xf0] sm:$0xff] }
  0x15   : > { %2379 = vmatpush3.msra.mxu1 %v210_v7  ;;  %2349 = vmatprep.subr.mxu0 %v1941_v8  ;;  %v1931_v25 = vld [vmem:[%s2771_s24 + $0x19] sm:$0xff]  ;;  %v1932_v29 = vld [vmem:[%s2771_s24 + $0x21] sm:$0xff]  ;;  %v1933_v31 = vld [vmem:[%s2771_s24 + $0x29] sm:$0xff] }
  0x16   : > { %2380 = vmatprep.subr.mxu1 %v209_v9  ;;  %2350 = vmatpush3.msra.mxu0 %v1941_v8  ;;  %v199_v26 = vld [vmem:[%s2771_s24 + $0x18] sm:$0xff]  ;;  %v200_v30 = vld [vmem:[%s2771_s24 + $0x20] sm:$0xff]  ;;  %v201_v32 = vld [vmem:[%s2771_s24 + $0x28] sm:$0xff] }
  0x17   : > { %2381 = vmatpush3.msra.mxu1 %v209_v9  ;;  %2351 = vmatprep.subr.mxu0 %v1940_v10  ;;  %v1980_v33 = vld [vmem:[%s3303_s1 + $0xa0] sm:$0xff]  ;;  %v2009_v34 = vld [vmem:[%s3303_s1 + $0xe8] sm:$0xff]  ;;  %v1979_v35 = vld [vmem:[%s3303_s1 + $0x98] sm:$0xff] }
  0x18   : > { %2382 = vmatprep.subr.mxu1 %v208_v11  ;;  %2352 = vmatpush3.msra.mxu0 %v1940_v10  ;;  %v2008_v36 = vld [vmem:[%s3303_s1 + $0xe0] sm:$0xff]  ;;  %v1934_v37 = vld [vmem:[%s2771_s24 + $0x31] sm:$0xff]  ;;  %v1977_v46 = vld [vmem:[%s3303_s1 + $0x88] sm:$0xff] }
  0x19   : > { %2383 = vmatpush3.msra.mxu1 %v208_v11  ;;  %2353 = vmatprep.subr.mxu0 %v1939_v12  ;;  %v202_v38 = vld [vmem:[%s2771_s24 + $0x30] sm:$0xff]  ;;  %v1935_v39 = vld [vmem:[%s2771_s24 + $0x39] sm:$0xff]  ;;  %v1936_v44 = vld [vmem:[%s2771_s24 + $0x41] sm:$0xff] }
  0x1a   : > { %2384 = vmatprep.subr.mxu1 %v207_v13  ;;  %2354 = vmatpush3.msra.mxu0 %v1939_v12  ;;  %v203_v40 = vld [vmem:[%s2771_s24 + $0x38] sm:$0xff]  ;;  %v1978_v42 = vld [vmem:[%s3303_s1 + $0x90] sm:$0xff]  ;;  %v204_v45 = vld [vmem:[%s2771_s24 + $0x40] sm:$0xff] }
  0x1b   : > { %2385 = vmatpush3.msra.mxu1 %v207_v13  ;;  %2355 = vmatprep.subr.mxu0 %v1938_v14  ;;  %v2007_v41 = vld [vmem:[%s3303_s1 + $0xd8] sm:$0xff]  ;;  %v2006_v43 = vld [vmem:[%s3303_s1 + $0xd0] sm:$0xff]  ;;  %v205_v48 = vld [vmem:[%s2771_s24 + $0x48] sm:$0xff] }
  0x1c   : > { %2386 = vmatprep.subr.mxu1 %v206_v15  ;;  %2356 = vmatpush3.msra.mxu0 %v1938_v14  ;;  %v1937_v47 = vld [vmem:[%s2771_s24 + $0x49] sm:$0xff]  ;;  %v1976_v50 = vld [vmem:[%s3303_s1 + $0x80] sm:$0xff]  ;;  %v1995_v54 = vld [vmem:[%s2771_s24 + $0x12] sm:$0xff] }
  0x1d   : > { %2357 = vmatprep.mubr.msk.f32.mxu0 %vm235_vm0, %v1928_v16  ;;  %2387 = vmatpush3.msra.mxu1 %v206_v15  ;;  %v2005_v49 = vld [vmem:[%s3303_s1 + $0xc8] sm:$0xff]  ;;  %v2004_v51 = vld [vmem:[%s3303_s1 + $0xc0] sm:$0xff]  ;;  %v2039_v55 = vld [vmem:[%s3303_s1 + $0x138] sm:$0xff] }
  0x1e   : > { %2388 = vmatprep.mubr.msk.f32.mxu1 %vm235_vm0, %v196_v17  ;;  %2358 = vmatmul.mubr.msk.f32.vlgmr.msra.gmra.mxu0 %vm235_vm0, %v1929_v18  ;;  %v1966_v52 = vld [vmem:[%s2771_s24 + $0x2] sm:$0xff]  ;;  %v1994_v53 = vld [vmem:[%s2771_s24 + $0xa] sm:$0xff]  ;;  %v1996_v56 = vld [vmem:[%s2771_s24 + $0x1a] sm:$0xff] }
  0x1f   : > { %2389 = vmatmul.mubr.msk.f32.vlgmr.msra.gmra.mxu1 %vm235_vm0, %v197_v19  ;;  %2403 = vmatprep.subr.mxu0 %v1983_v20  ;;  %v2038_v57 = vld [vmem:[%s3303_s1 + $0x130] sm:$0xff]  ;;  %v2067_v58 = vld [vmem:[%s3303_s1 + $0x178] sm:$0xff]  ;;  %v1997_v59 = vld [vmem:[%s2771_s24 + $0x22] sm:$0xff] }
  0x20   : > { %2360 = vmatprep.mubr.msk.f32.mxu0 %vm235_vm0, %v1930_v21  ;;  %2404 = vmatpush3.msra.mxu0 %v1983_v20  ;;  %v2037_v60 = vld [vmem:[%s3303_s1 + $0x128] sm:$0xff]  ;;  %v2066_v61 = vld [vmem:[%s3303_s1 + $0x170] sm:$0xff]  ;;  %v2036_v0 = vld [vmem:[%s3303_s1 + $0x120] sm:$0xff] }
  0x21   : > { %2391 = vmatprep.mubr.msk.f32.mxu1 %vm235_vm0, %v198_v22  ;;  %2405 = vmatprep.subr.mxu0 %v1982_v23  ;;  %v1998_v62 = vld [vmem:[%s2771_s24 + $0x2a] sm:$0xff]  ;;  %v1999_v63 = vld [vmem:[%s2771_s24 + $0x32] sm:$0xff]  ;;  %v2064_v3 = vld [vmem:[%s3303_s1 + $0x160] sm:$0xff] }
  0x22   : > { %2434 = vmatprep.subr.mxu1 %v2011_v24  ;;  %2361 = vmatmul.mubr.msk.f32.gmra.mxu0 %vm235_vm0, %v1931_v25  ;;  %v2065_v1 = vld [vmem:[%s3303_s1 + $0x168] sm:$0xff]  ;;  %v2035_v2 = vld [vmem:[%s3303_s1 + $0x118] sm:$0xff]  ;;  %v2034_v7 = vld [vmem:[%s3303_s1 + $0x110] sm:$0xff] }
  0x23   : > { %2392 = vmatmul.mubr.msk.f32.gmra.mxu1 %vm235_vm0, %v199_v26  ;;  %2406 = vmatpush3.msra.mxu0 %v1982_v23  ;;  %v2000_v4 = vld [vmem:[%s2771_s24 + $0x3a] sm:$0xff]  ;;  %v2001_v5 = vld [vmem:[%s2771_s24 + $0x42] sm:$0xff]  ;;  %v2062_v8 = vld [vmem:[%s3303_s1 + $0x150] sm:$0xff] }
  0x24   : > { %2435 = vmatpush3.msra.mxu1 %v2011_v24  ;;  %2407 = vmatprep.subr.mxu0 %v1981_v27  ;;  %v2063_v6 = vld [vmem:[%s3303_s1 + $0x158] sm:$0xff]  ;;  %v2002_v9 = vld [vmem:[%s2771_s24 + $0x4a] sm:$0xff]  ;;  %v2032_v13 = vld [vmem:[%s3303_s1 + $0x100] sm:$0xff] }
  0x25   : > { %2436 = vmatprep.subr.mxu1 %v2010_v28  ;;  %2408 = vmatpush3.msra.mxu0 %v1981_v27  ;;  %v2033_v10 = vld [vmem:[%s3303_s1 + $0x108] sm:$0xff]  ;;  %v2003_v11 = vld [vmem:[%s2771_s24 + $0x52] sm:$0xff]  ;;  %v2060_v14 = vld [vmem:[%s3303_s1 + $0x140] sm:$0xff] }
  0x26   : > { %2363 = vmatprep.mubr.msk.f32.mxu0 %vm235_vm0, %v1932_v29  ;;  %2394 = vmatprep.mubr.msk.f32.mxu1 %vm235_vm0, %v200_v30  ;;  %v2061_v12 = vld [vmem:[%s3303_s1 + $0x148] sm:$0xff]  ;;  %v2023_v17 = vld [vmem:[%s2771_s24 + $0x13] sm:$0xff]  ;;  %v2024_v20 = vld [vmem:[%s2771_s24 + $0x1b] sm:$0xff] }
  0x27   : > { %2437 = vmatpush3.msra.mxu1 %v2010_v28  ;;  %2364 = vmatmul.mubr.msk.f32.gmra.mxu0 %vm235_vm0, %v1933_v31  ;;  %v2022_v15 = vld [vmem:[%s2771_s24 + $0xb] sm:$0xff]  ;;  %v2950_v18 = vld [vmem:[%s2771_s24 + $0x14] sm:$0xff]  ;;  %v2959_v21 = vld [vmem:[%s2771_s24 + $0x1c] sm:$0xff] }
  0x28   : > { %2395 = vmatmul.mubr.msk.f32.gmra.mxu1 %vm235_vm0, %v201_v32  ;;  %2409 = vmatprep.subr.mxu0 %v1980_v33  ;;  %v2050_v16 = vld [vmem:[%s2771_s24 + $0xc] sm:$0xff]  ;;  %v2095_v19 = vld [vmem:[%s3303_s1 + $0x1b8] sm:$0xff]  ;;  %v2025_v24 = vld [vmem:[%s2771_s24 + $0x23] sm:$0xff] }
  0x29   : > { %2438 = vmatprep.subr.mxu1 %v2009_v34  ;;  %2410 = vmatpush3.msra.mxu0 %v1980_v33  ;;  %v2094_v22 = vld [vmem:[%s3303_s1 + $0x1b0] sm:$0xff]  ;;  %v2123_v23 = vld [vmem:[%s3303_s1 + $0x1f8] sm:$0xff]  ;;  %v2973_v25 = vld [vmem:[%s2771_s24 + $0x24] sm:$0xff] }
  0x2a   : > { %2439 = vmatpush3.msra.mxu1 %v2009_v34  ;;  %2411 = vmatprep.subr.mxu0 %v1979_v35  ;;  %v2093_v26 = vld [vmem:[%s3303_s1 + $0x1a8] sm:$0xff]  ;;  %v2122_v27 = vld [vmem:[%s3303_s1 + $0x1f0] sm:$0xff]  ;;  %v2092_v32 = vld [vmem:[%s3303_s1 + $0x1a0] sm:$0xff] }
  0x2b   : > { %2440 = vmatprep.subr.mxu1 %v2008_v36  ;;  %2366 = vmatprep.mubr.msk.f32.mxu0 %vm235_vm0, %v1934_v37  ;;  %v2026_v28 = vld [vmem:[%s2771_s24 + $0x2b] sm:$0xff]  ;;  %v2027_v30 = vld [vmem:[%s2771_s24 + $0x33] sm:$0xff]  ;;  %v3014_v37 = vld [vmem:[%s2771_s24 + $0x3c] sm:$0xff] }
  0x2c   : > { %2397 = vmatprep.mubr.msk.f32.mxu1 %vm235_vm0, %v202_v38  ;;  %2412 = vmatpush3.msra.mxu0 %v1979_v35  ;;  %v2988_v29 = vld [vmem:[%s2771_s24 + $0x2c] sm:$0xff]  ;;  %v2992_v31 = vld [vmem:[%s2771_s24 + $0x34] sm:$0xff]  ;;  %v2120_v35 = vld [vmem:[%s3303_s1 + $0x1e0] sm:$0xff] }
  0x2d   : > { %2441 = vmatpush3.msra.mxu1 %v2008_v36  ;;  %2367 = vmatmul.mubr.msk.f32.gmra.mxu0 %vm235_vm0, %v1935_v39  ;;  %v2121_v33 = vld [vmem:[%s3303_s1 + $0x1e8] sm:$0xff]  ;;  %v2091_v34 = vld [vmem:[%s3303_s1 + $0x198] sm:$0xff] }
  0x2e   : > { %2398 = vmatmul.mubr.msk.f32.gmra.mxu1 %vm235_vm0, %v203_v40  ;;  %2442 = vmatprep.subr.mxu1 %v2007_v41  ;;  %v2028_v36 = vld [vmem:[%s2771_s24 + $0x3b] sm:$0xff]  ;;  %v2029_v38 = vld [vmem:[%s2771_s24 + $0x43] sm:$0xff] }
  0x2f   : > { %2413 = vmatprep.subr.mxu0 %v1978_v42  ;;  %2443 = vmatpush3.msra.mxu1 %v2007_v41  ;;  %v3018_v39 = vld [vmem:[%s2771_s24 + $0x44] sm:$0xff]  ;;  %v2119_v40 = vld [vmem:[%s3303_s1 + $0x1d8] sm:$0xff]  ;;  %v2090_v41 = vld [vmem:[%s3303_s1 + $0x190] sm:$0xff] }
  0x30   : > { %2414 = vmatpush3.msra.mxu0 %v1978_v42  ;;  %2444 = vmatprep.subr.mxu1 %v2006_v43  ;;  %v2118_v42 = vld [vmem:[%s3303_s1 + $0x1d0] sm:$0xff] }
  0x31   : > { %2369 = vmatprep.mubr.msk.f32.mxu0 %vm235_vm0, %v1936_v44  ;;  %2400 = vmatprep.mubr.msk.f32.mxu1 %vm235_vm0, %v204_v45  ;;  %v3037_v44 = vld [vmem:[%s2771_s24 + $0x4c] sm:$0xff] }
  0x32   : > { %2415 = vmatprep.subr.mxu0 %v1977_v46  ;;  %2445 = vmatpush3.msra.mxu1 %v2006_v43  ;;  %v2030_v43 = vld [vmem:[%s2771_s24 + $0x4b] sm:$0xff] }
  0x33   : > { %2370 = vmatmul.mubr.msk.f32.gmra.mxu0 %vm235_vm0, %v1937_v47  ;;  %2401 = vmatmul.mubr.msk.f32.gmra.mxu1 %vm235_vm0, %v205_v48  ;;  %v2089_v45 = vld [vmem:[%s3303_s1 + $0x188] sm:$0xff]  ;;  %v3045_v47 = vld [vmem:[%s2771_s24 + $0x54] sm:$0xff] }
  0x34   : > { %2416 = vmatpush3.msra.mxu0 %v1977_v46  ;;  %2446 = vmatprep.subr.mxu1 %v2005_v49  ;;  %v2031_v46 = vld [vmem:[%s2771_s24 + $0x53] sm:$0xff]  ;;  %v2117_v48 = vld [vmem:[%s3303_s1 + $0x1c8] sm:$0xff] }
  0x35   : > { %2417 = vmatprep.subr.mxu0 %v1976_v50  ;;  %2447 = vmatpush3.msra.mxu1 %v2005_v49  ;;  %v2088_v49 = vld [vmem:[%s3303_s1 + $0x180] sm:$0xff] }
  0x36   : > { %2418 = vmatpush3.msra.mxu0 %v1976_v50  ;;  %2448 = vmatprep.subr.mxu1 %v2004_v51  ;;  %v2116_v50 = vld [vmem:[%s3303_s1 + $0x1c0] sm:$0xff] }
  0x37   : > { %2419 = vmatprep.mubr.msk.f32.mxu0 %vm235_vm0, %v1966_v52  ;;  %2449 = vmatpush3.msra.mxu1 %v2004_v51  ;;  %v2106_v51 = vld [vmem:[%s2771_s24 + $0x15] sm:$0xff]  ;;  %v2107_v52 = vld [vmem:[%s2771_s24 + $0x1d] sm:$0xff] }
  0x38   : > { %2450 = vmatprep.mubr.msk.f32.mxu1 %vm235_vm0, %v1994_v53  ;;  %2420 = vmatmul.mubr.msk.f32.vlgmr.msra.gmra.mxu0 %vm235_vm0, %v1994_v53  ;;  %v2151_v53 = vld [vmem:[%s3303_s1 + $0x238] sm:$0xff] }
  0x39   : > { %2451 = vmatmul.mubr.msk.f32.vlgmr.msra.gmra.mxu1 %vm235_vm0, %v1995_v54  ;;  %2465 = vmatprep.subr.mxu0 %v2039_v55 }
  0x3a   : > { %2422 = vmatprep.mubr.msk.f32.mxu0 %vm235_vm0, %v1995_v54  ;;  %2466 = vmatpush3.msra.mxu0 %v2039_v55  ;;  %v2108_v54 = vld [vmem:[%s2771_s24 + $0x25] sm:$0xff]  ;;  %v2150_v55 = vld [vmem:[%s3303_s1 + $0x230] sm:$0xff] }
  0x3b   : > { %2453 = vmatprep.mubr.msk.f32.mxu1 %vm235_vm0, %v1996_v56  ;;  %2467 = vmatprep.subr.mxu0 %v2038_v57 }
  0x3c   : > { %2496 = vmatprep.subr.mxu1 %v2067_v58  ;;  %2423 = vmatmul.mubr.msk.f32.gmra.mxu0 %vm235_vm0, %v1996_v56  ;;  %v2109_v56 = vld [vmem:[%s2771_s24 + $0x2d] sm:$0xff] }
  0x3d   : > { %2454 = vmatmul.mubr.msk.f32.gmra.mxu1 %vm235_vm0, %v1997_v59  ;;  %2468 = vmatpush3.msra.mxu0 %v2038_v57  ;;  %v2149_v57 = vld [vmem:[%s3303_s1 + $0x228] sm:$0xff] }
  0x3e   : > { %2497 = vmatpush3.msra.mxu1 %v2067_v58  ;;  %2469 = vmatprep.subr.mxu0 %v2037_v60  ;;  %v2110_v58 = vld [vmem:[%s2771_s24 + $0x35] sm:$0xff] }
  0x3f   : > { %2498 = vmatprep.subr.mxu1 %v2066_v61  ;;  %2470 = vmatpush3.msra.mxu0 %v2037_v60  ;;  %v2148_v60 = vld [vmem:[%s3303_s1 + $0x220] sm:$0xff] }
  0x40   : > { %2425 = vmatprep.mubr.msk.f32.mxu0 %vm235_vm0, %v1997_v59  ;;  %2456 = vmatprep.mubr.msk.f32.mxu1 %vm235_vm0, %v1998_v62  ;;  %v2111_v59 = vld [vmem:[%s2771_s24 + $0x3d] sm:$0xff] }
  0x41   : > { %2499 = vmatpush3.msra.mxu1 %v2066_v61  ;;  %2426 = vmatmul.mubr.msk.f32.gmra.mxu0 %vm235_vm0, %v1998_v62  ;;  %v2147_v61 = vld [vmem:[%s3303_s1 + $0x218] sm:$0xff]  ;;  %v2112_v62 = vld [vmem:[%s2771_s24 + $0x45] sm:$0xff] }
  0x42   : > { %2457 = vmatmul.mubr.msk.f32.gmra.mxu1 %vm235_vm0, %v1999_v63  ;;  %2471 = vmatprep.subr.mxu0 %v2036_v0 }
  0x43   : > { %2500 = vmatprep.subr.mxu1 %v2065_v1  ;;  %2472 = vmatpush3.msra.mxu0 %v2036_v0  ;;  %v2146_v0 = vld [vmem:[%s3303_s1 + $0x210] sm:$0xff] }
  0x44   : > { %2501 = vmatpush3.msra.mxu1 %v2065_v1  ;;  %2473 = vmatprep.subr.mxu0 %v2035_v2  ;;  %v2114_v1 = vld [vmem:[%s2771_s24 + $0x55] sm:$0xff] }
  0x45   : > { %2502 = vmatprep.subr.mxu1 %v2064_v3  ;;  %2428 = vmatprep.mubr.msk.f32.mxu0 %vm235_vm0, %v1999_v63  ;;  %v2113_v63 = vld [vmem:[%s2771_s24 + $0x4d] sm:$0xff] }
  0x46   : > { %2459 = vmatprep.mubr.msk.f32.mxu1 %vm235_vm0, %v2000_v4  ;;  %2474 = vmatpush3.msra.mxu0 %v2035_v2  ;;  %v2145_v2 = vld [vmem:[%s3303_s1 + $0x208] sm:$0xff] }
  0x47   : > { %2503 = vmatpush3.msra.mxu1 %v2064_v3  ;;  %2429 = vmatmul.mubr.msk.f32.gmra.mxu0 %vm235_vm0, %v2000_v4  ;;  %v2087_v3 = vld [vmem:[%s2771_s24 + $0x5c] sm:$0xff] }
  0x48   : > { %2460 = vmatmul.mubr.msk.f32.gmra.mxu1 %vm235_vm0, %v2001_v5  ;;  %2504 = vmatprep.subr.mxu1 %v2063_v6  ;;  %v2115_v4 = vld [vmem:[%s2771_s24 + $0x5d] sm:$0xff] }
  0x49   : > { %2475 = vmatprep.subr.mxu0 %v2034_v7  ;;  %2505 = vmatpush3.msra.mxu1 %v2063_v6  ;;  %v2134_v6 = vld [vmem:[%s2771_s24 + $0x16] sm:$0xff] }
  0x4a   : > { %2476 = vmatpush3.msra.mxu0 %v2034_v7  ;;  %2506 = vmatprep.subr.mxu1 %v2062_v8  ;;  %v2140_v7 = vld [vmem:[%s2771_s24 + $0x46] sm:$0xff] }
  0x4b   : > { %2431 = vmatprep.mubr.msk.f32.mxu0 %vm235_vm0, %v2001_v5  ;;  %2462 = vmatprep.mubr.msk.f32.mxu1 %vm235_vm0, %v2002_v9  ;;  %v2144_v5 = vld [vmem:[%s3303_s1 + $0x200] sm:$0xff] }
  0x4c   : > { %2477 = vmatprep.subr.mxu0 %v2033_v10  ;;  %2507 = vmatpush3.msra.mxu1 %v2062_v8  ;;  %v2135_v8 = vld [vmem:[%s2771_s24 + $0x1e] sm:$0xff] }
  0x4d   : > { %2432 = vmatmul.mubr.msk.f32.gmra.mxu0 %vm235_vm0, %v2002_v9  ;;  %2463 = vmatmul.mubr.msk.f32.gmra.mxu1 %vm235_vm0, %v2003_v11  ;;  %v2141_v9 = vld [vmem:[%s2771_s24 + $0x4e] sm:$0xff]  ;;  %v2142_v11 = vld [vmem:[%s2771_s24 + $0x56] sm:$0xff] }
  0x4e   : > { %2478 = vmatpush3.msra.mxu0 %v2033_v10  ;;  %2508 = vmatprep.subr.mxu1 %v2061_v12  ;;  %v2136_v10 = vld [vmem:[%s2771_s24 + $0x26] sm:$0xff] }
  0x4f   : > { %2479 = vmatprep.subr.mxu0 %v2032_v13  ;;  %2509 = vmatpush3.msra.mxu1 %v2061_v12  ;;  %v2137_v12 = vld [vmem:[%s2771_s24 + $0x2e] sm:$0xff] }
  0x50   : > { %2480 = vmatpush3.msra.mxu0 %v2032_v13  ;;  %2510 = vmatprep.subr.mxu1 %v2060_v14  ;;  %v2143_v13 = vld [vmem:[%s2771_s24 + $0x5e] sm:$0xff] }
  0x51   : > { %2481 = vmatprep.mubr.msk.f32.mxu0 %vm235_vm0, %v2022_v15  ;;  %2511 = vmatpush3.msra.mxu1 %v2060_v14  ;;  %v2138_v14 = vld [vmem:[%s2771_s24 + $0x36] sm:$0xff]  ;;  %v2139_v15 = vld [vmem:[%s2771_s24 + $0x3e] sm:$0xff] }
  0x52   : > { %2512 = vmatprep.mubr.msk.f32.mxu1 %vm235_vm0, %v2050_v16  ;;  %2482 = vmatmul.mubr.msk.f32.vlgmr.msra.gmra.mxu0 %vm235_vm0, %v2023_v17 }
  0x53   : > { %2513 = vmatmul.mubr.msk.f32.vlgmr.msra.gmra.mxu1 %vm235_vm0, %v2950_v18  ;;  %2527 = vmatprep.subr.mxu0 %v2095_v19 }
  0x54   : > { %2484 = vmatprep.mubr.msk.f32.mxu0 %vm235_vm0, %v2024_v20  ;;  %2528 = vmatpush3.msra.mxu0 %v2095_v19 }
  0x55   : > { %2515 = vmatprep.mubr.msk.f32.mxu1 %vm235_vm0, %v2959_v21  ;;  %2529 = vmatprep.subr.mxu0 %v2094_v22 }
  0x56   : > { %2558 = vmatprep.subr.mxu1 %v2123_v23  ;;  %2485 = vmatmul.mubr.msk.f32.gmra.mxu0 %vm235_vm0, %v2025_v24 }
  0x57   : > { %2516 = vmatmul.mubr.msk.f32.gmra.mxu1 %vm235_vm0, %v2973_v25  ;;  %2530 = vmatpush3.msra.mxu0 %v2094_v22 }
  0x58   : > { %2559 = vmatpush3.msra.mxu1 %v2123_v23  ;;  %2531 = vmatprep.subr.mxu0 %v2093_v26 }
  0x59   : > { %2560 = vmatprep.subr.mxu1 %v2122_v27  ;;  %2532 = vmatpush3.msra.mxu0 %v2093_v26 }
  0x5a   : > { %2487 = vmatprep.mubr.msk.f32.mxu0 %vm235_vm0, %v2026_v28  ;;  %2518 = vmatprep.mubr.msk.f32.mxu1 %vm235_vm0, %v2988_v29 }
  0x5b   : > { %2561 = vmatpush3.msra.mxu1 %v2122_v27  ;;  %2488 = vmatmul.mubr.msk.f32.gmra.mxu0 %vm235_vm0, %v2027_v30 }
  0x5c   : > { %2519 = vmatmul.mubr.msk.f32.gmra.mxu1 %vm235_vm0, %v2992_v31  ;;  %2533 = vmatprep.subr.mxu0 %v2092_v32 }
  0x5d   : > { %2562 = vmatprep.subr.mxu1 %v2121_v33  ;;  %2534 = vmatpush3.msra.mxu0 %v2092_v32 }
  0x5e   : > { %2563 = vmatpush3.msra.mxu1 %v2121_v33  ;;  %2535 = vmatprep.subr.mxu0 %v2091_v34 }
  0x5f   : > { %2564 = vmatprep.subr.mxu1 %v2120_v35  ;;  %2490 = vmatprep.mubr.msk.f32.mxu0 %vm235_vm0, %v2028_v36 }
  0x60   : > { %2521 = vmatprep.mubr.msk.f32.mxu1 %vm235_vm0, %v3014_v37  ;;  %2536 = vmatpush3.msra.mxu0 %v2091_v34 }
  0x61   : > { %2565 = vmatpush3.msra.mxu1 %v2120_v35  ;;  %2491 = vmatmul.mubr.msk.f32.gmra.mxu0 %vm235_vm0, %v2029_v38 }
  0x62   : > { %2522 = vmatmul.mubr.msk.f32.gmra.mxu1 %vm235_vm0, %v3018_v39  ;;  %2566 = vmatprep.subr.mxu1 %v2119_v40 }
  0x63   : > { %2537 = vmatprep.subr.mxu0 %v2090_v41  ;;  %2567 = vmatpush3.msra.mxu1 %v2119_v40 }
  0x64   : > { %2538 = vmatpush3.msra.mxu0 %v2090_v41  ;;  %2568 = vmatprep.subr.mxu1 %v2118_v42 }
  0x65   : > { %2493 = vmatprep.mubr.msk.f32.mxu0 %vm235_vm0, %v2030_v43  ;;  %2524 = vmatprep.mubr.msk.f32.mxu1 %vm235_vm0, %v3037_v44 }
  0x66   : > { %2539 = vmatprep.subr.mxu0 %v2089_v45  ;;  %2569 = vmatpush3.msra.mxu1 %v2118_v42 }
  0x67   : > { %2494 = vmatmul.mubr.msk.f32.gmra.mxu0 %vm235_vm0, %v2031_v46  ;;  %2525 = vmatmul.mubr.msk.f32.gmra.mxu1 %vm235_vm0, %v3045_v47 }
  0x68   : > { %2540 = vmatpush3.msra.mxu0 %v2089_v45  ;;  %2570 = vmatprep.subr.mxu1 %v2117_v48 }
  0x69   : > { %2541 = vmatprep.subr.mxu0 %v2088_v49  ;;  %2571 = vmatpush3.msra.mxu1 %v2117_v48 }
  0x6a   : > { %2542 = vmatpush3.msra.mxu0 %v2088_v49  ;;  %2572 = vmatprep.subr.mxu1 %v2116_v50 }
  0x6b   : > { %2543 = vmatprep.mubr.msk.f32.mxu0 %vm235_vm0, %v2950_v18  ;;  %2573 = vmatpush3.msra.mxu1 %v2116_v50 }
  0x6c   : > { %2574 = vmatprep.mubr.msk.f32.mxu1 %vm235_vm0, %v2106_v51  ;;  %2544 = vmatmul.mubr.msk.f32.vlgmr.msra.gmra.mxu0 %vm235_vm0, %v2959_v21 }
  0x6d   : > { %2575 = vmatmul.mubr.msk.f32.vlgmr.msra.gmra.mxu1 %vm235_vm0, %v2107_v52  ;;  %2589 = vmatprep.subr.mxu0 %v2151_v53 }
  0x6e   : > { %2546 = vmatprep.mubr.msk.f32.mxu0 %vm235_vm0, %v2973_v25  ;;  %2590 = vmatpush3.msra.mxu0 %v2151_v53 }
  0x6f   : > { %2577 = vmatprep.mubr.msk.f32.mxu1 %vm235_vm0, %v2108_v54  ;;  %2591 = vmatprep.subr.mxu0 %v2150_v55 }
  0x70   : > { %2620 = vmatprep.subr.mxu1 %v2151_v53  ;;  %2547 = vmatmul.mubr.msk.f32.gmra.mxu0 %vm235_vm0, %v2988_v29 }
  0x71   : > { %2578 = vmatmul.mubr.msk.f32.gmra.mxu1 %vm235_vm0, %v2109_v56  ;;  %2592 = vmatpush3.msra.mxu0 %v2150_v55 }
  0x72   : > { %2628 = vmatpush3.msra.mxu1 %v2151_v53  ;;  %2593 = vmatprep.subr.mxu0 %v2149_v57 }
  0x73   : > { %2621 = vmatprep.subr.mxu1 %v2150_v55  ;;  %2594 = vmatpush3.msra.mxu0 %v2149_v57 }
  0x74   : > { %2549 = vmatprep.mubr.msk.f32.mxu0 %vm235_vm0, %v2992_v31  ;;  %2580 = vmatprep.mubr.msk.f32.mxu1 %vm235_vm0, %v2110_v58 }
  0x75   : > { %2629 = vmatpush3.msra.mxu1 %v2150_v55  ;;  %2550 = vmatmul.mubr.msk.f32.gmra.mxu0 %vm235_vm0, %v3014_v37 }
  0x76   : > { %2581 = vmatmul.mubr.msk.f32.gmra.mxu1 %vm235_vm0, %v2111_v59  ;;  %2622 = vmatprep.subr.mxu1 %v2149_v57 }
  0x77   : > { %2595 = vmatprep.subr.mxu0 %v2148_v60  ;;  %2630 = vmatpush3.msra.mxu1 %v2149_v57 }
  0x78   : > { %2596 = vmatpush3.msra.mxu0 %v2148_v60  ;;  %2623 = vmatprep.subr.mxu1 %v2148_v60 }
  0x79   : > { %2597 = vmatprep.subr.mxu0 %v2147_v61  ;;  %2552 = vmatprep.mubr.msk.f32.mxu0 %vm235_vm0, %v3018_v39 }
  0x7a   : > { %2583 = vmatprep.mubr.msk.f32.mxu1 %vm235_vm0, %v2112_v62  ;;  %2631 = vmatpush3.msra.mxu1 %v2148_v60 }
  0x7b   : > { %2598 = vmatpush3.msra.mxu0 %v2147_v61  ;;  %2584 = vmatmul.mubr.msk.f32.gmra.mxu1 %vm235_vm0, %v2113_v63 }
  0x7c   : > { %2553 = vmatmul.mubr.msk.f32.gmra.mxu0 %vm235_vm0, %v3037_v44  ;;  %2624 = vmatprep.subr.mxu1 %v2147_v61 }
  0x7d   : > { %2599 = vmatprep.subr.mxu0 %v2146_v0  ;;  %2632 = vmatpush3.msra.mxu1 %v2147_v61 }
  0x7e   : > { %2600 = vmatpush3.msra.mxu0 %v2146_v0  ;;  %2625 = vmatprep.subr.mxu1 %v2146_v0 }
  0x7f   : > { %2555 = vmatprep.mubr.msk.f32.mxu0 %vm235_vm0, %v3045_v47  ;;  %2586 = vmatprep.mubr.msk.f32.mxu1 %vm235_vm0, %v2114_v1 }
  0x80   : > { %2633 = vmatpush3.msra.mxu1 %v2146_v0  ;;  %2601 = vmatprep.subr.mxu0 %v2145_v2 }
  0x81   : > { %2556 = vmatmul.mubr.msk.f32.gmra.mxu0 %vm235_vm0, %v2087_v3  ;;  %2587 = vmatmul.mubr.msk.f32.gmra.mxu1 %vm235_vm0, %v2115_v4 }
  0x82   : > { %2626 = vmatprep.subr.mxu1 %v2145_v2  ;;  %2602 = vmatpush3.msra.mxu0 %v2145_v2 }
  0x83   : > { %2634 = vmatpush3.msra.mxu1 %v2145_v2  ;;  %2603 = vmatprep.subr.mxu0 %v2144_v5 }
  0x84   : > { %2627 = vmatprep.subr.mxu1 %v2144_v5  ;;  %2604 = vmatpush3.msra.mxu0 %v2144_v5 }
  0x85   : > { %2635 = vmatpush3.msra.mxu1 %v2144_v5  ;;  %2605 = vmatprep.mubr.msk.f32.mxu0 %vm235_vm0, %v2134_v6 }
  0x86   : > { %2614 = vmatprep.mubr.msk.f32.mxu1 %vm235_vm0, %v2140_v7  ;;  %2606 = vmatmul.mubr.msk.f32.vlgmr.msra.gmra.mxu0 %vm235_vm0, %v2135_v8 }
  0x87   : > { %2615 = vmatmul.mubr.msk.f32.vlgmr.msra.gmra.mxu1 %vm235_vm0, %v2141_v9  ;;  %2608 = vmatprep.mubr.msk.f32.mxu0 %vm235_vm0, %v2136_v10 }
  0x88   : > { %2617 = vmatprep.mubr.msk.f32.mxu1 %vm235_vm0, %v2142_v11 }
  0x8a   : > { %2609 = vmatmul.mubr.msk.f32.gmra.mxu0 %vm235_vm0, %v2137_v12 }
  0x8b   : > { %2618 = vmatmul.mubr.msk.f32.gmra.mxu1 %vm235_vm0, %v2143_v13  ;;  %2611 = vmatprep.mubr.msk.f32.mxu0 %vm235_vm0, %v2138_v14 }
  0x8e   : > { %2612 = vmatmul.mubr.msk.f32.gmra.mxu0 %vm235_vm0, %v2139_v15 }
  0xde   : > { %v2359_v16 = vpop.f32.mrf.mxu0 }
  0xdf   : > { %v2390_v17 = vpop.f32.mrf.mxu1 }
  0xe0   : > { %v3145_v18 = vadd.f32 %v2390_v17, %v2359_v16  ;;  %v332_v19 = vpop.f32.mrf.mxu0 }
  0xe1   : > { %v477_v20 = vpop.f32.mrf.mxu1 }
  0xe2   : > { %v3147_v21 = vadd.f32 %v477_v20, %v332_v19  ;;  %v2362_v22 = vpop.f32.mrf.mxu0 }
  0xe3   : > { %v2393_v23 = vpop.f32.mrf.mxu1 }
  0xe4   : > { %v3149_v24 = vadd.f32 %v2393_v23, %v2362_v22  ;;  %v342_v25 = vpop.f32.mrf.mxu0 }
  0xe5   : > { %v487_v26 = vpop.f32.mrf.mxu1 }
  0xe6   : > { %v3151_v27 = vadd.f32 %v487_v26, %v342_v25 }
  0xe7   : > { %v2365_v28 = vpop.f32.mrf.mxu0 }
  0xe8   : > { %v2396_v29 = vpop.f32.mrf.mxu1 }
  0xe9   : > { %v3153_v30 = vadd.f32 %v2396_v29, %v2365_v28  ;;  %v352_v31 = vpop.f32.mrf.mxu0 }
  0xea   : > { %v497_v32 = vpop.f32.mrf.mxu1 }
  0xeb   : > { %v3155_v33 = vadd.f32 %v497_v32, %v352_v31 }
  0xed   : > { %v2368_v34 = vpop.f32.mrf.mxu0 }
  0xee   : > { %v2399_v35 = vpop.f32.mrf.mxu1 }
  0xef   : > { %v362_v36 = vpop.f32.mrf.mxu0  ;;  %v513_v31 = vadd.f32 %v2399_v35, %v2368_v34 }
  0xf0   : > { %v507_v37 = vpop.f32.mrf.mxu1 }
  0xf1   : > { %v508_v32 = vadd.f32 %v507_v37, %v362_v36 }
  0xf3   : > { %v2371_v38 = vpop.f32.mrf.mxu0  ;;  %v2402_v39 = vpop.f32.mrf.mxu1 }
  0xf5   : > { %v372_v40 = vpop.f32.mrf.mxu0  ;;  %v517_v41 = vpop.f32.mrf.mxu1 }
  0xf8   : > { %v2421_v42 = vpop.f32.mrf.mxu0 }
  0xf9   : > { %v2452_v43 = vpop.f32.mrf.mxu1 }
  0xfa   : > { %v643_v44 = vpop.f32.mrf.mxu0 }
  0xfb   : > { %v3157_v45 = vpop.f32.mrf.mxu1 }
  0xfc   : > { %v2424_v46 = vpop.f32.mrf.mxu0 }
  0xfd   : > { %v3159_v47 = vpop.f32.mrf.mxu1 }
  0xfe   : > { %v653_v48 = vpop.f32.mrf.mxu0 }
  0xff   : > { %v3161_v49 = vpop.f32.mrf.mxu1  ;;  %v694_v35 = vadd.f32 %v653_v48, %v3151_v27 }
 0x101   : > { %v3163_v50 = vpop.f32.mrf.mxu0 }
 0x102   : > { %v3165_v51 = vpop.f32.mrf.mxu1 }
 0x103   : > { %v3167_v52 = vpop.f32.mrf.mxu0 }
 0x104   : > { %v3169_v53 = vpop.f32.mrf.mxu1 }
 0x107   : > { %v2430_v54 = vpop.f32.mrf.mxu0 }
 0x108   : > { %v2461_v55 = vpop.f32.mrf.mxu1 }
 0x109   : > { %v673_v56 = vpop.f32.mrf.mxu0 }
 0x10a   : > { %v849_v57 = vpop.f32.mrf.mxu1 }
 0x10d   : > { %v2433_v58 = vpop.f32.mrf.mxu0  ;;  %v3171_v59 = vpop.f32.mrf.mxu1 }
 0x10f   : > { %v683_v60 = vpop.f32.mrf.mxu0  ;;  %v859_v61 = vpop.f32.mrf.mxu1 }
 0x112   : > { %v2483_v62 = vpop.f32.mrf.mxu0 }
 0x113   : > { %v2514_v63 = vpop.f32.mrf.mxu1 }
 0x114   : > { %v995_v0 = vpop.f32.mrf.mxu0 }
 0x115   : > { %v3173_v1 = vpop.f32.mrf.mxu1 }
 0x116   : > { %v2486_v2 = vpop.f32.mrf.mxu0 }
 0x117   : > { %v3175_v3 = vpop.f32.mrf.mxu1 }
 0x118   : > { %v1005_v4 = vpop.f32.mrf.mxu0 }
 0x119   : > { %v3177_v5 = vpop.f32.mrf.mxu1 }
 0x11b   : > { %v3179_v6 = vpop.f32.mrf.mxu0 }
 0x11c   : > { %v3181_v7 = vpop.f32.mrf.mxu1 }
 0x11d   : > { %3306 = vst [vmem:[#allocation2_spill] sm:$0xff] %v3181_v7  ;;  %v3183_v8 = vpop.f32.mrf.mxu0  ;;  %v699_v7 = vadd.f32 %v2430_v54, %v513_v31 }
 0x11e   : > { %3307 = vst [vmem:[#allocation3_spill] sm:$0xff] %v3183_v8  ;;  %v3185_v9 = vpop.f32.mrf.mxu1 }
 0x11f   : > { %3308 = vst [vmem:[#allocation4_spill] sm:$0xff] %v3185_v9  ;;  %v693_v9 = vadd.f32 %v2421_v42, %v3145_v18  ;;  %v875_v18 = vadd.f32 %v2461_v55, %v699_v7 }
 0x121   : > { %v2492_v10 = vpop.f32.mrf.mxu0  ;;  %v869_v34 = vadd.f32 %v2452_v43, %v693_v9  ;;  %v696_v43 = vadd.f32 %v3167_v52, %v3155_v33 }
 0x122   : > { %v2523_v11 = vpop.f32.mrf.mxu1 }
 0x123   : > { %v1025_v12 = vpop.f32.mrf.mxu0  ;;  %v1045_v31 = vadd.f32 %v2483_v62, %v869_v34  ;;  %v872_v33 = vadd.f32 %v3169_v53, %v696_v43  ;;  %v3239_v34 = vld [vmem:[%s3304_s2] ss:$0 sm:$0xff] }
 0x124   : > { %v1201_v13 = vpop.f32.mrf.mxu1 }
 0x125   : > { %v1221_v55 = vadd.f32 %v2514_v63, %v1045_v31 }
 0x126   : > { %v3325_v31 = vld [vmem:[#allocation4_spill] sm:$0xff] }
 0x127   : > { %v2495_v14 = vpop.f32.mrf.mxu0  ;;  %v3187_v15 = vpop.f32.mrf.mxu1 }
 0x128   : > { %3309 = vst [vmem:[#allocation5_spill] sm:$0xff] %v3187_v15 }
 0x129   : > { %v1035_v16 = vpop.f32.mrf.mxu0  ;;  %v3189_v17 = vpop.f32.mrf.mxu1 }
 0x12a   : > { %3310 = vst [vmem:[#allocation6_spill] sm:$0xff] %v3189_v17 }
 0x12c   : > { %v2545_v19 = vpop.f32.mrf.mxu0 }
 0x12d   : > { %v3191_v20 = vpop.f32.mrf.mxu1 }
 0x12e   : > { %3311 = vst [vmem:[#allocation7_spill] sm:$0xff] %v3191_v20  ;;  %v1347_v22 = vpop.f32.mrf.mxu0  ;;  %v692_v20 = vadd.f32 %v643_v44, %v3147_v21  ;;  %v1051_v21 = vadd.f32 %v2492_v10, %v875_v18  ;;  %v3317_v10 = vld [vmem:[#allocation3_spill] sm:$0xff] }
 0x12f   : > { %v3193_v23 = vpop.f32.mrf.mxu1 }
 0x130   : > { %3312 = vst [vmem:[#allocation8_spill] sm:$0xff] %v3193_v23  ;;  %v3195_v25 = vpop.f32.mrf.mxu0  ;;  %v698_v23 = vadd.f32 %v673_v56, %v508_v32  ;;  %v868_v42 = vadd.f32 %v3157_v45, %v692_v20 }
 0x131   : > { %3313 = vst [vmem:[#allocation9_spill] sm:$0xff] %v3195_v25  ;;  %v3197_v26 = vpop.f32.mrf.mxu1 }
 0x132   : > { %3314 = vst [vmem:[#allocation10_spill] sm:$0xff] %v3197_v26  ;;  %v3199_v28 = vpop.f32.mrf.mxu0  ;;  %v523_v26 = vadd.f32 %v2402_v39, %v2371_v38  ;;  %v874_v54 = vadd.f32 %v849_v57, %v698_v23  ;;  %v697_v38 = vadd.f32 %v3163_v50, %v3153_v30  ;;  %v1044_v39 = vadd.f32 %v995_v0, %v868_v42 }
 0x133   : > { %3315 = vst [vmem:[#allocation11_spill] sm:$0xff] %v3199_v28  ;;  %v3201_v29 = vpop.f32.mrf.mxu1  ;;  %v518_v28 = vadd.f32 %v517_v41, %v372_v40  ;;  %v1397_v0 = vadd.f32 %v2545_v19, %v1221_v55 }
 0x134   : > { %3316 = vst [vmem:[#allocation12_spill] sm:$0xff] %v3201_v29  ;;  %v695_v29 = vadd.f32 %v2424_v46, %v3149_v24  ;;  %v701_v36 = vadd.f32 %v2433_v58, %v523_v26  ;;  %v870_v24 = vadd.f32 %v3161_v49, %v694_v35  ;;  %v1050_v40 = vadd.f32 %v1025_v12, %v874_v54 }
 0x135   : > { %v3204_v17 = vpop.f32.mrf.mxu0  ;;  %v700_v37 = vadd.f32 %v683_v60, %v518_v28  ;;  %v1227_v58 = vadd.f32 %v2523_v11, %v1051_v21  ;;  %v1220_v49 = vadd.f32 %v3173_v1, %v1044_v39  ;;  %v1048_v11 = vadd.f32 %v3317_v10, %v872_v33  ;;  %v3318_v1 = vld [vmem:[#allocation5_spill] sm:$0xff]  ;;  %v3321_v19 = vld [vmem:[#allocation7_spill] sm:$0xff] }
 0x136   : > { %v3206_v15 = vpop.f32.mrf.mxu1  ;;  %v871_v32 = vadd.f32 %v3159_v47, %v695_v29  ;;  %v877_v45 = vadd.f32 %v3171_v59, %v701_v36  ;;  %v1046_v57 = vadd.f32 %v1005_v4, %v870_v24  ;;  %v873_v47 = vadd.f32 %v3165_v51, %v697_v38 }
 0x137   : > { %v3209_v8 = vpop.f32.mrf.mxu0  ;;  %v876_v46 = vadd.f32 %v859_v61, %v700_v37  ;;  %v1226_v62 = vadd.f32 %v1201_v13, %v1050_v40  ;;  %v3319_v13 = vld [vmem:[#allocation6_spill] sm:$0xff]  ;;  %v3324_v18 = vld [vmem:[#allocation8_spill] sm:$0xff]  ;;  %v1224_v21 = vadd.f32 %v3325_v31, %v1048_v11 }
 0x138   : > { %v3211_v25 = vpop.f32.mrf.mxu1  ;;  %v1047_v48 = vadd.f32 %v2486_v2, %v871_v32  ;;  %v1053_v60 = vadd.f32 %v2495_v14, %v877_v45  ;;  %v1049_v59 = vadd.f32 %v3179_v6, %v873_v47  ;;  %v1222_v63 = vadd.f32 %v3177_v5, %v1046_v57  ;;  %v3322_v6 = vld [vmem:[#allocation2_spill] sm:$0xff] }
 0x139   : > { %v1052_v30 = vadd.f32 %v1035_v16, %v876_v46  ;;  %v1396_v2 = vadd.f32 %v1347_v22, %v1220_v49  ;;  %v3320_v16 = vld [vmem:[#allocation9_spill] sm:$0xff]  ;;  %v1400_v46 = vadd.f32 %v3209_v8, %v1224_v21 }
 0x13a   : > { %v1223_v52 = vadd.f32 %v3175_v3, %v1047_v48  ;;  %v1229_v12 = vadd.f32 %v3318_v1, %v1053_v60  ;;  %v1573_v3 = vadd.f32 %v3321_v19, %v1397_v0  ;;  %v1225_v5 = vadd.f32 %v3322_v6, %v1049_v59  ;;  %v3323_v22 = vld [vmem:[#allocation11_spill] sm:$0xff] }
 0x13b   : > { %v2585_v56 = vpop.f32.mrf.mxu1  ;;  %v1228_v14 = vadd.f32 %v3319_v13, %v1052_v30  ;;  %v1398_v23 = vadd.f32 %v3323_v22, %v1222_v63  ;;  %v1572_v36 = vadd.f32 %v3324_v18, %v1396_v2  ;;  %v3327_v45 = vld [vmem:[#allocation12_spill] sm:$0xff]  ;;  %v1576_v63 = vadd.f32 %v3211_v25, %v1400_v46 }
 0x13c   : > { %v2554_v44 = vpop.f32.mrf.mxu0  ;;  %v1399_v53 = vadd.f32 %v3320_v16, %v1223_v52  ;;  %v1401_v32 = vadd.f32 %v3204_v17, %v1225_v5 }
 0x13d   : > { %v1553_v41 = vpop.f32.mrf.mxu1  ;;  %v1403_v7 = vadd.f32 %v2554_v44, %v1227_v58  ;;  %v3326_v44 = vld [vmem:[#allocation10_spill] sm:$0xff] }
 0x13e   : > { %v1377_v27 = vpop.f32.mrf.mxu0  ;;  %v1577_v8 = vadd.f32 %v3206_v15, %v1401_v32 }
 0x13f   : > { %v1402_v51 = vadd.f32 %v1377_v27, %v1226_v62  ;;  %v1579_v20 = vadd.f32 %v2585_v56, %v1403_v7  ;;  %v1575_v56 = vadd.f32 %v3326_v44, %v1399_v53 }
 0x141   : > { %v2557_v50 = vpop.f32.mrf.mxu0  ;;  %v2588_v9 = vpop.f32.mrf.mxu1  ;;  %v1578_v37 = vadd.f32 %v1553_v41, %v1402_v51  ;;  %v1574_v41 = vadd.f32 %v3327_v45, %v1398_v23 }
 0x142   : > { %v1405_v26 = vadd.f32 %v2557_v50, %v1229_v12 }
 0x143   : > { %v1387_v61 = vpop.f32.mrf.mxu0  ;;  %v1563_v4 = vpop.f32.mrf.mxu1 }
 0x144   : > { %v1404_v28 = vadd.f32 %v1387_v61, %v1228_v14  ;;  %v1581_v48 = vadd.f32 %v2588_v9, %v1405_v26 }
 0x146   : > { %v2607_v29 = vpop.f32.mrf.mxu0  ;;  %v1580_v55 = vadd.f32 %v1563_v4, %v1404_v28 }
 0x147   : > { %v2616_v35 = vpop.f32.mrf.mxu1  ;;  %v1749_v42 = vadd.f32 %v2607_v29, %v1573_v3 }
 0x148   : > { %v1755_v54 = vadd.f32 %v2616_v35, %v1579_v20  ;;  %v1699_v38 = vpop.f32.mrf.mxu0 }
 0x149   : > { %v1729_v24 = vpop.f32.mrf.mxu1  ;;  %v1766_v39 = vadd.f32 %v3239_v34, %v1749_v42  ;;  %v1748_v27 = vadd.f32 %v1699_v38, %v1572_v36 }
 0x14a   : > { %v1772_v40 = vadd.f32 %v3239_v34, %v1755_v54  ;;  %v1754_v43 = vadd.f32 %v1729_v24, %v1578_v37  ;;  %v2610_v17 = vpop.f32.mrf.mxu0 }
 0x14b   : > { %v2619_v57 = vpop.f32.mrf.mxu1  ;;  %v1776_v58 = vmax.f32 %v1766_v39, 0.0  ;;  %v1765_v60 = vadd.f32 %v3239_v34, %v1748_v27  ;;  %v1751_v50 = vadd.f32 %v2610_v17, %v1575_v56 }
 0x14c   : > { %v1782_v47 = vmax.f32 %v1772_v40, 0.0  ;;  %v1771_v30 = vadd.f32 %v3239_v34, %v1754_v43  ;;  %v1757_v49 = vadd.f32 %v2619_v57, %v1581_v48  ;;  %v1709_v62 = vpop.f32.mrf.mxu0 }
 0x14d   : > { %v1739_v0 = vpop.f32.mrf.mxu1  ;;  %2163 = vst.msk [vmem:[%s3253_s7 + $0x6] sm:$0xfc] %vm1788_vm1, %v1776_v58  ;;  %v1775_v7 = vmax.f32 %v1765_v60, 0.0  ;;  %v1750_v33 = vadd.f32 %v1709_v62, %v1574_v41  ;;  %v1768_v59 = vadd.f32 %v3239_v34, %v1751_v50 }
 0x14e   : > { %2171 = vst.msk [vmem:[%s3253_s7 + $0x2e] sm:$0x3] %vm1790_vm2, %v1782_v47  ;;  %v1781_v9 = vmax.f32 %v1771_v30, 0.0  ;;  %v1756_v52 = vadd.f32 %v1739_v0, %v1580_v55  ;;  %v1774_v15 = vadd.f32 %v3239_v34, %v1757_v49  ;;  %v2613_v61 = vpop.f32.mrf.mxu0 }
 0x14f   : > { %2172 = vst.msk [vmem:[%s3253_s7 + $0x2c] sm:$0xf0] %vm1793_vm3, %v1782_v47  ;;  %v1767_v2 = vadd.f32 %v3239_v34, %v1750_v33  ;;  %v1753_v4 = vadd.f32 %v2613_v61, %v1577_v8  ;;  %v1778_v10 = vmax.f32 %v1768_v59, 0.0 }
 0x150   : > { %1786 = vst.msk [vmem:[%s3253_s7] sm:$0xff] %vm1785_vm4, %v1775_v7  ;;  %v1773_v51 = vadd.f32 %v3239_v34, %v1756_v52  ;;  %v1784_v11 = vmax.f32 %v1774_v15, 0.0  ;;  %v1719_v1 = vpop.f32.mrf.mxu0 }
 0x151   : > { %2170 = vst.msk [vmem:[%s3253_s7 + $0x26] sm:$0xfc] %vm1788_vm1, %v1781_v9  ;;  %v1777_v12 = vmax.f32 %v1767_v2, 0.0  ;;  %v1770_v13 = vadd.f32 %v3239_v34, %v1753_v4  ;;  %v1752_v14 = vadd.f32 %v1719_v1, %v1576_v63 }
 0x152   : > { %v1783_v25 = vmax.f32 %v1773_v51, 0.0  ;;  %2166 = vst.msk [vmem:[%s3253_s7 + $0x14] sm:$0xf] %vm1795_vm5, %v1778_v10 }
 0x153   : > { %2167 = vst.msk [vmem:[%s3253_s7 + $0x12] sm:$0xc0] %vm1798_vm6, %v1778_v10  ;;  %v1780_v16 = vmax.f32 %v1770_v13, 0.0  ;;  %v1769_v53 = vadd.f32 %v3239_v34, %v1752_v14 }
 0x154   : > { %2175 = vst.msk [vmem:[%s3253_s7 + $0x3a] sm:$0x3f] %vm1800_vm7, %v1784_v11 }
 0x155   : > { %2164 = vst.msk [vmem:[%s3253_s7 + $0xe] sm:$0x3] %vm1790_vm2, %v1777_v12  ;;  %v1779_v19 = vmax.f32 %v1769_v53, 0.0 }
 0x156   : > { %2165 = vst.msk [vmem:[%s3253_s7 + $0xc] sm:$0xf0] %vm1793_vm3, %v1777_v12 }
 0x157   : > { %2173 = vst.msk [vmem:[%s3253_s7 + $0x34] sm:$0xf] %vm1795_vm5, %v1783_v25 }
 0x158   : > { %2174 = vst.msk [vmem:[%s3253_s7 + $0x32] sm:$0xc0] %vm1798_vm6, %v1783_v25 }
 0x159   : > { %2169 = vst.msk [vmem:[%s3253_s7 + $0x20] sm:$0xff] %vm1785_vm4, %v1780_v16 }
 0x15a   : > { %2168 = vst.msk [vmem:[%s3253_s7 + $0x1a] sm:$0x3f] %vm1800_vm7, %v1779_v19 }
 0x15b PF: > { %s13_s14 = sadd.s32 1, %s2683_s14   ;;  %s3328_s12 = smov %s2679_s13 }
 0x15c   : > { %p10_p5 = scmp.ge.s32.totalorder %s13_s14, 4   ;;  %s3329_s13 = smov %s3331_s15 }
 0x15e   :  { %12 = sbr.rel (!%p10_p5) target bundleno = 2 (0x2), region = 86 }

// kernel: inception_a.8
= control target key start
LH: loop header
LB: loop body
LE: loop exit
PB: predicated region body
PF: predicated region fallthrough
CT: control target
= control target key end

     0   :  { %s2888_s12 = smov 0   ;;  %s2890_s13 = smov 0   ;;  %s3597_s0 = inlined_call_operand.vmem [shape: f32[2,110,96], index: 0, kind: input, shape index: {}]   ;;  %s3598_s1 = inlined_call_operand.vmem [shape: f32[9,96,96], index: 1, kind: input, shape index: {}]   ;;  %s3599_s2 = inlined_call_operand.vmem [shape: f32[1,96], index: 2, kind: input, shape index: {}]   ;;  %s3600_s3 = inlined_call_operand.vmem [shape: f32[2,8,8,96], index: 3, kind: output, shape index: {}]  }
   0x1   :  { %s2892_s14 = smov 0  }
   0x2 LB: > { %s25_s15 = sadd.s32 1, %s2862_s13  ;;  %p1959_p0 = scmp.ge.s32.totalorder %s2866_s14, 1  ;;  %s2866_s14 = sphi %s2892_s14, %s13_s14   ;;  %s2862_s13 = sphi %s2890_s13, %s3630_s13   ;;  %s2858_s12 = sphi %s2888_s12, %s3629_s12  }
   0x3   : > { %p27_p1 = scmp.ge.s32.totalorder %s25_s15, 2  ;;  %p151_p2 = scmp.lt.s32.totalorder %s2866_s14, 3 }
   0x5   : > { %s3632_s15 = smov (%p27_p1, %s25_s15), 0  ;;  %p152_p3 = pnand %p1959_p0, %p151_p2 }
   0x7   : > { %155 = sbr.rel (%p152_p3) target bundleno = 387 (0x183), region = 32 }
   0xc   : > { %v1984_v0 = vld [vmem:[%s3598_s1 + $0xb8] sm:$0xff]  ;;  %v1983_v2 = vld [vmem:[%s3598_s1 + $0xb0] sm:$0xff]  ;;  %v1982_v4 = vld [vmem:[%s3598_s1 + $0xa8] sm:$0xff]  ;;  %p179_p4 = scmp.lt.s32.totalorder %s2858_s12, 1  ;;  %vm243_vm0 = vcmask 785408   ;;  %vm1823_vm1 = vcmask 785410  }
   0xd   : > { %v217_v1 = vld [vmem:[%s3598_s1 + $0x58] sm:$0xff]  ;;  %2444 = vmatprep.subr.mxu0 %v1984_v0  ;;  %v216_v3 = vld [vmem:[%s3598_s1 + $0x50] sm:$0xff]  ;;  %v215_v5 = vld [vmem:[%s3598_s1 + $0x48] sm:$0xff]  ;;  %vm1825_vm2 = vcmask 779264   ;;  %vm1828_vm3 = vcmask 785412   ;;  %vm1830_vm4 = vcmask 781312  }
   0xe   : > { %2483 = vmatprep.subr.mxu1 %v217_v1  ;;  %2445 = vmatpush3.msra.mxu0 %v1984_v0  ;;  %v1981_v6 = vld [vmem:[%s3598_s1 + $0xa0] sm:$0xff]  ;;  %v1980_v8 = vld [vmem:[%s3598_s1 + $0x98] sm:$0xff]  ;;  %v1979_v10 = vld [vmem:[%s3598_s1 + $0x90] sm:$0xff]  ;;  %s3634_s12 = smov (!%p179_p4, %s2858_s12), 1  ;;  %vm1833_vm5 = vcmask 785414   ;;  %vm1835_vm6 = vcmask 783360  }
   0xf   : > { %2484 = vmatpush3.msra.mxu1 %v217_v1  ;;  %2446 = vmatprep.subr.mxu0 %v1983_v2  ;;  %v214_v7 = vld [vmem:[%s3598_s1 + $0x40] sm:$0xff]  ;;  %v213_v9 = vld [vmem:[%s3598_s1 + $0x38] sm:$0xff]  ;;  %v212_v11 = vld [vmem:[%s3598_s1 + $0x30] sm:$0xff]  ;;  %s2819_s29 = smul.u32 112, %s3634_s12  ;;  %s2245_s10 = sshll.u32 %s3634_s12, 6 }
  0x10   : > { %2485 = vmatprep.subr.mxu1 %v216_v3  ;;  %2447 = vmatpush3.msra.mxu0 %v1983_v2  ;;  %v1978_v12 = vld [vmem:[%s3598_s1 + $0x88] sm:$0xff]  ;;  %v1977_v14 = vld [vmem:[%s3598_s1 + $0x80] sm:$0xff]  ;;  %v1976_v16 = vld [vmem:[%s3598_s1 + $0x78] sm:$0xff]  ;;  %s3548_s16 = scalar_lea.vmem %s3600_s3, %s2245_s10 }
  0x11   : > { %2486 = vmatpush3.msra.mxu1 %v216_v3  ;;  %2448 = vmatprep.subr.mxu0 %v1982_v4  ;;  %v211_v13 = vld [vmem:[%s3598_s1 + $0x28] sm:$0xff]  ;;  %v210_v15 = vld [vmem:[%s3598_s1 + $0x20] sm:$0xff]  ;;  %v209_v17 = vld [vmem:[%s3598_s1 + $0x18] sm:$0xff]  ;;  %s2982_s17 = scalar_lea.vmem %s3597_s0, %s2819_s29 }
  0x12   : > { %2487 = vmatprep.subr.mxu1 %v215_v5  ;;  %2449 = vmatpush3.msra.mxu0 %v1982_v4  ;;  %v1975_v18 = vld [vmem:[%s3598_s1 + $0x70] sm:$0xff]  ;;  %v1974_v20 = vld [vmem:[%s3598_s1 + $0x68] sm:$0xff]  ;;  %v1973_v22 = vld [vmem:[%s3598_s1 + $0x60] sm:$0xff] }
  0x13   : > { %2488 = vmatpush3.msra.mxu1 %v215_v5  ;;  %2450 = vmatprep.subr.mxu0 %v1981_v6  ;;  %v208_v19 = vld [vmem:[%s3598_s1 + $0x10] sm:$0xff]  ;;  %v207_v21 = vld [vmem:[%s3598_s1 + $0x8] sm:$0xff]  ;;  %v206_v23 = vld [vmem:[%s3598_s1] sm:$0xff] }
  0x14   : > { %2489 = vmatprep.subr.mxu1 %v214_v7  ;;  %2451 = vmatpush3.msra.mxu0 %v1981_v6  ;;  %v1963_v24 = vld [vmem:[%s2982_s17 + $0x1] sm:$0xff]  ;;  %v1964_v26 = vld [vmem:[%s2982_s17 + $0x9] sm:$0xff]  ;;  %v2026_v28 = vld [vmem:[%s3598_s1 + $0x118] sm:$0xff] }
  0x15   : > { %2490 = vmatpush3.msra.mxu1 %v214_v7  ;;  %2452 = vmatprep.subr.mxu0 %v1980_v8  ;;  %v196_v25 = vld [vmem:[%s2982_s17] sm:$0xff]  ;;  %v197_v27 = vld [vmem:[%s2982_s17 + $0x8] sm:$0xff]  ;;  %v2058_v29 = vld [vmem:[%s3598_s1 + $0x178] sm:$0xff] }
  0x16   : > { %2491 = vmatprep.subr.mxu1 %v213_v9  ;;  %2453 = vmatpush3.msra.mxu0 %v1980_v8  ;;  %v2025_v30 = vld [vmem:[%s3598_s1 + $0x110] sm:$0xff]  ;;  %v2024_v32 = vld [vmem:[%s3598_s1 + $0x108] sm:$0xff]  ;;  %v2023_v36 = vld [vmem:[%s3598_s1 + $0x100] sm:$0xff] }
  0x17   : > { %2492 = vmatpush3.msra.mxu1 %v213_v9  ;;  %2454 = vmatprep.subr.mxu0 %v1979_v10  ;;  %v2057_v31 = vld [vmem:[%s3598_s1 + $0x170] sm:$0xff]  ;;  %v2056_v33 = vld [vmem:[%s3598_s1 + $0x168] sm:$0xff]  ;;  %v2055_v37 = vld [vmem:[%s3598_s1 + $0x160] sm:$0xff] }
  0x18   : > { %2493 = vmatprep.subr.mxu1 %v212_v11  ;;  %2455 = vmatpush3.msra.mxu0 %v1979_v10  ;;  %v1965_v34 = vld [vmem:[%s2982_s17 + $0x11] sm:$0xff]  ;;  %v1966_v38 = vld [vmem:[%s2982_s17 + $0x19] sm:$0xff]  ;;  %v1967_v42 = vld [vmem:[%s2982_s17 + $0x21] sm:$0xff] }
  0x19   : > { %2494 = vmatpush3.msra.mxu1 %v212_v11  ;;  %2456 = vmatprep.subr.mxu0 %v1978_v12  ;;  %v198_v35 = vld [vmem:[%s2982_s17 + $0x10] sm:$0xff]  ;;  %v199_v39 = vld [vmem:[%s2982_s17 + $0x18] sm:$0xff]  ;;  %v200_v43 = vld [vmem:[%s2982_s17 + $0x20] sm:$0xff] }
  0x1a   : > { %2495 = vmatprep.subr.mxu1 %v211_v13  ;;  %2457 = vmatpush3.msra.mxu0 %v1978_v12  ;;  %v2022_v40 = vld [vmem:[%s3598_s1 + $0xf8] sm:$0xff]  ;;  %v2021_v44 = vld [vmem:[%s3598_s1 + $0xf0] sm:$0xff]  ;;  %v201_v47 = vld [vmem:[%s2982_s17 + $0x28] sm:$0xff] }
  0x1b   : > { %2496 = vmatpush3.msra.mxu1 %v211_v13  ;;  %2458 = vmatprep.subr.mxu0 %v1977_v14  ;;  %v2054_v41 = vld [vmem:[%s3598_s1 + $0x158] sm:$0xff]  ;;  %v2053_v45 = vld [vmem:[%s3598_s1 + $0x150] sm:$0xff]  ;;  %v2020_v48 = vld [vmem:[%s3598_s1 + $0xe8] sm:$0xff] }
  0x1c   : > { %2497 = vmatprep.subr.mxu1 %v210_v15  ;;  %2459 = vmatpush3.msra.mxu0 %v1977_v14  ;;  %v1968_v46 = vld [vmem:[%s2982_s17 + $0x29] sm:$0xff]  ;;  %v1969_v50 = vld [vmem:[%s2982_s17 + $0x31] sm:$0xff]  ;;  %v2019_v52 = vld [vmem:[%s3598_s1 + $0xe0] sm:$0xff] }
  0x1d   : > { %2498 = vmatpush3.msra.mxu1 %v210_v15  ;;  %2460 = vmatprep.subr.mxu0 %v1976_v16  ;;  %v2052_v49 = vld [vmem:[%s3598_s1 + $0x148] sm:$0xff]  ;;  %v202_v51 = vld [vmem:[%s2982_s17 + $0x30] sm:$0xff]  ;;  %v2051_v53 = vld [vmem:[%s3598_s1 + $0x140] sm:$0xff] }
  0x1e   : > { %2499 = vmatprep.subr.mxu1 %v209_v17  ;;  %2461 = vmatpush3.msra.mxu0 %v1976_v16  ;;  %v1970_v54 = vld [vmem:[%s2982_s17 + $0x39] sm:$0xff]  ;;  %v1971_v58 = vld [vmem:[%s2982_s17 + $0x41] sm:$0xff]  ;;  %v2017_v60 = vld [vmem:[%s3598_s1 + $0xd0] sm:$0xff] }
  0x1f   : > { %2500 = vmatpush3.msra.mxu1 %v209_v17  ;;  %2462 = vmatprep.subr.mxu0 %v1975_v18  ;;  %v203_v55 = vld [vmem:[%s2982_s17 + $0x38] sm:$0xff]  ;;  %v204_v59 = vld [vmem:[%s2982_s17 + $0x40] sm:$0xff]  ;;  %v2049_v61 = vld [vmem:[%s3598_s1 + $0x130] sm:$0xff] }
  0x20   : > { %2501 = vmatprep.subr.mxu1 %v208_v19  ;;  %2463 = vmatpush3.msra.mxu0 %v1975_v18  ;;  %v2018_v56 = vld [vmem:[%s3598_s1 + $0xd8] sm:$0xff]  ;;  %v1972_v62 = vld [vmem:[%s2982_s17 + $0x49] sm:$0xff]  ;;  %v2015_v2 = vld [vmem:[%s3598_s1 + $0xc0] sm:$0xff] }
  0x21   : > { %2502 = vmatpush3.msra.mxu1 %v208_v19  ;;  %2464 = vmatprep.subr.mxu0 %v1974_v20  ;;  %v2050_v57 = vld [vmem:[%s3598_s1 + $0x138] sm:$0xff]  ;;  %v205_v63 = vld [vmem:[%s2982_s17 + $0x48] sm:$0xff]  ;;  %v2047_v3 = vld [vmem:[%s3598_s1 + $0x120] sm:$0xff] }
  0x22   : > { %2503 = vmatprep.subr.mxu1 %v207_v21  ;;  %2465 = vmatpush3.msra.mxu0 %v1974_v20  ;;  %v2016_v0 = vld [vmem:[%s3598_s1 + $0xc8] sm:$0xff]  ;;  %v2090_v6 = vld [vmem:[%s3598_s1 + $0x1d8] sm:$0xff]  ;;  %v2089_v9 = vld [vmem:[%s3598_s1 + $0x1d0] sm:$0xff] }
  0x23   : > { %2504 = vmatpush3.msra.mxu1 %v207_v21  ;;  %2466 = vmatprep.subr.mxu0 %v1973_v22  ;;  %v2048_v1 = vld [vmem:[%s3598_s1 + $0x128] sm:$0xff]  ;;  %v2122_v7 = vld [vmem:[%s3598_s1 + $0x238] sm:$0xff]  ;;  %v2121_v10 = vld [vmem:[%s3598_s1 + $0x230] sm:$0xff] }
  0x24   : > { %2505 = vmatprep.subr.mxu1 %v206_v23  ;;  %2467 = vmatpush3.msra.mxu0 %v1973_v22  ;;  %v2005_v4 = vld [vmem:[%s2982_s17 + $0x2] sm:$0xff]  ;;  %v2006_v5 = vld [vmem:[%s2982_s17 + $0xa] sm:$0xff]  ;;  %v2038_v8 = vld [vmem:[%s2982_s17 + $0x12] sm:$0xff] }
  0x25   : > { %2468 = vmatprep.mubr.msk.f32.mxu0 %vm243_vm0, %v1963_v24  ;;  %2506 = vmatpush3.msra.mxu1 %v206_v23  ;;  %v2008_v11 = vld [vmem:[%s2982_s17 + $0x1a] sm:$0xff]  ;;  %v2088_v12 = vld [vmem:[%s3598_s1 + $0x1c8] sm:$0xff]  ;;  %v2085_v20 = vld [vmem:[%s3598_s1 + $0x1b0] sm:$0xff] }
  0x26   : > { %2507 = vmatprep.mubr.msk.f32.mxu1 %vm243_vm0, %v196_v25  ;;  %2469 = vmatmul.mubr.msk.f32.vlgmr.msra.gmra.mxu0 %vm243_vm0, %v1964_v26  ;;  %v2120_v13 = vld [vmem:[%s3598_s1 + $0x228] sm:$0xff]  ;;  %v2087_v14 = vld [vmem:[%s3598_s1 + $0x1c0] sm:$0xff]  ;;  %v2086_v18 = vld [vmem:[%s3598_s1 + $0x1b8] sm:$0xff] }
  0x27   : > { %2508 = vmatmul.mubr.msk.f32.vlgmr.msra.gmra.mxu1 %vm243_vm0, %v197_v27  ;;  %2522 = vmatprep.subr.mxu0 %v2026_v28  ;;  %v2040_v15 = vld [vmem:[%s2982_s17 + $0x22] sm:$0xff]  ;;  %v2010_v17 = vld [vmem:[%s2982_s17 + $0x2a] sm:$0xff]  ;;  %v2118_v19 = vld [vmem:[%s3598_s1 + $0x218] sm:$0xff] }
  0x28   : > { %2561 = vmatprep.subr.mxu1 %v2058_v29  ;;  %2523 = vmatpush3.msra.mxu0 %v2026_v28  ;;  %v2119_v16 = vld [vmem:[%s3598_s1 + $0x220] sm:$0xff]  ;;  %v2042_v21 = vld [vmem:[%s2982_s17 + $0x32] sm:$0xff]  ;;  %v2084_v24 = vld [vmem:[%s3598_s1 + $0x1a8] sm:$0xff] }
  0x29   : > { %2562 = vmatpush3.msra.mxu1 %v2058_v29  ;;  %2524 = vmatprep.subr.mxu0 %v2025_v30  ;;  %v2117_v22 = vld [vmem:[%s3598_s1 + $0x210] sm:$0xff]  ;;  %v2012_v23 = vld [vmem:[%s2982_s17 + $0x3a] sm:$0xff]  ;;  %v2116_v25 = vld [vmem:[%s3598_s1 + $0x208] sm:$0xff] }
  0x2a   : > { %2563 = vmatprep.subr.mxu1 %v2057_v31  ;;  %2525 = vmatpush3.msra.mxu0 %v2025_v30  ;;  %v2083_v26 = vld [vmem:[%s3598_s1 + $0x1a0] sm:$0xff]  ;;  %v2014_v29 = vld [vmem:[%s2982_s17 + $0x4a] sm:$0xff]  ;;  %v2082_v30 = vld [vmem:[%s3598_s1 + $0x198] sm:$0xff] }
  0x2b   : > { %2564 = vmatpush3.msra.mxu1 %v2057_v31  ;;  %2526 = vmatprep.subr.mxu0 %v2024_v32  ;;  %v2044_v27 = vld [vmem:[%s2982_s17 + $0x42] sm:$0xff]  ;;  %v2114_v31 = vld [vmem:[%s3598_s1 + $0x1f8] sm:$0xff] }
  0x2c   : > { %2565 = vmatprep.subr.mxu1 %v2056_v33  ;;  %2527 = vmatpush3.msra.mxu0 %v2024_v32  ;;  %v2115_v28 = vld [vmem:[%s3598_s1 + $0x200] sm:$0xff]  ;;  %v2081_v32 = vld [vmem:[%s3598_s1 + $0x190] sm:$0xff] }
  0x2d   : > { %2566 = vmatpush3.msra.mxu1 %v2056_v33  ;;  %2471 = vmatprep.mubr.msk.f32.mxu0 %vm243_vm0, %v1965_v34  ;;  %v2046_v33 = vld [vmem:[%s2982_s17 + $0x52] sm:$0xff] }
  0x2e   : > { %2510 = vmatprep.mubr.msk.f32.mxu1 %vm243_vm0, %v198_v35  ;;  %2528 = vmatprep.subr.mxu0 %v2023_v36  ;;  %v2113_v34 = vld [vmem:[%s3598_s1 + $0x1f0] sm:$0xff]  ;;  %v2080_v35 = vld [vmem:[%s3598_s1 + $0x188] sm:$0xff] }
  0x2f   : > { %2567 = vmatprep.subr.mxu1 %v2055_v37  ;;  %2472 = vmatmul.mubr.msk.f32.gmra.mxu0 %vm243_vm0, %v1966_v38  ;;  %v2111_v38 = vld [vmem:[%s3598_s1 + $0x1e0] sm:$0xff] }
  0x30   : > { %2511 = vmatmul.mubr.msk.f32.gmra.mxu1 %vm243_vm0, %v199_v39  ;;  %2529 = vmatpush3.msra.mxu0 %v2023_v36  ;;  %v2112_v36 = vld [vmem:[%s3598_s1 + $0x1e8] sm:$0xff] }
  0x31   : > { %2568 = vmatpush3.msra.mxu1 %v2055_v37  ;;  %2530 = vmatprep.subr.mxu0 %v2022_v40  ;;  %v2079_v37 = vld [vmem:[%s3598_s1 + $0x180] sm:$0xff]  ;;  %v2069_v39 = vld [vmem:[%s2982_s17 + $0xb] sm:$0xff] }
  0x32   : > { %2569 = vmatprep.subr.mxu1 %v2054_v41  ;;  %2531 = vmatpush3.msra.mxu0 %v2022_v40  ;;  %v2070_v40 = vld [vmem:[%s2982_s17 + $0x13] sm:$0xff] }
  0x33   : > { %2570 = vmatpush3.msra.mxu1 %v2054_v41  ;;  %2474 = vmatprep.mubr.msk.f32.mxu0 %vm243_vm0, %v1967_v42  ;;  %v2101_v41 = vld [vmem:[%s2982_s17 + $0xc] sm:$0xff]  ;;  %v2154_v42 = vld [vmem:[%s3598_s1 + $0x298] sm:$0xff] }
  0x34   : > { %2513 = vmatprep.mubr.msk.f32.mxu1 %vm243_vm0, %v200_v43  ;;  %2532 = vmatprep.subr.mxu0 %v2021_v44  ;;  %v2186_v43 = vld [vmem:[%s3598_s1 + $0x2f8] sm:$0xff] }
  0x35   : > { %2571 = vmatprep.subr.mxu1 %v2053_v45  ;;  %2475 = vmatmul.mubr.msk.f32.gmra.mxu0 %vm243_vm0, %v1968_v46  ;;  %v2185_v46 = vld [vmem:[%s3598_s1 + $0x2f0] sm:$0xff] }
  0x36   : > { %2514 = vmatmul.mubr.msk.f32.gmra.mxu1 %vm243_vm0, %v201_v47  ;;  %2533 = vmatpush3.msra.mxu0 %v2021_v44  ;;  %v3216_v44 = vld [vmem:[%s2982_s17 + $0x14] sm:$0xff] }
  0x37   : > { %2572 = vmatpush3.msra.mxu1 %v2053_v45  ;;  %2534 = vmatprep.subr.mxu0 %v2020_v48  ;;  %v2153_v45 = vld [vmem:[%s3598_s1 + $0x290] sm:$0xff]  ;;  %v2071_v47 = vld [vmem:[%s2982_s17 + $0x1b] sm:$0xff] }
  0x38   : > { %2573 = vmatprep.subr.mxu1 %v2052_v49  ;;  %2535 = vmatpush3.msra.mxu0 %v2020_v48  ;;  %v2072_v48 = vld [vmem:[%s2982_s17 + $0x23] sm:$0xff] }
  0x39   : > { %2574 = vmatpush3.msra.mxu1 %v2052_v49  ;;  %2477 = vmatprep.mubr.msk.f32.mxu0 %vm243_vm0, %v1969_v50  ;;  %v2152_v49 = vld [vmem:[%s3598_s1 + $0x288] sm:$0xff] }
  0x3a   : > { %2516 = vmatprep.mubr.msk.f32.mxu1 %vm243_vm0, %v202_v51  ;;  %2536 = vmatprep.subr.mxu0 %v2019_v52  ;;  %v2184_v50 = vld [vmem:[%s3598_s1 + $0x2e8] sm:$0xff]  ;;  %v3238_v51 = vld [vmem:[%s2982_s17 + $0x1c] sm:$0xff] }
  0x3b   : > { %2575 = vmatprep.subr.mxu1 %v2051_v53  ;;  %2478 = vmatmul.mubr.msk.f32.gmra.mxu0 %vm243_vm0, %v1970_v54  ;;  %v2183_v54 = vld [vmem:[%s3598_s1 + $0x2e0] sm:$0xff] }
  0x3c   : > { %2517 = vmatmul.mubr.msk.f32.gmra.mxu1 %vm243_vm0, %v203_v55  ;;  %2537 = vmatpush3.msra.mxu0 %v2019_v52  ;;  %v2151_v52 = vld [vmem:[%s3598_s1 + $0x280] sm:$0xff]  ;;  %v2073_v55 = vld [vmem:[%s2982_s17 + $0x2b] sm:$0xff] }
  0x3d   : > { %2576 = vmatpush3.msra.mxu1 %v2051_v53  ;;  %2538 = vmatprep.subr.mxu0 %v2018_v56  ;;  %v3245_v53 = vld [vmem:[%s2982_s17 + $0x24] sm:$0xff] }
  0x3e   : > { %2577 = vmatprep.subr.mxu1 %v2050_v57  ;;  %2539 = vmatpush3.msra.mxu0 %v2018_v56  ;;  %v2074_v56 = vld [vmem:[%s2982_s17 + $0x33] sm:$0xff] }
  0x3f   : > { %2578 = vmatpush3.msra.mxu1 %v2050_v57  ;;  %2480 = vmatprep.mubr.msk.f32.mxu0 %vm243_vm0, %v1971_v58  ;;  %v2150_v57 = vld [vmem:[%s3598_s1 + $0x278] sm:$0xff] }
  0x40   : > { %2519 = vmatprep.mubr.msk.f32.mxu1 %vm243_vm0, %v204_v59  ;;  %2540 = vmatprep.subr.mxu0 %v2017_v60  ;;  %v2182_v58 = vld [vmem:[%s3598_s1 + $0x2d8] sm:$0xff]  ;;  %v3264_v59 = vld [vmem:[%s2982_s17 + $0x2c] sm:$0xff] }
  0x41   : > { %2579 = vmatprep.subr.mxu1 %v2049_v61  ;;  %2481 = vmatmul.mubr.msk.f32.gmra.mxu0 %vm243_vm0, %v1972_v62  ;;  %v2181_v62 = vld [vmem:[%s3598_s1 + $0x2d0] sm:$0xff] }
  0x42   : > { %2520 = vmatmul.mubr.msk.f32.gmra.mxu1 %vm243_vm0, %v205_v63  ;;  %2541 = vmatpush3.msra.mxu0 %v2017_v60  ;;  %v2149_v60 = vld [vmem:[%s3598_s1 + $0x270] sm:$0xff]  ;;  %v2075_v63 = vld [vmem:[%s2982_s17 + $0x3b] sm:$0xff] }
  0x43   : > { %2580 = vmatpush3.msra.mxu1 %v2049_v61  ;;  %2542 = vmatprep.subr.mxu0 %v2016_v0  ;;  %v3271_v61 = vld [vmem:[%s2982_s17 + $0x34] sm:$0xff] }
  0x44   : > { %2581 = vmatprep.subr.mxu1 %v2048_v1  ;;  %2543 = vmatpush3.msra.mxu0 %v2016_v0  ;;  %v2076_v0 = vld [vmem:[%s2982_s17 + $0x43] sm:$0xff] }
  0x45   : > { %2582 = vmatpush3.msra.mxu1 %v2048_v1  ;;  %2544 = vmatprep.subr.mxu0 %v2015_v2  ;;  %v2148_v1 = vld [vmem:[%s3598_s1 + $0x268] sm:$0xff] }
  0x46   : > { %2583 = vmatprep.subr.mxu1 %v2047_v3  ;;  %2545 = vmatpush3.msra.mxu0 %v2015_v2  ;;  %v2180_v2 = vld [vmem:[%s3598_s1 + $0x2c8] sm:$0xff] }
  0x47   : > { %2546 = vmatprep.mubr.msk.f32.mxu0 %vm243_vm0, %v2005_v4  ;;  %2584 = vmatpush3.msra.mxu1 %v2047_v3  ;;  %v3290_v3 = vld [vmem:[%s2982_s17 + $0x3c] sm:$0xff] }
  0x48   : > { %2547 = vmatmul.mubr.msk.f32.vlgmr.msra.gmra.mxu0 %vm243_vm0, %v2006_v5  ;;  %2585 = vmatprep.mubr.msk.f32.mxu1 %vm243_vm0, %v2006_v5  ;;  %v2147_v4 = vld [vmem:[%s3598_s1 + $0x260] sm:$0xff] }
  0x49   : > { %2600 = vmatprep.subr.mxu0 %v2090_v6  ;;  %2639 = vmatprep.subr.mxu1 %v2122_v7  ;;  %v3297_v5 = vld [vmem:[%s2982_s17 + $0x44] sm:$0xff] }
  0x4a   : > { %2586 = vmatmul.mubr.msk.f32.vlgmr.msra.gmra.mxu1 %vm243_vm0, %v2038_v8  ;;  %2601 = vmatpush3.msra.mxu0 %v2090_v6  ;;  %v2179_v6 = vld [vmem:[%s3598_s1 + $0x2c0] sm:$0xff] }
  0x4b   : > { %2640 = vmatpush3.msra.mxu1 %v2122_v7  ;;  %2602 = vmatprep.subr.mxu0 %v2089_v9  ;;  %v2077_v7 = vld [vmem:[%s2982_s17 + $0x4b] sm:$0xff] }
  0x4c   : > { %2641 = vmatprep.subr.mxu1 %v2121_v10  ;;  %2549 = vmatprep.mubr.msk.f32.mxu0 %vm243_vm0, %v2038_v8  ;;  %v2078_v8 = vld [vmem:[%s2982_s17 + $0x53] sm:$0xff] }
  0x4d   : > { %2603 = vmatpush3.msra.mxu0 %v2089_v9  ;;  %2642 = vmatpush3.msra.mxu1 %v2121_v10  ;;  %v2146_v9 = vld [vmem:[%s3598_s1 + $0x258] sm:$0xff] }
  0x4e   : > { %2550 = vmatmul.mubr.msk.f32.gmra.mxu0 %vm243_vm0, %v2008_v11  ;;  %2604 = vmatprep.subr.mxu0 %v2088_v12  ;;  %v2178_v10 = vld [vmem:[%s3598_s1 + $0x2b8] sm:$0xff] }
  0x4f   : > { %2643 = vmatprep.subr.mxu1 %v2120_v13  ;;  %2588 = vmatprep.mubr.msk.f32.mxu1 %vm243_vm0, %v2008_v11  ;;  %v3316_v11 = vld [vmem:[%s2982_s17 + $0x4c] sm:$0xff] }
  0x50   : > { %2605 = vmatpush3.msra.mxu0 %v2088_v12  ;;  %2644 = vmatpush3.msra.mxu1 %v2120_v13  ;;  %v2145_v12 = vld [vmem:[%s3598_s1 + $0x250] sm:$0xff] }
  0x51   : > { %2606 = vmatprep.subr.mxu0 %v2087_v14  ;;  %2589 = vmatmul.mubr.msk.f32.gmra.mxu1 %vm243_vm0, %v2040_v15  ;;  %v3323_v13 = vld [vmem:[%s2982_s17 + $0x54] sm:$0xff] }
  0x52   : > { %2645 = vmatprep.subr.mxu1 %v2119_v16  ;;  %2552 = vmatprep.mubr.msk.f32.mxu0 %vm243_vm0, %v2040_v15  ;;  %v2144_v15 = vld [vmem:[%s3598_s1 + $0x248] sm:$0xff] }
  0x53   : > { %2607 = vmatpush3.msra.mxu0 %v2087_v14  ;;  %2646 = vmatpush3.msra.mxu1 %v2119_v16  ;;  %v2177_v14 = vld [vmem:[%s3598_s1 + $0x2b0] sm:$0xff]  ;;  %v2176_v16 = vld [vmem:[%s3598_s1 + $0x2a8] sm:$0xff] }
  0x54   : > { %2553 = vmatmul.mubr.msk.f32.gmra.mxu0 %vm243_vm0, %v2010_v17  ;;  %2608 = vmatprep.subr.mxu0 %v2086_v18 }
  0x55   : > { %2647 = vmatprep.subr.mxu1 %v2118_v19  ;;  %2591 = vmatprep.mubr.msk.f32.mxu1 %vm243_vm0, %v2010_v17  ;;  %v2143_v17 = vld [vmem:[%s3598_s1 + $0x240] sm:$0xff] }
  0x56   : > { %2609 = vmatpush3.msra.mxu0 %v2086_v18  ;;  %2648 = vmatpush3.msra.mxu1 %v2118_v19  ;;  %v2175_v18 = vld [vmem:[%s3598_s1 + $0x2a0] sm:$0xff]  ;;  %v2165_v19 = vld [vmem:[%s2982_s17 + $0x15] sm:$0xff] }
  0x57   : > { %2610 = vmatprep.subr.mxu0 %v2085_v20  ;;  %2592 = vmatmul.mubr.msk.f32.gmra.mxu1 %vm243_vm0, %v2042_v21 }
  0x58   : > { %2649 = vmatprep.subr.mxu1 %v2117_v22  ;;  %2555 = vmatprep.mubr.msk.f32.mxu0 %vm243_vm0, %v2042_v21  ;;  %v2166_v21 = vld [vmem:[%s2982_s17 + $0x1d] sm:$0xff] }
  0x59   : > { %2611 = vmatpush3.msra.mxu0 %v2085_v20  ;;  %2650 = vmatpush3.msra.mxu1 %v2117_v22  ;;  %v2218_v20 = vld [vmem:[%s3598_s1 + $0x358] sm:$0xff]  ;;  %v2217_v22 = vld [vmem:[%s3598_s1 + $0x350] sm:$0xff] }
  0x5a   : > { %2556 = vmatmul.mubr.msk.f32.gmra.mxu0 %vm243_vm0, %v2012_v23  ;;  %2612 = vmatprep.subr.mxu0 %v2084_v24 }
  0x5b   : > { %2651 = vmatprep.subr.mxu1 %v2116_v25  ;;  %2594 = vmatprep.mubr.msk.f32.mxu1 %vm243_vm0, %v2012_v23  ;;  %v2216_v23 = vld [vmem:[%s3598_s1 + $0x348] sm:$0xff] }
  0x5c   : > { %2613 = vmatpush3.msra.mxu0 %v2084_v24  ;;  %2652 = vmatpush3.msra.mxu1 %v2116_v25  ;;  %v2167_v24 = vld [vmem:[%s2982_s17 + $0x25] sm:$0xff] }
  0x5d   : > { %2614 = vmatprep.subr.mxu0 %v2083_v26  ;;  %2595 = vmatmul.mubr.msk.f32.gmra.mxu1 %vm243_vm0, %v2044_v27  ;;  %v2215_v25 = vld [vmem:[%s3598_s1 + $0x340] sm:$0xff] }
  0x5e   : > { %2653 = vmatprep.subr.mxu1 %v2115_v28  ;;  %2558 = vmatprep.mubr.msk.f32.mxu0 %vm243_vm0, %v2044_v27  ;;  %v2214_v27 = vld [vmem:[%s3598_s1 + $0x338] sm:$0xff] }
  0x5f   : > { %2615 = vmatpush3.msra.mxu0 %v2083_v26  ;;  %2654 = vmatpush3.msra.mxu1 %v2115_v28  ;;  %v2168_v26 = vld [vmem:[%s2982_s17 + $0x2d] sm:$0xff]  ;;  %v2169_v28 = vld [vmem:[%s2982_s17 + $0x35] sm:$0xff] }
  0x60   : > { %2559 = vmatmul.mubr.msk.f32.gmra.mxu0 %vm243_vm0, %v2014_v29  ;;  %2616 = vmatprep.subr.mxu0 %v2082_v30 }
  0x61   : > { %2655 = vmatprep.subr.mxu1 %v2114_v31  ;;  %2597 = vmatprep.mubr.msk.f32.mxu1 %vm243_vm0, %v2014_v29  ;;  %v2213_v29 = vld [vmem:[%s3598_s1 + $0x330] sm:$0xff] }
  0x62   : > { %2617 = vmatpush3.msra.mxu0 %v2082_v30  ;;  %2656 = vmatpush3.msra.mxu1 %v2114_v31  ;;  %v2170_v30 = vld [vmem:[%s2982_s17 + $0x3d] sm:$0xff]  ;;  %v2212_v31 = vld [vmem:[%s3598_s1 + $0x328] sm:$0xff] }
  0x63   : > { %2618 = vmatprep.subr.mxu0 %v2081_v32  ;;  %2598 = vmatmul.mubr.msk.f32.gmra.mxu1 %vm243_vm0, %v2046_v33  ;;  %v2211_v33 = vld [vmem:[%s3598_s1 + $0x320] sm:$0xff] }
  0x64   : > { %2657 = vmatprep.subr.mxu1 %v2113_v34  ;;  %2619 = vmatpush3.msra.mxu0 %v2081_v32  ;;  %v2171_v32 = vld [vmem:[%s2982_s17 + $0x45] sm:$0xff] }
  0x65   : > { %2658 = vmatpush3.msra.mxu1 %v2113_v34  ;;  %2620 = vmatprep.subr.mxu0 %v2080_v35  ;;  %v2172_v34 = vld [vmem:[%s2982_s17 + $0x4d] sm:$0xff] }
  0x66   : > { %2659 = vmatprep.subr.mxu1 %v2112_v36  ;;  %2621 = vmatpush3.msra.mxu0 %v2080_v35  ;;  %v2142_v35 = vld [vmem:[%s2982_s17 + $0x5c] sm:$0xff] }
  0x67   : > { %2660 = vmatpush3.msra.mxu1 %v2112_v36  ;;  %2622 = vmatprep.subr.mxu0 %v2079_v37  ;;  %v2210_v36 = vld [vmem:[%s3598_s1 + $0x318] sm:$0xff] }
  0x68   : > { %2661 = vmatprep.subr.mxu1 %v2111_v38  ;;  %2623 = vmatpush3.msra.mxu0 %v2079_v37  ;;  %v2173_v37 = vld [vmem:[%s2982_s17 + $0x55] sm:$0xff] }
  0x69   : > { %2624 = vmatprep.mubr.msk.f32.mxu0 %vm243_vm0, %v2069_v39  ;;  %2662 = vmatpush3.msra.mxu1 %v2111_v38  ;;  %v2209_v38 = vld [vmem:[%s3598_s1 + $0x310] sm:$0xff]  ;;  %v2174_v39 = vld [vmem:[%s2982_s17 + $0x5d] sm:$0xff] }
  0x6a   : > { %2625 = vmatmul.mubr.msk.f32.vlgmr.msra.gmra.mxu0 %vm243_vm0, %v2070_v40  ;;  %2663 = vmatprep.mubr.msk.f32.mxu1 %vm243_vm0, %v2101_v41  ;;  %v2208_v40 = vld [vmem:[%s3598_s1 + $0x308] sm:$0xff]  ;;  %v2207_v41 = vld [vmem:[%s3598_s1 + $0x300] sm:$0xff] }
  0x6b   : > { %2678 = vmatprep.subr.mxu0 %v2154_v42  ;;  %2717 = vmatprep.subr.mxu1 %v2186_v43 }
  0x6c   : > { %2664 = vmatmul.mubr.msk.f32.vlgmr.msra.gmra.mxu1 %vm243_vm0, %v3216_v44  ;;  %2679 = vmatpush3.msra.mxu0 %v2154_v42  ;;  %v2197_v42 = vld [vmem:[%s2982_s17 + $0x16] sm:$0xff] }
  0x6d   : > { %2718 = vmatpush3.msra.mxu1 %v2186_v43  ;;  %2680 = vmatprep.subr.mxu0 %v2153_v45  ;;  %v2203_v43 = vld [vmem:[%s2982_s17 + $0x46] sm:$0xff] }
  0x6e   : > { %2719 = vmatprep.subr.mxu1 %v2185_v46  ;;  %2627 = vmatprep.mubr.msk.f32.mxu0 %vm243_vm0, %v2071_v47  ;;  %v2205_v47 = vld [vmem:[%s2982_s17 + $0x56] sm:$0xff] }
  0x6f   : > { %2681 = vmatpush3.msra.mxu0 %v2153_v45  ;;  %2720 = vmatpush3.msra.mxu1 %v2185_v46  ;;  %v2204_v45 = vld [vmem:[%s2982_s17 + $0x4e] sm:$0xff]  ;;  %v2199_v46 = vld [vmem:[%s2982_s17 + $0x26] sm:$0xff] }
  0x70   : > { %2628 = vmatmul.mubr.msk.f32.gmra.mxu0 %vm243_vm0, %v2072_v48  ;;  %2682 = vmatprep.subr.mxu0 %v2152_v49  ;;  %v2200_v48 = vld [vmem:[%s2982_s17 + $0x2e] sm:$0xff] }
  0x71   : > { %2721 = vmatprep.subr.mxu1 %v2184_v50  ;;  %2666 = vmatprep.mubr.msk.f32.mxu1 %vm243_vm0, %v3238_v51 }
  0x72   : > { %2683 = vmatpush3.msra.mxu0 %v2152_v49  ;;  %2722 = vmatpush3.msra.mxu1 %v2184_v50  ;;  %v2206_v49 = vld [vmem:[%s2982_s17 + $0x5e] sm:$0xff]  ;;  %v2201_v50 = vld [vmem:[%s2982_s17 + $0x36] sm:$0xff] }
  0x73   : > { %2684 = vmatprep.subr.mxu0 %v2151_v52  ;;  %2667 = vmatmul.mubr.msk.f32.gmra.mxu1 %vm243_vm0, %v3245_v53 }
  0x74   : > { %2723 = vmatprep.subr.mxu1 %v2183_v54  ;;  %2630 = vmatprep.mubr.msk.f32.mxu0 %vm243_vm0, %v2073_v55 }
  0x75   : > { %2685 = vmatpush3.msra.mxu0 %v2151_v52  ;;  %2724 = vmatpush3.msra.mxu1 %v2183_v54 }
  0x76   : > { %2631 = vmatmul.mubr.msk.f32.gmra.mxu0 %vm243_vm0, %v2074_v56  ;;  %2686 = vmatprep.subr.mxu0 %v2150_v57 }
  0x77   : > { %2725 = vmatprep.subr.mxu1 %v2182_v58  ;;  %2669 = vmatprep.mubr.msk.f32.mxu1 %vm243_vm0, %v3264_v59 }
  0x78   : > { %2687 = vmatpush3.msra.mxu0 %v2150_v57  ;;  %2726 = vmatpush3.msra.mxu1 %v2182_v58 }
  0x79   : > { %2688 = vmatprep.subr.mxu0 %v2149_v60  ;;  %2670 = vmatmul.mubr.msk.f32.gmra.mxu1 %vm243_vm0, %v3271_v61 }
  0x7a   : > { %2727 = vmatprep.subr.mxu1 %v2181_v62  ;;  %2633 = vmatprep.mubr.msk.f32.mxu0 %vm243_vm0, %v2075_v63 }
  0x7b   : > { %2689 = vmatpush3.msra.mxu0 %v2149_v60  ;;  %2728 = vmatpush3.msra.mxu1 %v2181_v62 }
  0x7c   : > { %2634 = vmatmul.mubr.msk.f32.gmra.mxu0 %vm243_vm0, %v2076_v0  ;;  %2690 = vmatprep.subr.mxu0 %v2148_v1 }
  0x7d   : > { %2729 = vmatprep.subr.mxu1 %v2180_v2  ;;  %2672 = vmatprep.mubr.msk.f32.mxu1 %vm243_vm0, %v3290_v3 }
  0x7e   : > { %2691 = vmatpush3.msra.mxu0 %v2148_v1  ;;  %2730 = vmatpush3.msra.mxu1 %v2180_v2 }
  0x7f   : > { %2692 = vmatprep.subr.mxu0 %v2147_v4  ;;  %2673 = vmatmul.mubr.msk.f32.gmra.mxu1 %vm243_vm0, %v3297_v5 }
  0x80   : > { %2731 = vmatprep.subr.mxu1 %v2179_v6  ;;  %2636 = vmatprep.mubr.msk.f32.mxu0 %vm243_vm0, %v2077_v7 }
  0x81   : > { %2693 = vmatpush3.msra.mxu0 %v2147_v4  ;;  %2732 = vmatpush3.msra.mxu1 %v2179_v6 }
  0x82   : > { %2637 = vmatmul.mubr.msk.f32.gmra.mxu0 %vm243_vm0, %v2078_v8  ;;  %2694 = vmatprep.subr.mxu0 %v2146_v9 }
  0x83   : > { %2733 = vmatprep.subr.mxu1 %v2178_v10  ;;  %2675 = vmatprep.mubr.msk.f32.mxu1 %vm243_vm0, %v3316_v11 }
  0x84   : > { %2695 = vmatpush3.msra.mxu0 %v2146_v9  ;;  %2734 = vmatpush3.msra.mxu1 %v2178_v10 }
  0x85   : > { %2696 = vmatprep.subr.mxu0 %v2145_v12  ;;  %2676 = vmatmul.mubr.msk.f32.gmra.mxu1 %vm243_vm0, %v3323_v13 }
  0x86   : > { %2735 = vmatprep.subr.mxu1 %v2177_v14  ;;  %2697 = vmatpush3.msra.mxu0 %v2145_v12 }
  0x87   : > { %2736 = vmatpush3.msra.mxu1 %v2177_v14  ;;  %2698 = vmatprep.subr.mxu0 %v2144_v15 }
  0x88   : > { %2737 = vmatprep.subr.mxu1 %v2176_v16  ;;  %2699 = vmatpush3.msra.mxu0 %v2144_v15 }
  0x89   : > { %2738 = vmatpush3.msra.mxu1 %v2176_v16  ;;  %2700 = vmatprep.subr.mxu0 %v2143_v17 }
  0x8a   : > { %2739 = vmatprep.subr.mxu1 %v2175_v18  ;;  %2701 = vmatpush3.msra.mxu0 %v2143_v17 }
  0x8b   : > { %2702 = vmatprep.mubr.msk.f32.mxu0 %vm243_vm0, %v3216_v44  ;;  %2740 = vmatpush3.msra.mxu1 %v2175_v18  ;;  %v2198_v44 = vld [vmem:[%s2982_s17 + $0x1e] sm:$0xff] }
  0x8c   : > { %2703 = vmatmul.mubr.msk.f32.vlgmr.msra.gmra.mxu0 %vm243_vm0, %v3238_v51  ;;  %2741 = vmatprep.mubr.msk.f32.mxu1 %vm243_vm0, %v2165_v19  ;;  %v2202_v51 = vld [vmem:[%s2982_s17 + $0x3e] sm:$0xff] }
  0x8d   : > { %2756 = vmatprep.subr.mxu0 %v2218_v20  ;;  %2795 = vmatprep.subr.mxu1 %v2218_v20 }
  0x8e   : > { %2742 = vmatmul.mubr.msk.f32.vlgmr.msra.gmra.mxu1 %vm243_vm0, %v2166_v21  ;;  %2757 = vmatpush3.msra.mxu0 %v2218_v20 }
  0x8f   : > { %2807 = vmatpush3.msra.mxu1 %v2218_v20  ;;  %2758 = vmatprep.subr.mxu0 %v2217_v22 }
  0x90   : > { %2796 = vmatprep.subr.mxu1 %v2217_v22  ;;  %2705 = vmatprep.mubr.msk.f32.mxu0 %vm243_vm0, %v3245_v53 }
  0x91   : > { %2759 = vmatpush3.msra.mxu0 %v2217_v22  ;;  %2808 = vmatpush3.msra.mxu1 %v2217_v22 }
  0x92   : > { %2706 = vmatmul.mubr.msk.f32.gmra.mxu0 %vm243_vm0, %v3264_v59  ;;  %2760 = vmatprep.subr.mxu0 %v2216_v23 }
  0x93   : > { %2797 = vmatprep.subr.mxu1 %v2216_v23  ;;  %2744 = vmatprep.mubr.msk.f32.mxu1 %vm243_vm0, %v2167_v24 }
  0x94   : > { %2761 = vmatpush3.msra.mxu0 %v2216_v23  ;;  %2809 = vmatpush3.msra.mxu1 %v2216_v23 }
  0x95   : > { %2762 = vmatprep.subr.mxu0 %v2215_v25  ;;  %2745 = vmatmul.mubr.msk.f32.gmra.mxu1 %vm243_vm0, %v2168_v26 }
  0x96   : > { %2798 = vmatprep.subr.mxu1 %v2215_v25  ;;  %2708 = vmatprep.mubr.msk.f32.mxu0 %vm243_vm0, %v3271_v61 }
  0x97   : > { %2763 = vmatpush3.msra.mxu0 %v2215_v25  ;;  %2810 = vmatpush3.msra.mxu1 %v2215_v25 }
  0x98   : > { %2709 = vmatmul.mubr.msk.f32.gmra.mxu0 %vm243_vm0, %v3290_v3  ;;  %2764 = vmatprep.subr.mxu0 %v2214_v27 }
  0x99   : > { %2799 = vmatprep.subr.mxu1 %v2214_v27  ;;  %2747 = vmatprep.mubr.msk.f32.mxu1 %vm243_vm0, %v2169_v28 }
  0x9a   : > { %2765 = vmatpush3.msra.mxu0 %v2214_v27  ;;  %2811 = vmatpush3.msra.mxu1 %v2214_v27 }
  0x9b   : > { %2766 = vmatprep.subr.mxu0 %v2213_v29  ;;  %2748 = vmatmul.mubr.msk.f32.gmra.mxu1 %vm243_vm0, %v2170_v30 }
  0x9c   : > { %2800 = vmatprep.subr.mxu1 %v2213_v29  ;;  %2711 = vmatprep.mubr.msk.f32.mxu0 %vm243_vm0, %v3297_v5 }
  0x9d   : > { %2767 = vmatpush3.msra.mxu0 %v2213_v29  ;;  %2812 = vmatpush3.msra.mxu1 %v2213_v29 }
  0x9e   : > { %2712 = vmatmul.mubr.msk.f32.gmra.mxu0 %vm243_vm0, %v3316_v11  ;;  %2768 = vmatprep.subr.mxu0 %v2212_v31 }
  0x9f   : > { %2801 = vmatprep.subr.mxu1 %v2212_v31  ;;  %2750 = vmatprep.mubr.msk.f32.mxu1 %vm243_vm0, %v2171_v32 }
  0xa0   : > { %2769 = vmatpush3.msra.mxu0 %v2212_v31  ;;  %2813 = vmatpush3.msra.mxu1 %v2212_v31 }
  0xa1   : > { %2770 = vmatprep.subr.mxu0 %v2211_v33  ;;  %2751 = vmatmul.mubr.msk.f32.gmra.mxu1 %vm243_vm0, %v2172_v34 }
  0xa2   : > { %2802 = vmatprep.subr.mxu1 %v2211_v33  ;;  %2714 = vmatprep.mubr.msk.f32.mxu0 %vm243_vm0, %v3323_v13 }
  0xa3   : > { %2771 = vmatpush3.msra.mxu0 %v2211_v33  ;;  %2814 = vmatpush3.msra.mxu1 %v2211_v33 }
  0xa4   : > { %2715 = vmatmul.mubr.msk.f32.gmra.mxu0 %vm243_vm0, %v2142_v35  ;;  %2772 = vmatprep.subr.mxu0 %v2210_v36 }
  0xa5   : > { %2803 = vmatprep.subr.mxu1 %v2210_v36  ;;  %2753 = vmatprep.mubr.msk.f32.mxu1 %vm243_vm0, %v2173_v37 }
  0xa6   : > { %2773 = vmatpush3.msra.mxu0 %v2210_v36  ;;  %2815 = vmatpush3.msra.mxu1 %v2210_v36 }
  0xa7   : > { %2774 = vmatprep.subr.mxu0 %v2209_v38  ;;  %2754 = vmatmul.mubr.msk.f32.gmra.mxu1 %vm243_vm0, %v2174_v39 }
  0xa8   : > { %2804 = vmatprep.subr.mxu1 %v2209_v38  ;;  %2775 = vmatpush3.msra.mxu0 %v2209_v38 }
  0xa9   : > { %2816 = vmatpush3.msra.mxu1 %v2209_v38  ;;  %2776 = vmatprep.subr.mxu0 %v2208_v40 }
  0xaa   : > { %2805 = vmatprep.subr.mxu1 %v2208_v40  ;;  %2777 = vmatpush3.msra.mxu0 %v2208_v40 }
  0xab   : > { %2817 = vmatpush3.msra.mxu1 %v2208_v40  ;;  %2778 = vmatprep.subr.mxu0 %v2207_v41 }
  0xac   : > { %2806 = vmatprep.subr.mxu1 %v2207_v41  ;;  %2779 = vmatpush3.msra.mxu0 %v2207_v41 }
  0xad   : > { %2818 = vmatpush3.msra.mxu1 %v2207_v41  ;;  %2780 = vmatprep.mubr.msk.f32.mxu0 %vm243_vm0, %v2197_v42 }
  0xae   : > { %2789 = vmatprep.mubr.msk.f32.mxu1 %vm243_vm0, %v2203_v43  ;;  %2781 = vmatmul.mubr.msk.f32.vlgmr.msra.gmra.mxu0 %vm243_vm0, %v2198_v44 }
  0xaf   : > { %2790 = vmatmul.mubr.msk.f32.vlgmr.msra.gmra.mxu1 %vm243_vm0, %v2204_v45  ;;  %2783 = vmatprep.mubr.msk.f32.mxu0 %vm243_vm0, %v2199_v46 }
  0xb0   : > { %2792 = vmatprep.mubr.msk.f32.mxu1 %vm243_vm0, %v2205_v47 }
  0xb2   : > { %2784 = vmatmul.mubr.msk.f32.gmra.mxu0 %vm243_vm0, %v2200_v48 }
  0xb3   : > { %2793 = vmatmul.mubr.msk.f32.gmra.mxu1 %vm243_vm0, %v2206_v49  ;;  %2786 = vmatprep.mubr.msk.f32.mxu0 %vm243_vm0, %v2201_v50 }
  0xb6   : > { %2787 = vmatmul.mubr.msk.f32.gmra.mxu0 %vm243_vm0, %v2202_v51 }
  0xe6   : > { %v2470_v52 = vpop.f32.mrf.mxu0 }
  0xe7   : > { %v2509_v53 = vpop.f32.mrf.mxu1 }
  0xe8   : > { %v3440_v54 = vadd.f32 %v2509_v53, %v2470_v52  ;;  %v340_v55 = vpop.f32.mrf.mxu0 }
  0xe9   : > { %v485_v56 = vpop.f32.mrf.mxu1 }
  0xea   : > { %v3442_v57 = vadd.f32 %v485_v56, %v340_v55 }
  0xef   : > { %v2473_v58 = vpop.f32.mrf.mxu0 }
  0xf0   : > { %v2512_v59 = vpop.f32.mrf.mxu1 }
  0xf1   : > { %v3444_v60 = vadd.f32 %v2512_v59, %v2473_v58  ;;  %v350_v61 = vpop.f32.mrf.mxu0 }
  0xf2   : > { %v495_v62 = vpop.f32.mrf.mxu1 }
  0xf3   : > { %v3446_v63 = vadd.f32 %v495_v62, %v350_v61 }
  0xf5   : > { %v2476_v0 = vpop.f32.mrf.mxu0 }
  0xf6   : > { %v2515_v1 = vpop.f32.mrf.mxu1 }
  0xf7   : > { %v3448_v2 = vadd.f32 %v2515_v1, %v2476_v0  ;;  %v360_v3 = vpop.f32.mrf.mxu0 }
  0xf8   : > { %v505_v4 = vpop.f32.mrf.mxu1 }
  0xf9   : > { %v3450_v5 = vadd.f32 %v505_v4, %v360_v3 }
  0xfb   : > { %v2479_v6 = vpop.f32.mrf.mxu0 }
  0xfc   : > { %v2518_v7 = vpop.f32.mrf.mxu1 }
  0xfd   : > { %v370_v8 = vpop.f32.mrf.mxu0  ;;  %v521_v4 = vadd.f32 %v2518_v7, %v2479_v6 }
  0xfe   : > { %v515_v9 = vpop.f32.mrf.mxu1 }
 0x101   : > { %v3452_v10 = vpop.f32.mrf.mxu0 }
 0x102   : > { %v2521_v11 = vpop.f32.mrf.mxu1 }
 0x103   : > { %v380_v12 = vpop.f32.mrf.mxu0 }
 0x104   : > { %v525_v13 = vpop.f32.mrf.mxu1 }
 0x108   : > { %v2548_v14 = vpop.f32.mrf.mxu0 }
 0x10a   : > { %v655_v15 = vpop.f32.mrf.mxu0  ;;  %v2587_v16 = vpop.f32.mrf.mxu1 }
 0x10c   : > { %v3454_v18 = vpop.f32.mrf.mxu1 }
 0x10e   : > { %v2551_v17 = vpop.f32.mrf.mxu0 }
 0x110   : > { %v665_v19 = vpop.f32.mrf.mxu0 }
 0x111   : > { %v3456_v20 = vpop.f32.mrf.mxu1  ;;  %v706_v7 = vadd.f32 %v665_v19, %v3446_v63 }
 0x113   : > { %v3460_v22 = vpop.f32.mrf.mxu1 }
 0x114   : > { %v3458_v21 = vpop.f32.mrf.mxu0 }
 0x116   : > { %v3462_v23 = vpop.f32.mrf.mxu0 }
 0x117   : > { %v3464_v24 = vpop.f32.mrf.mxu1 }
 0x119   : > { %v3466_v25 = vpop.f32.mrf.mxu1 }
 0x11a   : > { %v2557_v26 = vpop.f32.mrf.mxu0 }
 0x11c   : > { %v685_v28 = vpop.f32.mrf.mxu0 }
 0x11d   : > { %v2596_v27 = vpop.f32.mrf.mxu1 }
 0x11f   : > { %v865_v29 = vpop.f32.mrf.mxu1 }
 0x120   : > { %v2560_v30 = vpop.f32.mrf.mxu0 }
 0x122   : > { %v695_v32 = vpop.f32.mrf.mxu0 }
 0x123   : > { %v3468_v31 = vpop.f32.mrf.mxu1 }
 0x125   : > { %v875_v33 = vpop.f32.mrf.mxu1 }
 0x12a   : > { %v2626_v34 = vpop.f32.mrf.mxu0 }
 0x12c   : > { %v1015_v35 = vpop.f32.mrf.mxu0  ;;  %v2665_v36 = vpop.f32.mrf.mxu1 }
 0x12e   : > { %v3470_v38 = vpop.f32.mrf.mxu1 }
 0x130   : > { %v2629_v37 = vpop.f32.mrf.mxu0 }
 0x132   : > { %v1025_v39 = vpop.f32.mrf.mxu0 }
 0x133   : > { %v3472_v40 = vpop.f32.mrf.mxu1 }
 0x135   : > { %v3476_v42 = vpop.f32.mrf.mxu1 }
 0x136   : > { %v3474_v41 = vpop.f32.mrf.mxu0  ;;  %3601 = vst [vmem:[#allocation2_spill] sm:$0xff] %v3476_v42 }
 0x138   : > { %v3478_v43 = vpop.f32.mrf.mxu0 }
 0x139   : > { %3602 = vst [vmem:[#allocation3_spill] sm:$0xff] %v3478_v43  ;;  %v3480_v44 = vpop.f32.mrf.mxu1 }
 0x13a   : > { %3603 = vst [vmem:[#allocation4_spill] sm:$0xff] %v3480_v44 }
 0x13b   : > { %v3482_v45 = vpop.f32.mrf.mxu1 }
 0x13c   : > { %3604 = vst [vmem:[#allocation5_spill] sm:$0xff] %v3482_v45  ;;  %v2635_v46 = vpop.f32.mrf.mxu0 }
 0x13e   : > { %v1045_v48 = vpop.f32.mrf.mxu0 }
 0x13f   : > { %v2674_v47 = vpop.f32.mrf.mxu1 }
 0x141   : > { %v1225_v49 = vpop.f32.mrf.mxu1 }
 0x142   : > { %v2638_v50 = vpop.f32.mrf.mxu0 }
 0x144   : > { %v1055_v52 = vpop.f32.mrf.mxu0 }
 0x145   : > { %v3484_v51 = vpop.f32.mrf.mxu1 }
 0x146   : > { %3605 = vst [vmem:[#allocation6_spill] sm:$0xff] %v3484_v51  ;;  %v705_v51 = vadd.f32 %v2548_v14, %v3440_v54 }
 0x147   : > { %v3486_v53 = vpop.f32.mrf.mxu1 }
 0x148   : > { %3606 = vst [vmem:[#allocation7_spill] sm:$0xff] %v3486_v53  ;;  %v516_v53 = vadd.f32 %v515_v9, %v370_v8  ;;  %v885_v6 = vadd.f32 %v2587_v16, %v705_v51 }
 0x14c   : > { %v2704_v55 = vpop.f32.mrf.mxu0 }
 0x14e   : > { %v1375_v56 = vpop.f32.mrf.mxu0  ;;  %v3488_v58 = vpop.f32.mrf.mxu1 }
 0x14f   : > { %3607 = vst [vmem:[#allocation8_spill] sm:$0xff] %v3488_v58  ;;  %v711_v58 = vadd.f32 %v2557_v26, %v521_v4  ;;  %v1065_v26 = vadd.f32 %v2626_v34, %v885_v6 }
 0x150   : > { %v3490_v61 = vpop.f32.mrf.mxu1 }
 0x151   : > { %3608 = vst [vmem:[#allocation9_spill] sm:$0xff] %v3490_v61  ;;  %v704_v61 = vadd.f32 %v655_v15, %v3442_v57  ;;  %v1245_v19 = vadd.f32 %v2665_v36, %v1065_v26 }
 0x152   : > { %v2707_v59 = vpop.f32.mrf.mxu0 }
 0x153   : > { %v884_v54 = vadd.f32 %v3454_v18, %v704_v61  ;;  %v1425_v34 = vadd.f32 %v2704_v55, %v1245_v19 }
 0x154   : > { %v3492_v62 = vpop.f32.mrf.mxu0 }
 0x155   : > { %3609 = vst [vmem:[#allocation10_spill] sm:$0xff] %v3492_v62  ;;  %v3494_v0 = vpop.f32.mrf.mxu1  ;;  %v710_v62 = vadd.f32 %v685_v28, %v516_v53 }
 0x156   : > { %3610 = vst [vmem:[#allocation11_spill] sm:$0xff] %v3494_v0  ;;  %v531_v0 = vadd.f32 %v2521_v11, %v3452_v10  ;;  %v709_v10 = vadd.f32 %v3458_v21, %v3448_v2  ;;  %v3619_v51 = vld [vmem:[#allocation8_spill] sm:$0xff] }
 0x157   : > { %v3498_v3 = vpop.f32.mrf.mxu1  ;;  %v890_v14 = vadd.f32 %v865_v29, %v710_v62  ;;  %v3534_v62 = vld [vmem:[%s3599_s2] ss:$0 sm:$0xff] }
 0x158   : > { %v3496_v1 = vpop.f32.mrf.mxu0  ;;  %3612 = vst [vmem:[#allocation13_spill] sm:$0xff] %v3498_v3  ;;  %v707_v3 = vadd.f32 %v2551_v17, %v3444_v60  ;;  %v713_v8 = vadd.f32 %v2560_v30, %v531_v0  ;;  %v886_v60 = vadd.f32 %v3460_v22, %v706_v7  ;;  %v3623_v7 = vld [vmem:[#allocation5_spill] sm:$0xff] }
 0x159   : > { %3611 = vst [vmem:[#allocation12_spill] sm:$0xff] %v3496_v1  ;;  %v526_v1 = vadd.f32 %v525_v13, %v380_v12  ;;  %v1064_v12 = vadd.f32 %v1015_v35, %v884_v54  ;;  %v1070_v63 = vadd.f32 %v1045_v48, %v890_v14  ;;  %v708_v13 = vadd.f32 %v3462_v23, %v3450_v5 }
 0x15a   : > { %v3500_v45 = vpop.f32.mrf.mxu0  ;;  %v887_v15 = vadd.f32 %v3456_v20, %v707_v3  ;;  %v893_v16 = vadd.f32 %v3468_v31, %v713_v8  ;;  %v889_v20 = vadd.f32 %v3464_v24, %v709_v10  ;;  %v3616_v24 = vld [vmem:[#allocation3_spill] sm:$0xff] }
 0x15b   : > { %3613 = vst [vmem:[#allocation14_spill] sm:$0xff] %v3500_v45  ;;  %v3502_v44 = vpop.f32.mrf.mxu1  ;;  %v891_v45 = vadd.f32 %v2596_v27, %v711_v58  ;;  %v712_v9 = vadd.f32 %v695_v32, %v526_v1  ;;  %v1066_v27 = vadd.f32 %v1025_v39, %v886_v60  ;;  %v1244_v22 = vadd.f32 %v3470_v38, %v1064_v12 }
 0x15c   : > { %3614 = vst [vmem:[#allocation15_spill] sm:$0xff] %v3502_v44  ;;  %v1067_v18 = vadd.f32 %v2629_v37, %v887_v15  ;;  %v1073_v30 = vadd.f32 %v2638_v50, %v893_v16  ;;  %v1250_v32 = vadd.f32 %v1225_v49, %v1070_v63  ;;  %v888_v5 = vadd.f32 %v3466_v25, %v708_v13  ;;  %v3618_v50 = vld [vmem:[#allocation7_spill] sm:$0xff]  ;;  %v3621_v53 = vld [vmem:[#allocation10_spill] sm:$0xff] }
 0x15d   : > { %v3505_v43 = vpop.f32.mrf.mxu1  ;;  %v1071_v4 = vadd.f32 %v2635_v46, %v891_v45  ;;  %v892_v17 = vadd.f32 %v875_v33, %v712_v9  ;;  %v1069_v31 = vadd.f32 %v3474_v41, %v889_v20  ;;  %v3615_v33 = vld [vmem:[#allocation2_spill] sm:$0xff]  ;;  %v1424_v37 = vadd.f32 %v1375_v56, %v1244_v22  ;;  %v3624_v9 = vld [vmem:[#allocation11_spill] sm:$0xff] }
 0x15e   : > { %v2713_v42 = vpop.f32.mrf.mxu0  ;;  %v1247_v23 = vadd.f32 %v3472_v40, %v1067_v18  ;;  %v1246_v36 = vadd.f32 %v3615_v33, %v1066_v27  ;;  %v1068_v46 = vadd.f32 %v3616_v24, %v888_v5  ;;  %v1605_v25 = vadd.f32 %v3619_v51, %v1425_v34  ;;  %v3620_v40 = vld [vmem:[#allocation4_spill] sm:$0xff] }
 0x15f   : > { %v1251_v28 = vadd.f32 %v2674_v47, %v1071_v4  ;;  %v1072_v2 = vadd.f32 %v1055_v52, %v892_v17  ;;  %v3617_v47 = vld [vmem:[#allocation6_spill] sm:$0xff]  ;;  %v1249_v41 = vadd.f32 %v3620_v40, %v1069_v31  ;;  %v3626_v63 = vld [vmem:[#allocation13_spill] sm:$0xff] }
 0x160   : > { %v1405_v57 = vpop.f32.mrf.mxu0  ;;  %v1253_v48 = vadd.f32 %v3617_v47, %v1073_v30  ;;  %v1427_v49 = vadd.f32 %v2707_v59, %v1247_v23  ;;  %v1426_v55 = vadd.f32 %v3621_v53, %v1246_v36  ;;  %v3622_v59 = vld [vmem:[#allocation9_spill] sm:$0xff]  ;;  %v1248_v8 = vadd.f32 %v3623_v7, %v1068_v46  ;;  %v3625_v14 = vld [vmem:[#allocation12_spill] sm:$0xff] }
 0x161   : > { %v2752_v44 = vpop.f32.mrf.mxu1  ;;  %v1431_v35 = vadd.f32 %v2713_v42, %v1251_v28  ;;  %v1430_v39 = vadd.f32 %v1405_v57, %v1250_v32  ;;  %v1252_v38 = vadd.f32 %v3618_v50, %v1072_v2  ;;  %v1604_v1 = vadd.f32 %v3622_v59, %v1424_v37 }
 0x162   : > { %v1607_v54 = vadd.f32 %v3624_v9, %v1427_v49  ;;  %v1429_v26 = vadd.f32 %v3625_v14, %v1249_v41  ;;  %v3627_v13 = vld [vmem:[#allocation14_spill] sm:$0xff] }
 0x163   : > { %v1585_v11 = vpop.f32.mrf.mxu1  ;;  %v1611_v52 = vadd.f32 %v2752_v44, %v1431_v35  ;;  %v1428_v16 = vadd.f32 %v3627_v13, %v1248_v8  ;;  %v3628_v2 = vld [vmem:[#allocation15_spill] sm:$0xff] }
 0x164   : > { %v2716_v29 = vpop.f32.mrf.mxu0  ;;  %v1610_v3 = vadd.f32 %v1585_v11, %v1430_v39  ;;  %v1606_v11 = vadd.f32 %v3626_v63, %v1426_v55  ;;  %v1609_v22 = vadd.f32 %v3628_v2, %v1429_v26 }
 0x165   : > { %v1433_v56 = vadd.f32 %v2716_v29, %v1253_v48 }
 0x166   : > { %v1415_v45 = vpop.f32.mrf.mxu0 }
 0x167   : > { %v2755_v21 = vpop.f32.mrf.mxu1  ;;  %v1432_v58 = vadd.f32 %v1415_v45, %v1252_v38  ;;  %v1608_v45 = vadd.f32 %v3505_v43, %v1428_v16 }
 0x168   : > { %v1613_v17 = vadd.f32 %v2755_v21, %v1433_v56 }
 0x169   : > { %v1595_v42 = vpop.f32.mrf.mxu1 }
 0x16a   : > { %v1612_v18 = vadd.f32 %v1595_v42, %v1432_v58 }
 0x16e   : > { %v2782_v61 = vpop.f32.mrf.mxu0 }
 0x16f   : > { %v2791_v0 = vpop.f32.mrf.mxu1  ;;  %v1785_v44 = vadd.f32 %v2782_v61, %v1605_v25 }
 0x170   : > { %v1791_v6 = vadd.f32 %v2791_v0, %v1611_v52  ;;  %v1735_v4 = vpop.f32.mrf.mxu0 }
 0x171   : > { %v1765_v57 = vpop.f32.mrf.mxu1  ;;  %v1802_v15 = vadd.f32 %v3534_v62, %v1785_v44  ;;  %v1784_v60 = vadd.f32 %v1735_v4, %v1604_v1 }
 0x172   : > { %v1808_v10 = vadd.f32 %v3534_v62, %v1791_v6  ;;  %v1790_v12 = vadd.f32 %v1765_v57, %v1610_v3  ;;  %v2785_v19 = vpop.f32.mrf.mxu0 }
 0x173   : > { %v2794_v27 = vpop.f32.mrf.mxu1  ;;  %v1812_v28 = vmax.f32 %v1802_v15, 0.0  ;;  %v1801_v20 = vadd.f32 %v3534_v62, %v1784_v60  ;;  %v1787_v21 = vadd.f32 %v2785_v19, %v1607_v54 }
 0x174   : > { %v1818_v29 = vmax.f32 %v1808_v10, 0.0  ;;  %v1807_v30 = vadd.f32 %v3534_v62, %v1790_v12  ;;  %v1793_v32 = vadd.f32 %v2794_v27, %v1613_v17  ;;  %v1745_v34 = vpop.f32.mrf.mxu0 }
 0x175   : > { %v1775_v35 = vpop.f32.mrf.mxu1  ;;  %2230 = vst.msk [vmem:[%s3548_s16 + $0x6] sm:$0xfc] %vm1823_vm1, %v1812_v28  ;;  %v1811_v5 = vmax.f32 %v1801_v20, 0.0  ;;  %v1786_v31 = vadd.f32 %v1745_v34, %v1606_v11  ;;  %v1804_v36 = vadd.f32 %v3534_v62, %v1787_v21 }
 0x176   : > { %2238 = vst.msk [vmem:[%s3548_s16 + $0x2e] sm:$0x3] %vm1825_vm2, %v1818_v29  ;;  %v1817_v23 = vmax.f32 %v1807_v30, 0.0  ;;  %v1792_v33 = vadd.f32 %v1775_v35, %v1612_v18  ;;  %v1810_v37 = vadd.f32 %v3534_v62, %v1793_v32  ;;  %v2788_v39 = vpop.f32.mrf.mxu0 }
 0x177   : > { %2239 = vst.msk [vmem:[%s3548_s16 + $0x2c] sm:$0xf0] %vm1828_vm3, %v1818_v29  ;;  %v1803_v24 = vadd.f32 %v3534_v62, %v1786_v31  ;;  %v1789_v47 = vadd.f32 %v2788_v39, %v1609_v22  ;;  %v1814_v48 = vmax.f32 %v1804_v36, 0.0 }
 0x178   : > { %1821 = vst.msk [vmem:[%s3548_s16] sm:$0xff] %vm243_vm0, %v1811_v5  ;;  %v1809_v46 = vadd.f32 %v3534_v62, %v1792_v33  ;;  %v1820_v50 = vmax.f32 %v1810_v37, 0.0  ;;  %v1755_v38 = vpop.f32.mrf.mxu0 }
 0x179   : > { %2237 = vst.msk [vmem:[%s3548_s16 + $0x26] sm:$0xfc] %vm1823_vm1, %v1817_v23  ;;  %v1813_v49 = vmax.f32 %v1803_v24, 0.0  ;;  %v1806_v42 = vadd.f32 %v3534_v62, %v1789_v47  ;;  %v1788_v51 = vadd.f32 %v1755_v38, %v1608_v45 }
 0x17a   : > { %v1819_v43 = vmax.f32 %v1809_v46, 0.0  ;;  %2233 = vst.msk [vmem:[%s3548_s16 + $0x14] sm:$0xf] %vm1830_vm4, %v1814_v48 }
 0x17b   : > { %2234 = vst.msk [vmem:[%s3548_s16 + $0x12] sm:$0xc0] %vm1833_vm5, %v1814_v48  ;;  %v1816_v25 = vmax.f32 %v1806_v42, 0.0  ;;  %v1805_v52 = vadd.f32 %v3534_v62, %v1788_v51 }
 0x17c   : > { %2242 = vst.msk [vmem:[%s3548_s16 + $0x3a] sm:$0x3f] %vm1835_vm6, %v1820_v50 }
 0x17d   : > { %2231 = vst.msk [vmem:[%s3548_s16 + $0xe] sm:$0x3] %vm1825_vm2, %v1813_v49  ;;  %v1815_v40 = vmax.f32 %v1805_v52, 0.0 }
 0x17e   : > { %2232 = vst.msk [vmem:[%s3548_s16 + $0xc] sm:$0xf0] %vm1828_vm3, %v1813_v49 }
 0x17f   : > { %2240 = vst.msk [vmem:[%s3548_s16 + $0x34] sm:$0xf] %vm1830_vm4, %v1819_v43 }
 0x180   : > { %2241 = vst.msk [vmem:[%s3548_s16 + $0x32] sm:$0xc0] %vm1833_vm5, %v1819_v43 }
 0x181   : > { %2236 = vst.msk [vmem:[%s3548_s16 + $0x20] sm:$0xff] %vm243_vm0, %v1816_v25 }
 0x182   : > { %2235 = vst.msk [vmem:[%s3548_s16 + $0x1a] sm:$0x3f] %vm1835_vm6, %v1815_v40 }
 0x183 PF: > { %s13_s14 = sadd.s32 1, %s2866_s14   ;;  %s3629_s12 = smov %s2862_s13 }
 0x184   : > { %p10_p5 = scmp.ge.s32.totalorder %s13_s14, 4   ;;  %s3630_s13 = smov %s3632_s15 }
 0x186   :  { %12 = sbr.rel (!%p10_p5) target bundleno = 2 (0x2), region = 86 }

// kernel: inception_a.6
= control target key start
LH: loop header
LB: loop body
LE: loop exit
PB: predicated region body
PF: predicated region fallthrough
CT: control target
= control target key end

     0   :  { %s7264_s12 = smov 0   ;;  %s7266_s13 = smov 0   ;;  %s8961_s0 = inlined_call_operand.vmem [shape: f32[2,156,48], index: 0, kind: input, shape index: {}]   ;;  %s8962_s1 = inlined_call_operand.vmem [shape: f32[25,48,64], index: 1, kind: input, shape index: {}]   ;;  %s8963_s2 = inlined_call_operand.vmem [shape: f32[1,64], index: 2, kind: input, shape index: {}]   ;;  %s8964_s3 = inlined_call_operand.vmem [shape: f32[2,8,8,64], index: 3, kind: output, shape index: {}]  }
   0x1   :  { %s7268_s14 = smov 0  }
   0x2 LB: > { %s25_s15 = sadd.s32 1, %s7238_s13  ;;  %p5232_p0 = scmp.ge.s32.totalorder %s7242_s14, 1  ;;  %s7242_s14 = sphi %s7268_s14, %s13_s14   ;;  %s7238_s13 = sphi %s7266_s13, %s9042_s13   ;;  %s7234_s12 = sphi %s7264_s12, %s9041_s12  }
   0x3   : > { %p27_p1 = scmp.ge.s32.totalorder %s25_s15, 2  ;;  %p151_p2 = scmp.lt.s32.totalorder %s7242_s14, 3 }
   0x5   : > { %s9044_s15 = smov (%p27_p1, %s25_s15), 0  ;;  %p152_p3 = pnand %p5232_p0, %p151_p2 }
   0x7   : > { %155 = sbr.rel (%p152_p3) target bundleno = 531 (0x213), region = 32 }
   0xc   : > { %v5253_v0 = vld [vmem:[%s8962_s1 + $0x58] sm:$0xff]  ;;  %v5252_v1 = vld [vmem:[%s8962_s1 + $0x50] sm:$0xff]  ;;  %p179_p4 = scmp.lt.s32.totalorder %s7234_s12, 1  ;;  %v5251_v2 = vld [vmem:[%s8962_s1 + $0x48] sm:$0xff]  ;;  %vm235_vm0 = vcmask 392192   ;;  %vm5054_vm1 = vcmask 523268  }
   0xd   : > { %7183 = vmatprep.subr.mxu1 %v5253_v0  ;;  %6433 = vmatprep.subr.mxu0 %v5253_v0  ;;  %v5250_v3 = vld [vmem:[%s8962_s1 + $0x40] sm:$0xff]  ;;  %v5249_v4 = vld [vmem:[%s8962_s1 + $0x38] sm:$0xff]  ;;  %v5248_v5 = vld [vmem:[%s8962_s1 + $0x30] sm:$0xff]  ;;  %vm5051_vm2 = vcmask 523264   ;;  %vm5056_vm3 = vcmask 519168  }
   0xe   : > { %7189 = vmatpush3.msra.mxu1 %v5253_v0  ;;  %6434 = vmatpush3.msra.mxu0 %v5253_v0  ;;  %s9046_s12 = smov (!%p179_p4, %s7234_s12), 1  ;;  %v213_v9 = vld [vmem:[%s8962_s1 + $0x28] sm:$0xff]  ;;  %v212_v12 = vld [vmem:[%s8962_s1 + $0x20] sm:$0xff]  ;;  %v211_v17 = vld [vmem:[%s8962_s1 + $0x18] sm:$0xff] }
   0xf   : > { %7184 = vmatprep.subr.mxu1 %v5252_v1  ;;  %6435 = vmatprep.subr.mxu0 %v5252_v1  ;;  %s7195_s24 = smul.u32 160, %s9046_s12  ;;  %v5295_v11 = vld [vmem:[%s8962_s1 + $0x88] sm:$0xff]  ;;  %v5294_v14 = vld [vmem:[%s8962_s1 + $0x80] sm:$0xff]  ;;  %v5293_v19 = vld [vmem:[%s8962_s1 + $0x78] sm:$0xff]  ;;  %s5982_s8 = sshll.u32 %s9046_s12, 6 }
  0x10   : > { %7190 = vmatpush3.msra.mxu1 %v5252_v1  ;;  %6436 = vmatpush3.msra.mxu0 %v5252_v1  ;;  %v210_v20 = vld [vmem:[%s8962_s1 + $0x10] sm:$0xff]  ;;  %v209_v25 = vld [vmem:[%s8962_s1 + $0x8] sm:$0xff]  ;;  %v208_v28 = vld [vmem:[%s8962_s1] sm:$0xff]  ;;  %s8897_s10 = scalar_lea.vmem %s8964_s3, %s5982_s8 }
  0x11   : > { %7185 = vmatprep.subr.mxu1 %v5251_v2  ;;  %6437 = vmatprep.subr.mxu0 %v5251_v2  ;;  %s7303_s29 = scalar_lea.vmem %s8961_s0, %s7195_s24  ;;  %v5292_v22 = vld [vmem:[%s8962_s1 + $0x70] sm:$0xff]  ;;  %v5291_v27 = vld [vmem:[%s8962_s1 + $0x68] sm:$0xff]  ;;  %v5290_v30 = vld [vmem:[%s8962_s1 + $0x60] sm:$0xff] }
  0x12   : > { %7191 = vmatpush3.msra.mxu1 %v5251_v2  ;;  %6438 = vmatpush3.msra.mxu0 %v5251_v2  ;;  %v7309_v6 = vld [vmem:[%s7303_s29 + $0x31] sm:$0xff]  ;;  %v5236_v7 = vld [vmem:[%s7303_s29 + $0x1] sm:$0xff]  ;;  %v7313_v8 = vld [vmem:[%s7303_s29 + $0x39] sm:$0xff] }
  0x13   : > { %7186 = vmatprep.subr.mxu1 %v5250_v3  ;;  %6439 = vmatprep.subr.mxu0 %v5250_v3  ;;  %v5237_v10 = vld [vmem:[%s7303_s29 + $0x9] sm:$0xff]  ;;  %v7331_v13 = vld [vmem:[%s7303_s29 + $0x41] sm:$0xff]  ;;  %v5238_v15 = vld [vmem:[%s7303_s29 + $0x11] sm:$0xff] }
  0x14   : > { %7192 = vmatpush3.msra.mxu1 %v5250_v3  ;;  %6440 = vmatpush3.msra.mxu0 %v5250_v3  ;;  %v7339_v16 = vld [vmem:[%s7303_s29 + $0x49] sm:$0xff]  ;;  %v7347_v18 = vld [vmem:[%s7303_s29 + $0x19] sm:$0xff]  ;;  %v7359_v21 = vld [vmem:[%s7303_s29 + $0x51] sm:$0xff] }
  0x15   : > { %7187 = vmatprep.subr.mxu1 %v5249_v4  ;;  %6441 = vmatprep.subr.mxu0 %v5249_v4  ;;  %v7367_v23 = vld [vmem:[%s7303_s29 + $0x21] sm:$0xff]  ;;  %v7370_v24 = vld [vmem:[%s7303_s29 + $0x59] sm:$0xff]  ;;  %v7378_v26 = vld [vmem:[%s7303_s29 + $0x29] sm:$0xff] }
  0x16   : > { %7193 = vmatpush3.msra.mxu1 %v5249_v4  ;;  %6442 = vmatpush3.msra.mxu0 %v5249_v4  ;;  %v196_v29 = vld [vmem:[%s7303_s29] sm:$0xff]  ;;  %v197_v31 = vld [vmem:[%s7303_s29 + $0x8] sm:$0xff]  ;;  %v5325_v33 = vld [vmem:[%s8962_s1 + $0xb8] sm:$0xff] }
  0x17   : > { %7188 = vmatprep.subr.mxu1 %v5248_v5  ;;  %6443 = vmatprep.subr.mxu0 %v5248_v5  ;;  %v5278_v32 = vld [vmem:[%s7303_s29 + $0x2] sm:$0xff]  ;;  %v5279_v34 = vld [vmem:[%s7303_s29 + $0xa] sm:$0xff]  ;;  %v7412_v37 = vld [vmem:[%s7303_s29 + $0x18] sm:$0xff] }
  0x18   : > { %7194 = vmatpush3.msra.mxu1 %v5248_v5  ;;  %6454 = vmatprep.mubr.msk.f32.mxu1 %vm235_vm0, %v7309_v6  ;;  %v5355_v35 = vld [vmem:[%s8962_s1 + $0xe8] sm:$0xff]  ;;  %v7408_v36 = vld [vmem:[%s7303_s29 + $0x10] sm:$0xff]  ;;  %v7422_v40 = vld [vmem:[%s7303_s29 + $0x1a] sm:$0xff] }
  0x19   : > { %6444 = vmatpush3.msra.mxu0 %v5248_v5  ;;  %6445 = vmatprep.mubr.msk.f32.mxu0 %vm235_vm0, %v5236_v7  ;;  %v5280_v38 = vld [vmem:[%s7303_s29 + $0x12] sm:$0xff]  ;;  %v5354_v41 = vld [vmem:[%s8962_s1 + $0xe0] sm:$0xff]  ;;  %v7434_v43 = vld [vmem:[%s7303_s29 + $0x28] sm:$0xff] }
  0x1a   : > { %6455 = vmatmul.mubr.msk.f32.vlgmr.msra.gmra.mxu1 %vm235_vm0, %v7313_v8  ;;  %6463 = vmatprep.subr.mxu1 %v213_v9  ;;  %v5324_v39 = vld [vmem:[%s8962_s1 + $0xb0] sm:$0xff]  ;;  %v7430_v42 = vld [vmem:[%s7303_s29 + $0x20] sm:$0xff]  ;;  %v5323_v45 = vld [vmem:[%s8962_s1 + $0xa8] sm:$0xff] }
  0x1b   : > { %6446 = vmatmul.mubr.msk.f32.vlgmr.msra.gmra.mxu0 %vm235_vm0, %v5237_v10  ;;  %6464 = vmatpush3.msra.mxu1 %v213_v9  ;;  %v7439_v44 = vld [vmem:[%s7303_s29 + $0x22] sm:$0xff]  ;;  %v7447_v46 = vld [vmem:[%s7303_s29 + $0x2a] sm:$0xff]  ;;  %v5353_v47 = vld [vmem:[%s8962_s1 + $0xd8] sm:$0xff] }
  0x1c   : > { %6493 = vmatprep.subr.mxu0 %v5295_v11  ;;  %6465 = vmatprep.subr.mxu1 %v212_v12  ;;  %v7455_v48 = vld [vmem:[%s7303_s29 + $0x30] sm:$0xff]  ;;  %v7460_v49 = vld [vmem:[%s7303_s29 + $0x38] sm:$0xff]  ;;  %v5322_v51 = vld [vmem:[%s8962_s1 + $0xa0] sm:$0xff] }
  0x1d   : > { %6494 = vmatpush3.msra.mxu0 %v5295_v11  ;;  %6457 = vmatprep.mubr.msk.f32.mxu1 %vm235_vm0, %v7331_v13  ;;  %v7465_v50 = vld [vmem:[%s7303_s29 + $0x32] sm:$0xff]  ;;  %v7473_v52 = vld [vmem:[%s7303_s29 + $0x3a] sm:$0xff]  ;;  %v7486_v55 = vld [vmem:[%s7303_s29 + $0x48] sm:$0xff] }
  0x1e   : > { %6466 = vmatpush3.msra.mxu1 %v212_v12  ;;  %6495 = vmatprep.subr.mxu0 %v5294_v14  ;;  %v5352_v53 = vld [vmem:[%s8962_s1 + $0xd0] sm:$0xff]  ;;  %v7481_v54 = vld [vmem:[%s7303_s29 + $0x40] sm:$0xff]  ;;  %v5321_v57 = vld [vmem:[%s8962_s1 + $0x98] sm:$0xff] }
  0x1f   : > { %6448 = vmatprep.mubr.msk.f32.mxu0 %vm235_vm0, %v5238_v15  ;;  %6458 = vmatmul.mubr.msk.f32.gmra.mxu1 %vm235_vm0, %v7339_v16  ;;  %v7491_v56 = vld [vmem:[%s7303_s29 + $0x42] sm:$0xff]  ;;  %v7499_v58 = vld [vmem:[%s7303_s29 + $0x4a] sm:$0xff]  ;;  %v7512_v61 = vld [vmem:[%s7303_s29 + $0x58] sm:$0xff] }
  0x20   : > { %6467 = vmatprep.subr.mxu1 %v211_v17  ;;  %6496 = vmatpush3.msra.mxu0 %v5294_v14  ;;  %v5351_v59 = vld [vmem:[%s8962_s1 + $0xc8] sm:$0xff]  ;;  %v7507_v60 = vld [vmem:[%s7303_s29 + $0x50] sm:$0xff]  ;;  %v7525_v0 = vld [vmem:[%s7303_s29 + $0x5a] sm:$0xff] }
  0x21   : > { %6449 = vmatmul.mubr.msk.f32.gmra.mxu0 %vm235_vm0, %v7347_v18  ;;  %6468 = vmatpush3.msra.mxu1 %v211_v17  ;;  %v7517_v62 = vld [vmem:[%s7303_s29 + $0x52] sm:$0xff]  ;;  %v5350_v1 = vld [vmem:[%s8962_s1 + $0xc0] sm:$0xff]  ;;  %v5415_v9 = vld [vmem:[%s8962_s1 + $0x148] sm:$0xff] }
  0x22   : > { %6497 = vmatprep.subr.mxu0 %v5293_v19  ;;  %6469 = vmatprep.subr.mxu1 %v210_v20  ;;  %v5320_v63 = vld [vmem:[%s8962_s1 + $0x90] sm:$0xff]  ;;  %v5308_v2 = vld [vmem:[%s7303_s29 + $0x3] sm:$0xff]  ;;  %v5385_v5 = vld [vmem:[%s8962_s1 + $0x118] sm:$0xff] }
  0x23   : > { %6498 = vmatpush3.msra.mxu0 %v5293_v19  ;;  %6460 = vmatprep.mubr.msk.f32.mxu1 %vm235_vm0, %v7359_v21  ;;  %v5309_v3 = vld [vmem:[%s7303_s29 + $0xb] sm:$0xff]  ;;  %v5310_v10 = vld [vmem:[%s7303_s29 + $0x13] sm:$0xff]  ;;  %v7553_v11 = vld [vmem:[%s7303_s29 + $0x1b] sm:$0xff] }
  0x24   : > { %6470 = vmatpush3.msra.mxu1 %v210_v20  ;;  %6499 = vmatprep.subr.mxu0 %v5292_v22  ;;  %v5338_v4 = vld [vmem:[%s7303_s29 + $0x4] sm:$0xff]  ;;  %v7544_v7 = vld [vmem:[%s7303_s29 + $0xc] sm:$0xff]  ;;  %v7558_v12 = vld [vmem:[%s7303_s29 + $0x14] sm:$0xff] }
  0x25   : > { %6451 = vmatprep.mubr.msk.f32.mxu0 %vm235_vm0, %v7367_v23  ;;  %6461 = vmatmul.mubr.msk.f32.gmra.mxu1 %vm235_vm0, %v7370_v24  ;;  %v5384_v14 = vld [vmem:[%s8962_s1 + $0x110] sm:$0xff]  ;;  %v7565_v15 = vld [vmem:[%s7303_s29 + $0x1c] sm:$0xff] }
  0x26   : > { %6471 = vmatprep.subr.mxu1 %v209_v25  ;;  %6500 = vmatpush3.msra.mxu0 %v5292_v22  ;;  %v5414_v17 = vld [vmem:[%s8962_s1 + $0x140] sm:$0xff]  ;;  %v7578_v20 = vld [vmem:[%s7303_s29 + $0x2b] sm:$0xff] }
  0x27   : > { %6452 = vmatmul.mubr.msk.f32.gmra.mxu0 %vm235_vm0, %v7378_v26  ;;  %6472 = vmatpush3.msra.mxu1 %v209_v25  ;;  %v7573_v19 = vld [vmem:[%s7303_s29 + $0x23] sm:$0xff] }
  0x28   : > { %6501 = vmatprep.subr.mxu0 %v5291_v27  ;;  %6473 = vmatprep.subr.mxu1 %v208_v28  ;;  %v7583_v22 = vld [vmem:[%s7303_s29 + $0x24] sm:$0xff] }
  0x29   : > { %6502 = vmatpush3.msra.mxu0 %v5291_v27  ;;  %6474 = vmatpush3.msra.mxu1 %v208_v28  ;;  %v5383_v25 = vld [vmem:[%s8962_s1 + $0x108] sm:$0xff]  ;;  %v5413_v28 = vld [vmem:[%s8962_s1 + $0x138] sm:$0xff] }
  0x2a   : > { %6475 = vmatprep.mubr.msk.f32.mxu1 %vm235_vm0, %v196_v29  ;;  %6503 = vmatprep.subr.mxu0 %v5290_v30  ;;  %v7591_v27 = vld [vmem:[%s7303_s29 + $0x2c] sm:$0xff] }
  0x2b   : > { %6476 = vmatmul.mubr.msk.f32.vlgmr.msra.gmra.mxu1 %vm235_vm0, %v197_v31  ;;  %6504 = vmatpush3.msra.mxu0 %v5290_v30  ;;  %v7599_v29 = vld [vmem:[%s7303_s29 + $0x33] sm:$0xff]  ;;  %v7604_v30 = vld [vmem:[%s7303_s29 + $0x3b] sm:$0xff] }
  0x2c   : > { %6505 = vmatprep.mubr.msk.f32.mxu0 %vm235_vm0, %v5278_v32  ;;  %6523 = vmatprep.subr.mxu1 %v5325_v33  ;;  %v7609_v31 = vld [vmem:[%s7303_s29 + $0x34] sm:$0xff]  ;;  %v5382_v32 = vld [vmem:[%s8962_s1 + $0x100] sm:$0xff] }
  0x2d   : > { %6506 = vmatmul.mubr.msk.f32.vlgmr.msra.gmra.mxu0 %vm235_vm0, %v5279_v34  ;;  %6524 = vmatpush3.msra.mxu1 %v5325_v33  ;;  %v7617_v33 = vld [vmem:[%s7303_s29 + $0x3c] sm:$0xff]  ;;  %v5412_v34 = vld [vmem:[%s8962_s1 + $0x130] sm:$0xff] }
  0x2e   : > { %6553 = vmatprep.subr.mxu0 %v5355_v35  ;;  %6478 = vmatprep.mubr.msk.f32.mxu1 %vm235_vm0, %v7408_v36 }
  0x2f   : > { %6554 = vmatpush3.msra.mxu0 %v5355_v35  ;;  %6479 = vmatmul.mubr.msk.f32.gmra.mxu1 %vm235_vm0, %v7412_v37  ;;  %v7625_v35 = vld [vmem:[%s7303_s29 + $0x43] sm:$0xff] }
  0x30   : > { %6508 = vmatprep.mubr.msk.f32.mxu0 %vm235_vm0, %v5280_v38  ;;  %6525 = vmatprep.subr.mxu1 %v5324_v39  ;;  %v7630_v38 = vld [vmem:[%s7303_s29 + $0x4b] sm:$0xff] }
  0x31   : > { %6509 = vmatmul.mubr.msk.f32.gmra.mxu0 %vm235_vm0, %v7422_v40  ;;  %6526 = vmatpush3.msra.mxu1 %v5324_v39  ;;  %v7635_v39 = vld [vmem:[%s7303_s29 + $0x44] sm:$0xff] }
  0x32   : > { %6555 = vmatprep.subr.mxu0 %v5354_v41  ;;  %6481 = vmatprep.mubr.msk.f32.mxu1 %vm235_vm0, %v7430_v42 }
  0x33   : > { %6556 = vmatpush3.msra.mxu0 %v5354_v41  ;;  %6482 = vmatmul.mubr.msk.f32.gmra.mxu1 %vm235_vm0, %v7434_v43  ;;  %v5381_v41 = vld [vmem:[%s8962_s1 + $0xf8] sm:$0xff] }
  0x34   : > { %6511 = vmatprep.mubr.msk.f32.mxu0 %vm235_vm0, %v7439_v44  ;;  %6527 = vmatprep.subr.mxu1 %v5323_v45 }
  0x35   : > { %6512 = vmatmul.mubr.msk.f32.gmra.mxu0 %vm235_vm0, %v7447_v46  ;;  %6528 = vmatpush3.msra.mxu1 %v5323_v45  ;;  %v7643_v45 = vld [vmem:[%s7303_s29 + $0x4c] sm:$0xff] }
  0x36   : > { %6557 = vmatprep.subr.mxu0 %v5353_v47  ;;  %6484 = vmatprep.mubr.msk.f32.mxu1 %vm235_vm0, %v7455_v48 }
  0x37   : > { %6558 = vmatpush3.msra.mxu0 %v5353_v47  ;;  %6485 = vmatmul.mubr.msk.f32.gmra.mxu1 %vm235_vm0, %v7460_v49  ;;  %v5411_v47 = vld [vmem:[%s8962_s1 + $0x128] sm:$0xff] }
  0x38   : > { %6514 = vmatprep.mubr.msk.f32.mxu0 %vm235_vm0, %v7465_v50  ;;  %6529 = vmatprep.subr.mxu1 %v5322_v51 }
  0x39   : > { %6515 = vmatmul.mubr.msk.f32.gmra.mxu0 %vm235_vm0, %v7473_v52  ;;  %6530 = vmatpush3.msra.mxu1 %v5322_v51  ;;  %v7651_v51 = vld [vmem:[%s7303_s29 + $0x53] sm:$0xff] }
  0x3a   : > { %6559 = vmatprep.subr.mxu0 %v5352_v53  ;;  %6487 = vmatprep.mubr.msk.f32.mxu1 %vm235_vm0, %v7481_v54 }
  0x3b   : > { %6560 = vmatpush3.msra.mxu0 %v5352_v53  ;;  %6488 = vmatmul.mubr.msk.f32.gmra.mxu1 %vm235_vm0, %v7486_v55  ;;  %v7656_v53 = vld [vmem:[%s7303_s29 + $0x5b] sm:$0xff] }
  0x3c   : > { %6517 = vmatprep.mubr.msk.f32.mxu0 %vm235_vm0, %v7491_v56  ;;  %6531 = vmatprep.subr.mxu1 %v5321_v57 }
  0x3d   : > { %6518 = vmatmul.mubr.msk.f32.gmra.mxu0 %vm235_vm0, %v7499_v58  ;;  %6532 = vmatpush3.msra.mxu1 %v5321_v57  ;;  %v7661_v57 = vld [vmem:[%s7303_s29 + $0x54] sm:$0xff] }
  0x3e   : > { %6561 = vmatprep.subr.mxu0 %v5351_v59  ;;  %6490 = vmatprep.mubr.msk.f32.mxu1 %vm235_vm0, %v7507_v60 }
  0x3f   : > { %6562 = vmatpush3.msra.mxu0 %v5351_v59  ;;  %6491 = vmatmul.mubr.msk.f32.gmra.mxu1 %vm235_vm0, %v7512_v61  ;;  %v5380_v59 = vld [vmem:[%s8962_s1 + $0xf0] sm:$0xff] }
  0x40   : > { %6520 = vmatprep.mubr.msk.f32.mxu0 %vm235_vm0, %v7517_v62  ;;  %6533 = vmatprep.subr.mxu1 %v5320_v63 }
  0x41   : > { %6521 = vmatmul.mubr.msk.f32.gmra.mxu0 %vm235_vm0, %v7525_v0  ;;  %6534 = vmatpush3.msra.mxu1 %v5320_v63  ;;  %v7669_v63 = vld [vmem:[%s7303_s29 + $0x5c] sm:$0xff] }
  0x42   : > { %6563 = vmatprep.subr.mxu0 %v5350_v1  ;;  %6535 = vmatprep.mubr.msk.f32.mxu1 %vm235_vm0, %v5308_v2  ;;  %v5398_v2 = vld [vmem:[%s7303_s29 + $0xd] sm:$0xff] }
  0x43   : > { %6564 = vmatpush3.msra.mxu0 %v5350_v1  ;;  %6536 = vmatmul.mubr.msk.f32.vlgmr.msra.gmra.mxu1 %vm235_vm0, %v5309_v3  ;;  %v5410_v1 = vld [vmem:[%s8962_s1 + $0x120] sm:$0xff]  ;;  %v5445_v3 = vld [vmem:[%s8962_s1 + $0x178] sm:$0xff] }
  0x44   : > { %6565 = vmatprep.mubr.msk.f32.mxu0 %vm235_vm0, %v5338_v4  ;;  %6583 = vmatprep.subr.mxu1 %v5385_v5  ;;  %v5399_v4 = vld [vmem:[%s7303_s29 + $0x15] sm:$0xff] }
  0x45   : > { %6566 = vmatmul.mubr.msk.f32.vlgmr.msra.gmra.mxu0 %vm235_vm0, %v7544_v7  ;;  %6584 = vmatpush3.msra.mxu1 %v5385_v5  ;;  %v5475_v5 = vld [vmem:[%s8962_s1 + $0x1a8] sm:$0xff] }
  0x46   : > { %6613 = vmatprep.subr.mxu0 %v5415_v9  ;;  %6538 = vmatprep.mubr.msk.f32.mxu1 %vm235_vm0, %v5310_v10  ;;  %v7701_v10 = vld [vmem:[%s7303_s29 + $0x25] sm:$0xff] }
  0x47   : > { %6614 = vmatpush3.msra.mxu0 %v5415_v9  ;;  %6539 = vmatmul.mubr.msk.f32.gmra.mxu1 %vm235_vm0, %v7553_v11  ;;  %v5400_v9 = vld [vmem:[%s7303_s29 + $0x1d] sm:$0xff] }
  0x48   : > { %6568 = vmatprep.mubr.msk.f32.mxu0 %vm235_vm0, %v7558_v12  ;;  %6585 = vmatprep.subr.mxu1 %v5384_v14 }
  0x49   : > { %6569 = vmatmul.mubr.msk.f32.gmra.mxu0 %vm235_vm0, %v7565_v15  ;;  %6586 = vmatpush3.msra.mxu1 %v5384_v14  ;;  %v7712_v14 = vld [vmem:[%s7303_s29 + $0x2d] sm:$0xff] }
  0x4a   : > { %6615 = vmatprep.subr.mxu0 %v5414_v17  ;;  %6541 = vmatprep.mubr.msk.f32.mxu1 %vm235_vm0, %v7573_v19 }
  0x4b   : > { %6616 = vmatpush3.msra.mxu0 %v5414_v17  ;;  %6542 = vmatmul.mubr.msk.f32.gmra.mxu1 %vm235_vm0, %v7578_v20  ;;  %v5443_v17 = vld [vmem:[%s8962_s1 + $0x168] sm:$0xff] }
  0x4c   : > { %6571 = vmatprep.mubr.msk.f32.mxu0 %vm235_vm0, %v7583_v22  ;;  %6587 = vmatprep.subr.mxu1 %v5383_v25 }
  0x4d   : > { %6572 = vmatmul.mubr.msk.f32.gmra.mxu0 %vm235_vm0, %v7591_v27  ;;  %6588 = vmatpush3.msra.mxu1 %v5383_v25  ;;  %v7720_v25 = vld [vmem:[%s7303_s29 + $0x35] sm:$0xff] }
  0x4e   : > { %6617 = vmatprep.subr.mxu0 %v5413_v28  ;;  %6544 = vmatprep.mubr.msk.f32.mxu1 %vm235_vm0, %v7599_v29 }
  0x4f   : > { %6618 = vmatpush3.msra.mxu0 %v5413_v28  ;;  %6545 = vmatmul.mubr.msk.f32.gmra.mxu1 %vm235_vm0, %v7604_v30  ;;  %v5473_v28 = vld [vmem:[%s8962_s1 + $0x198] sm:$0xff] }
  0x50   : > { %6574 = vmatprep.mubr.msk.f32.mxu0 %vm235_vm0, %v7609_v31  ;;  %6589 = vmatprep.subr.mxu1 %v5382_v32 }
  0x51   : > { %6575 = vmatmul.mubr.msk.f32.gmra.mxu0 %vm235_vm0, %v7617_v33  ;;  %6590 = vmatpush3.msra.mxu1 %v5382_v32  ;;  %v7732_v32 = vld [vmem:[%s7303_s29 + $0x3d] sm:$0xff] }
  0x52   : > { %6619 = vmatprep.subr.mxu0 %v5412_v34  ;;  %6547 = vmatprep.mubr.msk.f32.mxu1 %vm235_vm0, %v7625_v35 }
  0x53   : > { %6620 = vmatpush3.msra.mxu0 %v5412_v34  ;;  %6548 = vmatmul.mubr.msk.f32.gmra.mxu1 %vm235_vm0, %v7630_v38  ;;  %v5442_v34 = vld [vmem:[%s8962_s1 + $0x160] sm:$0xff] }
  0x54   : > { %6577 = vmatprep.mubr.msk.f32.mxu0 %vm235_vm0, %v7635_v39  ;;  %6591 = vmatprep.subr.mxu1 %v5381_v41 }
  0x55   : > { %6578 = vmatmul.mubr.msk.f32.gmra.mxu0 %vm235_vm0, %v7643_v45  ;;  %6592 = vmatpush3.msra.mxu1 %v5381_v41  ;;  %v7740_v41 = vld [vmem:[%s7303_s29 + $0x45] sm:$0xff] }
  0x56   : > { %6621 = vmatprep.subr.mxu0 %v5411_v47  ;;  %6550 = vmatprep.mubr.msk.f32.mxu1 %vm235_vm0, %v7651_v51 }
  0x57   : > { %6622 = vmatpush3.msra.mxu0 %v5411_v47  ;;  %6551 = vmatmul.mubr.msk.f32.gmra.mxu1 %vm235_vm0, %v7656_v53  ;;  %v5472_v47 = vld [vmem:[%s8962_s1 + $0x190] sm:$0xff] }
  0x58   : > { %6580 = vmatprep.mubr.msk.f32.mxu0 %vm235_vm0, %v7661_v57  ;;  %6593 = vmatprep.subr.mxu1 %v5380_v59 }
  0x59   : > { %6581 = vmatmul.mubr.msk.f32.gmra.mxu0 %vm235_vm0, %v7669_v63  ;;  %6594 = vmatpush3.msra.mxu1 %v5380_v59  ;;  %v7752_v59 = vld [vmem:[%s7303_s29 + $0x4d] sm:$0xff] }
  0x5a   : > { %6623 = vmatprep.subr.mxu0 %v5410_v1  ;;  %6595 = vmatprep.mubr.msk.f32.mxu1 %vm235_vm0, %v7544_v7  ;;  %v5444_v7 = vld [vmem:[%s8962_s1 + $0x170] sm:$0xff] }
  0x5b   : > { %6624 = vmatpush3.msra.mxu0 %v5410_v1  ;;  %6596 = vmatmul.mubr.msk.f32.vlgmr.msra.gmra.mxu1 %vm235_vm0, %v7558_v12  ;;  %v5474_v12 = vld [vmem:[%s8962_s1 + $0x1a0] sm:$0xff]  ;;  %v5441_v1 = vld [vmem:[%s8962_s1 + $0x158] sm:$0xff] }
  0x5c   : > { %6625 = vmatprep.mubr.msk.f32.mxu0 %vm235_vm0, %v5398_v2  ;;  %6643 = vmatprep.subr.mxu1 %v5445_v3  ;;  %v7760_v2 = vld [vmem:[%s7303_s29 + $0x55] sm:$0xff] }
  0x5d   : > { %6626 = vmatmul.mubr.msk.f32.vlgmr.msra.gmra.mxu0 %vm235_vm0, %v5399_v4  ;;  %6644 = vmatpush3.msra.mxu1 %v5445_v3  ;;  %v5471_v3 = vld [vmem:[%s8962_s1 + $0x188] sm:$0xff] }
  0x5e   : > { %6673 = vmatprep.subr.mxu0 %v5475_v5  ;;  %6598 = vmatprep.mubr.msk.f32.mxu1 %vm235_vm0, %v7565_v15  ;;  %v7770_v4 = vld [vmem:[%s7303_s29 + $0x64] sm:$0xff] }
  0x5f   : > { %6674 = vmatpush3.msra.mxu0 %v5475_v5  ;;  %6599 = vmatmul.mubr.msk.f32.gmra.mxu1 %vm235_vm0, %v7583_v22  ;;  %v7775_v5 = vld [vmem:[%s7303_s29 + $0x5d] sm:$0xff] }
  0x60   : > { %6628 = vmatprep.mubr.msk.f32.mxu0 %vm235_vm0, %v5400_v9  ;;  %6645 = vmatprep.subr.mxu1 %v5444_v7  ;;  %v5440_v9 = vld [vmem:[%s8962_s1 + $0x150] sm:$0xff] }
  0x61   : > { %6629 = vmatmul.mubr.msk.f32.gmra.mxu0 %vm235_vm0, %v7701_v10  ;;  %6646 = vmatpush3.msra.mxu1 %v5444_v7  ;;  %v7783_v7 = vld [vmem:[%s7303_s29 + $0x65] sm:$0xff] }
  0x62   : > { %6675 = vmatprep.subr.mxu0 %v5474_v12  ;;  %6601 = vmatprep.mubr.msk.f32.mxu1 %vm235_vm0, %v7591_v27  ;;  %8979 = vst [vmem:[#allocation2_spill] sm:$0xff] %v7783_v7 }
  0x63   : > { %6676 = vmatpush3.msra.mxu0 %v5474_v12  ;;  %6602 = vmatmul.mubr.msk.f32.gmra.mxu1 %vm235_vm0, %v7609_v31  ;;  %v5470_v12 = vld [vmem:[%s8962_s1 + $0x180] sm:$0xff] }
  0x64   : > { %6631 = vmatprep.mubr.msk.f32.mxu0 %vm235_vm0, %v7712_v14  ;;  %6647 = vmatprep.subr.mxu1 %v5443_v17 }
  0x65   : > { %6632 = vmatmul.mubr.msk.f32.gmra.mxu0 %vm235_vm0, %v7720_v25  ;;  %6648 = vmatpush3.msra.mxu1 %v5443_v17  ;;  %v5428_v17 = vld [vmem:[%s7303_s29 + $0xe] sm:$0xff] }
  0x66   : > { %6677 = vmatprep.subr.mxu0 %v5473_v28  ;;  %6604 = vmatprep.mubr.msk.f32.mxu1 %vm235_vm0, %v7617_v33 }
  0x67   : > { %6678 = vmatpush3.msra.mxu0 %v5473_v28  ;;  %6605 = vmatmul.mubr.msk.f32.gmra.mxu1 %vm235_vm0, %v7635_v39  ;;  %v5429_v28 = vld [vmem:[%s7303_s29 + $0x16] sm:$0xff] }
  0x68   : > { %6634 = vmatprep.mubr.msk.f32.mxu0 %vm235_vm0, %v7732_v32  ;;  %6649 = vmatprep.subr.mxu1 %v5442_v34 }
  0x69   : > { %6635 = vmatmul.mubr.msk.f32.gmra.mxu0 %vm235_vm0, %v7740_v41  ;;  %6650 = vmatpush3.msra.mxu1 %v5442_v34  ;;  %v5458_v34 = vld [vmem:[%s7303_s29 + $0xf] sm:$0xff] }
  0x6a   : > { %6679 = vmatprep.subr.mxu0 %v5472_v47  ;;  %6607 = vmatprep.mubr.msk.f32.mxu1 %vm235_vm0, %v7643_v45 }
  0x6b   : > { %6680 = vmatpush3.msra.mxu0 %v5472_v47  ;;  %6608 = vmatmul.mubr.msk.f32.gmra.mxu1 %vm235_vm0, %v7661_v57  ;;  %v5505_v47 = vld [vmem:[%s8962_s1 + $0x1d8] sm:$0xff] }
  0x6c   : > { %6637 = vmatprep.mubr.msk.f32.mxu0 %vm235_vm0, %v7752_v59  ;;  %6651 = vmatprep.subr.mxu1 %v5441_v1 }
  0x6d   : > { %6638 = vmatmul.mubr.msk.f32.gmra.mxu0 %vm235_vm0, %v7760_v2  ;;  %6652 = vmatpush3.msra.mxu1 %v5441_v1  ;;  %v5459_v1 = vld [vmem:[%s7303_s29 + $0x17] sm:$0xff] }
  0x6e   : > { %6681 = vmatprep.subr.mxu0 %v5471_v3  ;;  %6610 = vmatprep.mubr.msk.f32.mxu1 %vm235_vm0, %v7669_v63 }
  0x6f   : > { %6682 = vmatpush3.msra.mxu0 %v5471_v3  ;;  %6611 = vmatmul.mubr.msk.f32.gmra.mxu1 %vm235_vm0, %v7770_v4  ;;  %v5535_v3 = vld [vmem:[%s8962_s1 + $0x208] sm:$0xff] }
  0x70   : > { %6640 = vmatprep.mubr.msk.f32.mxu0 %vm235_vm0, %v7775_v5  ;;  %6653 = vmatprep.subr.mxu1 %v5440_v9 }
  0x71   : > { %6641 = vmatmul.mubr.msk.f32.gmra.mxu0 %vm235_vm0, %v7783_v7  ;;  %6654 = vmatpush3.msra.mxu1 %v5440_v9  ;;  %v5430_v7 = vld [vmem:[%s7303_s29 + $0x1e] sm:$0xff]  ;;  %v7809_v9 = vld [vmem:[%s7303_s29 + $0x26] sm:$0xff] }
  0x72   : > { %6683 = vmatprep.subr.mxu0 %v5470_v12  ;;  %6655 = vmatprep.mubr.msk.f32.mxu1 %vm235_vm0, %v5428_v17  ;;  %8980 = vst [vmem:[#allocation3_spill] sm:$0xff] %v7809_v9  ;;  %v5460_v17 = vld [vmem:[%s7303_s29 + $0x1f] sm:$0xff] }
  0x73   : > { %6684 = vmatpush3.msra.mxu0 %v5470_v12  ;;  %6656 = vmatmul.mubr.msk.f32.vlgmr.msra.gmra.mxu1 %vm235_vm0, %v5429_v28  ;;  %v5504_v12 = vld [vmem:[%s8962_s1 + $0x1d0] sm:$0xff]  ;;  %v7818_v28 = vld [vmem:[%s7303_s29 + $0x27] sm:$0xff] }
  0x74   : > { %6685 = vmatprep.mubr.msk.f32.mxu0 %vm235_vm0, %v5458_v34  ;;  %6703 = vmatprep.subr.mxu1 %v5505_v47  ;;  %8981 = vst [vmem:[#allocation4_spill] sm:$0xff] %v7818_v28  ;;  %v5534_v34 = vld [vmem:[%s8962_s1 + $0x200] sm:$0xff] }
  0x75   : > { %6686 = vmatmul.mubr.msk.f32.vlgmr.msra.gmra.mxu0 %vm235_vm0, %v5459_v1  ;;  %6704 = vmatpush3.msra.mxu1 %v5505_v47  ;;  %v7826_v47 = vld [vmem:[%s7303_s29 + $0x2e] sm:$0xff]  ;;  %v7830_v1 = vld [vmem:[%s7303_s29 + $0x36] sm:$0xff] }
  0x76   : > { %6733 = vmatprep.subr.mxu0 %v5535_v3  ;;  %6658 = vmatprep.mubr.msk.f32.mxu1 %vm235_vm0, %v5430_v7  ;;  %8982 = vst [vmem:[#allocation5_spill] sm:$0xff] %v7826_v47  ;;  %8983 = vst [vmem:[#allocation6_spill] sm:$0xff] %v7830_v1  ;;  %v7835_v7 = vld [vmem:[%s7303_s29 + $0x2f] sm:$0xff] }
  0x77   : > { %6734 = vmatpush3.msra.mxu0 %v5535_v3  ;;  %6659 = vmatmul.mubr.msk.f32.gmra.mxu1 %vm235_vm0, %v7809_v9  ;;  %8984 = vst [vmem:[#allocation7_spill] sm:$0xff] %v7835_v7  ;;  %v5503_v3 = vld [vmem:[%s8962_s1 + $0x1c8] sm:$0xff] }
  0x78   : > { %6688 = vmatprep.mubr.msk.f32.mxu0 %vm235_vm0, %v5460_v17  ;;  %6705 = vmatprep.subr.mxu1 %v5504_v12  ;;  %v7843_v17 = vld [vmem:[%s7303_s29 + $0x37] sm:$0xff]  ;;  %v7856_v9 = vld [vmem:[%s7303_s29 + $0x46] sm:$0xff] }
  0x79   : > { %6689 = vmatmul.mubr.msk.f32.gmra.mxu0 %vm235_vm0, %v7818_v28  ;;  %6706 = vmatpush3.msra.mxu1 %v5504_v12  ;;  %8985 = vst [vmem:[#allocation8_spill] sm:$0xff] %v7843_v17  ;;  %v5533_v12 = vld [vmem:[%s8962_s1 + $0x1f8] sm:$0xff]  ;;  %8987 = vst [vmem:[#allocation10_spill] sm:$0xff] %v7856_v9 }
  0x7a   : > { %6735 = vmatprep.subr.mxu0 %v5534_v34  ;;  %6661 = vmatprep.mubr.msk.f32.mxu1 %vm235_vm0, %v7826_v47  ;;  %v7851_v28 = vld [vmem:[%s7303_s29 + $0x3e] sm:$0xff]  ;;  %v7882_v47 = vld [vmem:[%s7303_s29 + $0x56] sm:$0xff] }
  0x7b   : > { %6736 = vmatpush3.msra.mxu0 %v5534_v34  ;;  %6662 = vmatmul.mubr.msk.f32.gmra.mxu1 %vm235_vm0, %v7830_v1  ;;  %8986 = vst [vmem:[#allocation9_spill] sm:$0xff] %v7851_v28  ;;  %v7861_v34 = vld [vmem:[%s7303_s29 + $0x3f] sm:$0xff]  ;;  %8991 = vst [vmem:[#allocation14_spill] sm:$0xff] %v7882_v47 }
  0x7c   : > { %6691 = vmatprep.mubr.msk.f32.mxu0 %vm235_vm0, %v7835_v7  ;;  %6707 = vmatprep.subr.mxu1 %v5503_v3  ;;  %8988 = vst [vmem:[#allocation11_spill] sm:$0xff] %v7861_v34  ;;  %v5502_v1 = vld [vmem:[%s8962_s1 + $0x1c0] sm:$0xff] }
  0x7d   : > { %6692 = vmatmul.mubr.msk.f32.gmra.mxu0 %vm235_vm0, %v7843_v17  ;;  %6708 = vmatpush3.msra.mxu1 %v5503_v3  ;;  %v7869_v7 = vld [vmem:[%s7303_s29 + $0x47] sm:$0xff]  ;;  %v5532_v3 = vld [vmem:[%s8962_s1 + $0x1f0] sm:$0xff] }
  0x7e   : > { %6737 = vmatprep.subr.mxu0 %v5533_v12  ;;  %6664 = vmatprep.mubr.msk.f32.mxu1 %vm235_vm0, %v7851_v28  ;;  %8989 = vst [vmem:[#allocation12_spill] sm:$0xff] %v7869_v7  ;;  %v7877_v17 = vld [vmem:[%s7303_s29 + $0x4e] sm:$0xff]  ;;  %v7908_v28 = vld [vmem:[%s7303_s29 + $0x66] sm:$0xff] }
  0x7f   : > { %6738 = vmatpush3.msra.mxu0 %v5533_v12  ;;  %6665 = vmatmul.mubr.msk.f32.gmra.mxu1 %vm235_vm0, %v7856_v9  ;;  %8990 = vst [vmem:[#allocation13_spill] sm:$0xff] %v7877_v17  ;;  %v7887_v12 = vld [vmem:[%s7303_s29 + $0x4f] sm:$0xff]  ;;  %v5501_v9 = vld [vmem:[%s8962_s1 + $0x1b8] sm:$0xff] }
  0x80   : > { %6694 = vmatprep.mubr.msk.f32.mxu0 %vm235_vm0, %v7861_v34  ;;  %6709 = vmatprep.subr.mxu1 %v5502_v1  ;;  %v7895_v34 = vld [vmem:[%s7303_s29 + $0x57] sm:$0xff] }
  0x81   : > { %6695 = vmatmul.mubr.msk.f32.gmra.mxu0 %vm235_vm0, %v7869_v7  ;;  %6710 = vmatpush3.msra.mxu1 %v5502_v1  ;;  %8992 = vst [vmem:[#allocation15_spill] sm:$0xff] %v7895_v34  ;;  %v5531_v1 = vld [vmem:[%s8962_s1 + $0x1e8] sm:$0xff]  ;;  %v7903_v7 = vld [vmem:[%s7303_s29 + $0x5e] sm:$0xff] }
  0x82   : > { %6739 = vmatprep.subr.mxu0 %v5532_v3  ;;  %6667 = vmatprep.mubr.msk.f32.mxu1 %vm235_vm0, %v7877_v17  ;;  %v7921_v17 = vld [vmem:[%s7303_s29 + $0x67] sm:$0xff] }
  0x83   : > { %6740 = vmatpush3.msra.mxu0 %v5532_v3  ;;  %6668 = vmatmul.mubr.msk.f32.gmra.mxu1 %vm235_vm0, %v7882_v47  ;;  %v7913_v3 = vld [vmem:[%s7303_s29 + $0x5f] sm:$0xff]  ;;  %v5500_v47 = vld [vmem:[%s8962_s1 + $0x1b0] sm:$0xff] }
  0x84   : > { %6697 = vmatprep.mubr.msk.f32.mxu0 %vm235_vm0, %v7887_v12  ;;  %6711 = vmatprep.subr.mxu1 %v5501_v9 }
  0x85   : > { %6698 = vmatmul.mubr.msk.f32.gmra.mxu0 %vm235_vm0, %v7895_v34  ;;  %6712 = vmatpush3.msra.mxu1 %v5501_v9  ;;  %v5530_v9 = vld [vmem:[%s8962_s1 + $0x1e0] sm:$0xff]  ;;  %v5565_v34 = vld [vmem:[%s8962_s1 + $0x238] sm:$0xff] }
  0x86   : > { %6741 = vmatprep.subr.mxu0 %v5531_v1  ;;  %6670 = vmatprep.mubr.msk.f32.mxu1 %vm235_vm0, %v7903_v7 }
  0x87   : > { %6742 = vmatpush3.msra.mxu0 %v5531_v1  ;;  %6671 = vmatmul.mubr.msk.f32.gmra.mxu1 %vm235_vm0, %v7908_v28  ;;  %v5595_v1 = vld [vmem:[%s8962_s1 + $0x268] sm:$0xff] }
  0x88   : > { %6700 = vmatprep.mubr.msk.f32.mxu0 %vm235_vm0, %v7913_v3  ;;  %6713 = vmatprep.subr.mxu1 %v5500_v47 }
  0x89   : > { %6701 = vmatmul.mubr.msk.f32.gmra.mxu0 %vm235_vm0, %v7921_v17  ;;  %6714 = vmatpush3.msra.mxu1 %v5500_v47  ;;  %v7994_v47 = vld [vmem:[%s7303_s29 + $0x60] sm:$0xff] }
  0x8a   : > { %6743 = vmatprep.subr.mxu0 %v5530_v9  ;;  %6715 = vmatprep.mubr.msk.f32.mxu1 %vm235_vm0, %v7408_v36  ;;  %v5564_v36 = vld [vmem:[%s8962_s1 + $0x230] sm:$0xff] }
  0x8b   : > { %6744 = vmatpush3.msra.mxu0 %v5530_v9  ;;  %6716 = vmatmul.mubr.msk.f32.vlgmr.msra.gmra.mxu1 %vm235_vm0, %v7412_v37  ;;  %v8014_v9 = vld [vmem:[%s7303_s29 + $0x70] sm:$0xff] }
  0x8c   : > { %6745 = vmatprep.mubr.msk.f32.mxu0 %vm235_vm0, %v7412_v37  ;;  %6763 = vmatprep.subr.mxu1 %v5565_v34  ;;  %v5594_v37 = vld [vmem:[%s8962_s1 + $0x260] sm:$0xff] }
  0x8d   : > { %6746 = vmatmul.mubr.msk.f32.vlgmr.msra.gmra.mxu0 %vm235_vm0, %v7430_v42  ;;  %6764 = vmatpush3.msra.mxu1 %v5565_v34  ;;  %v8004_v34 = vld [vmem:[%s7303_s29 + $0x68] sm:$0xff] }
  0x8e   : > { %6793 = vmatprep.subr.mxu0 %v5595_v1  ;;  %6718 = vmatprep.mubr.msk.f32.mxu1 %vm235_vm0, %v7430_v42  ;;  %v5563_v42 = vld [vmem:[%s8962_s1 + $0x228] sm:$0xff] }
  0x8f   : > { %6794 = vmatpush3.msra.mxu0 %v5595_v1  ;;  %6719 = vmatmul.mubr.msk.f32.gmra.mxu1 %vm235_vm0, %v7434_v43  ;;  %v5625_v1 = vld [vmem:[%s8962_s1 + $0x298] sm:$0xff] }
  0x90   : > { %6748 = vmatprep.mubr.msk.f32.mxu0 %vm235_vm0, %v7434_v43  ;;  %6765 = vmatprep.subr.mxu1 %v5564_v36  ;;  %v5593_v43 = vld [vmem:[%s8962_s1 + $0x258] sm:$0xff] }
  0x91   : > { %6749 = vmatmul.mubr.msk.f32.gmra.mxu0 %vm235_vm0, %v7455_v48  ;;  %6766 = vmatpush3.msra.mxu1 %v5564_v36  ;;  %v5655_v36 = vld [vmem:[%s8962_s1 + $0x2c8] sm:$0xff] }
  0x92   : > { %6795 = vmatprep.subr.mxu0 %v5594_v37  ;;  %6721 = vmatprep.mubr.msk.f32.mxu1 %vm235_vm0, %v7455_v48  ;;  %v5562_v48 = vld [vmem:[%s8962_s1 + $0x220] sm:$0xff] }
  0x93   : > { %6796 = vmatpush3.msra.mxu0 %v5594_v37  ;;  %6722 = vmatmul.mubr.msk.f32.gmra.mxu1 %vm235_vm0, %v7460_v49  ;;  %v5618_v37 = vld [vmem:[%s7303_s29 + $0x6b] sm:$0xff] }
  0x94   : > { %6751 = vmatprep.mubr.msk.f32.mxu0 %vm235_vm0, %v7460_v49  ;;  %6767 = vmatprep.subr.mxu1 %v5563_v42  ;;  %v5592_v49 = vld [vmem:[%s8962_s1 + $0x250] sm:$0xff] }
  0x95   : > { %6752 = vmatmul.mubr.msk.f32.gmra.mxu0 %vm235_vm0, %v7481_v54  ;;  %6768 = vmatpush3.msra.mxu1 %v5563_v42  ;;  %v5619_v42 = vld [vmem:[%s7303_s29 + $0x73] sm:$0xff] }
  0x96   : > { %6797 = vmatprep.subr.mxu0 %v5593_v43  ;;  %6724 = vmatprep.mubr.msk.f32.mxu1 %vm235_vm0, %v7481_v54  ;;  %v5561_v54 = vld [vmem:[%s8962_s1 + $0x218] sm:$0xff] }
  0x97   : > { %6798 = vmatpush3.msra.mxu0 %v5593_v43  ;;  %6725 = vmatmul.mubr.msk.f32.gmra.mxu1 %vm235_vm0, %v7486_v55  ;;  %v8182_v43 = vld [vmem:[%s7303_s29 + $0x6c] sm:$0xff] }
  0x98   : > { %6754 = vmatprep.mubr.msk.f32.mxu0 %vm235_vm0, %v7486_v55  ;;  %6769 = vmatprep.subr.mxu1 %v5562_v48  ;;  %v5591_v55 = vld [vmem:[%s8962_s1 + $0x248] sm:$0xff] }
  0x99   : > { %6755 = vmatmul.mubr.msk.f32.gmra.mxu0 %vm235_vm0, %v7507_v60  ;;  %6770 = vmatpush3.msra.mxu1 %v5562_v48  ;;  %v8189_v48 = vld [vmem:[%s7303_s29 + $0x74] sm:$0xff] }
  0x9a   : > { %6799 = vmatprep.subr.mxu0 %v5592_v49  ;;  %6727 = vmatprep.mubr.msk.f32.mxu1 %vm235_vm0, %v7507_v60  ;;  %v5560_v60 = vld [vmem:[%s8962_s1 + $0x210] sm:$0xff] }
  0x9b   : > { %6800 = vmatpush3.msra.mxu0 %v5592_v49  ;;  %6728 = vmatmul.mubr.msk.f32.gmra.mxu1 %vm235_vm0, %v7512_v61  ;;  %v5710_v49 = vld [vmem:[%s8962_s1 + $0x300] sm:$0xff] }
  0x9c   : > { %6757 = vmatprep.mubr.msk.f32.mxu0 %vm235_vm0, %v7512_v61  ;;  %6771 = vmatprep.subr.mxu1 %v5561_v54  ;;  %v5590_v61 = vld [vmem:[%s8962_s1 + $0x240] sm:$0xff] }
  0x9d   : > { %6758 = vmatmul.mubr.msk.f32.gmra.mxu0 %vm235_vm0, %v7994_v47  ;;  %6772 = vmatpush3.msra.mxu1 %v5561_v54  ;;  %v5745_v54 = vld [vmem:[%s8962_s1 + $0x358] sm:$0xff] }
  0x9e   : > { %6801 = vmatprep.subr.mxu0 %v5591_v55  ;;  %6730 = vmatprep.mubr.msk.f32.mxu1 %vm235_vm0, %v7994_v47 }
  0x9f   : > { %6802 = vmatpush3.msra.mxu0 %v5591_v55  ;;  %6731 = vmatmul.mubr.msk.f32.gmra.mxu1 %vm235_vm0, %v8004_v34  ;;  %v5775_v55 = vld [vmem:[%s8962_s1 + $0x388] sm:$0xff] }
  0xa0   : > { %6760 = vmatprep.mubr.msk.f32.mxu0 %vm235_vm0, %v8004_v34  ;;  %6773 = vmatprep.subr.mxu1 %v5560_v60 }
  0xa1   : > { %6761 = vmatmul.mubr.msk.f32.gmra.mxu0 %vm235_vm0, %v8014_v9  ;;  %6774 = vmatpush3.msra.mxu1 %v5560_v60 }
  0xa2   : > { %6803 = vmatprep.subr.mxu0 %v5590_v61  ;;  %6775 = vmatprep.mubr.msk.f32.mxu1 %vm235_vm0, %v7347_v18  ;;  %v5624_v18 = vld [vmem:[%s8962_s1 + $0x290] sm:$0xff] }
  0xa3   : > { %6804 = vmatpush3.msra.mxu0 %v5590_v61  ;;  %6776 = vmatmul.mubr.msk.f32.vlgmr.msra.gmra.mxu1 %vm235_vm0, %v7367_v23  ;;  %v5654_v23 = vld [vmem:[%s8962_s1 + $0x2c0] sm:$0xff] }
  0xa4   : > { %6805 = vmatprep.mubr.msk.f32.mxu0 %vm235_vm0, %v7422_v40  ;;  %6823 = vmatprep.subr.mxu1 %v5625_v1  ;;  %v5557_v40 = vld [vmem:[%s7303_s29 + $0x61] sm:$0xff] }
  0xa5   : > { %6806 = vmatmul.mubr.msk.f32.vlgmr.msra.gmra.mxu0 %vm235_vm0, %v7439_v44  ;;  %6824 = vmatpush3.msra.mxu1 %v5625_v1  ;;  %v5651_v44 = vld [vmem:[%s8962_s1 + $0x2a8] sm:$0xff]  ;;  %v8993_v61 = vld [vmem:[#allocation2_spill] sm:$0xff] }
  0xa6   : > { %6853 = vmatprep.subr.mxu0 %v5655_v36  ;;  %6778 = vmatprep.mubr.msk.f32.mxu1 %vm235_vm0, %v7378_v26  ;;  %v5623_v26 = vld [vmem:[%s8962_s1 + $0x288] sm:$0xff]  ;;  %v8277_v1 = vld [vmem:[%s7303_s29 + $0x7c] sm:$0xff] }
  0xa7   : > { %6854 = vmatpush3.msra.mxu0 %v5655_v36  ;;  %6779 = vmatmul.mubr.msk.f32.gmra.mxu1 %vm235_vm0, %v7309_v6  ;;  %v5653_v6 = vld [vmem:[%s8962_s1 + $0x2b8] sm:$0xff] }
  0xa8   : > { %6808 = vmatprep.mubr.msk.f32.mxu0 %vm235_vm0, %v7447_v46  ;;  %6825 = vmatprep.subr.mxu1 %v5624_v18  ;;  %v5558_v46 = vld [vmem:[%s7303_s29 + $0x69] sm:$0xff]  ;;  %v5708_v36 = vld [vmem:[%s7303_s29 + $0x75] sm:$0xff] }
  0xa9   : > { %6809 = vmatmul.mubr.msk.f32.gmra.mxu0 %vm235_vm0, %v7465_v50  ;;  %6826 = vmatpush3.msra.mxu1 %v5624_v18  ;;  %v5559_v50 = vld [vmem:[%s7303_s29 + $0x71] sm:$0xff] }
  0xaa   : > { %6855 = vmatprep.subr.mxu0 %v5654_v23  ;;  %6781 = vmatprep.mubr.msk.f32.mxu1 %vm235_vm0, %v7313_v8  ;;  %v5622_v8 = vld [vmem:[%s8962_s1 + $0x280] sm:$0xff]  ;;  %v5740_v18 = vld [vmem:[%s8962_s1 + $0x330] sm:$0xff] }
  0xab   : > { %6856 = vmatpush3.msra.mxu0 %v5654_v23  ;;  %6782 = vmatmul.mubr.msk.f32.gmra.mxu1 %vm235_vm0, %v7331_v13  ;;  %v5652_v13 = vld [vmem:[%s8962_s1 + $0x2b0] sm:$0xff]  ;;  %v5709_v23 = vld [vmem:[%s7303_s29 + $0x7d] sm:$0xff] }
  0xac   : > { %6811 = vmatprep.mubr.msk.f32.mxu0 %vm235_vm0, %v7473_v52  ;;  %6827 = vmatprep.subr.mxu1 %v5623_v26  ;;  %v5588_v52 = vld [vmem:[%s7303_s29 + $0x6a] sm:$0xff] }
  0xad   : > { %6812 = vmatmul.mubr.msk.f32.gmra.mxu0 %vm235_vm0, %v7491_v56  ;;  %6828 = vmatpush3.msra.mxu1 %v5623_v26  ;;  %v5589_v56 = vld [vmem:[%s7303_s29 + $0x72] sm:$0xff] }
  0xae   : > { %6857 = vmatprep.subr.mxu0 %v5653_v6  ;;  %6784 = vmatprep.mubr.msk.f32.mxu1 %vm235_vm0, %v7339_v16  ;;  %v5621_v16 = vld [vmem:[%s8962_s1 + $0x278] sm:$0xff] }
  0xaf   : > { %6858 = vmatpush3.msra.mxu0 %v5653_v6  ;;  %6785 = vmatmul.mubr.msk.f32.gmra.mxu1 %vm235_vm0, %v7359_v21  ;;  %v5587_v21 = vld [vmem:[%s7303_s29 + $0x62] sm:$0xff] }
  0xb0   : > { %6814 = vmatprep.mubr.msk.f32.mxu0 %vm235_vm0, %v7499_v58  ;;  %6829 = vmatprep.subr.mxu1 %v5622_v8  ;;  %v5650_v58 = vld [vmem:[%s8962_s1 + $0x2a0] sm:$0xff] }
  0xb1   : > { %6815 = vmatmul.mubr.msk.f32.gmra.mxu0 %vm235_vm0, %v7517_v62  ;;  %6830 = vmatpush3.msra.mxu1 %v5622_v8  ;;  %v5685_v62 = vld [vmem:[%s8962_s1 + $0x2f8] sm:$0xff]  ;;  %v5770_v8 = vld [vmem:[%s8962_s1 + $0x360] sm:$0xff] }
  0xb2   : > { %6859 = vmatprep.subr.mxu0 %v5652_v13  ;;  %6787 = vmatprep.mubr.msk.f32.mxu1 %vm235_vm0, %v7370_v24  ;;  %v5620_v24 = vld [vmem:[%s8962_s1 + $0x270] sm:$0xff] }
  0xb3   : > { %6860 = vmatpush3.msra.mxu0 %v5652_v13  ;;  %6788 = vmatmul.mubr.msk.f32.gmra.mxu1 %vm235_vm0, %v5557_v40  ;;  %v5805_v40 = vld [vmem:[%s8962_s1 + $0x3b8] sm:$0xff] }
  0xb4   : > { %6817 = vmatprep.mubr.msk.f32.mxu0 %vm235_vm0, %v7525_v0  ;;  %6831 = vmatprep.subr.mxu1 %v5621_v16  ;;  %v5715_v0 = vld [vmem:[%s8962_s1 + $0x328] sm:$0xff] }
  0xb5   : > { %6818 = vmatmul.mubr.msk.f32.gmra.mxu0 %vm235_vm0, %v5587_v21  ;;  %6832 = vmatpush3.msra.mxu1 %v5621_v16  ;;  %v8994_v16 = vld [vmem:[#allocation3_spill] sm:$0xff] }
  0xb6   : > { %6861 = vmatprep.subr.mxu0 %v5651_v44  ;;  %6790 = vmatprep.mubr.msk.f32.mxu1 %vm235_vm0, %v5558_v46  ;;  %v5835_v46 = vld [vmem:[%s8962_s1 + $0x3e8] sm:$0xff] }
  0xb7   : > { %6862 = vmatpush3.msra.mxu0 %v5651_v44  ;;  %6791 = vmatmul.mubr.msk.f32.gmra.mxu1 %vm235_vm0, %v5559_v50  ;;  %v8995_v44 = vld [vmem:[#allocation5_spill] sm:$0xff] }
  0xb8   : > { %6820 = vmatprep.mubr.msk.f32.mxu0 %vm235_vm0, %v5588_v52  ;;  %6833 = vmatprep.subr.mxu1 %v5620_v24  ;;  %v8996_v52 = vld [vmem:[#allocation4_spill] sm:$0xff] }
  0xb9   : > { %6821 = vmatmul.mubr.msk.f32.gmra.mxu0 %vm235_vm0, %v5589_v56  ;;  %6834 = vmatpush3.msra.mxu1 %v5620_v24  ;;  %v8997_v56 = vld [vmem:[#allocation7_spill] sm:$0xff] }
  0xba   : > { %6863 = vmatprep.subr.mxu0 %v5650_v58  ;;  %6835 = vmatprep.mubr.msk.f32.mxu1 %vm235_vm0, %v7553_v11  ;;  %v5684_v11 = vld [vmem:[%s8962_s1 + $0x2f0] sm:$0xff] }
  0xbb   : > { %6864 = vmatpush3.msra.mxu0 %v5650_v58  ;;  %6836 = vmatmul.mubr.msk.f32.vlgmr.msra.gmra.mxu1 %vm235_vm0, %v7573_v19  ;;  %v5683_v19 = vld [vmem:[%s8962_s1 + $0x2e8] sm:$0xff] }
  0xbc   : > { %6865 = vmatprep.mubr.msk.f32.mxu0 %vm235_vm0, %v7565_v15  ;;  %6883 = vmatprep.subr.mxu1 %v5685_v62  ;;  %v5714_v15 = vld [vmem:[%s8962_s1 + $0x320] sm:$0xff] }
  0xbd   : > { %6866 = vmatmul.mubr.msk.f32.vlgmr.msra.gmra.mxu0 %vm235_vm0, %v7583_v22  ;;  %6884 = vmatpush3.msra.mxu1 %v5685_v62  ;;  %v5804_v62 = vld [vmem:[%s8962_s1 + $0x3b0] sm:$0xff] }
  0xbe   : > { %6913 = vmatprep.subr.mxu0 %v5715_v0  ;;  %6838 = vmatprep.mubr.msk.f32.mxu1 %vm235_vm0, %v7578_v20  ;;  %v5713_v20 = vld [vmem:[%s8962_s1 + $0x318] sm:$0xff] }
  0xbf   : > { %6914 = vmatpush3.msra.mxu0 %v5715_v0  ;;  %6839 = vmatmul.mubr.msk.f32.gmra.mxu1 %vm235_vm0, %v7599_v29  ;;  %v5682_v29 = vld [vmem:[%s8962_s1 + $0x2e0] sm:$0xff] }
  0xc0   : > { %6868 = vmatprep.mubr.msk.f32.mxu0 %vm235_vm0, %v7591_v27  ;;  %6885 = vmatprep.subr.mxu1 %v5684_v11 }
  0xc1   : > { %6869 = vmatmul.mubr.msk.f32.gmra.mxu0 %vm235_vm0, %v7609_v31  ;;  %6886 = vmatpush3.msra.mxu1 %v5684_v11 }
  0xc2   : > { %6915 = vmatprep.subr.mxu0 %v5714_v15  ;;  %6841 = vmatprep.mubr.msk.f32.mxu1 %vm235_vm0, %v7604_v30  ;;  %v5712_v30 = vld [vmem:[%s8962_s1 + $0x310] sm:$0xff] }
  0xc3   : > { %6916 = vmatpush3.msra.mxu0 %v5714_v15  ;;  %6842 = vmatmul.mubr.msk.f32.gmra.mxu1 %vm235_vm0, %v7625_v35  ;;  %v5617_v35 = vld [vmem:[%s7303_s29 + $0x63] sm:$0xff] }
  0xc4   : > { %6871 = vmatprep.mubr.msk.f32.mxu0 %vm235_vm0, %v7617_v33  ;;  %6887 = vmatprep.subr.mxu1 %v5683_v19  ;;  %v8998_v15 = vld [vmem:[#allocation6_spill] sm:$0xff] }
  0xc5   : > { %6872 = vmatmul.mubr.msk.f32.gmra.mxu0 %vm235_vm0, %v7635_v39  ;;  %6888 = vmatpush3.msra.mxu1 %v5683_v19 }
  0xc6   : > { %6917 = vmatprep.subr.mxu0 %v5713_v20  ;;  %6844 = vmatprep.mubr.msk.f32.mxu1 %vm235_vm0, %v7630_v38  ;;  %v5681_v38 = vld [vmem:[%s8962_s1 + $0x2d8] sm:$0xff] }
  0xc7   : > { %6918 = vmatpush3.msra.mxu0 %v5713_v20  ;;  %6845 = vmatmul.mubr.msk.f32.gmra.mxu1 %vm235_vm0, %v7651_v51  ;;  %v5711_v51 = vld [vmem:[%s8962_s1 + $0x308] sm:$0xff] }
  0xc8   : > { %6874 = vmatprep.mubr.msk.f32.mxu0 %vm235_vm0, %v7643_v45  ;;  %6889 = vmatprep.subr.mxu1 %v5682_v29 }
  0xc9   : > { %6875 = vmatmul.mubr.msk.f32.gmra.mxu0 %vm235_vm0, %v7661_v57  ;;  %6890 = vmatpush3.msra.mxu1 %v5682_v29  ;;  %v8999_v29 = vld [vmem:[#allocation9_spill] sm:$0xff] }
  0xca   : > { %6919 = vmatprep.subr.mxu0 %v5712_v30  ;;  %6847 = vmatprep.mubr.msk.f32.mxu1 %vm235_vm0, %v7656_v53  ;;  %v5680_v53 = vld [vmem:[%s8962_s1 + $0x2d0] sm:$0xff] }
  0xcb   : > { %6920 = vmatpush3.msra.mxu0 %v5712_v30  ;;  %6848 = vmatmul.mubr.msk.f32.gmra.mxu1 %vm235_vm0, %v5617_v35  ;;  %v5834_v30 = vld [vmem:[%s8962_s1 + $0x3e0] sm:$0xff] }
  0xcc   : > { %6877 = vmatprep.mubr.msk.f32.mxu0 %vm235_vm0, %v7669_v63  ;;  %6891 = vmatprep.subr.mxu1 %v5681_v38 }
  0xcd   : > { %6878 = vmatmul.mubr.msk.f32.gmra.mxu0 %vm235_vm0, %v7770_v4  ;;  %6892 = vmatpush3.msra.mxu1 %v5681_v38 }
  0xce   : > { %6921 = vmatprep.subr.mxu0 %v5711_v51  ;;  %6850 = vmatprep.mubr.msk.f32.mxu1 %vm235_vm0, %v5618_v37 }
  0xcf   : > { %6922 = vmatpush3.msra.mxu0 %v5711_v51  ;;  %6851 = vmatmul.mubr.msk.f32.gmra.mxu1 %vm235_vm0, %v5619_v42  ;;  %v9000_v51 = vld [vmem:[#allocation8_spill] sm:$0xff]  ;;  %v9001_v42 = vld [vmem:[#allocation11_spill] sm:$0xff] }
  0xd0   : > { %6880 = vmatprep.mubr.msk.f32.mxu0 %vm235_vm0, %v8182_v43  ;;  %6893 = vmatprep.subr.mxu1 %v5680_v53 }
  0xd1   : > { %6881 = vmatmul.mubr.msk.f32.gmra.mxu0 %vm235_vm0, %v8189_v48  ;;  %6894 = vmatpush3.msra.mxu1 %v5680_v53  ;;  %v5803_v53 = vld [vmem:[%s8962_s1 + $0x3a8] sm:$0xff] }
  0xd2   : > { %6923 = vmatprep.subr.mxu0 %v5710_v49  ;;  %6895 = vmatprep.mubr.msk.f32.mxu1 %vm235_vm0, %v7583_v22  ;;  %v5744_v22 = vld [vmem:[%s8962_s1 + $0x350] sm:$0xff] }
  0xd3   : > { %6924 = vmatpush3.msra.mxu0 %v5710_v49  ;;  %6896 = vmatmul.mubr.msk.f32.vlgmr.msra.gmra.mxu1 %vm235_vm0, %v7591_v27  ;;  %v5774_v27 = vld [vmem:[%s8962_s1 + $0x380] sm:$0xff] }
  0xd4   : > { %6925 = vmatprep.mubr.msk.f32.mxu0 %vm235_vm0, %v7701_v10  ;;  %6943 = vmatprep.subr.mxu1 %v5745_v54  ;;  %v5773_v10 = vld [vmem:[%s8962_s1 + $0x378] sm:$0xff] }
  0xd5   : > { %6926 = vmatmul.mubr.msk.f32.vlgmr.msra.gmra.mxu0 %vm235_vm0, %v7712_v14  ;;  %6944 = vmatpush3.msra.mxu1 %v5745_v54  ;;  %v9002_v54 = vld [vmem:[#allocation10_spill] sm:$0xff] }
  0xd6   : > { %6973 = vmatprep.subr.mxu0 %v5775_v55  ;;  %6898 = vmatprep.mubr.msk.f32.mxu1 %vm235_vm0, %v7609_v31  ;;  %v5743_v31 = vld [vmem:[%s8962_s1 + $0x348] sm:$0xff] }
  0xd7   : > { %6974 = vmatpush3.msra.mxu0 %v5775_v55  ;;  %6899 = vmatmul.mubr.msk.f32.gmra.mxu1 %vm235_vm0, %v7617_v33 }
  0xd8   : > { %6928 = vmatprep.mubr.msk.f32.mxu0 %vm235_vm0, %v7720_v25  ;;  %6945 = vmatprep.subr.mxu1 %v5744_v22 }
  0xd9   : > { %6929 = vmatmul.mubr.msk.f32.gmra.mxu0 %vm235_vm0, %v7732_v32  ;;  %6946 = vmatpush3.msra.mxu1 %v5744_v22  ;;  %v5772_v32 = vld [vmem:[%s8962_s1 + $0x370] sm:$0xff] }
  0xda   : > { %6975 = vmatprep.subr.mxu0 %v5774_v27  ;;  %6901 = vmatprep.mubr.msk.f32.mxu1 %vm235_vm0, %v7635_v39  ;;  %v8232_v33 = vpop.f32.mrf.mxu1  ;;  %v5742_v39 = vld [vmem:[%s8962_s1 + $0x340] sm:$0xff] }
  0xdb   : > { %6976 = vmatpush3.msra.mxu0 %v5774_v27  ;;  %6902 = vmatmul.mubr.msk.f32.gmra.mxu1 %vm235_vm0, %v7643_v45  ;;  %v6447_v14 = vpop.f32.mrf.mxu0  ;;  %v9003_v27 = vld [vmem:[#allocation13_spill] sm:$0xff] }
  0xdc   : > { %6931 = vmatprep.mubr.msk.f32.mxu0 %vm235_vm0, %v7740_v41  ;;  %6947 = vmatprep.subr.mxu1 %v5743_v31  ;;  %v8241_v25 = vpop.f32.mrf.mxu1 }
  0xdd   : > { %6932 = vmatmul.mubr.msk.f32.gmra.mxu0 %vm235_vm0, %v7752_v59  ;;  %6948 = vmatpush3.msra.mxu1 %v5743_v31  ;;  %v338_v45 = vpop.f32.mrf.mxu0  ;;  %v5833_v31 = vld [vmem:[%s8962_s1 + $0x3d8] sm:$0xff] }
  0xde   : > { %6977 = vmatprep.subr.mxu0 %v5773_v10  ;;  %6904 = vmatprep.mubr.msk.f32.mxu1 %vm235_vm0, %v7661_v57  ;;  %v5741_v57 = vld [vmem:[%s8962_s1 + $0x338] sm:$0xff] }
  0xdf   : > { %6978 = vmatpush3.msra.mxu0 %v5773_v10  ;;  %6905 = vmatmul.mubr.msk.f32.gmra.mxu1 %vm235_vm0, %v7669_v63  ;;  %v8255_v41 = vpop.f32.mrf.mxu1 }
  0xe0   : > { %6934 = vmatprep.mubr.msk.f32.mxu0 %vm235_vm0, %v7760_v2  ;;  %6949 = vmatprep.subr.mxu1 %v5742_v39  ;;  %v5707_v2 = vld [vmem:[%s7303_s29 + $0x6d] sm:$0xff] }
  0xe1   : > { %6935 = vmatmul.mubr.msk.f32.gmra.mxu0 %vm235_vm0, %v7775_v5  ;;  %6950 = vmatpush3.msra.mxu1 %v5742_v39  ;;  %v6450_v63 = vpop.f32.mrf.mxu0  ;;  %v8264_v59 = vpop.f32.mrf.mxu1  ;;  %v5771_v5 = vld [vmem:[%s8962_s1 + $0x368] sm:$0xff]  ;;  %v9004_v39 = vld [vmem:[#allocation12_spill] sm:$0xff] }
  0xe2   : > { %6979 = vmatprep.subr.mxu0 %v5772_v32  ;;  %6907 = vmatprep.mubr.msk.f32.mxu1 %vm235_vm0, %v7770_v4 }
  0xe3   : > { %6980 = vmatpush3.msra.mxu0 %v5772_v32  ;;  %6908 = vmatmul.mubr.msk.f32.gmra.mxu1 %vm235_vm0, %v8182_v43  ;;  %v348_v60 = vpop.f32.mrf.mxu0 }
  0xe4   : > { %6937 = vmatprep.mubr.msk.f32.mxu0 %vm235_vm0, %v8993_v61  ;;  %6951 = vmatprep.subr.mxu1 %v5741_v57 }
  0xe5   : > { %6938 = vmatmul.mubr.msk.f32.gmra.mxu0 %vm235_vm0, %v5707_v2  ;;  %6952 = vmatpush3.msra.mxu1 %v5741_v57  ;;  %v8280_v4 = vpop.f32.mrf.mxu1  ;;  %v5802_v57 = vld [vmem:[%s8962_s1 + $0x3a0] sm:$0xff] }
  0xe6   : > { %6981 = vmatprep.subr.mxu0 %v5771_v5  ;;  %6910 = vmatprep.mubr.msk.f32.mxu1 %vm235_vm0, %v8189_v48 }
  0xe7   : > { %6982 = vmatpush3.msra.mxu0 %v5771_v5  ;;  %6911 = vmatmul.mubr.msk.f32.gmra.mxu1 %vm235_vm0, %v8277_v1  ;;  %v6453_v26 = vpop.f32.mrf.mxu0  ;;  %v8291_v6 = vpop.f32.mrf.mxu1  ;;  %v9005_v5 = vld [vmem:[#allocation14_spill] sm:$0xff] }
  0xe8   : > { %6940 = vmatprep.mubr.msk.f32.mxu0 %vm235_vm0, %v5708_v36  ;;  %6953 = vmatprep.subr.mxu1 %v5740_v18 }
  0xe9   : > { %6941 = vmatmul.mubr.msk.f32.gmra.mxu0 %vm235_vm0, %v5709_v23  ;;  %6954 = vmatpush3.msra.mxu1 %v5740_v18  ;;  %v358_v13 = vpop.f32.mrf.mxu0  ;;  %v9006_v23 = vld [vmem:[#allocation15_spill] sm:$0xff] }
  0xea   : > { %6983 = vmatprep.subr.mxu0 %v5770_v8  ;;  %6955 = vmatprep.mubr.msk.f32.mxu1 %vm235_vm0, %v8994_v16  ;;  %v5767_v16 = vld [vmem:[%s7303_s29 + $0x6f] sm:$0xff] }
  0xeb   : > { %6984 = vmatpush3.msra.mxu0 %v5770_v8  ;;  %v6477_v21 = vpop.f32.mrf.mxu1  ;;  %6956 = vmatmul.mubr.msk.f32.vlgmr.msra.gmra.mxu1 %vm235_vm0, %v8995_v44  ;;  %v5831_v44 = vld [vmem:[%s8962_s1 + $0x3c8] sm:$0xff] }
  0xec   : > { %v505_v50 = vadd.f32 %v6477_v21, %v6447_v14  ;;  %6985 = vmatprep.mubr.msk.f32.mxu0 %vm235_vm0, %v8996_v52  ;;  %7003 = vmatprep.subr.mxu1 %v5805_v40 }
  0xed   : > { %v6507_v24 = vpop.f32.mrf.mxu0  ;;  %6986 = vmatmul.mubr.msk.f32.vlgmr.msra.gmra.mxu0 %vm235_vm0, %v8997_v56  ;;  %7004 = vmatpush3.msra.mxu1 %v5805_v40  ;;  %v499_v58 = vpop.f32.mrf.mxu1  ;;  %v5768_v56 = vld [vmem:[%s7303_s29 + $0x77] sm:$0xff] }
  0xee   : > { %v8315_v0 = vadd.f32 %v6507_v24, %v505_v50  ;;  %v500_v11 = vadd.f32 %v499_v58, %v338_v45  ;;  %7033 = vmatprep.subr.mxu0 %v5835_v46  ;;  %6958 = vmatprep.mubr.msk.f32.mxu1 %vm235_vm0, %v8998_v15  ;;  %v5800_v58 = vld [vmem:[%s8962_s1 + $0x390] sm:$0xff] }
  0xef   : > { %v681_v19 = vpop.f32.mrf.mxu0  ;;  %7034 = vmatpush3.msra.mxu0 %v5835_v46  ;;  %v6480_v20 = vpop.f32.mrf.mxu1  ;;  %6959 = vmatmul.mubr.msk.f32.gmra.mxu1 %vm235_vm0, %v8999_v29  ;;  %v5738_v46 = vld [vmem:[%s7303_s29 + $0x76] sm:$0xff] }
  0xf0   : > { %v8324_v35 = vadd.f32 %v681_v19, %v500_v11  ;;  %v515_v38 = vadd.f32 %v6480_v20, %v6450_v63  ;;  %6988 = vmatprep.mubr.msk.f32.mxu0 %vm235_vm0, %v9000_v51  ;;  %7005 = vmatprep.subr.mxu1 %v5804_v62  ;;  %v5830_v19 = vld [vmem:[%s8962_s1 + $0x3c0] sm:$0xff]  ;;  %v5788_v20 = vld [vmem:[%s7303_s29 + $0x28] sm:$0xff] }
  0xf1   : > { %v6510_v37 = vpop.f32.mrf.mxu0  ;;  %6989 = vmatmul.mubr.msk.f32.gmra.mxu0 %vm235_vm0, %v9001_v42  ;;  %7006 = vmatpush3.msra.mxu1 %v5804_v62  ;;  %v509_v43 = vpop.f32.mrf.mxu1 }
  0xf2   : > { %v8333_v48 = vadd.f32 %v6510_v37, %v515_v38  ;;  %v510_v49 = vadd.f32 %v509_v43, %v348_v60  ;;  %7035 = vmatprep.subr.mxu0 %v5834_v30  ;;  %6961 = vmatprep.mubr.msk.f32.mxu1 %vm235_vm0, %v9002_v54  ;;  %v5865_v37 = vld [vmem:[%s8962_s1 + $0x418] sm:$0xff]  ;;  %v5895_v54 = vld [vmem:[%s8962_s1 + $0x448] sm:$0xff] }
  0xf3   : > { %v691_v55 = vpop.f32.mrf.mxu0  ;;  %7036 = vmatpush3.msra.mxu0 %v5834_v30  ;;  %v6483_v22 = vpop.f32.mrf.mxu1  ;;  %6962 = vmatmul.mubr.msk.f32.gmra.mxu1 %vm235_vm0, %v9003_v27 }
  0xf4   : > { %v8342_v10 = vadd.f32 %v691_v55, %v510_v49  ;;  %v525_v14 = vadd.f32 %v6483_v22, %v6453_v26  ;;  %6991 = vmatprep.mubr.msk.f32.mxu0 %vm235_vm0, %v9004_v39  ;;  %7007 = vmatprep.subr.mxu1 %v5803_v53  ;;  %v5737_v26 = vld [vmem:[%s7303_s29 + $0x6e] sm:$0xff] }
  0xf5   : > { %v6513_v45 = vpop.f32.mrf.mxu0  ;;  %6992 = vmatmul.mubr.msk.f32.gmra.mxu0 %vm235_vm0, %v7887_v12  ;;  %7008 = vmatpush3.msra.mxu1 %v5803_v53  ;;  %v519_v32 = vpop.f32.mrf.mxu1  ;;  %v5832_v12 = vld [vmem:[%s8962_s1 + $0x3d0] sm:$0xff] }
  0xf6   : > { %v8351_v63 = vadd.f32 %v6513_v45, %v525_v14  ;;  %v520_v2 = vadd.f32 %v519_v32, %v358_v13  ;;  %7037 = vmatprep.subr.mxu0 %v5833_v31  ;;  %6964 = vmatprep.mubr.msk.f32.mxu1 %vm235_vm0, %v9005_v5  ;;  %v5801_v13 = vld [vmem:[%s8962_s1 + $0x398] sm:$0xff]  ;;  %v5864_v14 = vld [vmem:[%s8962_s1 + $0x410] sm:$0xff] }
  0xf7   : > { %v701_v60 = vpop.f32.mrf.mxu0  ;;  %7038 = vmatpush3.msra.mxu0 %v5833_v31  ;;  %v6486_v61 = vpop.f32.mrf.mxu1  ;;  %6965 = vmatmul.mubr.msk.f32.gmra.mxu1 %vm235_vm0, %v7903_v7 }
  0xf8   : > { %v8360_v36 = vadd.f32 %v701_v60, %v520_v2  ;;  %v535_v18 = vadd.f32 %v6486_v61, %v8232_v33  ;;  %6994 = vmatprep.mubr.msk.f32.mxu0 %vm235_vm0, %v9006_v23  ;;  %7009 = vmatprep.subr.mxu1 %v5802_v57  ;;  %v5894_v2 = vld [vmem:[%s8962_s1 + $0x440] sm:$0xff] }
  0xf9   : > { %v6516_v8 = vpop.f32.mrf.mxu0  ;;  %6995 = vmatmul.mubr.msk.f32.gmra.mxu0 %vm235_vm0, %v7913_v3  ;;  %7010 = vmatpush3.msra.mxu1 %v5802_v57  ;;  %v529_v7 = vpop.f32.mrf.mxu1 }
  0xfa   : > { %v8371_v40 = vadd.f32 %v6516_v8, %v535_v18  ;;  %v530_v33 = vadd.f32 %v529_v7, %v8241_v25  ;;  %7039 = vmatprep.subr.mxu0 %v5832_v12  ;;  %6967 = vmatprep.mubr.msk.f32.mxu1 %vm235_vm0, %v7908_v28  ;;  %v5739_v28 = vld [vmem:[%s7303_s29 + $0x7e] sm:$0xff]  ;;  %v5863_v18 = vld [vmem:[%s8962_s1 + $0x408] sm:$0xff] }
  0xfb   : > { %v711_v21 = vpop.f32.mrf.mxu0  ;;  %7040 = vmatpush3.msra.mxu0 %v5832_v12  ;;  %v6489_v3 = vpop.f32.mrf.mxu1  ;;  %6968 = vmatmul.mubr.msk.f32.gmra.mxu1 %vm235_vm0, %v5737_v26 }
  0xfc   : > { %v8382_v50 = vadd.f32 %v711_v21, %v530_v33  ;;  %v545_v25 = vadd.f32 %v6489_v3, %v8255_v41  ;;  %6997 = vmatprep.mubr.msk.f32.mxu0 %vm235_vm0, %v7921_v17  ;;  %7011 = vmatprep.subr.mxu1 %v5801_v13  ;;  %v5769_v17 = vld [vmem:[%s7303_s29 + $0x7f] sm:$0xff] }
  0xfd   : > { %v6519_v52 = vpop.f32.mrf.mxu0  ;;  %6998 = vmatmul.mubr.msk.f32.gmra.mxu0 %vm235_vm0, %v5767_v16  ;;  %7012 = vmatpush3.msra.mxu1 %v5801_v13  ;;  %v539_v24 = vpop.f32.mrf.mxu1  ;;  %v5893_v13 = vld [vmem:[%s8962_s1 + $0x438] sm:$0xff]  ;;  %v5862_v3 = vld [vmem:[%s8962_s1 + $0x400] sm:$0xff] }
  0xfe   : > { %v8393_v62 = vadd.f32 %v6519_v52, %v545_v25  ;;  %v540_v41 = vadd.f32 %v539_v24, %v8264_v59  ;;  %7041 = vmatprep.subr.mxu0 %v5831_v44  ;;  %6970 = vmatprep.mubr.msk.f32.mxu1 %vm235_vm0, %v5738_v46  ;;  %v5789_v59 = vld [vmem:[%s7303_s29 + $0x30] sm:$0xff] }
  0xff   : > { %v721_v11 = vpop.f32.mrf.mxu0  ;;  %7042 = vmatpush3.msra.mxu0 %v5831_v44  ;;  %v6492_v15 = vpop.f32.mrf.mxu1  ;;  %6971 = vmatmul.mubr.msk.f32.gmra.mxu1 %vm235_vm0, %v5739_v28  ;;  %v5892_v28 = vld [vmem:[%s8962_s1 + $0x430] sm:$0xff] }
 0x100   : > { %v8403_v29 = vadd.f32 %v721_v11, %v540_v41  ;;  %v555_v30 = vadd.f32 %v6492_v15, %v8280_v4  ;;  %7000 = vmatprep.mubr.msk.f32.mxu0 %vm235_vm0, %v5768_v56  ;;  %7013 = vmatprep.subr.mxu1 %v5800_v58  ;;  %v5819_v4 = vld [vmem:[%s7303_s29 + $0x38] sm:$0xff]  ;;  %v5891_v15 = vld [vmem:[%s8962_s1 + $0x428] sm:$0xff] }
 0x101   : > { %v6522_v38 = vpop.f32.mrf.mxu0  ;;  %7001 = vmatmul.mubr.msk.f32.gmra.mxu0 %vm235_vm0, %v5769_v17  ;;  %7014 = vmatpush3.msra.mxu1 %v5800_v58  ;;  %v549_v51 = vpop.f32.mrf.mxu1  ;;  %v5861_v58 = vld [vmem:[%s8962_s1 + $0x3f8] sm:$0xff] }
 0x102   : > { %v8412_v42 = vadd.f32 %v6522_v38, %v555_v30  ;;  %v550_v43 = vadd.f32 %v549_v51, %v8291_v6  ;;  %7043 = vmatprep.subr.mxu0 %v5830_v19  ;;  %7015 = vmatprep.mubr.msk.f32.mxu1 %vm235_vm0, %v5788_v20  ;;  %v5791_v6 = vld [vmem:[%s7303_s29 + $0x40] sm:$0xff] }
 0x103   : > { %v731_v53 = vpop.f32.mrf.mxu0  ;;  %7044 = vmatpush3.msra.mxu0 %v5830_v19  ;;  %v6537_v49 = vpop.f32.mrf.mxu1  ;;  %7016 = vmatmul.mubr.msk.f32.vlgmr.msra.gmra.mxu1 %vm235_vm0, %v5789_v59 }
 0x104   : > { %v8421_v55 = vadd.f32 %v731_v53, %v550_v43  ;;  %v935_v22 = vadd.f32 %v6537_v49, %v8315_v0  ;;  %7045 = vmatprep.mubr.msk.f32.mxu0 %vm235_vm0, %v5789_v59  ;;  %7063 = vmatprep.subr.mxu1 %v5865_v37  ;;  %v5821_v0 = vld [vmem:[%s7303_s29 + $0x48] sm:$0xff]  ;;  %v5860_v59 = vld [vmem:[%s8962_s1 + $0x3f0] sm:$0xff]  ;;  %v5890_v43 = vld [vmem:[%s8962_s1 + $0x420] sm:$0xff] }
 0x105   : > { %v6567_v27 = vpop.f32.mrf.mxu0  ;;  %7046 = vmatmul.mubr.msk.f32.vlgmr.msra.gmra.mxu0 %vm235_vm0, %v5819_v4  ;;  %7064 = vmatpush3.msra.mxu1 %v5865_v37  ;;  %v875_v31 = vpop.f32.mrf.mxu1  ;;  %v5849_v49 = vld [vmem:[%s7303_s29 + $0x39] sm:$0xff] }
 0x106   : > { %v8430_v39 = vadd.f32 %v6567_v27, %v935_v22  ;;  %v934_v45 = vadd.f32 %v875_v31, %v8324_v35  ;;  %7093 = vmatprep.subr.mxu0 %v5895_v54  ;;  %7018 = vmatprep.mubr.msk.f32.mxu1 %vm235_vm0, %v5819_v4  ;;  %v5793_v35 = vld [vmem:[%s7303_s29 + $0x50] sm:$0xff]  ;;  %v5925_v27 = vld [vmem:[%s8962_s1 + $0x478] sm:$0xff] }
 0x107   : > { %v1069_v32 = vpop.f32.mrf.mxu0  ;;  %7094 = vmatpush3.msra.mxu0 %v5895_v54  ;;  %v6540_v57 = vpop.f32.mrf.mxu1  ;;  %7019 = vmatmul.mubr.msk.f32.gmra.mxu1 %vm235_vm0, %v5791_v6  ;;  %v5848_v4 = vld [vmem:[%s7303_s29 + $0x31] sm:$0xff] }
 0x108   : > { %v8439_v5 = vadd.f32 %v1069_v32, %v934_v45  ;;  %v937_v60 = vadd.f32 %v6540_v57, %v8333_v48  ;;  %7048 = vmatprep.mubr.msk.f32.mxu0 %vm235_vm0, %v5791_v6  ;;  %7065 = vmatprep.subr.mxu1 %v5864_v14  ;;  %v5823_v48 = vld [vmem:[%s7303_s29 + $0x58] sm:$0xff]  ;;  %v5955_v32 = vld [vmem:[%s8962_s1 + $0x4a8] sm:$0xff] }
 0x109   : > { %v6570_v61 = vpop.f32.mrf.mxu0  ;;  %7049 = vmatmul.mubr.msk.f32.gmra.mxu0 %vm235_vm0, %v5821_v0  ;;  %7066 = vmatpush3.msra.mxu1 %v5864_v14  ;;  %v885_v12 = vpop.f32.mrf.mxu1  ;;  %v5878_v6 = vld [vmem:[%s7303_s29 + $0x32] sm:$0xff]  ;;  %v5879_v14 = vld [vmem:[%s7303_s29 + $0x3a] sm:$0xff] }
 0x10a   : > { %v8448_v23 = vadd.f32 %v6570_v61, %v937_v60  ;;  %v936_v26 = vadd.f32 %v885_v12, %v8342_v10  ;;  %7095 = vmatprep.subr.mxu0 %v5894_v2  ;;  %7021 = vmatprep.mubr.msk.f32.mxu1 %vm235_vm0, %v5821_v0  ;;  %v5850_v57 = vld [vmem:[%s7303_s29 + $0x41] sm:$0xff]  ;;  %v5851_v60 = vld [vmem:[%s7303_s29 + $0x49] sm:$0xff] }
 0x10b   : > { %v1079_v8 = vpop.f32.mrf.mxu0  ;;  %7096 = vmatpush3.msra.mxu0 %v5894_v2  ;;  %v6543_v7 = vpop.f32.mrf.mxu1  ;;  %7022 = vmatmul.mubr.msk.f32.gmra.mxu1 %vm235_vm0, %v5793_v35  ;;  %v5880_v12 = vld [vmem:[%s7303_s29 + $0x42] sm:$0xff] }
 0x10c   : > { %v8457_v33 = vadd.f32 %v1079_v8, %v936_v26  ;;  %v939_v16 = vadd.f32 %v6543_v7, %v8351_v63  ;;  %7051 = vmatprep.mubr.msk.f32.mxu0 %vm235_vm0, %v5793_v35  ;;  %7067 = vmatprep.subr.mxu1 %v5863_v18 }
 0x10d   : > { %v6573_v10 = vpop.f32.mrf.mxu0  ;;  %7052 = vmatmul.mubr.msk.f32.gmra.mxu0 %vm235_vm0, %v5823_v48  ;;  %7068 = vmatpush3.msra.mxu1 %v5863_v18  ;;  %v895_v21 = vpop.f32.mrf.mxu1  ;;  %v5924_v18 = vld [vmem:[%s8962_s1 + $0x470] sm:$0xff] }
 0x10e   : > { %v8465_v44 = vadd.f32 %v6573_v10, %v939_v16  ;;  %v938_v46 = vadd.f32 %v895_v21, %v8360_v36  ;;  %7097 = vmatprep.subr.mxu0 %v5893_v13  ;;  %7024 = vmatprep.mubr.msk.f32.mxu1 %vm235_vm0, %v5823_v48  ;;  %v5881_v48 = vld [vmem:[%s7303_s29 + $0x4a] sm:$0xff]  ;;  %v5853_v21 = vld [vmem:[%s7303_s29 + $0x59] sm:$0xff] }
 0x10f   : > { %v1089_v63 = vpop.f32.mrf.mxu0  ;;  %7098 = vmatpush3.msra.mxu0 %v5893_v13  ;;  %v6546_v25 = vpop.f32.mrf.mxu1  ;;  %7025 = vmatmul.mubr.msk.f32.gmra.mxu1 %vm235_vm0, %v7994_v47  ;;  %v5954_v13 = vld [vmem:[%s8962_s1 + $0x4a0] sm:$0xff]  ;;  %v5852_v16 = vld [vmem:[%s7303_s29 + $0x51] sm:$0xff] }
 0x110   : > { %v8474_v52 = vadd.f32 %v1089_v63, %v938_v46  ;;  %v941_v24 = vadd.f32 %v6546_v25, %v8371_v40  ;;  %7054 = vmatprep.mubr.msk.f32.mxu0 %vm235_vm0, %v7994_v47  ;;  %7069 = vmatprep.subr.mxu1 %v5862_v3  ;;  %v5827_v47 = vld [vmem:[%s7303_s29 + $0x78] sm:$0xff]  ;;  %v5923_v25 = vld [vmem:[%s8962_s1 + $0x468] sm:$0xff] }
 0x111   : > { %v6576_v36 = vpop.f32.mrf.mxu0  ;;  %7055 = vmatmul.mubr.msk.f32.gmra.mxu0 %vm235_vm0, %v8004_v34  ;;  %7070 = vmatpush3.msra.mxu1 %v5862_v3  ;;  %v905_v56 = vpop.f32.mrf.mxu1  ;;  %v5882_v63 = vld [vmem:[%s7303_s29 + $0x52] sm:$0xff] }
 0x112   : > { %v8484_v41 = vadd.f32 %v6576_v36, %v941_v24  ;;  %v940_v17 = vadd.f32 %v905_v56, %v8382_v50  ;;  %7099 = vmatprep.subr.mxu0 %v5892_v28  ;;  %7027 = vmatprep.mubr.msk.f32.mxu1 %vm235_vm0, %v8004_v34  ;;  %v5799_v34 = vld [vmem:[%s7303_s29 + $0x80] sm:$0xff] }
 0x113   : > { %v1099_v40 = vpop.f32.mrf.mxu0  ;;  %7100 = vmatpush3.msra.mxu0 %v5892_v28  ;;  %v6549_v11 = vpop.f32.mrf.mxu1  ;;  %7028 = vmatmul.mubr.msk.f32.gmra.mxu1 %vm235_vm0, %v8014_v9  ;;  %v5883_v24 = vld [vmem:[%s7303_s29 + $0x5a] sm:$0xff] }
 0x114   : > { %v8495_v19 = vadd.f32 %v1099_v40, %v940_v17  ;;  %v943_v50 = vadd.f32 %v6549_v11, %v8393_v62  ;;  %7057 = vmatprep.mubr.msk.f32.mxu0 %vm235_vm0, %v8014_v9  ;;  %7071 = vmatprep.subr.mxu1 %v5861_v58  ;;  %v5829_v9 = vld [vmem:[%s7303_s29 + $0x88] sm:$0xff] }
 0x115   : > { %v6579_v20 = vpop.f32.mrf.mxu0  ;;  %7058 = vmatmul.mubr.msk.f32.gmra.mxu0 %vm235_vm0, %v5827_v47  ;;  %7072 = vmatpush3.msra.mxu1 %v5861_v58  ;;  %v915_v30 = vpop.f32.mrf.mxu1  ;;  %v5953_v58 = vld [vmem:[%s8962_s1 + $0x498] sm:$0xff]  ;;  %v5854_v17 = vld [vmem:[%s7303_s29 + $0x61] sm:$0xff]  ;;  %v5855_v40 = vld [vmem:[%s7303_s29 + $0x69] sm:$0xff] }
 0x116   : > { %v8505_v38 = vadd.f32 %v6579_v20, %v943_v50  ;;  %v942_v62 = vadd.f32 %v915_v30, %v8403_v29  ;;  %7101 = vmatprep.subr.mxu0 %v5891_v15  ;;  %7030 = vmatprep.mubr.msk.f32.mxu1 %vm235_vm0, %v5827_v47  ;;  %v5884_v50 = vld [vmem:[%s7303_s29 + $0x62] sm:$0xff]  ;;  %v5885_v30 = vld [vmem:[%s7303_s29 + $0x6a] sm:$0xff] }
 0x117   : > { %v1109_v51 = vpop.f32.mrf.mxu0  ;;  %7102 = vmatpush3.msra.mxu0 %v5891_v15  ;;  %v6552_v37 = vpop.f32.mrf.mxu1  ;;  %7031 = vmatmul.mubr.msk.f32.gmra.mxu1 %vm235_vm0, %v5799_v34 }
 0x118   : > { %v8515_v53 = vadd.f32 %v1109_v51, %v942_v62  ;;  %v945_v29 = vadd.f32 %v6552_v37, %v8412_v42  ;;  %7060 = vmatprep.mubr.msk.f32.mxu0 %vm235_vm0, %v5799_v34  ;;  %7073 = vmatprep.subr.mxu1 %v5860_v59  ;;  %v5922_v34 = vld [vmem:[%s8962_s1 + $0x460] sm:$0xff]  ;;  %v5856_v51 = vld [vmem:[%s7303_s29 + $0x71] sm:$0xff] }
 0x119   : > { %v6582_v54 = vpop.f32.mrf.mxu0  ;;  %7061 = vmatmul.mubr.msk.f32.gmra.mxu0 %vm235_vm0, %v5829_v9  ;;  %7074 = vmatpush3.msra.mxu1 %v5860_v59  ;;  %v925_v22 = vpop.f32.mrf.mxu1  ;;  %v5952_v9 = vld [vmem:[%s8962_s1 + $0x490] sm:$0xff] }
 0x11a   : > { %v8525_v31 = vadd.f32 %v6582_v54, %v945_v29  ;;  %v944_v42 = vadd.f32 %v925_v22, %v8421_v55  ;;  %7103 = vmatprep.subr.mxu0 %v5890_v43  ;;  %7075 = vmatprep.mubr.msk.f32.mxu1 %vm235_vm0, %v5848_v4  ;;  %v5921_v54 = vld [vmem:[%s8962_s1 + $0x458] sm:$0xff] }
 0x11b   : > { %v1119_v45 = vpop.f32.mrf.mxu0  ;;  %7104 = vmatpush3.msra.mxu0 %v5890_v43  ;;  %v6597_v0 = vpop.f32.mrf.mxu1  ;;  %7076 = vmatmul.mubr.msk.f32.vlgmr.msra.gmra.mxu1 %vm235_vm0, %v5849_v49  ;;  %v5857_v43 = vld [vmem:[%s7303_s29 + $0x79] sm:$0xff] }
 0x11c   : > { %v8535_v2 = vadd.f32 %v1119_v45, %v944_v42  ;;  %v1323_v55 = vadd.f32 %v6597_v0, %v8430_v39  ;;  %7105 = vmatprep.mubr.msk.f32.mxu0 %vm235_vm0, %v5878_v6  ;;  %7123 = vmatprep.subr.mxu1 %v5925_v27  ;;  %v5886_v49 = vld [vmem:[%s7303_s29 + $0x72] sm:$0xff]  ;;  %v5887_v6 = vld [vmem:[%s7303_s29 + $0x7a] sm:$0xff] }
 0x11d   : > { %v6627_v35 = vpop.f32.mrf.mxu0  ;;  %7106 = vmatmul.mubr.msk.f32.vlgmr.msra.gmra.mxu0 %vm235_vm0, %v5879_v14  ;;  %7124 = vmatpush3.msra.mxu1 %v5925_v27  ;;  %v1263_v61 = vpop.f32.mrf.mxu1  ;;  %v5951_v14 = vld [vmem:[%s8962_s1 + $0x488] sm:$0xff] }
 0x11e   : > { %v8545_v26 = vadd.f32 %v6627_v35, %v1323_v55  ;;  %v1322_v39 = vadd.f32 %v1263_v61, %v8439_v5  ;;  %7153 = vmatprep.subr.mxu0 %v5955_v32  ;;  %7078 = vmatprep.mubr.msk.f32.mxu1 %vm235_vm0, %v5850_v57  ;;  %v5858_v45 = vld [vmem:[%s7303_s29 + $0x81] sm:$0xff]  ;;  %v5920_v35 = vld [vmem:[%s8962_s1 + $0x450] sm:$0xff] }
 0x11f   : > { %v1457_v8 = vpop.f32.mrf.mxu0  ;;  %7154 = vmatpush3.msra.mxu0 %v5955_v32  ;;  %v6600_v7 = vpop.f32.mrf.mxu1  ;;  %7079 = vmatmul.mubr.msk.f32.gmra.mxu1 %vm235_vm0, %v5851_v60  ;;  %v5859_v32 = vld [vmem:[%s7303_s29 + $0x89] sm:$0xff] }
 0x120   : > { %v8555_v10 = vadd.f32 %v1457_v8, %v1322_v39  ;;  %v1325_v5 = vadd.f32 %v6600_v7, %v8448_v23  ;;  %7108 = vmatprep.mubr.msk.f32.mxu0 %vm235_vm0, %v5880_v12  ;;  %7125 = vmatprep.subr.mxu1 %v5924_v18  ;;  %v5888_v60 = vld [vmem:[%s7303_s29 + $0x82] sm:$0xff]  ;;  %v5889_v12 = vld [vmem:[%s7303_s29 + $0x8a] sm:$0xff]  ;;  %v5908_v8 = vld [vmem:[%s7303_s29 + $0x33] sm:$0xff] }
 0x121   : > { %v6630_v3 = vpop.f32.mrf.mxu0  ;;  %7109 = vmatmul.mubr.msk.f32.gmra.mxu0 %vm235_vm0, %v5881_v48  ;;  %7126 = vmatpush3.msra.mxu1 %v5924_v18  ;;  %v1273_v46 = vpop.f32.mrf.mxu1  ;;  %v5950_v48 = vld [vmem:[%s8962_s1 + $0x480] sm:$0xff] }
 0x122   : > { %v8565_v28 = vadd.f32 %v6630_v3, %v1325_v5  ;;  %v1324_v23 = vadd.f32 %v1273_v46, %v8457_v33  ;;  %7155 = vmatprep.subr.mxu0 %v5954_v13  ;;  %7081 = vmatprep.mubr.msk.f32.mxu1 %vm235_vm0, %v5852_v16  ;;  %v5910_v3 = vld [vmem:[%s7303_s29 + $0x43] sm:$0xff] }
 0x123   : > { %v1467_v36 = vpop.f32.mrf.mxu0  ;;  %7156 = vmatpush3.msra.mxu0 %v5954_v13  ;;  %v6603_v56 = vpop.f32.mrf.mxu1  ;;  %7082 = vmatmul.mubr.msk.f32.gmra.mxu1 %vm235_vm0, %v5853_v21  ;;  %v5909_v13 = vld [vmem:[%s7303_s29 + $0x3b] sm:$0xff] }
 0x124   : > { %v8575_v47 = vadd.f32 %v1467_v36, %v1324_v23  ;;  %v1327_v33 = vadd.f32 %v6603_v56, %v8465_v44  ;;  %7111 = vmatprep.mubr.msk.f32.mxu0 %vm235_vm0, %v5882_v63  ;;  %7127 = vmatprep.subr.mxu1 %v5923_v25  ;;  %v5938_v21 = vld [vmem:[%s7303_s29 + $0x34] sm:$0xff] }
 0x125   : > { %v6633_v11 = vpop.f32.mrf.mxu0  ;;  %7112 = vmatmul.mubr.msk.f32.gmra.mxu0 %vm235_vm0, %v5883_v24  ;;  %7128 = vmatpush3.msra.mxu1 %v5923_v25  ;;  %v1283_v15 = vpop.f32.mrf.mxu1  ;;  %v5940_v24 = vld [vmem:[%s7303_s29 + $0x44] sm:$0xff] }
 0x126   : > { %v8585_v20 = vadd.f32 %v6633_v11, %v1327_v33  ;;  %v1326_v44 = vadd.f32 %v1283_v15, %v8474_v52  ;;  %7157 = vmatprep.subr.mxu0 %v5953_v58  ;;  %7084 = vmatprep.mubr.msk.f32.mxu1 %vm235_vm0, %v5854_v17  ;;  %v5912_v33 = vld [vmem:[%s7303_s29 + $0x53] sm:$0xff] }
 0x127   : > { %v1477_v59 = vpop.f32.mrf.mxu0  ;;  %7158 = vmatpush3.msra.mxu0 %v5953_v58  ;;  %v6606_v62 = vpop.f32.mrf.mxu1  ;;  %7085 = vmatmul.mubr.msk.f32.gmra.mxu1 %vm235_vm0, %v5855_v40  ;;  %v5941_v15 = vld [vmem:[%s7303_s29 + $0x4c] sm:$0xff] }
 0x128   : > { %v8595_v37 = vadd.f32 %v1477_v59, %v1326_v44  ;;  %v1329_v52 = vadd.f32 %v6606_v62, %v8484_v41  ;;  %7114 = vmatprep.mubr.msk.f32.mxu0 %vm235_vm0, %v5884_v50  ;;  %7129 = vmatprep.subr.mxu1 %v5922_v34  ;;  %v5913_v59 = vld [vmem:[%s7303_s29 + $0x5b] sm:$0xff] }
 0x129   : > { %v6636_v4 = vpop.f32.mrf.mxu0  ;;  %7115 = vmatmul.mubr.msk.f32.gmra.mxu0 %vm235_vm0, %v5885_v30  ;;  %7130 = vmatpush3.msra.mxu1 %v5922_v34  ;;  %v1293_v29 = vpop.f32.mrf.mxu1  ;;  %v5942_v34 = vld [vmem:[%s7303_s29 + $0x54] sm:$0xff] }
 0x12a   : > { %v8605_v22 = vadd.f32 %v6636_v4, %v1329_v52  ;;  %v1328_v41 = vadd.f32 %v1293_v29, %v8495_v19  ;;  %7159 = vmatprep.subr.mxu0 %v5952_v9  ;;  %7087 = vmatprep.mubr.msk.f32.mxu1 %vm235_vm0, %v5856_v51  ;;  %v5944_v29 = vld [vmem:[%s7303_s29 + $0x64] sm:$0xff] }
 0x12b   : > { %v1487_v27 = vpop.f32.mrf.mxu0  ;;  %7160 = vmatpush3.msra.mxu0 %v5952_v9  ;;  %v6609_v42 = vpop.f32.mrf.mxu1  ;;  %7088 = vmatmul.mubr.msk.f32.gmra.mxu1 %vm235_vm0, %v5857_v43  ;;  %v5914_v9 = vld [vmem:[%s7303_s29 + $0x63] sm:$0xff] }
 0x12c   : > { %v8615_v0 = vadd.f32 %v1487_v27, %v1328_v41  ;;  %v1331_v19 = vadd.f32 %v6609_v42, %v8505_v38  ;;  %7117 = vmatprep.mubr.msk.f32.mxu0 %vm235_vm0, %v5886_v49  ;;  %7131 = vmatprep.subr.mxu1 %v5921_v54  ;;  %v5943_v43 = vld [vmem:[%s7303_s29 + $0x5c] sm:$0xff]  ;;  %v5915_v41 = vld [vmem:[%s7303_s29 + $0x6b] sm:$0xff]  ;;  %v5916_v27 = vld [vmem:[%s7303_s29 + $0x73] sm:$0xff] }
 0x12d   : > { %v6639_v57 = vpop.f32.mrf.mxu0  ;;  %7118 = vmatmul.mubr.msk.f32.gmra.mxu0 %vm235_vm0, %v5887_v6  ;;  %7132 = vmatpush3.msra.mxu1 %v5921_v54  ;;  %v1303_v55 = vpop.f32.mrf.mxu1 }
 0x12e   : > { %v8625_v61 = vadd.f32 %v6639_v57, %v1331_v19  ;;  %v1330_v38 = vadd.f32 %v1303_v55, %v8515_v53  ;;  %7161 = vmatprep.subr.mxu0 %v5951_v14  ;;  %7090 = vmatprep.mubr.msk.f32.mxu1 %vm235_vm0, %v5858_v45  ;;  %v5945_v45 = vld [vmem:[%s7303_s29 + $0x6c] sm:$0xff] }
 0x12f   : > { %v1497_v18 = vpop.f32.mrf.mxu0  ;;  %7162 = vmatpush3.msra.mxu0 %v5951_v14  ;;  %v6612_v39 = vpop.f32.mrf.mxu1  ;;  %7091 = vmatmul.mubr.msk.f32.gmra.mxu1 %vm235_vm0, %v5859_v32 }
 0x130   : > { %v8635_v7 = vadd.f32 %v1497_v18, %v1330_v38  ;;  %v1333_v53 = vadd.f32 %v6612_v39, %v8525_v31  ;;  %7120 = vmatprep.mubr.msk.f32.mxu0 %vm235_vm0, %v5888_v60  ;;  %7133 = vmatprep.subr.mxu1 %v5920_v35  ;;  %v5939_v31 = vld [vmem:[%s7303_s29 + $0x3c] sm:$0xff] }
 0x131   : > { %v6642_v16 = vpop.f32.mrf.mxu0  ;;  %7121 = vmatmul.mubr.msk.f32.gmra.mxu0 %vm235_vm0, %v5889_v12  ;;  %7134 = vmatpush3.msra.mxu1 %v5920_v35  ;;  %v1313_v5 = vpop.f32.mrf.mxu1  ;;  %v5917_v60 = vld [vmem:[%s7303_s29 + $0x7b] sm:$0xff]  ;;  %v5918_v38 = vld [vmem:[%s7303_s29 + $0x83] sm:$0xff] }
 0x132   : > { %v8643_v46 = vadd.f32 %v6642_v16, %v1333_v53  ;;  %v1332_v63 = vadd.f32 %v1313_v5, %v8535_v2  ;;  %7163 = vmatprep.subr.mxu0 %v5950_v48  ;;  %7135 = vmatprep.mubr.msk.f32.mxu1 %vm235_vm0, %v5908_v8  ;;  %v5911_v2 = vld [vmem:[%s7303_s29 + $0x4b] sm:$0xff] }
 0x133   : > { %v1507_v25 = vpop.f32.mrf.mxu0  ;;  %7164 = vmatpush3.msra.mxu0 %v5950_v48  ;;  %v6657_v23 = vpop.f32.mrf.mxu1  ;;  %7136 = vmatmul.mubr.msk.f32.vlgmr.msra.gmra.mxu1 %vm235_vm0, %v5909_v13  ;;  %v5919_v13 = vld [vmem:[%s7303_s29 + $0x8b] sm:$0xff] }
 0x134   : > { %v8650_v36 = vadd.f32 %v1507_v25, %v1332_v63  ;;  %v1711_v56 = vadd.f32 %v6657_v23, %v8545_v26  ;;  %7165 = vmatprep.mubr.msk.f32.mxu0 %vm235_vm0, %v5938_v21  ;;  %7138 = vmatprep.mubr.msk.f32.mxu1 %vm235_vm0, %v5910_v3  ;;  %v5949_v3 = vld [vmem:[%s7303_s29 + $0x8c] sm:$0xff] }
 0x135   : > { %v6687_v58 = vpop.f32.mrf.mxu0  ;;  %7166 = vmatmul.mubr.msk.f32.vlgmr.msra.gmra.mxu0 %vm235_vm0, %v5939_v31  ;;  %v1651_v17 = vpop.f32.mrf.mxu1 }
 0x136   : > { %v8658_v40 = vadd.f32 %v6687_v58, %v1711_v56  ;;  %v1710_v11 = vadd.f32 %v1651_v17, %v8555_v10  ;;  %7168 = vmatprep.mubr.msk.f32.mxu0 %vm235_vm0, %v5940_v24 }
 0x137   : > { %v1845_v26 = vpop.f32.mrf.mxu0  ;;  %v6660_v50 = vpop.f32.mrf.mxu1  ;;  %7139 = vmatmul.mubr.msk.f32.gmra.mxu1 %vm235_vm0, %v5911_v2 }
 0x138   : > { %v8665_v44 = vadd.f32 %v1845_v26, %v1710_v11  ;;  %v1713_v30 = vadd.f32 %v6660_v50, %v8565_v28  ;;  %7141 = vmatprep.mubr.msk.f32.mxu1 %vm235_vm0, %v5912_v33 }
 0x139   : > { %v6690_v62 = vpop.f32.mrf.mxu0  ;;  %7169 = vmatmul.mubr.msk.f32.gmra.mxu0 %vm235_vm0, %v5941_v15  ;;  %v1661_v10 = vpop.f32.mrf.mxu1 }
 0x13a   : > { %v8672_v51 = vadd.f32 %v6690_v62, %v1713_v30  ;;  %v1712_v52 = vadd.f32 %v1661_v10, %v8575_v47  ;;  %7171 = vmatprep.mubr.msk.f32.mxu0 %vm235_vm0, %v5942_v34 }
 0x13b   : > { %v1855_v4 = vpop.f32.mrf.mxu0  ;;  %v6663_v28 = vpop.f32.mrf.mxu1  ;;  %7142 = vmatmul.mubr.msk.f32.gmra.mxu1 %vm235_vm0, %v5913_v59 }
 0x13c   : > { %v8679_v49 = vadd.f32 %v1855_v4, %v1712_v52  ;;  %v1715_v54 = vadd.f32 %v6663_v28, %v8585_v20  ;;  %7144 = vmatprep.mubr.msk.f32.mxu1 %vm235_vm0, %v5914_v9  ;;  %v5946_v20 = vld [vmem:[%s7303_s29 + $0x74] sm:$0xff] }
 0x13d   : > { %v6693_v6 = vpop.f32.mrf.mxu0  ;;  %7172 = vmatmul.mubr.msk.f32.gmra.mxu0 %vm235_vm0, %v5943_v43  ;;  %v1671_v47 = vpop.f32.mrf.mxu1 }
 0x13e   : > { %v8686_v42 = vadd.f32 %v6693_v6, %v1715_v54  ;;  %v1714_v14 = vadd.f32 %v1671_v47, %v8595_v37  ;;  %7174 = vmatprep.mubr.msk.f32.mxu0 %vm235_vm0, %v5944_v29 }
 0x13f   : > { %v1865_v19 = vpop.f32.mrf.mxu0  ;;  %v6666_v32 = vpop.f32.mrf.mxu1  ;;  %7145 = vmatmul.mubr.msk.f32.gmra.mxu1 %vm235_vm0, %v5915_v41 }
 0x140   : > { %v1908_v57 = vadd.f32 %v1865_v19, %v1714_v14  ;;  %v1717_v55 = vadd.f32 %v6666_v32, %v8605_v22  ;;  %7147 = vmatprep.mubr.msk.f32.mxu1 %vm235_vm0, %v5916_v27  ;;  %v5948_v22 = vld [vmem:[%s7303_s29 + $0x84] sm:$0xff] }
 0x141   : > { %v6696_v35 = vpop.f32.mrf.mxu0  ;;  %7175 = vmatmul.mubr.msk.f32.gmra.mxu0 %vm235_vm0, %v5945_v45  ;;  %v1681_v37 = vpop.f32.mrf.mxu1 }
 0x142   : > { %v1911_v12 = vadd.f32 %v6696_v35, %v1717_v55  ;;  %v1716_v18 = vadd.f32 %v1681_v37, %v8615_v0  ;;  %7177 = vmatprep.mubr.msk.f32.mxu0 %vm235_vm0, %v5946_v20 }
 0x143   : > { %v1875_v39 = vpop.f32.mrf.mxu0  ;;  %v6669_v48 = vpop.f32.mrf.mxu1  ;;  %7148 = vmatmul.mubr.msk.f32.gmra.mxu1 %vm235_vm0, %v5917_v60 }
 0x144   : > { %v1910_v8 = vadd.f32 %v1875_v39, %v1716_v18  ;;  %v1719_v53 = vadd.f32 %v6669_v48, %v8625_v61  ;;  %7150 = vmatprep.mubr.msk.f32.mxu1 %vm235_vm0, %v5918_v38 }
 0x145   : > { %v6699_v16 = vpop.f32.mrf.mxu0  ;;  %7178 = vmatmul.mubr.msk.f32.gmra.mxu0 %vm235_vm0, %v8277_v1  ;;  %v1691_v5 = vpop.f32.mrf.mxu1 }
 0x146   : > { %v1913_v0 = vadd.f32 %v6699_v16, %v1719_v53  ;;  %v1718_v21 = vadd.f32 %v1691_v5, %v8635_v7  ;;  %7180 = vmatprep.mubr.msk.f32.mxu0 %vm235_vm0, %v5948_v22 }
 0x147   : > { %v1885_v63 = vpop.f32.mrf.mxu0  ;;  %v6672_v31 = vpop.f32.mrf.mxu1  ;;  %7151 = vmatmul.mubr.msk.f32.gmra.mxu1 %vm235_vm0, %v5919_v13 }
 0x148   : > { %v1912_v25 = vadd.f32 %v1885_v63, %v1718_v21  ;;  %v1721_v61 = vadd.f32 %v6672_v31, %v8643_v46 }
 0x149   : > { %v6702_v23 = vpop.f32.mrf.mxu0  ;;  %7181 = vmatmul.mubr.msk.f32.gmra.mxu0 %vm235_vm0, %v5949_v3  ;;  %v1701_v24 = vpop.f32.mrf.mxu1 }
 0x14a   : > { %v1915_v56 = vadd.f32 %v6702_v23, %v1721_v61  ;;  %v1720_v1 = vadd.f32 %v1701_v24, %v8650_v36 }
 0x14b   : > { %v1895_v2 = vpop.f32.mrf.mxu0  ;;  %v6717_v58 = vpop.f32.mrf.mxu1 }
 0x14c   : > { %v1914_v7 = vadd.f32 %v1895_v2, %v1720_v1  ;;  %v2099_v17 = vadd.f32 %v6717_v58, %v8658_v40 }
 0x14d   : > { %v6747_v33 = vpop.f32.mrf.mxu0  ;;  %v2039_v11 = vpop.f32.mrf.mxu1 }
 0x14e   : > { %v2293_v15 = vadd.f32 %v6747_v33, %v2099_v17  ;;  %v2098_v26 = vadd.f32 %v2039_v11, %v8665_v44 }
 0x14f   : > { %v2233_v50 = vpop.f32.mrf.mxu0  ;;  %v6720_v34 = vpop.f32.mrf.mxu1 }
 0x150   : > { %v2292_v46 = vadd.f32 %v2233_v50, %v2098_v26  ;;  %v2101_v30 = vadd.f32 %v6720_v34, %v8672_v51 }
 0x151   : > { %v6750_v59 = vpop.f32.mrf.mxu0  ;;  %v2049_v62 = vpop.f32.mrf.mxu1 }
 0x152   : > { %v2295_v10 = vadd.f32 %v6750_v59, %v2101_v30  ;;  %v2100_v36 = vadd.f32 %v2049_v62, %v8679_v49 }
 0x153   : > { %v2243_v9 = vpop.f32.mrf.mxu0  ;;  %v6723_v52 = vpop.f32.mrf.mxu1 }
 0x154   : > { %v2294_v43 = vadd.f32 %v2243_v9, %v2100_v36  ;;  %v2103_v40 = vadd.f32 %v6723_v52, %v8686_v42 }
 0x155   : > { %v6753_v4 = vpop.f32.mrf.mxu0  ;;  %v2059_v28 = vpop.f32.mrf.mxu1 }
 0x156   : > { %v2297_v29 = vadd.f32 %v6753_v4, %v2103_v40  ;;  %v2102_v54 = vadd.f32 %v2059_v28, %v1908_v57 }
 0x157   : > { %v2253_v44 = vpop.f32.mrf.mxu0  ;;  %v6726_v41 = vpop.f32.mrf.mxu1 }
 0x158   : > { %v2296_v6 = vadd.f32 %v2253_v44, %v2102_v54  ;;  %v2105_v47 = vadd.f32 %v6726_v41, %v1911_v12 }
 0x159   : > { %v6756_v27 = vpop.f32.mrf.mxu0  ;;  %v2069_v51 = vpop.f32.mrf.mxu1 }
 0x15a   : > { %v2299_v14 = vadd.f32 %v6756_v27, %v2105_v47  ;;  %v2104_v45 = vadd.f32 %v2069_v51, %v1910_v8 }
 0x15b   : > { %v2263_v19 = vpop.f32.mrf.mxu0  ;;  %v6729_v32 = vpop.f32.mrf.mxu1 }
 0x15c   : > { %v2298_v49 = vadd.f32 %v2263_v19, %v2104_v45  ;;  %v2107_v20 = vadd.f32 %v6729_v32, %v1913_v0 }
 0x15d   : > { %v6759_v55 = vpop.f32.mrf.mxu0  ;;  %v2079_v60 = vpop.f32.mrf.mxu1 }
 0x15e   : > { %v2301_v35 = vadd.f32 %v6759_v55, %v2107_v20  ;;  %v2106_v42 = vadd.f32 %v2079_v60, %v1912_v25 }
 0x15f   : > { %v2273_v37 = vpop.f32.mrf.mxu0  ;;  %v6732_v38 = vpop.f32.mrf.mxu1 }
 0x160   : > { %v2300_v18 = vadd.f32 %v2273_v37, %v2106_v42  ;;  %v2109_v57 = vadd.f32 %v6732_v38, %v1915_v56 }
 0x161   : > { %v6762_v39 = vpop.f32.mrf.mxu0  ;;  %v2089_v48 = vpop.f32.mrf.mxu1 }
 0x162   : > { %v2303_v22 = vadd.f32 %v6762_v39, %v2109_v57  ;;  %v2108_v12 = vadd.f32 %v2089_v48, %v1914_v7 }
 0x163   : > { %v2283_v53 = vpop.f32.mrf.mxu0  ;;  %v6777_v13 = vpop.f32.mrf.mxu1 }
 0x164   : > { %v2302_v16 = vadd.f32 %v2283_v53, %v2108_v12  ;;  %v2487_v8 = vadd.f32 %v6777_v13, %v2293_v15 }
 0x165   : > { %v6807_v5 = vpop.f32.mrf.mxu0  ;;  %v2427_v21 = vpop.f32.mrf.mxu1 }
 0x166   : > { %v2681_v3 = vadd.f32 %v6807_v5, %v2487_v8  ;;  %v2486_v0 = vadd.f32 %v2427_v21, %v2292_v46 }
 0x167   : > { %v2621_v63 = vpop.f32.mrf.mxu0  ;;  %v6780_v31 = vpop.f32.mrf.mxu1 }
 0x168   : > { %v2680_v61 = vadd.f32 %v2621_v63, %v2486_v0  ;;  %v2489_v25 = vadd.f32 %v6780_v31, %v2295_v10 }
 0x169   : > { %v6810_v23 = vpop.f32.mrf.mxu0  ;;  %v2437_v24 = vpop.f32.mrf.mxu1 }
 0x16a   : > { %v2683_v1 = vadd.f32 %v6810_v23, %v2489_v25  ;;  %v2488_v56 = vadd.f32 %v2437_v24, %v2294_v43 }
 0x16b   : > { %v2631_v2 = vpop.f32.mrf.mxu0  ;;  %v6783_v58 = vpop.f32.mrf.mxu1 }
 0x16c   : > { %v2682_v17 = vadd.f32 %v2631_v2, %v2488_v56  ;;  %v2491_v7 = vadd.f32 %v6783_v58, %v2297_v29 }
 0x16d   : > { %v6813_v33 = vpop.f32.mrf.mxu0  ;;  %v2447_v11 = vpop.f32.mrf.mxu1 }
 0x16e   : > { %v2685_v26 = vadd.f32 %v6813_v33, %v2491_v7  ;;  %v2490_v15 = vadd.f32 %v2447_v11, %v2296_v6 }
 0x16f   : > { %v2641_v50 = vpop.f32.mrf.mxu0  ;;  %v6786_v34 = vpop.f32.mrf.mxu1 }
 0x170   : > { %v2684_v30 = vadd.f32 %v2641_v50, %v2490_v15  ;;  %v2493_v46 = vadd.f32 %v6786_v34, %v2299_v14 }
 0x171   : > { %v6816_v59 = vpop.f32.mrf.mxu0  ;;  %v2457_v62 = vpop.f32.mrf.mxu1 }
 0x172   : > { %v2687_v36 = vadd.f32 %v6816_v59, %v2493_v46  ;;  %v2492_v10 = vadd.f32 %v2457_v62, %v2298_v49 }
 0x173   : > { %v2651_v9 = vpop.f32.mrf.mxu0  ;;  %v6789_v52 = vpop.f32.mrf.mxu1 }
 0x174   : > { %v2686_v40 = vadd.f32 %v2651_v9, %v2492_v10  ;;  %v2495_v43 = vadd.f32 %v6789_v52, %v2301_v35 }
 0x175   : > { %v6819_v4 = vpop.f32.mrf.mxu0  ;;  %v2467_v28 = vpop.f32.mrf.mxu1 }
 0x176   : > { %v2689_v54 = vadd.f32 %v6819_v4, %v2495_v43  ;;  %v2494_v29 = vadd.f32 %v2467_v28, %v2300_v18 }
 0x177   : > { %v2661_v44 = vpop.f32.mrf.mxu0  ;;  %v6792_v41 = vpop.f32.mrf.mxu1 }
 0x178   : > { %v2688_v47 = vadd.f32 %v2661_v44, %v2494_v29  ;;  %v2497_v6 = vadd.f32 %v6792_v41, %v2303_v22 }
 0x179   : > { %v6822_v27 = vpop.f32.mrf.mxu0  ;;  %v2477_v51 = vpop.f32.mrf.mxu1 }
 0x17a   : > { %v2691_v45 = vadd.f32 %v6822_v27, %v2497_v6  ;;  %v2496_v14 = vadd.f32 %v2477_v51, %v2302_v16 }
 0x17b   : > { %v2671_v19 = vpop.f32.mrf.mxu0  ;;  %v6837_v32 = vpop.f32.mrf.mxu1 }
 0x17c   : > { %v2690_v20 = vadd.f32 %v2671_v19, %v2496_v14  ;;  %v2875_v49 = vadd.f32 %v6837_v32, %v2681_v3 }
 0x17d   : > { %v6867_v55 = vpop.f32.mrf.mxu0  ;;  %v2815_v60 = vpop.f32.mrf.mxu1 }
 0x17e   : > { %v3069_v42 = vadd.f32 %v6867_v55, %v2875_v49  ;;  %v2874_v35 = vadd.f32 %v2815_v60, %v2680_v61 }
 0x17f   : > { %v3009_v37 = vpop.f32.mrf.mxu0  ;;  %v6840_v38 = vpop.f32.mrf.mxu1 }
 0x180   : > { %v3068_v57 = vadd.f32 %v3009_v37, %v2874_v35  ;;  %v2877_v18 = vadd.f32 %v6840_v38, %v2683_v1 }
 0x181   : > { %v6870_v39 = vpop.f32.mrf.mxu0  ;;  %v2825_v48 = vpop.f32.mrf.mxu1 }
 0x182   : > { %v3071_v12 = vadd.f32 %v6870_v39, %v2877_v18  ;;  %v2876_v22 = vadd.f32 %v2825_v48, %v2682_v17 }
 0x183   : > { %v3019_v53 = vpop.f32.mrf.mxu0  ;;  %v6843_v13 = vpop.f32.mrf.mxu1 }
 0x184   : > { %v3070_v8 = vadd.f32 %v3019_v53, %v2876_v22  ;;  %v2879_v16 = vadd.f32 %v6843_v13, %v2685_v26 }
 0x185   : > { %v6873_v5 = vpop.f32.mrf.mxu0  ;;  %v2835_v21 = vpop.f32.mrf.mxu1 }
 0x186   : > { %v3073_v0 = vadd.f32 %v6873_v5, %v2879_v16  ;;  %v2878_v3 = vadd.f32 %v2835_v21, %v2684_v30 }
 0x187   : > { %v3029_v63 = vpop.f32.mrf.mxu0  ;;  %v6846_v31 = vpop.f32.mrf.mxu1 }
 0x188   : > { %v3072_v25 = vadd.f32 %v3029_v63, %v2878_v3  ;;  %v2881_v61 = vadd.f32 %v6846_v31, %v2687_v36 }
 0x189   : > { %v6876_v23 = vpop.f32.mrf.mxu0  ;;  %v2845_v24 = vpop.f32.mrf.mxu1 }
 0x18a   : > { %v3075_v56 = vadd.f32 %v6876_v23, %v2881_v61  ;;  %v2880_v1 = vadd.f32 %v2845_v24, %v2686_v40 }
 0x18b   : > { %v3039_v2 = vpop.f32.mrf.mxu0  ;;  %v6849_v58 = vpop.f32.mrf.mxu1 }
 0x18c   : > { %v3074_v7 = vadd.f32 %v3039_v2, %v2880_v1  ;;  %v2883_v17 = vadd.f32 %v6849_v58, %v2689_v54 }
 0x18d   : > { %v6879_v33 = vpop.f32.mrf.mxu0  ;;  %v2855_v11 = vpop.f32.mrf.mxu1 }
 0x18e   : > { %v3077_v15 = vadd.f32 %v6879_v33, %v2883_v17  ;;  %v2882_v26 = vadd.f32 %v2855_v11, %v2688_v47 }
 0x18f   : > { %v3049_v50 = vpop.f32.mrf.mxu0  ;;  %v6852_v34 = vpop.f32.mrf.mxu1 }
 0x190   : > { %v3076_v46 = vadd.f32 %v3049_v50, %v2882_v26  ;;  %v2885_v30 = vadd.f32 %v6852_v34, %v2691_v45 }
 0x191   : > { %v6882_v59 = vpop.f32.mrf.mxu0  ;;  %v2865_v62 = vpop.f32.mrf.mxu1 }
 0x192   : > { %v3079_v10 = vadd.f32 %v6882_v59, %v2885_v30  ;;  %v2884_v36 = vadd.f32 %v2865_v62, %v2690_v20 }
 0x193   : > { %v3059_v9 = vpop.f32.mrf.mxu0  ;;  %v6897_v52 = vpop.f32.mrf.mxu1 }
 0x194   : > { %v3078_v43 = vadd.f32 %v3059_v9, %v2884_v36  ;;  %v3263_v40 = vadd.f32 %v6897_v52, %v3069_v42 }
 0x195   : > { %v6927_v4 = vpop.f32.mrf.mxu0  ;;  %v3203_v28 = vpop.f32.mrf.mxu1 }
 0x196   : > { %v8719_v29 = vadd.f32 %v6927_v4, %v3263_v40  ;;  %v3262_v54 = vadd.f32 %v3203_v28, %v3068_v57 }
 0x197   : > { %v3397_v44 = vpop.f32.mrf.mxu0  ;;  %v6900_v41 = vpop.f32.mrf.mxu1 }
 0x198   : > { %v8721_v47 = vadd.f32 %v3397_v44, %v3262_v54  ;;  %v3265_v6 = vadd.f32 %v6900_v41, %v3071_v12 }
 0x199   : > { %v6930_v27 = vpop.f32.mrf.mxu0  ;;  %v3213_v51 = vpop.f32.mrf.mxu1 }
 0x19a   : > { %v8723_v45 = vadd.f32 %v6930_v27, %v3265_v6  ;;  %v3264_v14 = vadd.f32 %v3213_v51, %v3070_v8 }
 0x19b   : > { %v3407_v19 = vpop.f32.mrf.mxu0  ;;  %v6903_v32 = vpop.f32.mrf.mxu1 }
 0x19c   : > { %v8725_v20 = vadd.f32 %v3407_v19, %v3264_v14  ;;  %v3267_v49 = vadd.f32 %v6903_v32, %v3073_v0 }
 0x19d   : > { %v6933_v55 = vpop.f32.mrf.mxu0  ;;  %v3223_v60 = vpop.f32.mrf.mxu1 }
 0x19e   : > { %v8727_v42 = vadd.f32 %v6933_v55, %v3267_v49  ;;  %v3266_v35 = vadd.f32 %v3223_v60, %v3072_v25 }
 0x19f   : > { %v3417_v37 = vpop.f32.mrf.mxu0  ;;  %v6906_v38 = vpop.f32.mrf.mxu1 }
 0x1a0   : > { %v8729_v57 = vadd.f32 %v3417_v37, %v3266_v35  ;;  %v3269_v18 = vadd.f32 %v6906_v38, %v3075_v56 }
 0x1a1   : > { %v6936_v39 = vpop.f32.mrf.mxu0  ;;  %v3233_v48 = vpop.f32.mrf.mxu1 }
 0x1a2   : > { %v8731_v12 = vadd.f32 %v6936_v39, %v3269_v18  ;;  %v3268_v22 = vadd.f32 %v3233_v48, %v3074_v7 }
 0x1a3   : > { %v3427_v53 = vpop.f32.mrf.mxu0  ;;  %v6909_v13 = vpop.f32.mrf.mxu1 }
 0x1a4   : > { %v8733_v8 = vadd.f32 %v3427_v53, %v3268_v22  ;;  %v3271_v16 = vadd.f32 %v6909_v13, %v3077_v15 }
 0x1a5   : > { %v6939_v5 = vpop.f32.mrf.mxu0  ;;  %v3243_v21 = vpop.f32.mrf.mxu1 }
 0x1a6   : > { %v8735_v0 = vadd.f32 %v6939_v5, %v3271_v16  ;;  %v3270_v3 = vadd.f32 %v3243_v21, %v3076_v46 }
 0x1a7   : > { %v3437_v63 = vpop.f32.mrf.mxu0  ;;  %v6912_v31 = vpop.f32.mrf.mxu1 }
 0x1a8   : > { %v8737_v25 = vadd.f32 %v3437_v63, %v3270_v3  ;;  %v3273_v61 = vadd.f32 %v6912_v31, %v3079_v10 }
 0x1a9   : > { %v6942_v23 = vpop.f32.mrf.mxu0  ;;  %v3253_v24 = vpop.f32.mrf.mxu1 }
 0x1aa   : > { %v8739_v56 = vadd.f32 %v6942_v23, %v3273_v61  ;;  %v3272_v1 = vadd.f32 %v3253_v24, %v3078_v43 }
 0x1ab   : > { %v3447_v2 = vpop.f32.mrf.mxu0  ;;  %v6957_v58 = vpop.f32.mrf.mxu1 }
 0x1ac   : > { %v8741_v7 = vadd.f32 %v3447_v2, %v3272_v1 }
 0x1ad   : > { %v6987_v17 = vpop.f32.mrf.mxu0  ;;  %v3591_v33 = vpop.f32.mrf.mxu1 }
 0x1af   : > { %v3785_v11 = vpop.f32.mrf.mxu0  ;;  %v6960_v15 = vpop.f32.mrf.mxu1 }
 0x1b1   : > { %v8743_v26 = vpop.f32.mrf.mxu0  ;;  %v3601_v50 = vpop.f32.mrf.mxu1 }
 0x1b3   : > { %v8745_v34 = vpop.f32.mrf.mxu0  ;;  %v6963_v46 = vpop.f32.mrf.mxu1 }
 0x1b5   : > { %v8747_v30 = vpop.f32.mrf.mxu0  ;;  %v8749_v59 = vpop.f32.mrf.mxu1 }
 0x1b7   : > { %v8751_v62 = vpop.f32.mrf.mxu0  ;;  %v8753_v10 = vpop.f32.mrf.mxu1 }
 0x1b9   : > { %v8755_v36 = vpop.f32.mrf.mxu0  ;;  %v8757_v9 = vpop.f32.mrf.mxu1 }
 0x1bb   : > { %v8759_v52 = vpop.f32.mrf.mxu0  ;;  %v8761_v43 = vpop.f32.mrf.mxu1 }
 0x1bd   : > { %v8763_v40 = vpop.f32.mrf.mxu0  ;;  %v8765_v4 = vpop.f32.mrf.mxu1 }
 0x1bf   : > { %v8767_v28 = vpop.f32.mrf.mxu0  ;;  %v8769_v54 = vpop.f32.mrf.mxu1 }
 0x1c1   : > { %v8771_v44 = vpop.f32.mrf.mxu0  ;;  %v8773_v41 = vpop.f32.mrf.mxu1 }
 0x1c2   : > { %9007 = vst [vmem:[#allocation2_spill] sm:$0xff] %v8771_v44 }
 0x1c3   : > { %v8775_v6 = vpop.f32.mrf.mxu0  ;;  %v7017_v27 = vpop.f32.mrf.mxu1 }
 0x1c4   : > { %9008 = vst [vmem:[#allocation3_spill] sm:$0xff] %v8775_v6  ;;  %v3653_v6 = vadd.f32 %v6960_v15, %v8723_v45  ;;  %v3654_v45 = vadd.f32 %v8749_v59, %v8729_v57 }
 0x1c5   : > { %v7047_v51 = vpop.f32.mrf.mxu0  ;;  %v3979_v14 = vpop.f32.mrf.mxu1 }
 0x1c6   : > { %v3848_v59 = vadd.f32 %v8751_v62, %v3654_v45 }
 0x1c7   : > { %v4173_v19 = vpop.f32.mrf.mxu0  ;;  %v7020_v32 = vpop.f32.mrf.mxu1 }
 0x1c9   : > { %v8777_v49 = vpop.f32.mrf.mxu0  ;;  %v3989_v55 = vpop.f32.mrf.mxu1 }
 0x1cb   : > { %v8779_v60 = vpop.f32.mrf.mxu0  ;;  %v7023_v35 = vpop.f32.mrf.mxu1 }
 0x1cd   : > { %v8781_v37 = vpop.f32.mrf.mxu0  ;;  %v3999_v38 = vpop.f32.mrf.mxu1 }
 0x1ce   : > { %v4042_v62 = vadd.f32 %v3999_v38, %v3848_v59 }
 0x1cf   : > { %v8783_v18 = vpop.f32.mrf.mxu0  ;;  %v8785_v39 = vpop.f32.mrf.mxu1 }
 0x1d0   : > { %9009 = vst [vmem:[#allocation5_spill] sm:$0xff] %v8783_v18  ;;  %v3652_v18 = vadd.f32 %v3601_v50, %v8725_v20 }
 0x1d1   : > { %v8787_v48 = vpop.f32.mrf.mxu0  ;;  %v8789_v22 = vpop.f32.mrf.mxu1 }
 0x1d2   : > { %9010 = vst [vmem:[#allocation4_spill] sm:$0xff] %v8787_v48  ;;  %9011 = vst [vmem:[#allocation7_spill] sm:$0xff] %v8789_v22 }
 0x1d3   : > { %v8791_v53 = vpop.f32.mrf.mxu0  ;;  %v8793_v13 = vpop.f32.mrf.mxu1 }
 0x1d4   : > { %9012 = vst [vmem:[#allocation6_spill] sm:$0xff] %v8791_v53  ;;  %9013 = vst [vmem:[#allocation9_spill] sm:$0xff] %v8793_v13 }
 0x1d5   : > { %v8795_v16 = vpop.f32.mrf.mxu0  ;;  %v8797_v5 = vpop.f32.mrf.mxu1 }
 0x1d6   : > { %9014 = vst [vmem:[#allocation8_spill] sm:$0xff] %v8795_v16  ;;  %9015 = vst [vmem:[#allocation11_spill] sm:$0xff] %v8797_v5  ;;  %v3651_v5 = vadd.f32 %v6957_v58, %v8719_v29  ;;  %v3655_v58 = vadd.f32 %v6963_v46, %v8727_v42  ;;  %v3657_v46 = vadd.f32 %v8753_v10, %v8731_v12 }
 0x1d7   : > { %v8799_v21 = vpop.f32.mrf.mxu0  ;;  %v8801_v3 = vpop.f32.mrf.mxu1  ;;  %v3659_v12 = vadd.f32 %v8761_v43, %v8735_v0 }
 0x1d8   : > { %9016 = vst [vmem:[#allocation10_spill] sm:$0xff] %v8799_v21  ;;  %9017 = vst [vmem:[#allocation13_spill] sm:$0xff] %v8801_v3  ;;  %v3650_v3 = vadd.f32 %v3591_v33, %v8721_v47  ;;  %v3847_v33 = vadd.f32 %v8743_v26, %v3653_v6  ;;  %v3849_v42 = vadd.f32 %v8747_v30, %v3655_v58 }
 0x1d9   : > { %v8803_v63 = vpop.f32.mrf.mxu0  ;;  %v8805_v31 = vpop.f32.mrf.mxu1 }
 0x1da   : > { %9018 = vst [vmem:[#allocation12_spill] sm:$0xff] %v8803_v63  ;;  %9019 = vst [vmem:[#allocation14_spill] sm:$0xff] %v8805_v31  ;;  %v4041_v50 = vadd.f32 %v7020_v32, %v3847_v33  ;;  %v9029_v33 = vld [vmem:[#allocation4_spill] sm:$0xff] }
 0x1db   : > { %v8807_v61 = vpop.f32.mrf.mxu0  ;;  %v7077_v23 = vpop.f32.mrf.mxu1 }
 0x1dc   : > { %9020 = vst [vmem:[#allocation15_spill] sm:$0xff] %v8807_v61  ;;  %v3845_v61 = vadd.f32 %v6987_v17, %v3651_v5  ;;  %v4235_v30 = vadd.f32 %v8777_v49, %v4041_v50 }
 0x1dd   : > { %v7107_v24 = vpop.f32.mrf.mxu0  ;;  %v4367_v1 = vpop.f32.mrf.mxu1 }
 0x1de   : > { %v4039_v29 = vadd.f32 %v7017_v27, %v3845_v61  ;;  %v9025_v61 = vld [vmem:[#allocation7_spill] sm:$0xff] }
 0x1df   : > { %v4561_v2 = vpop.f32.mrf.mxu0  ;;  %v7080_v53 = vpop.f32.mrf.mxu1 }
 0x1e0   : > { %v4233_v20 = vadd.f32 %v7047_v51, %v4039_v29  ;;  %v4429_v43 = vadd.f32 %v7080_v53, %v4235_v30 }
 0x1e1   : > { %v8809_v13 = vpop.f32.mrf.mxu0  ;;  %v4377_v16 = vpop.f32.mrf.mxu1 }
 0x1e2   : > { %9021 = vst [vmem:[#allocation16_spill] sm:$0xff] %v8809_v13  ;;  %v3844_v13 = vadd.f32 %v3785_v11, %v3650_v3  ;;  %v3846_v11 = vadd.f32 %v8745_v34, %v3652_v18  ;;  %v4427_v57 = vadd.f32 %v7077_v23, %v4233_v20  ;;  %v4043_v34 = vadd.f32 %v7023_v35, %v3849_v42 }
 0x1e3   : > { %v8812_v48 = vpop.f32.mrf.mxu0  ;;  %v7083_v21 = vpop.f32.mrf.mxu1 }
 0x1e4   : > { %9022 = vst [vmem:[#allocation17_spill] sm:$0xff] %v8812_v48  ;;  %v4621_v0 = vadd.f32 %v7107_v24, %v4427_v57  ;;  %v9026_v24 = vld [vmem:[#allocation2_spill] sm:$0xff] }
 0x1e5   : > { %v8815_v63 = vpop.f32.mrf.mxu0  ;;  %v8817_v31 = vpop.f32.mrf.mxu1 }
 0x1e6   : > { %9023 = vst [vmem:[#allocation18_spill] sm:$0xff] %v8815_v63  ;;  %v4038_v63 = vadd.f32 %v3979_v14, %v3844_v13  ;;  %v4040_v14 = vadd.f32 %v3989_v55, %v3846_v11  ;;  %v3656_v13 = vadd.f32 %v8757_v9, %v8733_v8  ;;  %v3658_v55 = vadd.f32 %v8765_v4, %v8737_v25  ;;  %v9030_v11 = vld [vmem:[#allocation9_spill] sm:$0xff] }
 0x1e7   : > { %v8820_v44 = vpop.f32.mrf.mxu0  ;;  %v8822_v22 = vpop.f32.mrf.mxu1  ;;  %v3661_v9 = vadd.f32 %v8769_v54, %v8739_v56  ;;  %v4237_v25 = vadd.f32 %v8781_v37, %v4043_v34  ;;  %v3853_v56 = vadd.f32 %v8763_v40, %v3659_v12  ;;  %v9033_v12 = vld [vmem:[#allocation11_spill] sm:$0xff] }
 0x1e8   : > { %v4232_v6 = vadd.f32 %v4173_v19, %v4038_v63  ;;  %v3851_v19 = vadd.f32 %v8755_v36, %v3657_v46  ;;  %v4234_v35 = vadd.f32 %v8779_v60, %v4040_v14  ;;  %v3850_v49 = vadd.f32 %v8759_v52, %v3656_v13  ;;  %v9024_v52 = vld [vmem:[#allocation5_spill] sm:$0xff]  ;;  %v9032_v13 = vld [vmem:[#allocation6_spill] sm:$0xff] }
 0x1e9   : > { %v8826_v48 = vpop.f32.mrf.mxu0  ;;  %v8828_v47 = vpop.f32.mrf.mxu1  ;;  %v3660_v36 = vadd.f32 %v8773_v41, %v8741_v7  ;;  %v3852_v53 = vadd.f32 %v8767_v28, %v3658_v55  ;;  %v4236_v63 = vadd.f32 %v9024_v52, %v4042_v62  ;;  %v4431_v41 = vadd.f32 %v7083_v21, %v4237_v25  ;;  %v9027_v40 = vld [vmem:[#allocation16_spill] sm:$0xff]  ;;  %v9028_v28 = vld [vmem:[#allocation3_spill] sm:$0xff]  ;;  %v9036_v25 = vld [vmem:[#allocation13_spill] sm:$0xff] }
 0x1ea   : > { %v4426_v10 = vadd.f32 %v4367_v1, %v4232_v6  ;;  %v4045_v4 = vadd.f32 %v8785_v39, %v3851_v19  ;;  %v4428_v60 = vadd.f32 %v4377_v16, %v4234_v35  ;;  %v4044_v7 = vadd.f32 %v9025_v61, %v3850_v49  ;;  %v8879_v39 = vld [vmem:[%s8963_s2] ss:$0 sm:$0xff]  ;;  %v9035_v49 = vld [vmem:[#allocation8_spill] sm:$0xff] }
 0x1eb   : > { %v8833_v17 = vpop.f32.mrf.mxu0  ;;  %v8835_v15 = vpop.f32.mrf.mxu1  ;;  %v3855_v1 = vadd.f32 %v9026_v24, %v3661_v9  ;;  %v3854_v58 = vadd.f32 %v9028_v28, %v3660_v36  ;;  %v4047_v21 = vadd.f32 %v9030_v11, %v3853_v56  ;;  %v4430_v20 = vadd.f32 %v8817_v31, %v4236_v63  ;;  %v9031_v46 = vld [vmem:[#allocation17_spill] sm:$0xff]  ;;  %v9037_v63 = vld [vmem:[#allocation10_spill] sm:$0xff] }
 0x1ec   : > { %v4620_v54 = vadd.f32 %v4561_v2, %v4426_v10  ;;  %v4623_v2 = vadd.f32 %v9027_v40, %v4429_v43  ;;  %v4239_v45 = vadd.f32 %v9029_v33, %v4045_v4  ;;  %v4622_v6 = vadd.f32 %v9031_v46, %v4428_v60 }
 0x1ed   : > { %v8841_v27 = vpop.f32.mrf.mxu0  ;;  %v8843_v26 = vpop.f32.mrf.mxu1  ;;  %v4238_v34 = vadd.f32 %v9032_v13, %v4044_v7  ;;  %v4046_v30 = vadd.f32 %v9033_v12, %v3852_v53  ;;  %v9034_v10 = vld [vmem:[#allocation18_spill] sm:$0xff]  ;;  %v4241_v36 = vadd.f32 %v9035_v49, %v4047_v21  ;;  %v4049_v4 = vadd.f32 %v9036_v25, %v3855_v1 }
 0x1ee   : > { %v4625_v19 = vadd.f32 %v9034_v10, %v4431_v41  ;;  %v4433_v55 = vadd.f32 %v8822_v22, %v4239_v45  ;;  %v4624_v22 = vadd.f32 %v8820_v44, %v4430_v20  ;;  %v9038_v7 = vld [vmem:[#allocation14_spill] sm:$0xff]  ;;  %v9040_v20 = vld [vmem:[#allocation15_spill] sm:$0xff] }
 0x1ef   : > { %v8848_v51 = vpop.f32.mrf.mxu0  ;;  %v8850_v32 = vpop.f32.mrf.mxu1  ;;  %v4240_v61 = vadd.f32 %v9037_v63, %v4046_v30  ;;  %v4048_v41 = vadd.f32 %v9038_v7, %v3854_v58  ;;  %v4435_v44 = vadd.f32 %v8835_v15, %v4241_v36 }
 0x1f1   : > { %v8858_v18 = vpop.f32.mrf.mxu0  ;;  %v8860_v8 = vpop.f32.mrf.mxu1  ;;  %v4434_v58 = vadd.f32 %v8843_v26, %v4240_v61 }
 0x1f3   : > { %v8870_v38 = vpop.f32.mrf.mxu0  ;;  %v7137_v5 = vpop.f32.mrf.mxu1  ;;  %v4628_v13 = vadd.f32 %v8848_v51, %v4434_v58 }
 0x1f4   : > { %v4815_v3 = vadd.f32 %v7137_v5, %v4621_v0  ;;  %v4432_v5 = vadd.f32 %v8828_v47, %v4238_v34 }
 0x1f5   : > { %v7167_v37 = vpop.f32.mrf.mxu0  ;;  %v4755_v23 = vpop.f32.mrf.mxu1 }
 0x1f6   : > { %v5009_v16 = vadd.f32 %v7167_v37, %v4815_v3  ;;  %v4814_v29 = vadd.f32 %v4755_v23, %v4620_v54  ;;  %v4627_v37 = vadd.f32 %v8826_v48, %v4433_v55  ;;  %v4626_v28 = vadd.f32 %v8833_v17, %v4432_v5 }
 0x1f7   : > { %v4949_v50 = vpop.f32.mrf.mxu0  ;;  %v7140_v42 = vpop.f32.mrf.mxu1 }
 0x1f8   : > { %v5028_v14 = vadd.f32 %v8879_v39, %v5009_v16  ;;  %v5008_v57 = vadd.f32 %v4949_v50, %v4814_v29  ;;  %v4817_v59 = vadd.f32 %v7140_v42, %v4623_v2  ;;  %v9039_v16 = vld [vmem:[#allocation12_spill] sm:$0xff]  ;;  %v4242_v50 = vadd.f32 %v9040_v20, %v4048_v41 }
 0x1f9   : > { %v7170_v31 = vpop.f32.mrf.mxu0  ;;  %v4765_v62 = vpop.f32.mrf.mxu1  ;;  %v4243_v29 = vadd.f32 %v9039_v16, %v4049_v4  ;;  %v4629_v42 = vadd.f32 %v8841_v27, %v4435_v44 }
 0x1fa   : > { %v5040_v9 = vmax.f32 %v5028_v14, 0.0  ;;  %v5027_v35 = vadd.f32 %v8879_v39, %v5008_v57  ;;  %v5011_v0 = vadd.f32 %v7170_v31, %v4817_v59  ;;  %v4816_v43 = vadd.f32 %v4765_v62, %v4622_v6 }
 0x1fb   : > { %v4959_v56 = vpop.f32.mrf.mxu0  ;;  %v7143_v54 = vpop.f32.mrf.mxu1  ;;  %v4437_v46 = vadd.f32 %v8850_v32, %v4243_v29  ;;  %v4436_v34 = vadd.f32 %v8860_v8, %v4242_v50 }
 0x1fc   : > { %5969 = vst.msk [vmem:[%s8897_s10 + $0x4] sm:$0xf0] %vm5054_vm1, %v5040_v9  ;;  %v5039_v60 = vmax.f32 %v5027_v35, 0.0  ;;  %v5030_v3 = vadd.f32 %v8879_v39, %v5011_v0  ;;  %v5010_v53 = vadd.f32 %v4959_v56, %v4816_v43  ;;  %v4819_v52 = vadd.f32 %v7143_v54, %v4625_v19 }
 0x1fd   : > { %v7173_v23 = vpop.f32.mrf.mxu0  ;;  %v4775_v47 = vpop.f32.mrf.mxu1  ;;  %v4631_v55 = vadd.f32 %v8858_v18, %v4437_v46  ;;  %v4630_v0 = vadd.f32 %v8870_v38, %v4436_v34 }
 0x1fe   : > { %5052 = vst.msk [vmem:[%s8897_s10] sm:$0xff] %vm5051_vm2, %v5039_v60  ;;  %v5042_v24 = vmax.f32 %v5030_v3, 0.0  ;;  %v5029_v1 = vadd.f32 %v8879_v39, %v5010_v53  ;;  %v5013_v40 = vadd.f32 %v7173_v23, %v4819_v52  ;;  %v4818_v2 = vadd.f32 %v4775_v47, %v4624_v22 }
 0x1ff   : > { %v4969_v48 = vpop.f32.mrf.mxu0  ;;  %v7146_v33 = vpop.f32.mrf.mxu1 }
 0x200   : > { %5971 = vst.msk [vmem:[%s8897_s10 + $0x10] sm:$0xff] %vm5051_vm2, %v5042_v24  ;;  %v5041_v15 = vmax.f32 %v5029_v1, 0.0  ;;  %v5032_v45 = vadd.f32 %v8879_v39, %v5013_v40  ;;  %v5012_v11 = vadd.f32 %v4969_v48, %v4818_v2  ;;  %v4821_v21 = vadd.f32 %v7146_v33, %v4627_v37 }
 0x201   : > { %v7176_v17 = vpop.f32.mrf.mxu0  ;;  %v4785_v6 = vpop.f32.mrf.mxu1 }
 0x202   : > { %5970 = vst.msk [vmem:[%s8897_s10 + $0xc] sm:$0xf] %vm5056_vm3, %v5041_v15  ;;  %v5044_v26 = vmax.f32 %v5032_v45, 0.0  ;;  %v5031_v14 = vadd.f32 %v8879_v39, %v5012_v11  ;;  %v5015_v57 = vadd.f32 %v7176_v17, %v4821_v21  ;;  %v4820_v59 = vadd.f32 %v4785_v6, %v4626_v28 }
 0x203   : > { %v4979_v12 = vpop.f32.mrf.mxu0  ;;  %v7149_v30 = vpop.f32.mrf.mxu1 }
 0x204   : > { %5973 = vst.msk [vmem:[%s8897_s10 + $0x1c] sm:$0xf] %vm5056_vm3, %v5044_v26  ;;  %v5043_v27 = vmax.f32 %v5031_v14, 0.0  ;;  %v5034_v32 = vadd.f32 %v8879_v39, %v5015_v57  ;;  %v5014_v10 = vadd.f32 %v4979_v12, %v4820_v59  ;;  %v4823_v19 = vadd.f32 %v7149_v30, %v4629_v42 }
 0x205   : > { %v7179_v31 = vpop.f32.mrf.mxu0  ;;  %v4795_v62 = vpop.f32.mrf.mxu1 }
 0x206   : > { %5972 = vst.msk [vmem:[%s8897_s10 + $0x14] sm:$0xf0] %vm5054_vm1, %v5043_v27  ;;  %v5046_v51 = vmax.f32 %v5034_v32, 0.0  ;;  %v5033_v8 = vadd.f32 %v8879_v39, %v5014_v10  ;;  %v5017_v9 = vadd.f32 %v7179_v31, %v4823_v19  ;;  %v4822_v35 = vadd.f32 %v4795_v62, %v4628_v13 }
 0x207   : > { %v4989_v43 = vpop.f32.mrf.mxu0  ;;  %v7152_v49 = vpop.f32.mrf.mxu1 }
 0x208   : > { %5975 = vst.msk [vmem:[%s8897_s10 + $0x24] sm:$0xf0] %vm5054_vm1, %v5046_v51  ;;  %v5045_v36 = vmax.f32 %v5033_v8, 0.0  ;;  %v5036_v18 = vadd.f32 %v8879_v39, %v5017_v9  ;;  %v5016_v25 = vadd.f32 %v4989_v43, %v4822_v35  ;;  %v4825_v4 = vadd.f32 %v7152_v49, %v4631_v55 }
 0x209   : > { %v7182_v22 = vpop.f32.mrf.mxu0  ;;  %v4805_v5 = vpop.f32.mrf.mxu1 }
 0x20a   : > { %5974 = vst.msk [vmem:[%s8897_s10 + $0x20] sm:$0xff] %vm5051_vm2, %v5045_v36  ;;  %v5048_v56 = vmax.f32 %v5036_v18, 0.0  ;;  %v5035_v38 = vadd.f32 %v8879_v39, %v5016_v25  ;;  %v5019_v54 = vadd.f32 %v7182_v22, %v4825_v4  ;;  %v4824_v60 = vadd.f32 %v4805_v5, %v4630_v0 }
 0x20b   : > { %v4999_v3 = vpop.f32.mrf.mxu0 }
 0x20c   : > { %5977 = vst.msk [vmem:[%s8897_s10 + $0x30] sm:$0xff] %vm5051_vm2, %v5048_v56  ;;  %v5047_v53 = vmax.f32 %v5035_v38, 0.0  ;;  %v5038_v52 = vadd.f32 %v8879_v39, %v5019_v54  ;;  %v5018_v63 = vadd.f32 %v4999_v3, %v4824_v60 }
 0x20e   : > { %5976 = vst.msk [vmem:[%s8897_s10 + $0x2c] sm:$0xf] %vm5056_vm3, %v5047_v53  ;;  %v5050_v61 = vmax.f32 %v5038_v52, 0.0  ;;  %v5037_v7 = vadd.f32 %v8879_v39, %v5018_v63 }
 0x210   : > { %5979 = vst.msk [vmem:[%s8897_s10 + $0x3c] sm:$0xf] %vm5056_vm3, %v5050_v61  ;;  %v5049_v41 = vmax.f32 %v5037_v7, 0.0 }
 0x212   : > { %5978 = vst.msk [vmem:[%s8897_s10 + $0x34] sm:$0xf0] %vm5054_vm1, %v5049_v41 }
 0x213 PF: > { %s13_s14 = sadd.s32 1, %s7242_s14   ;;  %s9041_s12 = smov %s7238_s13 }
 0x214   : > { %p10_p5 = scmp.ge.s32.totalorder %s13_s14, 4   ;;  %s9042_s13 = smov %s9044_s15 }
 0x216   :  { %12 = sbr.rel (!%p10_p5) target bundleno = 2 (0x2), region = 118 }

</bundles_post_ra>
